<compile_context>
chip_gen: v6e
topology: v6e:2x2x1
jax: 0.10.0
libtpu: 0.0.40
codegen_flags: <defaults>
</compile_context>

<pallas_src>
import jax
import jax.numpy as jnp
from jax.experimental import pallas as pl
from jax.experimental.pallas import tpu as pltpu


# --------------------------- fused decoder kernel --------------------------- #

def _make_decoder_kernel(reshape, num_layers, n_chan):
    """Builds the fused kernel for a fixed (reshape, num_layers, n_chan)."""
    C, h0, w0 = reshape
    f32 = jnp.float32

    def kernel(*refs):
        z_ref = refs[0]
        w1, b1, w2, b2, w3, b3 = refs[1:7]
        conv_refs = refs[7:7 + 2 * num_layers]
        o_ref = refs[7 + 2 * num_layers]
        pad_refs = refs[8 + 2 * num_layers:]

        # Zero the per-layer padded activation scratches once per grid step;
        # interiors are fully overwritten below, borders stay zero.
        for pr in pad_refs:
            pr[...] = jnp.zeros(pr.shape, f32)

        # ------------------------- fused 3-layer MLP ------------------------ #
        h = z_ref[0]                                              # (1, latent)
        h = jnp.maximum(jnp.dot(h, w1[...], preferred_element_type=f32)
                        + b1[...], 0.0)
        h = jnp.maximum(jnp.dot(h, w2[...], preferred_element_type=f32)
                        + b2[...], 0.0)
        h = jnp.maximum(jnp.dot(h, w3[...], preferred_element_type=f32)
                        + b3[...], 0.0)                           # (1, C*h0*w0)

        # Scatter the MLP output straight into the layer-0 padded activation
        # (conv-internal layout); PyTorch view order is (C, h0, w0) row-major.
        pad0 = pad_refs[0]
        for c in range(C):
            for iy in range(h0):
                s = (c * h0 + iy) * w0
                pad0[c, 1 + iy:2 + iy, 1:1 + w0] = h[:, s:s + w0]

        # ------------- phase-decomposed ConvTranspose2d stack --------------- #
        for i in range(num_layers):
            Cin = C
            H = h0 * (2 ** i)
            W = w0 * (2 ** i)
            HW = H * W
            last = i == num_layers - 1
            Cout = n_chan if last else C
            pad_in = pad_refs[i]
            wp_ref, b_ref = conv_refs[2 * i], conv_refs[2 * i + 1]
            w_ph = [wp_ref[p] for p in range(4)]                  # (Cout, 4Cin)
            bias = b_ref[...]                                     # (Cout, 1)
            pad_out = None if last else pad_refs[i + 1]

            # Column-interleave selectors: S_even[k, 2k] = 1, S_odd[k, 2k+1]=1.
            # Works for all rows at once because doubling the flat (ty*W + ix)
            # index lands exactly at (ty*2W + 2*ix).
            rI = jax.lax.broadcasted_iota(jnp.int32, (HW, 2 * HW), 0)
            cI = jax.lax.broadcasted_iota(jnp.int32, (HW, 2 * HW), 1)
            s_even = (cI == 2 * rI).astype(f32)
            s_odd = (cI == 2 * rI + 1).astype(f32)

            for py in range(2):
                parts = []                                        # per px
                for px in range(2):
                    # Build the (4*Cin, H*W) patch for this phase entirely from
                    # VMEM ref loads + concatenates (no reshape, no HBM).
                    taps = []
                    for dy in range(2):
                        for dx in range(2):
                            rows = [pad_in[:, py + dy + ty, px + dx:px + dx + W]
                                    for ty in range(H)]           # (Cin, W) each
                            taps.append(jnp.concatenate(rows, axis=1))
                    patch = jnp.concatenate(taps, axis=0)         # (4Cin, H*W)
                    parts.append(jnp.dot(w_ph[2 * py + px], patch,
                                         preferred_element_type=f32))

                # Interleave even/odd output columns via selector matmuls,
                # add bias, apply the layer activation.
                full = (jnp.dot(parts[0], s_even, preferred_element_type=f32)
                        + jnp.dot(parts[1], s_odd, preferred_element_type=f32)
                        + bias)                                   # (Cout, 2*H*W)
                if last:
                    full = 1.0 / (1.0 + jnp.exp(-full))           # exact sigmoid
                else:
                    full = jnp.maximum(full, 0.0)

                # Row interleave = per-row stores into the next padded scratch
                # (or the output block for the last layer).
                for ty in range(H):
                    row = full[:, ty * 2 * W:(ty + 1) * 2 * W]    # (Cout, 2W)
                    oy = 2 * ty + py
                    if last:
                        o_ref[0, :, oy, :] = row
                    else:
                        pad_out[:, 1 + oy, 1:1 + 2 * W] = row

    return kernel


# ------------------------------ decoder wrapper ----------------------------- #

def decoder_forward(prep, z, *, reshape, num_layers, n_chan):
    """Single-pallas_call forward of the whole decoder."""
    batch, latent_dim = z.shape
    C, h0, w0 = reshape
    Hf = h0 * 2 ** num_layers
    Wf = w0 * 2 ** num_layers

    z3 = z.reshape(batch, 1, latent_dim)   # per-batch block, TPU-friendly tile

    inputs = [z3,
              prep["lin1_wt"], prep["lin1_b"],
              prep["lin2_wt"], prep["lin2_b"],
              prep["lin3_wt"], prep["lin3_b"]]
    for i in range(num_layers):
        inputs.append(prep[f"convt{i}_wp"])
        inputs.append(prep[f"convt{i}_b"])

    def _resident(arr):        # full-array block, constant index map (stays in VMEM)
        n = arr.ndim
        return pl.BlockSpec(arr.shape, lambda b, n=n: (0,) * n)

    in_specs = ([pl.BlockSpec((1, 1, latent_dim), lambda b: (b, 0, 0))]
                + [_resident(a) for a in inputs[1:]])
    out_spec = pl.BlockSpec((1, n_chan, Hf, Wf), lambda b: (b, 0, 0, 0))

    # One zero-padded VMEM activation buffer per conv layer's input.
    scratch = [pltpu.VMEM((C, h0 * 2 ** i + 2, w0 * 2 ** i + 2), jnp.float32)
               for i in range(num_layers)]

    kernel = _make_decoder_kernel(reshape, num_layers, n_chan)

    return pl.pallas_call(
        kernel,
        out_shape=jax.ShapeDtypeStruct((batch, n_chan, Hf, Wf), jnp.float32),
        grid=(batch,),
        in_specs=in_specs,
        out_specs=out_spec,
        scratch_shapes=scratch,
        compiler_params=pltpu.CompilerParams(
            dimension_semantics=("parallel",)),   # batch split (v7x 2-TC etc.)
    )(*inputs)


# ------------------------------ parameters --------------------------------- #

# ky/kx index of the 4x4 ConvTranspose2d kernel used by output phase `p` and
# effective-2x2-kernel tap `d` (from oy = 2*iy - 1 + ky, stride 2, padding 1).
_PHASE_TAP_K = ((3, 1), (2, 0))     # [phase][tap]


def _phase_weights(w_t):
    """(Cin, Cout, 4, 4) PyTorch ConvTranspose2d weight -> (4, Cout, 4*Cin)."""
    Cin, Cout, K, _ = w_t.shape
    assert K == 4, "phase decomposition specialized to kernel=4, stride=2, pad=1"
    phases = []
    for py in range(2):
        for px in range(2):
            taps = [w_t[:, :, _PHASE_TAP_K[py][dy], _PHASE_TAP_K[px][dx]].T
                    for dy in range(2) for dx in range(2)]    # each (Cout, Cin)
            phases.append(jnp.concatenate(taps, axis=1))      # (Cout, 4*Cin)
    return jnp.stack(phases, axis=0)


def init_params(key, img_size, latent_dim, kernel_size, num_layers,
                hidden_dim, hidden_channels):
    """PyTorch-layout params: nn.Linear (out,in); ConvTranspose2d (in,out,K,K)."""
    n_chan = img_size[0]
    reshape = (hidden_channels,
               img_size[1] // 2 ** num_layers,
               img_size[2] // 2 ** num_layers)
    reshape_dim = reshape[0] * reshape[1] * reshape[2]

    def nrm(k, shape, scale=0.3):
        return scale * jax.random.normal(k, shape, jnp.float32)

    k = iter(jax.random.split(key, 3 + num_layers))
    params = {
        "lin1_w": nrm(next(k), (hidden_dim, latent_dim)),
        "lin1_b": jnp.zeros((hidden_dim,), jnp.float32),
        "lin2_w": nrm(next(k), (hidden_dim, hidden_dim)),
        "lin2_b": jnp.zeros((hidden_dim,), jnp.float32),
        "lin3_w": nrm(next(k), (reshape_dim, hidden_dim)),
        "lin3_b": jnp.zeros((reshape_dim,), jnp.float32),
    }
    for i in range(num_layers):
        cout = hidden_channels if i < num_layers - 1 else n_chan
        params[f"convt{i}_w"] = nrm(next(k), (hidden_channels, cout,
                                              kernel_size, kernel_size))
        params[f"convt{i}_b"] = jnp.zeros((cout,), jnp.float32)
    return params, reshape


def prepare_decoder_params(params, num_layers):
    """One-time weight re-layout (at init, NOT per forward call)."""
    prep = {
        "lin1_wt": params["lin1_w"].T, "lin1_b": params["lin1_b"][None, :],
        "lin2_wt": params["lin2_w"].T, "lin2_b": params["lin2_b"][None, :],
        "lin3_wt": params["lin3_w"].T, "lin3_b": params["lin3_b"][None, :],
    }
    for i in range(num_layers):
        prep[f"convt{i}_wp"] = _phase_weights(params[f"convt{i}_w"])
        prep[f"convt{i}_b"] = params[f"convt{i}_b"][:, None]
    return {k: jnp.asarray(v, jnp.float32) for k, v in prep.items()}


# --------------------------- pure-JAX reference ----------------------------- #

def reference_decoder(params, z, reshape, num_layers, stride=2, padding=1):
    x = jax.nn.relu(z @ params["lin1_w"].T + params["lin1_b"])
    x = jax.nn.relu(x @ params["lin2_w"].T + params["lin2_b"])
    x = jax.nn.relu(x @ params["lin3_w"].T + params["lin3_b"])
    x = x.reshape(z.shape[0], *reshape)
    for i in range(num_layers):
        w_t = params[f"convt{i}_w"]                           # (Cin, Cout, K, K)
        K = w_t.shape[2]
        w_conv = jnp.flip(w_t, axis=(2, 3)).transpose(1, 0, 2, 3)
        x = jax.lax.conv_general_dilated(
            x, w_conv, window_strides=(1, 1),
            padding=[(K - 1 - padding, K - 1 - padding)] * 2,
            lhs_dilation=(stride, stride),
            dimension_numbers=("NCHW", "OIHW", "NCHW"))
        x = x + params[f"convt{i}_b"].reshape(1, -1, 1, 1)
        x = jax.nn.relu(x) if i < num_layers - 1 else jax.nn.sigmoid(x)
    return x


# ---------------------------------- main ------------------------------------ #

if __name__ == "__main__":
    # Small but architecture-consistent config: 16x16 image, 3 conv-transpose
    # layers -> initial 2x2 feature map doubled three times.
    img_size = (1, 16, 16)
    latent_dim = 10
    kernel_size = 4
    num_layers = 3
    hidden_dim = 32
    hidden_channels = 8
    batch = 2

    key = jax.random.PRNGKey(0)
    k_params, k_z = jax.random.split(key)
    params, reshape = init_params(k_params, img_size, latent_dim, kernel_size,
                                  num_layers, hidden_dim, hidden_channels)
    z = jax.random.normal(k_z, (batch, latent_dim), jnp.float32)

    prep = prepare_decoder_params(params, num_layers)   # one-time re-layout

    fwd = jax.jit(decoder_forward,
                  static_argnames=("reshape", "num_layers", "n_chan"))
    out = jax.block_until_ready(fwd(prep, z, reshape=reshape,
                                    num_layers=num_layers,
                                    n_chan=img_size[0]))

    assert out.shape == (batch, *img_size), out.shape
    assert bool(jnp.all(jnp.isfinite(out)))
    assert bool(jnp.all((out >= 0.0) & (out <= 1.0)))   # exact sigmoid range

    ref = reference_decoder(params, z, reshape, num_layers)
    max_err = float(jnp.max(jnp.abs(out - ref)))
    assert max_err < 3e-2, f"max abs error vs reference: {max_err}"

    print("KERNEL_OK")
</pallas_src>

<mosaic_0001>
module attributes {stable_mosaic.version = 11 : i64} {
  func.func @kernel(%arg0: i32, %arg1: memref<1x1x10xf32, #tpu.memory_space<vmem>>, %arg2: memref<10x32xf32, #tpu.memory_space<vmem>>, %arg3: memref<1x32xf32, #tpu.memory_space<vmem>>, %arg4: memref<32x32xf32, #tpu.memory_space<vmem>>, %arg5: memref<1x32xf32, #tpu.memory_space<vmem>>, %arg6: memref<32x32xf32, #tpu.memory_space<vmem>>, %arg7: memref<1x32xf32, #tpu.memory_space<vmem>>, %arg8: memref<4x8x32xf32, #tpu.memory_space<vmem>>, %arg9: memref<8x1xf32, #tpu.memory_space<vmem>>, %arg10: memref<4x8x32xf32, #tpu.memory_space<vmem>>, %arg11: memref<8x1xf32, #tpu.memory_space<vmem>>, %arg12: memref<4x1x32xf32, #tpu.memory_space<vmem>>, %arg13: memref<1x1xf32, #tpu.memory_space<vmem>>, %arg14: memref<1x1x16x16xf32, #tpu.memory_space<vmem>>, %arg15: memref<8x4x4xf32, #tpu.memory_space<vmem>>, %arg16: memref<8x6x6xf32, #tpu.memory_space<vmem>>, %arg17: memref<8x10x10xf32, #tpu.memory_space<vmem>>) attributes {dimension_semantics = [#tpu.dimension_semantics<parallel>], iteration_bounds = array<i64: 2>, scalar_prefetch = 0 : i64, scratch_operands = 3 : i64, tpu.core_type = #tpu.core_type<tc>, window_params = [{transform_indices = @transform_0, window_bounds = array<i64: 1, 1, 10>}, {pipeline_mode = #tpu.pipeline_mode<synchronous>, transform_indices = @transform_1, window_bounds = array<i64: 10, 32>}, {pipeline_mode = #tpu.pipeline_mode<synchronous>, transform_indices = @transform_2, window_bounds = array<i64: 1, 32>}, {pipeline_mode = #tpu.pipeline_mode<synchronous>, transform_indices = @transform_3, window_bounds = array<i64: 32, 32>}, {pipeline_mode = #tpu.pipeline_mode<synchronous>, transform_indices = @transform_4, window_bounds = array<i64: 1, 32>}, {pipeline_mode = #tpu.pipeline_mode<synchronous>, transform_indices = @transform_5, window_bounds = array<i64: 32, 32>}, {pipeline_mode = #tpu.pipeline_mode<synchronous>, transform_indices = @transform_6, window_bounds = array<i64: 1, 32>}, {pipeline_mode = #tpu.pipeline_mode<synchronous>, transform_indices = @transform_7, window_bounds = array<i64: 4, 8, 32>}, {pipeline_mode = #tpu.pipeline_mode<synchronous>, transform_indices = @transform_8, window_bounds = array<i64: 8, 1>}, {pipeline_mode = #tpu.pipeline_mode<synchronous>, transform_indices = @transform_9, window_bounds = array<i64: 4, 8, 32>}, {pipeline_mode = #tpu.pipeline_mode<synchronous>, transform_indices = @transform_10, window_bounds = array<i64: 8, 1>}, {pipeline_mode = #tpu.pipeline_mode<synchronous>, transform_indices = @transform_11, window_bounds = array<i64: 4, 1, 32>}, {pipeline_mode = #tpu.pipeline_mode<synchronous>, transform_indices = @transform_12, window_bounds = array<i64: 1, 1>}, {transform_indices = @transform_13, window_bounds = array<i64: 1, 1, 16, 16>}]} {
    %cst = arith.constant 0.000000e+00 : f32
    %0 = vector.broadcast %cst : f32 to vector<8x4x4xf32>
    %c0 = arith.constant 0 : index
    %c0_0 = arith.constant 0 : index
    %c0_1 = arith.constant 0 : index
    %1 = vector.load %arg15[%c0, %c0_0, %c0_1] : memref<8x4x4xf32, #tpu.memory_space<vmem>>, vector<8x4x4xf32>
    tpu.vector_store %arg15[%c0, %c0_0, %c0_1], %0 {strides = array<i32>} : memref<8x4x4xf32, #tpu.memory_space<vmem>>, vector<8x4x4xf32>,
    %cst_2 = arith.constant 0.000000e+00 : f32
    %2 = vector.broadcast %cst_2 : f32 to vector<8x6x6xf32>
    %c0_3 = arith.constant 0 : index
    %c0_4 = arith.constant 0 : index
    %c0_5 = arith.constant 0 : index
    %3 = vector.load %arg16[%c0_3, %c0_4, %c0_5] : memref<8x6x6xf32, #tpu.memory_space<vmem>>, vector<8x6x6xf32>
    tpu.vector_store %arg16[%c0_3, %c0_4, %c0_5], %2 {strides = array<i32>} : memref<8x6x6xf32, #tpu.memory_space<vmem>>, vector<8x6x6xf32>,
    %cst_6 = arith.constant 0.000000e+00 : f32
    %4 = vector.broadcast %cst_6 : f32 to vector<8x10x10xf32>
    %c0_7 = arith.constant 0 : index
    %c0_8 = arith.constant 0 : index
    %c0_9 = arith.constant 0 : index
    %5 = vector.load %arg17[%c0_7, %c0_8, %c0_9] : memref<8x10x10xf32, #tpu.memory_space<vmem>>, vector<8x10x10xf32>
    tpu.vector_store %arg17[%c0_7, %c0_8, %c0_9], %4 {strides = array<i32>} : memref<8x10x10xf32, #tpu.memory_space<vmem>>, vector<8x10x10xf32>,
    %c0_10 = arith.constant 0 : index
    %c0_11 = arith.constant 0 : index
    %c0_12 = arith.constant 0 : index
    %6 = vector.load %arg1[%c0_10, %c0_11, %c0_12] : memref<1x1x10xf32, #tpu.memory_space<vmem>>, vector<1x1x10xf32>
    %7 = vector.shape_cast %6 : vector<1x1x10xf32> to vector<1x10xf32>
    %c0_13 = arith.constant 0 : index
    %c0_14 = arith.constant 0 : index
    %8 = vector.load %arg2[%c0_13, %c0_14] : memref<10x32xf32, #tpu.memory_space<vmem>>, vector<10x32xf32>
    %cst_15 = arith.constant dense<0.000000e+00> : vector<1x32xf32>
    %9 = tpu.matmul %7, %8, %cst_15 {dimension_numbers = #tpu.dot_dimension_numbers<[1], [0], [0], [1], [0, 0, 1, 1], [], []>} : vector<1x10xf32>, vector<10x32xf32>, vector<1x32xf32> -> vector<1x32xf32>
    %c0_16 = arith.constant 0 : index
    %c0_17 = arith.constant 0 : index
    %10 = vector.load %arg3[%c0_16, %c0_17] : memref<1x32xf32, #tpu.memory_space<vmem>>, vector<1x32xf32>
    %11 = arith.addf %9, %10 : vector<1x32xf32>
    %cst_18 = arith.constant 0.000000e+00 : f32
    %12 = vector.broadcast %cst_18 : f32 to vector<1x32xf32>
    %13 = arith.maximumf %11, %12 : vector<1x32xf32>
    %c0_19 = arith.constant 0 : index
    %c0_20 = arith.constant 0 : index
    %14 = vector.load %arg4[%c0_19, %c0_20] : memref<32x32xf32, #tpu.memory_space<vmem>>, vector<32x32xf32>
    %cst_21 = arith.constant dense<0.000000e+00> : vector<1x32xf32>
    %15 = tpu.matmul %13, %14, %cst_21 {dimension_numbers = #tpu.dot_dimension_numbers<[1], [0], [0], [1], [0, 0, 1, 1], [], []>} : vector<1x32xf32>, vector<32x32xf32>, vector<1x32xf32> -> vector<1x32xf32>
    %c0_22 = arith.constant 0 : index
    %c0_23 = arith.constant 0 : index
    %16 = vector.load %arg5[%c0_22, %c0_23] : memref<1x32xf32, #tpu.memory_space<vmem>>, vector<1x32xf32>
    %17 = arith.addf %15, %16 : vector<1x32xf32>
    %cst_24 = arith.constant 0.000000e+00 : f32
    %18 = vector.broadcast %cst_24 : f32 to vector<1x32xf32>
    %19 = arith.maximumf %17, %18 : vector<1x32xf32>
    %c0_25 = arith.constant 0 : index
    %c0_26 = arith.constant 0 : index
    %20 = vector.load %arg6[%c0_25, %c0_26] : memref<32x32xf32, #tpu.memory_space<vmem>>, vector<32x32xf32>
    %cst_27 = arith.constant dense<0.000000e+00> : vector<1x32xf32>
    %21 = tpu.matmul %19, %20, %cst_27 {dimension_numbers = #tpu.dot_dimension_numbers<[1], [0], [0], [1], [0, 0, 1, 1], [], []>} : vector<1x32xf32>, vector<32x32xf32>, vector<1x32xf32> -> vector<1x32xf32>
    %c0_28 = arith.constant 0 : index
    %c0_29 = arith.constant 0 : index
    %22 = vector.load %arg7[%c0_28, %c0_29] : memref<1x32xf32, #tpu.memory_space<vmem>>, vector<1x32xf32>
    %23 = arith.addf %21, %22 : vector<1x32xf32>
    %cst_30 = arith.constant 0.000000e+00 : f32
    %24 = vector.broadcast %cst_30 : f32 to vector<1x32xf32>
    %25 = arith.maximumf %23, %24 : vector<1x32xf32>
    %26 = vector.extract_strided_slice %25 {offsets = [0, 0], sizes = [1, 2], strides = [1, 1]} : vector<1x32xf32> to vector<1x2xf32>
    %c0_31 = arith.constant 0 : index
    %c1 = arith.constant 1 : index
    %c1_32 = arith.constant 1 : index
    %27 = vector.load %arg15[%c0_31, %c1, %c1_32] : memref<8x4x4xf32, #tpu.memory_space<vmem>>, vector<1x1x2xf32>
    %28 = vector.shape_cast %27 : vector<1x1x2xf32> to vector<1x2xf32>
    %29 = vector.shape_cast %26 : vector<1x2xf32> to vector<1x1x2xf32>
    tpu.vector_store %arg15[%c0_31, %c1, %c1_32], %29 {strides = array<i32>} : memref<8x4x4xf32, #tpu.memory_space<vmem>>, vector<1x1x2xf32>,
    %30 = vector.extract_strided_slice %25 {offsets = [0, 2], sizes = [1, 2], strides = [1, 1]} : vector<1x32xf32> to vector<1x2xf32>
    %c0_33 = arith.constant 0 : index
    %c2 = arith.constant 2 : index
    %c1_34 = arith.constant 1 : index
    %31 = vector.load %arg15[%c0_33, %c2, %c1_34] : memref<8x4x4xf32, #tpu.memory_space<vmem>>, vector<1x1x2xf32>
    %32 = vector.shape_cast %31 : vector<1x1x2xf32> to vector<1x2xf32>
    %33 = vector.shape_cast %30 : vector<1x2xf32> to vector<1x1x2xf32>
    tpu.vector_store %arg15[%c0_33, %c2, %c1_34], %33 {strides = array<i32>} : memref<8x4x4xf32, #tpu.memory_space<vmem>>, vector<1x1x2xf32>,
    %34 = vector.extract_strided_slice %25 {offsets = [0, 4], sizes = [1, 2], strides = [1, 1]} : vector<1x32xf32> to vector<1x2xf32>
    %c1_35 = arith.constant 1 : index
    %c1_36 = arith.constant 1 : index
    %c1_37 = arith.constant 1 : index
    %35 = vector.load %arg15[%c1_35, %c1_36, %c1_37] : memref<8x4x4xf32, #tpu.memory_space<vmem>>, vector<1x1x2xf32>
    %36 = vector.shape_cast %35 : vector<1x1x2xf32> to vector<1x2xf32>
    %37 = vector.shape_cast %34 : vector<1x2xf32> to vector<1x1x2xf32>
    tpu.vector_store %arg15[%c1_35, %c1_36, %c1_37], %37 {strides = array<i32>} : memref<8x4x4xf32, #tpu.memory_space<vmem>>, vector<1x1x2xf32>,
    %38 = vector.extract_strided_slice %25 {offsets = [0, 6], sizes = [1, 2], strides = [1, 1]} : vector<1x32xf32> to vector<1x2xf32>
    %c1_38 = arith.constant 1 : index
    %c2_39 = arith.constant 2 : index
    %c1_40 = arith.constant 1 : index
    %39 = vector.load %arg15[%c1_38, %c2_39, %c1_40] : memref<8x4x4xf32, #tpu.memory_space<vmem>>, vector<1x1x2xf32>
    %40 = vector.shape_cast %39 : vector<1x1x2xf32> to vector<1x2xf32>
    %41 = vector.shape_cast %38 : vector<1x2xf32> to vector<1x1x2xf32>
    tpu.vector_store %arg15[%c1_38, %c2_39, %c1_40], %41 {strides = array<i32>} : memref<8x4x4xf32, #tpu.memory_space<vmem>>, vector<1x1x2xf32>,
    %42 = vector.extract_strided_slice %25 {offsets = [0, 8], sizes = [1, 2], strides = [1, 1]} : vector<1x32xf32> to vector<1x2xf32>
    %c2_41 = arith.constant 2 : index
    %c1_42 = arith.constant 1 : index
    %c1_43 = arith.constant 1 : index
    %43 = vector.load %arg15[%c2_41, %c1_42, %c1_43] : memref<8x4x4xf32, #tpu.memory_space<vmem>>, vector<1x1x2xf32>
    %44 = vector.shape_cast %43 : vector<1x1x2xf32> to vector<1x2xf32>
    %45 = vector.shape_cast %42 : vector<1x2xf32> to vector<1x1x2xf32>
    tpu.vector_store %arg15[%c2_41, %c1_42, %c1_43], %45 {strides = array<i32>} : memref<8x4x4xf32, #tpu.memory_space<vmem>>, vector<1x1x2xf32>,
    %46 = vector.extract_strided_slice %25 {offsets = [0, 10], sizes = [1, 2], strides = [1, 1]} : vector<1x32xf32> to vector<1x2xf32>
    %c2_44 = arith.constant 2 : index
    %c2_45 = arith.constant 2 : index
    %c1_46 = arith.constant 1 : index
    %47 = vector.load %arg15[%c2_44, %c2_45, %c1_46] : memref<8x4x4xf32, #tpu.memory_space<vmem>>, vector<1x1x2xf32>
    %48 = vector.shape_cast %47 : vector<1x1x2xf32> to vector<1x2xf32>
    %49 = vector.shape_cast %46 : vector<1x2xf32> to vector<1x1x2xf32>
    tpu.vector_store %arg15[%c2_44, %c2_45, %c1_46], %49 {strides = array<i32>} : memref<8x4x4xf32, #tpu.memory_space<vmem>>, vector<1x1x2xf32>,
    %50 = vector.extract_strided_slice %25 {offsets = [0, 12], sizes = [1, 2], strides = [1, 1]} : vector<1x32xf32> to vector<1x2xf32>
    %c3 = arith.constant 3 : index
    %c1_47 = arith.constant 1 : index
    %c1_48 = arith.constant 1 : index
    %51 = vector.load %arg15[%c3, %c1_47, %c1_48] : memref<8x4x4xf32, #tpu.memory_space<vmem>>, vector<1x1x2xf32>
    %52 = vector.shape_cast %51 : vector<1x1x2xf32> to vector<1x2xf32>
    %53 = vector.shape_cast %50 : vector<1x2xf32> to vector<1x1x2xf32>
    tpu.vector_store %arg15[%c3, %c1_47, %c1_48], %53 {strides = array<i32>} : memref<8x4x4xf32, #tpu.memory_space<vmem>>, vector<1x1x2xf32>,
    %54 = vector.extract_strided_slice %25 {offsets = [0, 14], sizes = [1, 2], strides = [1, 1]} : vector<1x32xf32> to vector<1x2xf32>
    %c3_49 = arith.constant 3 : index
    %c2_50 = arith.constant 2 : index
    %c1_51 = arith.constant 1 : index
    %55 = vector.load %arg15[%c3_49, %c2_50, %c1_51] : memref<8x4x4xf32, #tpu.memory_space<vmem>>, vector<1x1x2xf32>
    %56 = vector.shape_cast %55 : vector<1x1x2xf32> to vector<1x2xf32>
    %57 = vector.shape_cast %54 : vector<1x2xf32> to vector<1x1x2xf32>
    tpu.vector_store %arg15[%c3_49, %c2_50, %c1_51], %57 {strides = array<i32>} : memref<8x4x4xf32, #tpu.memory_space<vmem>>, vector<1x1x2xf32>,
    %58 = vector.extract_strided_slice %25 {offsets = [0, 16], sizes = [1, 2], strides = [1, 1]} : vector<1x32xf32> to vector<1x2xf32>
    %c4 = arith.constant 4 : index
    %c1_52 = arith.constant 1 : index
    %c1_53 = arith.constant 1 : index
    %59 = vector.load %arg15[%c4, %c1_52, %c1_53] : memref<8x4x4xf32, #tpu.memory_space<vmem>>, vector<1x1x2xf32>
    %60 = vector.shape_cast %59 : vector<1x1x2xf32> to vector<1x2xf32>
    %61 = vector.shape_cast %58 : vector<1x2xf32> to vector<1x1x2xf32>
    tpu.vector_store %arg15[%c4, %c1_52, %c1_53], %61 {strides = array<i32>} : memref<8x4x4xf32, #tpu.memory_space<vmem>>, vector<1x1x2xf32>,
    %62 = vector.extract_strided_slice %25 {offsets = [0, 18], sizes = [1, 2], strides = [1, 1]} : vector<1x32xf32> to vector<1x2xf32>
    %c4_54 = arith.constant 4 : index
    %c2_55 = arith.constant 2 : index
    %c1_56 = arith.constant 1 : index
    %63 = vector.load %arg15[%c4_54, %c2_55, %c1_56] : memref<8x4x4xf32, #tpu.memory_space<vmem>>, vector<1x1x2xf32>
    %64 = vector.shape_cast %63 : vector<1x1x2xf32> to vector<1x2xf32>
    %65 = vector.shape_cast %62 : vector<1x2xf32> to vector<1x1x2xf32>
    tpu.vector_store %arg15[%c4_54, %c2_55, %c1_56], %65 {strides = array<i32>} : memref<8x4x4xf32, #tpu.memory_space<vmem>>, vector<1x1x2xf32>,
    %66 = vector.extract_strided_slice %25 {offsets = [0, 20], sizes = [1, 2], strides = [1, 1]} : vector<1x32xf32> to vector<1x2xf32>
    %c5 = arith.constant 5 : index
    %c1_57 = arith.constant 1 : index
    %c1_58 = arith.constant 1 : index
    %67 = vector.load %arg15[%c5, %c1_57, %c1_58] : memref<8x4x4xf32, #tpu.memory_space<vmem>>, vector<1x1x2xf32>
    %68 = vector.shape_cast %67 : vector<1x1x2xf32> to vector<1x2xf32>
    %69 = vector.shape_cast %66 : vector<1x2xf32> to vector<1x1x2xf32>
    tpu.vector_store %arg15[%c5, %c1_57, %c1_58], %69 {strides = array<i32>} : memref<8x4x4xf32, #tpu.memory_space<vmem>>, vector<1x1x2xf32>,
    %70 = vector.extract_strided_slice %25 {offsets = [0, 22], sizes = [1, 2], strides = [1, 1]} : vector<1x32xf32> to vector<1x2xf32>
    %c5_59 = arith.constant 5 : index
    %c2_60 = arith.constant 2 : index
    %c1_61 = arith.constant 1 : index
    %71 = vector.load %arg15[%c5_59, %c2_60, %c1_61] : memref<8x4x4xf32, #tpu.memory_space<vmem>>, vector<1x1x2xf32>
    %72 = vector.shape_cast %71 : vector<1x1x2xf32> to vector<1x2xf32>
    %73 = vector.shape_cast %70 : vector<1x2xf32> to vector<1x1x2xf32>
    tpu.vector_store %arg15[%c5_59, %c2_60, %c1_61], %73 {strides = array<i32>} : memref<8x4x4xf32, #tpu.memory_space<vmem>>, vector<1x1x2xf32>,
    %74 = vector.extract_strided_slice %25 {offsets = [0, 24], sizes = [1, 2], strides = [1, 1]} : vector<1x32xf32> to vector<1x2xf32>
    %c6 = arith.constant 6 : index
    %c1_62 = arith.constant 1 : index
    %c1_63 = arith.constant 1 : index
    %75 = vector.load %arg15[%c6, %c1_62, %c1_63] : memref<8x4x4xf32, #tpu.memory_space<vmem>>, vector<1x1x2xf32>
    %76 = vector.shape_cast %75 : vector<1x1x2xf32> to vector<1x2xf32>
    %77 = vector.shape_cast %74 : vector<1x2xf32> to vector<1x1x2xf32>
    tpu.vector_store %arg15[%c6, %c1_62, %c1_63], %77 {strides = array<i32>} : memref<8x4x4xf32, #tpu.memory_space<vmem>>, vector<1x1x2xf32>,
    %78 = vector.extract_strided_slice %25 {offsets = [0, 26], sizes = [1, 2], strides = [1, 1]} : vector<1x32xf32> to vector<1x2xf32>
    %c6_64 = arith.constant 6 : index
    %c2_65 = arith.constant 2 : index
    %c1_66 = arith.constant 1 : index
    %79 = vector.load %arg15[%c6_64, %c2_65, %c1_66] : memref<8x4x4xf32, #tpu.memory_space<vmem>>, vector<1x1x2xf32>
    %80 = vector.shape_cast %79 : vector<1x1x2xf32> to vector<1x2xf32>
    %81 = vector.shape_cast %78 : vector<1x2xf32> to vector<1x1x2xf32>
    tpu.vector_store %arg15[%c6_64, %c2_65, %c1_66], %81 {strides = array<i32>} : memref<8x4x4xf32, #tpu.memory_space<vmem>>, vector<1x1x2xf32>,
    %82 = vector.extract_strided_slice %25 {offsets = [0, 28], sizes = [1, 2], strides = [1, 1]} : vector<1x32xf32> to vector<1x2xf32>
    %c7 = arith.constant 7 : index
    %c1_67 = arith.constant 1 : index
    %c1_68 = arith.constant 1 : index
    %83 = vector.load %arg15[%c7, %c1_67, %c1_68] : memref<8x4x4xf32, #tpu.memory_space<vmem>>, vector<1x1x2xf32>
    %84 = vector.shape_cast %83 : vector<1x1x2xf32> to vector<1x2xf32>
    %85 = vector.shape_cast %82 : vector<1x2xf32> to vector<1x1x2xf32>
    tpu.vector_store %arg15[%c7, %c1_67, %c1_68], %85 {strides = array<i32>} : memref<8x4x4xf32, #tpu.memory_space<vmem>>, vector<1x1x2xf32>,
    %86 = vector.extract_strided_slice %25 {offsets = [0, 30], sizes = [1, 2], strides = [1, 1]} : vector<1x32xf32> to vector<1x2xf32>
    %c7_69 = arith.constant 7 : index
    %c2_70 = arith.constant 2 : index
    %c1_71 = arith.constant 1 : index
    %87 = vector.load %arg15[%c7_69, %c2_70, %c1_71] : memref<8x4x4xf32, #tpu.memory_space<vmem>>, vector<1x1x2xf32>
    %88 = vector.shape_cast %87 : vector<1x1x2xf32> to vector<1x2xf32>
    %89 = vector.shape_cast %86 : vector<1x2xf32> to vector<1x1x2xf32>
    tpu.vector_store %arg15[%c7_69, %c2_70, %c1_71], %89 {strides = array<i32>} : memref<8x4x4xf32, #tpu.memory_space<vmem>>, vector<1x1x2xf32>,
    %c0_72 = arith.constant 0 : index
    %c0_73 = arith.constant 0 : index
    %c0_74 = arith.constant 0 : index
    %90 = vector.load %arg8[%c0_72, %c0_73, %c0_74] : memref<4x8x32xf32, #tpu.memory_space<vmem>>, vector<1x8x32xf32>
    %91 = vector.shape_cast %90 : vector<1x8x32xf32> to vector<8x32xf32>
    %c1_75 = arith.constant 1 : index
    %c0_76 = arith.constant 0 : index
    %c0_77 = arith.constant 0 : index
    %92 = vector.load %arg8[%c1_75, %c0_76, %c0_77] : memref<4x8x32xf32, #tpu.memory_space<vmem>>, vector<1x8x32xf32>
    %93 = vector.shape_cast %92 : vector<1x8x32xf32> to vector<8x32xf32>
    %c2_78 = arith.constant 2 : index
    %c0_79 = arith.constant 0 : index
    %c0_80 = arith.constant 0 : index
    %94 = vector.load %arg8[%c2_78, %c0_79, %c0_80] : memref<4x8x32xf32, #tpu.memory_space<vmem>>, vector<1x8x32xf32>
    %95 = vector.shape_cast %94 : vector<1x8x32xf32> to vector<8x32xf32>
    %c3_81 = arith.constant 3 : index
    %c0_82 = arith.constant 0 : index
    %c0_83 = arith.constant 0 : index
    %96 = vector.load %arg8[%c3_81, %c0_82, %c0_83] : memref<4x8x32xf32, #tpu.memory_space<vmem>>, vector<1x8x32xf32>
    %97 = vector.shape_cast %96 : vector<1x8x32xf32> to vector<8x32xf32>
    %c0_84 = arith.constant 0 : index
    %c0_85 = arith.constant 0 : index
    %98 = vector.load %arg9[%c0_84, %c0_85] : memref<8x1xf32, #tpu.memory_space<vmem>>, vector<8x1xf32>
    %99 = tpu.iota {dimensions = array<i32: 0>} : vector<4x8xi32>
    %100 = tpu.iota {dimensions = array<i32: 1>} : vector<4x8xi32>
    %c2_i32 = arith.constant 2 : i32
    %101 = vector.broadcast %c2_i32 : i32 to vector<4x8xi32>
    %102 = arith.muli %101, %99 : vector<4x8xi32>
    %103 = arith.cmpi eq, %100, %102 : vector<4x8xi32>
    %104 = arith.extui %103 : vector<4x8xi1> to vector<4x8xi32>
    %105 = arith.sitofp %104 : vector<4x8xi32> to vector<4x8xf32>
    %c2_i32_86 = arith.constant 2 : i32
    %106 = vector.broadcast %c2_i32_86 : i32 to vector<4x8xi32>
    %107 = arith.muli %106, %99 : vector<4x8xi32>
    %c1_i32 = arith.constant 1 : i32
    %108 = vector.broadcast %c1_i32 : i32 to vector<4x8xi32>
    %109 = arith.addi %107, %108 : vector<4x8xi32>
    %110 = arith.cmpi eq, %100, %109 : vector<4x8xi32>
    %111 = arith.extui %110 : vector<4x8xi1> to vector<4x8xi32>
    %112 = arith.sitofp %111 : vector<4x8xi32> to vector<4x8xf32>
    %c0_87 = arith.constant 0 : index
    %c0_88 = arith.constant 0 : index
    %c0_89 = arith.constant 0 : index
    %113 = vector.load %arg15[%c0_87, %c0_88, %c0_89] : memref<8x4x4xf32, #tpu.memory_space<vmem>>, vector<8x1x2xf32>
    %114 = vector.shape_cast %113 : vector<8x1x2xf32> to vector<8x2xf32>
    %c0_90 = arith.constant 0 : index
    %c1_91 = arith.constant 1 : index
    %c0_92 = arith.constant 0 : index
    %115 = vector.load %arg15[%c0_90, %c1_91, %c0_92] : memref<8x4x4xf32, #tpu.memory_space<vmem>>, vector<8x1x2xf32>
    %116 = vector.shape_cast %115 : vector<8x1x2xf32> to vector<8x2xf32>
    %117 = tpu.concatenate %114, %116 in 1 : vector<8x2xf32>, vector<8x2xf32> -> vector<8x4xf32>
    %c0_93 = arith.constant 0 : index
    %c0_94 = arith.constant 0 : index
    %c1_95 = arith.constant 1 : index
    %118 = vector.load %arg15[%c0_93, %c0_94, %c1_95] : memref<8x4x4xf32, #tpu.memory_space<vmem>>, vector<8x1x2xf32>
    %119 = vector.shape_cast %118 : vector<8x1x2xf32> to vector<8x2xf32>
    %c0_96 = arith.constant 0 : index
    %c1_97 = arith.constant 1 : index
    %c1_98 = arith.constant 1 : index
    %120 = vector.load %arg15[%c0_96, %c1_97, %c1_98] : memref<8x4x4xf32, #tpu.memory_space<vmem>>, vector<8x1x2xf32>
    %121 = vector.shape_cast %120 : vector<8x1x2xf32> to vector<8x2xf32>
    %122 = tpu.concatenate %119, %121 in 1 : vector<8x2xf32>, vector<8x2xf32> -> vector<8x4xf32>
    %c0_99 = arith.constant 0 : index
    %c1_100 = arith.constant 1 : index
    %c0_101 = arith.constant 0 : index
    %123 = vector.load %arg15[%c0_99, %c1_100, %c0_101] : memref<8x4x4xf32, #tpu.memory_space<vmem>>, vector<8x1x2xf32>
    %124 = vector.shape_cast %123 : vector<8x1x2xf32> to vector<8x2xf32>
    %c0_102 = arith.constant 0 : index
    %c2_103 = arith.constant 2 : index
    %c0_104 = arith.constant 0 : index
    %125 = vector.load %arg15[%c0_102, %c2_103, %c0_104] : memref<8x4x4xf32, #tpu.memory_space<vmem>>, vector<8x1x2xf32>
    %126 = vector.shape_cast %125 : vector<8x1x2xf32> to vector<8x2xf32>
    %127 = tpu.concatenate %124, %126 in 1 : vector<8x2xf32>, vector<8x2xf32> -> vector<8x4xf32>
    %c0_105 = arith.constant 0 : index
    %c1_106 = arith.constant 1 : index
    %c1_107 = arith.constant 1 : index
    %128 = vector.load %arg15[%c0_105, %c1_106, %c1_107] : memref<8x4x4xf32, #tpu.memory_space<vmem>>, vector<8x1x2xf32>
    %129 = vector.shape_cast %128 : vector<8x1x2xf32> to vector<8x2xf32>
    %c0_108 = arith.constant 0 : index
    %c2_109 = arith.constant 2 : index
    %c1_110 = arith.constant 1 : index
    %130 = vector.load %arg15[%c0_108, %c2_109, %c1_110] : memref<8x4x4xf32, #tpu.memory_space<vmem>>, vector<8x1x2xf32>
    %131 = vector.shape_cast %130 : vector<8x1x2xf32> to vector<8x2xf32>
    %132 = tpu.concatenate %129, %131 in 1 : vector<8x2xf32>, vector<8x2xf32> -> vector<8x4xf32>
    %133 = tpu.concatenate %117, %122, %127, %132 in 0 : vector<8x4xf32>, vector<8x4xf32>, vector<8x4xf32>, vector<8x4xf32> -> vector<32x4xf32>
    %cst_111 = arith.constant dense<0.000000e+00> : vector<8x4xf32>
    %134 = tpu.matmul %91, %133, %cst_111 {dimension_numbers = #tpu.dot_dimension_numbers<[1], [0], [0], [1], [0, 0, 1, 1], [], []>} : vector<8x32xf32>, vector<32x4xf32>, vector<8x4xf32> -> vector<8x4xf32>
    %c0_112 = arith.constant 0 : index
    %c0_113 = arith.constant 0 : index
    %c1_114 = arith.constant 1 : index
    %135 = vector.load %arg15[%c0_112, %c0_113, %c1_114] : memref<8x4x4xf32, #tpu.memory_space<vmem>>, vector<8x1x2xf32>
    %136 = vector.shape_cast %135 : vector<8x1x2xf32> to vector<8x2xf32>
    %c0_115 = arith.constant 0 : index
    %c1_116 = arith.constant 1 : index
    %c1_117 = arith.constant 1 : index
    %137 = vector.load %arg15[%c0_115, %c1_116, %c1_117] : memref<8x4x4xf32, #tpu.memory_space<vmem>>, vector<8x1x2xf32>
    %138 = vector.shape_cast %137 : vector<8x1x2xf32> to vector<8x2xf32>
    %139 = tpu.concatenate %136, %138 in 1 : vector<8x2xf32>, vector<8x2xf32> -> vector<8x4xf32>
    %c0_118 = arith.constant 0 : index
    %c0_119 = arith.constant 0 : index
    %c2_120 = arith.constant 2 : index
    %140 = vector.load %arg15[%c0_118, %c0_119, %c2_120] : memref<8x4x4xf32, #tpu.memory_space<vmem>>, vector<8x1x2xf32>
    %141 = vector.shape_cast %140 : vector<8x1x2xf32> to vector<8x2xf32>
    %c0_121 = arith.constant 0 : index
    %c1_122 = arith.constant 1 : index
    %c2_123 = arith.constant 2 : index
    %142 = vector.load %arg15[%c0_121, %c1_122, %c2_123] : memref<8x4x4xf32, #tpu.memory_space<vmem>>, vector<8x1x2xf32>
    %143 = vector.shape_cast %142 : vector<8x1x2xf32> to vector<8x2xf32>
    %144 = tpu.concatenate %141, %143 in 1 : vector<8x2xf32>, vector<8x2xf32> -> vector<8x4xf32>
    %c0_124 = arith.constant 0 : index
    %c1_125 = arith.constant 1 : index
    %c1_126 = arith.constant 1 : index
    %145 = vector.load %arg15[%c0_124, %c1_125, %c1_126] : memref<8x4x4xf32, #tpu.memory_space<vmem>>, vector<8x1x2xf32>
    %146 = vector.shape_cast %145 : vector<8x1x2xf32> to vector<8x2xf32>
    %c0_127 = arith.constant 0 : index
    %c2_128 = arith.constant 2 : index
    %c1_129 = arith.constant 1 : index
    %147 = vector.load %arg15[%c0_127, %c2_128, %c1_129] : memref<8x4x4xf32, #tpu.memory_space<vmem>>, vector<8x1x2xf32>
    %148 = vector.shape_cast %147 : vector<8x1x2xf32> to vector<8x2xf32>
    %149 = tpu.concatenate %146, %148 in 1 : vector<8x2xf32>, vector<8x2xf32> -> vector<8x4xf32>
    %c0_130 = arith.constant 0 : index
    %c1_131 = arith.constant 1 : index
    %c2_132 = arith.constant 2 : index
    %150 = vector.load %arg15[%c0_130, %c1_131, %c2_132] : memref<8x4x4xf32, #tpu.memory_space<vmem>>, vector<8x1x2xf32>
    %151 = vector.shape_cast %150 : vector<8x1x2xf32> to vector<8x2xf32>
    %c0_133 = arith.constant 0 : index
    %c2_134 = arith.constant 2 : index
    %c2_135 = arith.constant 2 : index
    %152 = vector.load %arg15[%c0_133, %c2_134, %c2_135] : memref<8x4x4xf32, #tpu.memory_space<vmem>>, vector<8x1x2xf32>
    %153 = vector.shape_cast %152 : vector<8x1x2xf32> to vector<8x2xf32>
    %154 = tpu.concatenate %151, %153 in 1 : vector<8x2xf32>, vector<8x2xf32> -> vector<8x4xf32>
    %155 = tpu.concatenate %139, %144, %149, %154 in 0 : vector<8x4xf32>, vector<8x4xf32>, vector<8x4xf32>, vector<8x4xf32> -> vector<32x4xf32>
    %cst_136 = arith.constant dense<0.000000e+00> : vector<8x4xf32>
    %156 = tpu.matmul %93, %155, %cst_136 {dimension_numbers = #tpu.dot_dimension_numbers<[1], [0], [0], [1], [0, 0, 1, 1], [], []>} : vector<8x32xf32>, vector<32x4xf32>, vector<8x4xf32> -> vector<8x4xf32>
    %cst_137 = arith.constant dense<0.000000e+00> : vector<8x8xf32>
    %157 = tpu.matmul %134, %105, %cst_137 {dimension_numbers = #tpu.dot_dimension_numbers<[1], [0], [0], [1], [0, 0, 1, 1], [], []>} : vector<8x4xf32>, vector<4x8xf32>, vector<8x8xf32> -> vector<8x8xf32>
    %cst_138 = arith.constant dense<0.000000e+00> : vector<8x8xf32>
    %158 = tpu.matmul %156, %112, %cst_138 {dimension_numbers = #tpu.dot_dimension_numbers<[1], [0], [0], [1], [0, 0, 1, 1], [], []>} : vector<8x4xf32>, vector<4x8xf32>, vector<8x8xf32> -> vector<8x8xf32>
    %159 = arith.addf %157, %158 : vector<8x8xf32>
    %160 = vector.broadcast %98 : vector<8x1xf32> to vector<8x8xf32>
    %161 = arith.addf %159, %160 : vector<8x8xf32>
    %cst_139 = arith.constant 0.000000e+00 : f32
    %162 = vector.broadcast %cst_139 : f32 to vector<8x8xf32>
    %163 = arith.maximumf %161, %162 : vector<8x8xf32>
    %164 = vector.extract_strided_slice %163 {offsets = [0, 0], sizes = [8, 4], strides = [1, 1]} : vector<8x8xf32> to vector<8x4xf32>
    %c0_140 = arith.constant 0 : index
    %c1_141 = arith.constant 1 : index
    %c1_142 = arith.constant 1 : index
    %165 = vector.load %arg16[%c0_140, %c1_141, %c1_142] : memref<8x6x6xf32, #tpu.memory_space<vmem>>, vector<8x1x4xf32>
    %166 = vector.shape_cast %165 : vector<8x1x4xf32> to vector<8x4xf32>
    %167 = vector.shape_cast %164 : vector<8x4xf32> to vector<8x1x4xf32>
    tpu.vector_store %arg16[%c0_140, %c1_141, %c1_142], %167 {strides = array<i32>} : memref<8x6x6xf32, #tpu.memory_space<vmem>>, vector<8x1x4xf32>,
    %168 = vector.extract_strided_slice %163 {offsets = [0, 4], sizes = [8, 4], strides = [1, 1]} : vector<8x8xf32> to vector<8x4xf32>
    %c0_143 = arith.constant 0 : index
    %c3_144 = arith.constant 3 : index
    %c1_145 = arith.constant 1 : index
    %169 = vector.load %arg16[%c0_143, %c3_144, %c1_145] : memref<8x6x6xf32, #tpu.memory_space<vmem>>, vector<8x1x4xf32>
    %170 = vector.shape_cast %169 : vector<8x1x4xf32> to vector<8x4xf32>
    %171 = vector.shape_cast %168 : vector<8x4xf32> to vector<8x1x4xf32>
    tpu.vector_store %arg16[%c0_143, %c3_144, %c1_145], %171 {strides = array<i32>} : memref<8x6x6xf32, #tpu.memory_space<vmem>>, vector<8x1x4xf32>,
    %c0_146 = arith.constant 0 : index
    %c1_147 = arith.constant 1 : index
    %c0_148 = arith.constant 0 : index
    %172 = vector.load %arg15[%c0_146, %c1_147, %c0_148] : memref<8x4x4xf32, #tpu.memory_space<vmem>>, vector<8x1x2xf32>
    %173 = vector.shape_cast %172 : vector<8x1x2xf32> to vector<8x2xf32>
    %c0_149 = arith.constant 0 : index
    %c2_150 = arith.constant 2 : index
    %c0_151 = arith.constant 0 : index
    %174 = vector.load %arg15[%c0_149, %c2_150, %c0_151] : memref<8x4x4xf32, #tpu.memory_space<vmem>>, vector<8x1x2xf32>
    %175 = vector.shape_cast %174 : vector<8x1x2xf32> to vector<8x2xf32>
    %176 = tpu.concatenate %173, %175 in 1 : vector<8x2xf32>, vector<8x2xf32> -> vector<8x4xf32>
    %c0_152 = arith.constant 0 : index
    %c1_153 = arith.constant 1 : index
    %c1_154 = arith.constant 1 : index
    %177 = vector.load %arg15[%c0_152, %c1_153, %c1_154] : memref<8x4x4xf32, #tpu.memory_space<vmem>>, vector<8x1x2xf32>
    %178 = vector.shape_cast %177 : vector<8x1x2xf32> to vector<8x2xf32>
    %c0_155 = arith.constant 0 : index
    %c2_156 = arith.constant 2 : index
    %c1_157 = arith.constant 1 : index
    %179 = vector.load %arg15[%c0_155, %c2_156, %c1_157] : memref<8x4x4xf32, #tpu.memory_space<vmem>>, vector<8x1x2xf32>
    %180 = vector.shape_cast %179 : vector<8x1x2xf32> to vector<8x2xf32>
    %181 = tpu.concatenate %178, %180 in 1 : vector<8x2xf32>, vector<8x2xf32> -> vector<8x4xf32>
    %c0_158 = arith.constant 0 : index
    %c2_159 = arith.constant 2 : index
    %c0_160 = arith.constant 0 : index
    %182 = vector.load %arg15[%c0_158, %c2_159, %c0_160] : memref<8x4x4xf32, #tpu.memory_space<vmem>>, vector<8x1x2xf32>
    %183 = vector.shape_cast %182 : vector<8x1x2xf32> to vector<8x2xf32>
    %c0_161 = arith.constant 0 : index
    %c3_162 = arith.constant 3 : index
    %c0_163 = arith.constant 0 : index
    %184 = vector.load %arg15[%c0_161, %c3_162, %c0_163] : memref<8x4x4xf32, #tpu.memory_space<vmem>>, vector<8x1x2xf32>
    %185 = vector.shape_cast %184 : vector<8x1x2xf32> to vector<8x2xf32>
    %186 = tpu.concatenate %183, %185 in 1 : vector<8x2xf32>, vector<8x2xf32> -> vector<8x4xf32>
    %c0_164 = arith.constant 0 : index
    %c2_165 = arith.constant 2 : index
    %c1_166 = arith.constant 1 : index
    %187 = vector.load %arg15[%c0_164, %c2_165, %c1_166] : memref<8x4x4xf32, #tpu.memory_space<vmem>>, vector<8x1x2xf32>
    %188 = vector.shape_cast %187 : vector<8x1x2xf32> to vector<8x2xf32>
    %c0_167 = arith.constant 0 : index
    %c3_168 = arith.constant 3 : index
    %c1_169 = arith.constant 1 : index
    %189 = vector.load %arg15[%c0_167, %c3_168, %c1_169] : memref<8x4x4xf32, #tpu.memory_space<vmem>>, vector<8x1x2xf32>
    %190 = vector.shape_cast %189 : vector<8x1x2xf32> to vector<8x2xf32>
    %191 = tpu.concatenate %188, %190 in 1 : vector<8x2xf32>, vector<8x2xf32> -> vector<8x4xf32>
    %192 = tpu.concatenate %176, %181, %186, %191 in 0 : vector<8x4xf32>, vector<8x4xf32>, vector<8x4xf32>, vector<8x4xf32> -> vector<32x4xf32>
    %cst_170 = arith.constant dense<0.000000e+00> : vector<8x4xf32>
    %193 = tpu.matmul %95, %192, %cst_170 {dimension_numbers = #tpu.dot_dimension_numbers<[1], [0], [0], [1], [0, 0, 1, 1], [], []>} : vector<8x32xf32>, vector<32x4xf32>, vector<8x4xf32> -> vector<8x4xf32>
    %c0_171 = arith.constant 0 : index
    %c1_172 = arith.constant 1 : index
    %c1_173 = arith.constant 1 : index
    %194 = vector.load %arg15[%c0_171, %c1_172, %c1_173] : memref<8x4x4xf32, #tpu.memory_space<vmem>>, vector<8x1x2xf32>
    %195 = vector.shape_cast %194 : vector<8x1x2xf32> to vector<8x2xf32>
    %c0_174 = arith.constant 0 : index
    %c2_175 = arith.constant 2 : index
    %c1_176 = arith.constant 1 : index
    %196 = vector.load %arg15[%c0_174, %c2_175, %c1_176] : memref<8x4x4xf32, #tpu.memory_space<vmem>>, vector<8x1x2xf32>
    %197 = vector.shape_cast %196 : vector<8x1x2xf32> to vector<8x2xf32>
    %198 = tpu.concatenate %195, %197 in 1 : vector<8x2xf32>, vector<8x2xf32> -> vector<8x4xf32>
    %c0_177 = arith.constant 0 : index
    %c1_178 = arith.constant 1 : index
    %c2_179 = arith.constant 2 : index
    %199 = vector.load %arg15[%c0_177, %c1_178, %c2_179] : memref<8x4x4xf32, #tpu.memory_space<vmem>>, vector<8x1x2xf32>
    %200 = vector.shape_cast %199 : vector<8x1x2xf32> to vector<8x2xf32>
    %c0_180 = arith.constant 0 : index
    %c2_181 = arith.constant 2 : index
    %c2_182 = arith.constant 2 : index
    %201 = vector.load %arg15[%c0_180, %c2_181, %c2_182] : memref<8x4x4xf32, #tpu.memory_space<vmem>>, vector<8x1x2xf32>
    %202 = vector.shape_cast %201 : vector<8x1x2xf32> to vector<8x2xf32>
    %203 = tpu.concatenate %200, %202 in 1 : vector<8x2xf32>, vector<8x2xf32> -> vector<8x4xf32>
    %c0_183 = arith.constant 0 : index
    %c2_184 = arith.constant 2 : index
    %c1_185 = arith.constant 1 : index
    %204 = vector.load %arg15[%c0_183, %c2_184, %c1_185] : memref<8x4x4xf32, #tpu.memory_space<vmem>>, vector<8x1x2xf32>
    %205 = vector.shape_cast %204 : vector<8x1x2xf32> to vector<8x2xf32>
    %c0_186 = arith.constant 0 : index
    %c3_187 = arith.constant 3 : index
    %c1_188 = arith.constant 1 : index
    %206 = vector.load %arg15[%c0_186, %c3_187, %c1_188] : memref<8x4x4xf32, #tpu.memory_space<vmem>>, vector<8x1x2xf32>
    %207 = vector.shape_cast %206 : vector<8x1x2xf32> to vector<8x2xf32>
    %208 = tpu.concatenate %205, %207 in 1 : vector<8x2xf32>, vector<8x2xf32> -> vector<8x4xf32>
    %c0_189 = arith.constant 0 : index
    %c2_190 = arith.constant 2 : index
    %c2_191 = arith.constant 2 : index
    %209 = vector.load %arg15[%c0_189, %c2_190, %c2_191] : memref<8x4x4xf32, #tpu.memory_space<vmem>>, vector<8x1x2xf32>
    %210 = vector.shape_cast %209 : vector<8x1x2xf32> to vector<8x2xf32>
    %c0_192 = arith.constant 0 : index
    %c3_193 = arith.constant 3 : index
    %c2_194 = arith.constant 2 : index
    %211 = vector.load %arg15[%c0_192, %c3_193, %c2_194] : memref<8x4x4xf32, #tpu.memory_space<vmem>>, vector<8x1x2xf32>
    %212 = vector.shape_cast %211 : vector<8x1x2xf32> to vector<8x2xf32>
    %213 = tpu.concatenate %210, %212 in 1 : vector<8x2xf32>, vector<8x2xf32> -> vector<8x4xf32>
    %214 = tpu.concatenate %198, %203, %208, %213 in 0 : vector<8x4xf32>, vector<8x4xf32>, vector<8x4xf32>, vector<8x4xf32> -> vector<32x4xf32>
    %cst_195 = arith.constant dense<0.000000e+00> : vector<8x4xf32>
    %215 = tpu.matmul %97, %214, %cst_195 {dimension_numbers = #tpu.dot_dimension_numbers<[1], [0], [0], [1], [0, 0, 1, 1], [], []>} : vector<8x32xf32>, vector<32x4xf32>, vector<8x4xf32> -> vector<8x4xf32>
    %cst_196 = arith.constant dense<0.000000e+00> : vector<8x8xf32>
    %216 = tpu.matmul %193, %105, %cst_196 {dimension_numbers = #tpu.dot_dimension_numbers<[1], [0], [0], [1], [0, 0, 1, 1], [], []>} : vector<8x4xf32>, vector<4x8xf32>, vector<8x8xf32> -> vector<8x8xf32>
    %cst_197 = arith.constant dense<0.000000e+00> : vector<8x8xf32>
    %217 = tpu.matmul %215, %112, %cst_197 {dimension_numbers = #tpu.dot_dimension_numbers<[1], [0], [0], [1], [0, 0, 1, 1], [], []>} : vector<8x4xf32>, vector<4x8xf32>, vector<8x8xf32> -> vector<8x8xf32>
    %218 = arith.addf %216, %217 : vector<8x8xf32>
    %219 = vector.broadcast %98 : vector<8x1xf32> to vector<8x8xf32>
    %220 = arith.addf %218, %219 : vector<8x8xf32>
    %cst_198 = arith.constant 0.000000e+00 : f32
    %221 = vector.broadcast %cst_198 : f32 to vector<8x8xf32>
    %222 = arith.maximumf %220, %221 : vector<8x8xf32>
    %223 = vector.extract_strided_slice %222 {offsets = [0, 0], sizes = [8, 4], strides = [1, 1]} : vector<8x8xf32> to vector<8x4xf32>
    %c0_199 = arith.constant 0 : index
    %c2_200 = arith.constant 2 : index
    %c1_201 = arith.constant 1 : index
    %224 = vector.load %arg16[%c0_199, %c2_200, %c1_201] : memref<8x6x6xf32, #tpu.memory_space<vmem>>, vector<8x1x4xf32>
    %225 = vector.shape_cast %224 : vector<8x1x4xf32> to vector<8x4xf32>
    %226 = vector.shape_cast %223 : vector<8x4xf32> to vector<8x1x4xf32>
    tpu.vector_store %arg16[%c0_199, %c2_200, %c1_201], %226 {strides = array<i32>} : memref<8x6x6xf32, #tpu.memory_space<vmem>>, vector<8x1x4xf32>,
    %227 = vector.extract_strided_slice %222 {offsets = [0, 4], sizes = [8, 4], strides = [1, 1]} : vector<8x8xf32> to vector<8x4xf32>
    %c0_202 = arith.constant 0 : index
    %c4_203 = arith.constant 4 : index
    %c1_204 = arith.constant 1 : index
    %228 = vector.load %arg16[%c0_202, %c4_203, %c1_204] : memref<8x6x6xf32, #tpu.memory_space<vmem>>, vector<8x1x4xf32>
    %229 = vector.shape_cast %228 : vector<8x1x4xf32> to vector<8x4xf32>
    %230 = vector.shape_cast %227 : vector<8x4xf32> to vector<8x1x4xf32>
    tpu.vector_store %arg16[%c0_202, %c4_203, %c1_204], %230 {strides = array<i32>} : memref<8x6x6xf32, #tpu.memory_space<vmem>>, vector<8x1x4xf32>,
    %c0_205 = arith.constant 0 : index
    %c0_206 = arith.constant 0 : index
    %c0_207 = arith.constant 0 : index
    %231 = vector.load %arg10[%c0_205, %c0_206, %c0_207] : memref<4x8x32xf32, #tpu.memory_space<vmem>>, vector<1x8x32xf32>
    %232 = vector.shape_cast %231 : vector<1x8x32xf32> to vector<8x32xf32>
    %c1_208 = arith.constant 1 : index
    %c0_209 = arith.constant 0 : index
    %c0_210 = arith.constant 0 : index
    %233 = vector.load %arg10[%c1_208, %c0_209, %c0_210] : memref<4x8x32xf32, #tpu.memory_space<vmem>>, vector<1x8x32xf32>
    %234 = vector.shape_cast %233 : vector<1x8x32xf32> to vector<8x32xf32>
    %c2_211 = arith.constant 2 : index
    %c0_212 = arith.constant 0 : index
    %c0_213 = arith.constant 0 : index
    %235 = vector.load %arg10[%c2_211, %c0_212, %c0_213] : memref<4x8x32xf32, #tpu.memory_space<vmem>>, vector<1x8x32xf32>
    %236 = vector.shape_cast %235 : vector<1x8x32xf32> to vector<8x32xf32>
    %c3_214 = arith.constant 3 : index
    %c0_215 = arith.constant 0 : index
    %c0_216 = arith.constant 0 : index
    %237 = vector.load %arg10[%c3_214, %c0_215, %c0_216] : memref<4x8x32xf32, #tpu.memory_space<vmem>>, vector<1x8x32xf32>
    %238 = vector.shape_cast %237 : vector<1x8x32xf32> to vector<8x32xf32>
    %c0_217 = arith.constant 0 : index
    %c0_218 = arith.constant 0 : index
    %239 = vector.load %arg11[%c0_217, %c0_218] : memref<8x1xf32, #tpu.memory_space<vmem>>, vector<8x1xf32>
    %240 = tpu.iota {dimensions = array<i32: 0>} : vector<16x32xi32>
    %241 = tpu.iota {dimensions = array<i32: 1>} : vector<16x32xi32>
    %c2_i32_219 = arith.constant 2 : i32
    %242 = vector.broadcast %c2_i32_219 : i32 to vector<16x32xi32>
    %243 = arith.muli %242, %240 : vector<16x32xi32>
    %244 = arith.cmpi eq, %241, %243 : vector<16x32xi32>
    %245 = arith.extui %244 : vector<16x32xi1> to vector<16x32xi32>
    %246 = arith.sitofp %245 : vector<16x32xi32> to vector<16x32xf32>
    %c2_i32_220 = arith.constant 2 : i32
    %247 = vector.broadcast %c2_i32_220 : i32 to vector<16x32xi32>
    %248 = arith.muli %247, %240 : vector<16x32xi32>
    %c1_i32_221 = arith.constant 1 : i32
    %249 = vector.broadcast %c1_i32_221 : i32 to vector<16x32xi32>
    %250 = arith.addi %248, %249 : vector<16x32xi32>
    %251 = arith.cmpi eq, %241, %250 : vector<16x32xi32>
    %252 = arith.extui %251 : vector<16x32xi1> to vector<16x32xi32>
    %253 = arith.sitofp %252 : vector<16x32xi32> to vector<16x32xf32>
    %c0_222 = arith.constant 0 : index
    %c0_223 = arith.constant 0 : index
    %c0_224 = arith.constant 0 : index
    %254 = vector.load %arg16[%c0_222, %c0_223, %c0_224] : memref<8x6x6xf32, #tpu.memory_space<vmem>>, vector<8x1x4xf32>
    %255 = vector.shape_cast %254 : vector<8x1x4xf32> to vector<8x4xf32>
    %c0_225 = arith.constant 0 : index
    %c1_226 = arith.constant 1 : index
    %c0_227 = arith.constant 0 : index
    %256 = vector.load %arg16[%c0_225, %c1_226, %c0_227] : memref<8x6x6xf32, #tpu.memory_space<vmem>>, vector<8x1x4xf32>
    %257 = vector.shape_cast %256 : vector<8x1x4xf32> to vector<8x4xf32>
    %c0_228 = arith.constant 0 : index
    %c2_229 = arith.constant 2 : index
    %c0_230 = arith.constant 0 : index
    %258 = vector.load %arg16[%c0_228, %c2_229, %c0_230] : memref<8x6x6xf32, #tpu.memory_space<vmem>>, vector<8x1x4xf32>
    %259 = vector.shape_cast %258 : vector<8x1x4xf32> to vector<8x4xf32>
    %c0_231 = arith.constant 0 : index
    %c3_232 = arith.constant 3 : index
    %c0_233 = arith.constant 0 : index
    %260 = vector.load %arg16[%c0_231, %c3_232, %c0_233] : memref<8x6x6xf32, #tpu.memory_space<vmem>>, vector<8x1x4xf32>
    %261 = vector.shape_cast %260 : vector<8x1x4xf32> to vector<8x4xf32>
    %262 = tpu.concatenate %255, %257, %259, %261 in 1 : vector<8x4xf32>, vector<8x4xf32>, vector<8x4xf32>, vector<8x4xf32> -> vector<8x16xf32>
    %c0_234 = arith.constant 0 : index
    %c0_235 = arith.constant 0 : index
    %c1_236 = arith.constant 1 : index
    %263 = vector.load %arg16[%c0_234, %c0_235, %c1_236] : memref<8x6x6xf32, #tpu.memory_space<vmem>>, vector<8x1x4xf32>
    %264 = vector.shape_cast %263 : vector<8x1x4xf32> to vector<8x4xf32>
    %c0_237 = arith.constant 0 : index
    %c1_238 = arith.constant 1 : index
    %c1_239 = arith.constant 1 : index
    %265 = vector.load %arg16[%c0_237, %c1_238, %c1_239] : memref<8x6x6xf32, #tpu.memory_space<vmem>>, vector<8x1x4xf32>
    %266 = vector.shape_cast %265 : vector<8x1x4xf32> to vector<8x4xf32>
    %c0_240 = arith.constant 0 : index
    %c2_241 = arith.constant 2 : index
    %c1_242 = arith.constant 1 : index
    %267 = vector.load %arg16[%c0_240, %c2_241, %c1_242] : memref<8x6x6xf32, #tpu.memory_space<vmem>>, vector<8x1x4xf32>
    %268 = vector.shape_cast %267 : vector<8x1x4xf32> to vector<8x4xf32>
    %c0_243 = arith.constant 0 : index
    %c3_244 = arith.constant 3 : index
    %c1_245 = arith.constant 1 : index
    %269 = vector.load %arg16[%c0_243, %c3_244, %c1_245] : memref<8x6x6xf32, #tpu.memory_space<vmem>>, vector<8x1x4xf32>
    %270 = vector.shape_cast %269 : vector<8x1x4xf32> to vector<8x4xf32>
    %271 = tpu.concatenate %264, %266, %268, %270 in 1 : vector<8x4xf32>, vector<8x4xf32>, vector<8x4xf32>, vector<8x4xf32> -> vector<8x16xf32>
    %c0_246 = arith.constant 0 : index
    %c1_247 = arith.constant 1 : index
    %c0_248 = arith.constant 0 : index
    %272 = vector.load %arg16[%c0_246, %c1_247, %c0_248] : memref<8x6x6xf32, #tpu.memory_space<vmem>>, vector<8x1x4xf32>
    %273 = vector.shape_cast %272 : vector<8x1x4xf32> to vector<8x4xf32>
    %c0_249 = arith.constant 0 : index
    %c2_250 = arith.constant 2 : index
    %c0_251 = arith.constant 0 : index
    %274 = vector.load %arg16[%c0_249, %c2_250, %c0_251] : memref<8x6x6xf32, #tpu.memory_space<vmem>>, vector<8x1x4xf32>
    %275 = vector.shape_cast %274 : vector<8x1x4xf32> to vector<8x4xf32>
    %c0_252 = arith.constant 0 : index
    %c3_253 = arith.constant 3 : index
    %c0_254 = arith.constant 0 : index
    %276 = vector.load %arg16[%c0_252, %c3_253, %c0_254] : memref<8x6x6xf32, #tpu.memory_space<vmem>>, vector<8x1x4xf32>
    %277 = vector.shape_cast %276 : vector<8x1x4xf32> to vector<8x4xf32>
    %c0_255 = arith.constant 0 : index
    %c4_256 = arith.constant 4 : index
    %c0_257 = arith.constant 0 : index
    %278 = vector.load %arg16[%c0_255, %c4_256, %c0_257] : memref<8x6x6xf32, #tpu.memory_space<vmem>>, vector<8x1x4xf32>
    %279 = vector.shape_cast %278 : vector<8x1x4xf32> to vector<8x4xf32>
    %280 = tpu.concatenate %273, %275, %277, %279 in 1 : vector<8x4xf32>, vector<8x4xf32>, vector<8x4xf32>, vector<8x4xf32> -> vector<8x16xf32>
    %c0_258 = arith.constant 0 : index
    %c1_259 = arith.constant 1 : index
    %c1_260 = arith.constant 1 : index
    %281 = vector.load %arg16[%c0_258, %c1_259, %c1_260] : memref<8x6x6xf32, #tpu.memory_space<vmem>>, vector<8x1x4xf32>
    %282 = vector.shape_cast %281 : vector<8x1x4xf32> to vector<8x4xf32>
    %c0_261 = arith.constant 0 : index
    %c2_262 = arith.constant 2 : index
    %c1_263 = arith.constant 1 : index
    %283 = vector.load %arg16[%c0_261, %c2_262, %c1_263] : memref<8x6x6xf32, #tpu.memory_space<vmem>>, vector<8x1x4xf32>
    %284 = vector.shape_cast %283 : vector<8x1x4xf32> to vector<8x4xf32>
    %c0_264 = arith.constant 0 : index
    %c3_265 = arith.constant 3 : index
    %c1_266 = arith.constant 1 : index
    %285 = vector.load %arg16[%c0_264, %c3_265, %c1_266] : memref<8x6x6xf32, #tpu.memory_space<vmem>>, vector<8x1x4xf32>
    %286 = vector.shape_cast %285 : vector<8x1x4xf32> to vector<8x4xf32>
    %c0_267 = arith.constant 0 : index
    %c4_268 = arith.constant 4 : index
    %c1_269 = arith.constant 1 : index
    %287 = vector.load %arg16[%c0_267, %c4_268, %c1_269] : memref<8x6x6xf32, #tpu.memory_space<vmem>>, vector<8x1x4xf32>
    %288 = vector.shape_cast %287 : vector<8x1x4xf32> to vector<8x4xf32>
    %289 = tpu.concatenate %282, %284, %286, %288 in 1 : vector<8x4xf32>, vector<8x4xf32>, vector<8x4xf32>, vector<8x4xf32> -> vector<8x16xf32>
    %290 = tpu.concatenate %262, %271, %280, %289 in 0 : vector<8x16xf32>, vector<8x16xf32>, vector<8x16xf32>, vector<8x16xf32> -> vector<32x16xf32>
    %cst_270 = arith.constant dense<0.000000e+00> : vector<8x16xf32>
    %291 = tpu.matmul %232, %290, %cst_270 {dimension_numbers = #tpu.dot_dimension_numbers<[1], [0], [0], [1], [0, 0, 1, 1], [], []>} : vector<8x32xf32>, vector<32x16xf32>, vector<8x16xf32> -> vector<8x16xf32>
    %c0_271 = arith.constant 0 : index
    %c0_272 = arith.constant 0 : index
    %c1_273 = arith.constant 1 : index
    %292 = vector.load %arg16[%c0_271, %c0_272, %c1_273] : memref<8x6x6xf32, #tpu.memory_space<vmem>>, vector<8x1x4xf32>
    %293 = vector.shape_cast %292 : vector<8x1x4xf32> to vector<8x4xf32>
    %c0_274 = arith.constant 0 : index
    %c1_275 = arith.constant 1 : index
    %c1_276 = arith.constant 1 : index
    %294 = vector.load %arg16[%c0_274, %c1_275, %c1_276] : memref<8x6x6xf32, #tpu.memory_space<vmem>>, vector<8x1x4xf32>
    %295 = vector.shape_cast %294 : vector<8x1x4xf32> to vector<8x4xf32>
    %c0_277 = arith.constant 0 : index
    %c2_278 = arith.constant 2 : index
    %c1_279 = arith.constant 1 : index
    %296 = vector.load %arg16[%c0_277, %c2_278, %c1_279] : memref<8x6x6xf32, #tpu.memory_space<vmem>>, vector<8x1x4xf32>
    %297 = vector.shape_cast %296 : vector<8x1x4xf32> to vector<8x4xf32>
    %c0_280 = arith.constant 0 : index
    %c3_281 = arith.constant 3 : index
    %c1_282 = arith.constant 1 : index
    %298 = vector.load %arg16[%c0_280, %c3_281, %c1_282] : memref<8x6x6xf32, #tpu.memory_space<vmem>>, vector<8x1x4xf32>
    %299 = vector.shape_cast %298 : vector<8x1x4xf32> to vector<8x4xf32>
    %300 = tpu.concatenate %293, %295, %297, %299 in 1 : vector<8x4xf32>, vector<8x4xf32>, vector<8x4xf32>, vector<8x4xf32> -> vector<8x16xf32>
    %c0_283 = arith.constant 0 : index
    %c0_284 = arith.constant 0 : index
    %c2_285 = arith.constant 2 : index
    %301 = vector.load %arg16[%c0_283, %c0_284, %c2_285] : memref<8x6x6xf32, #tpu.memory_space<vmem>>, vector<8x1x4xf32>
    %302 = vector.shape_cast %301 : vector<8x1x4xf32> to vector<8x4xf32>
    %c0_286 = arith.constant 0 : index
    %c1_287 = arith.constant 1 : index
    %c2_288 = arith.constant 2 : index
    %303 = vector.load %arg16[%c0_286, %c1_287, %c2_288] : memref<8x6x6xf32, #tpu.memory_space<vmem>>, vector<8x1x4xf32>
    %304 = vector.shape_cast %303 : vector<8x1x4xf32> to vector<8x4xf32>
    %c0_289 = arith.constant 0 : index
    %c2_290 = arith.constant 2 : index
    %c2_291 = arith.constant 2 : index
    %305 = vector.load %arg16[%c0_289, %c2_290, %c2_291] : memref<8x6x6xf32, #tpu.memory_space<vmem>>, vector<8x1x4xf32>
    %306 = vector.shape_cast %305 : vector<8x1x4xf32> to vector<8x4xf32>
    %c0_292 = arith.constant 0 : index
    %c3_293 = arith.constant 3 : index
    %c2_294 = arith.constant 2 : index
    %307 = vector.load %arg16[%c0_292, %c3_293, %c2_294] : memref<8x6x6xf32, #tpu.memory_space<vmem>>, vector<8x1x4xf32>
    %308 = vector.shape_cast %307 : vector<8x1x4xf32> to vector<8x4xf32>
    %309 = tpu.concatenate %302, %304, %306, %308 in 1 : vector<8x4xf32>, vector<8x4xf32>, vector<8x4xf32>, vector<8x4xf32> -> vector<8x16xf32>
    %c0_295 = arith.constant 0 : index
    %c1_296 = arith.constant 1 : index
    %c1_297 = arith.constant 1 : index
    %310 = vector.load %arg16[%c0_295, %c1_296, %c1_297] : memref<8x6x6xf32, #tpu.memory_space<vmem>>, vector<8x1x4xf32>
    %311 = vector.shape_cast %310 : vector<8x1x4xf32> to vector<8x4xf32>
    %c0_298 = arith.constant 0 : index
    %c2_299 = arith.constant 2 : index
    %c1_300 = arith.constant 1 : index
    %312 = vector.load %arg16[%c0_298, %c2_299, %c1_300] : memref<8x6x6xf32, #tpu.memory_space<vmem>>, vector<8x1x4xf32>
    %313 = vector.shape_cast %312 : vector<8x1x4xf32> to vector<8x4xf32>
    %c0_301 = arith.constant 0 : index
    %c3_302 = arith.constant 3 : index
    %c1_303 = arith.constant 1 : index
    %314 = vector.load %arg16[%c0_301, %c3_302, %c1_303] : memref<8x6x6xf32, #tpu.memory_space<vmem>>, vector<8x1x4xf32>
    %315 = vector.shape_cast %314 : vector<8x1x4xf32> to vector<8x4xf32>
    %c0_304 = arith.constant 0 : index
    %c4_305 = arith.constant 4 : index
    %c1_306 = arith.constant 1 : index
    %316 = vector.load %arg16[%c0_304, %c4_305, %c1_306] : memref<8x6x6xf32, #tpu.memory_space<vmem>>, vector<8x1x4xf32>
    %317 = vector.shape_cast %316 : vector<8x1x4xf32> to vector<8x4xf32>
    %318 = tpu.concatenate %311, %313, %315, %317 in 1 : vector<8x4xf32>, vector<8x4xf32>, vector<8x4xf32>, vector<8x4xf32> -> vector<8x16xf32>
    %c0_307 = arith.constant 0 : index
    %c1_308 = arith.constant 1 : index
    %c2_309 = arith.constant 2 : index
    %319 = vector.load %arg16[%c0_307, %c1_308, %c2_309] : memref<8x6x6xf32, #tpu.memory_space<vmem>>, vector<8x1x4xf32>
    %320 = vector.shape_cast %319 : vector<8x1x4xf32> to vector<8x4xf32>
    %c0_310 = arith.constant 0 : index
    %c2_311 = arith.constant 2 : index
    %c2_312 = arith.constant 2 : index
    %321 = vector.load %arg16[%c0_310, %c2_311, %c2_312] : memref<8x6x6xf32, #tpu.memory_space<vmem>>, vector<8x1x4xf32>
    %322 = vector.shape_cast %321 : vector<8x1x4xf32> to vector<8x4xf32>
    %c0_313 = arith.constant 0 : index
    %c3_314 = arith.constant 3 : index
    %c2_315 = arith.constant 2 : index
    %323 = vector.load %arg16[%c0_313, %c3_314, %c2_315] : memref<8x6x6xf32, #tpu.memory_space<vmem>>, vector<8x1x4xf32>
    %324 = vector.shape_cast %323 : vector<8x1x4xf32> to vector<8x4xf32>
    %c0_316 = arith.constant 0 : index
    %c4_317 = arith.constant 4 : index
    %c2_318 = arith.constant 2 : index
    %325 = vector.load %arg16[%c0_316, %c4_317, %c2_318] : memref<8x6x6xf32, #tpu.memory_space<vmem>>, vector<8x1x4xf32>
    %326 = vector.shape_cast %325 : vector<8x1x4xf32> to vector<8x4xf32>
    %327 = tpu.concatenate %320, %322, %324, %326 in 1 : vector<8x4xf32>, vector<8x4xf32>, vector<8x4xf32>, vector<8x4xf32> -> vector<8x16xf32>
    %328 = tpu.concatenate %300, %309, %318, %327 in 0 : vector<8x16xf32>, vector<8x16xf32>, vector<8x16xf32>, vector<8x16xf32> -> vector<32x16xf32>
    %cst_319 = arith.constant dense<0.000000e+00> : vector<8x16xf32>
    %329 = tpu.matmul %234, %328, %cst_319 {dimension_numbers = #tpu.dot_dimension_numbers<[1], [0], [0], [1], [0, 0, 1, 1], [], []>} : vector<8x32xf32>, vector<32x16xf32>, vector<8x16xf32> -> vector<8x16xf32>
    %cst_320 = arith.constant dense<0.000000e+00> : vector<8x32xf32>
    %330 = tpu.matmul %291, %246, %cst_320 {dimension_numbers = #tpu.dot_dimension_numbers<[1], [0], [0], [1], [0, 0, 1, 1], [], []>} : vector<8x16xf32>, vector<16x32xf32>, vector<8x32xf32> -> vector<8x32xf32>
    %cst_321 = arith.constant dense<0.000000e+00> : vector<8x32xf32>
    %331 = tpu.matmul %329, %253, %cst_321 {dimension_numbers = #tpu.dot_dimension_numbers<[1], [0], [0], [1], [0, 0, 1, 1], [], []>} : vector<8x16xf32>, vector<16x32xf32>, vector<8x32xf32> -> vector<8x32xf32>
    %332 = arith.addf %330, %331 : vector<8x32xf32>
    %333 = vector.broadcast %239 : vector<8x1xf32> to vector<8x32xf32>
    %334 = arith.addf %332, %333 : vector<8x32xf32>
    %cst_322 = arith.constant 0.000000e+00 : f32
    %335 = vector.broadcast %cst_322 : f32 to vector<8x32xf32>
    %336 = arith.maximumf %334, %335 : vector<8x32xf32>
    %337 = vector.extract_strided_slice %336 {offsets = [0, 0], sizes = [8, 8], strides = [1, 1]} : vector<8x32xf32> to vector<8x8xf32>
    %c0_323 = arith.constant 0 : index
    %c1_324 = arith.constant 1 : index
    %c1_325 = arith.constant 1 : index
    %338 = vector.load %arg17[%c0_323, %c1_324, %c1_325] : memref<8x10x10xf32, #tpu.memory_space<vmem>>, vector<8x1x8xf32>
    %339 = vector.shape_cast %338 : vector<8x1x8xf32> to vector<8x8xf32>
    %340 = vector.shape_cast %337 : vector<8x8xf32> to vector<8x1x8xf32>
    tpu.vector_store %arg17[%c0_323, %c1_324, %c1_325], %340 {strides = array<i32>} : memref<8x10x10xf32, #tpu.memory_space<vmem>>, vector<8x1x8xf32>,
    %341 = vector.extract_strided_slice %336 {offsets = [0, 8], sizes = [8, 8], strides = [1, 1]} : vector<8x32xf32> to vector<8x8xf32>
    %c0_326 = arith.constant 0 : index
    %c3_327 = arith.constant 3 : index
    %c1_328 = arith.constant 1 : index
    %342 = vector.load %arg17[%c0_326, %c3_327, %c1_328] : memref<8x10x10xf32, #tpu.memory_space<vmem>>, vector<8x1x8xf32>
    %343 = vector.shape_cast %342 : vector<8x1x8xf32> to vector<8x8xf32>
    %344 = vector.shape_cast %341 : vector<8x8xf32> to vector<8x1x8xf32>
    tpu.vector_store %arg17[%c0_326, %c3_327, %c1_328], %344 {strides = array<i32>} : memref<8x10x10xf32, #tpu.memory_space<vmem>>, vector<8x1x8xf32>,
    %345 = vector.extract_strided_slice %336 {offsets = [0, 16], sizes = [8, 8], strides = [1, 1]} : vector<8x32xf32> to vector<8x8xf32>
    %c0_329 = arith.constant 0 : index
    %c5_330 = arith.constant 5 : index
    %c1_331 = arith.constant 1 : index
    %346 = vector.load %arg17[%c0_329, %c5_330, %c1_331] : memref<8x10x10xf32, #tpu.memory_space<vmem>>, vector<8x1x8xf32>
    %347 = vector.shape_cast %346 : vector<8x1x8xf32> to vector<8x8xf32>
    %348 = vector.shape_cast %345 : vector<8x8xf32> to vector<8x1x8xf32>
    tpu.vector_store %arg17[%c0_329, %c5_330, %c1_331], %348 {strides = array<i32>} : memref<8x10x10xf32, #tpu.memory_space<vmem>>, vector<8x1x8xf32>,
    %349 = vector.extract_strided_slice %336 {offsets = [0, 24], sizes = [8, 8], strides = [1, 1]} : vector<8x32xf32> to vector<8x8xf32>
    %c0_332 = arith.constant 0 : index
    %c7_333 = arith.constant 7 : index
    %c1_334 = arith.constant 1 : index
    %350 = vector.load %arg17[%c0_332, %c7_333, %c1_334] : memref<8x10x10xf32, #tpu.memory_space<vmem>>, vector<8x1x8xf32>
    %351 = vector.shape_cast %350 : vector<8x1x8xf32> to vector<8x8xf32>
    %352 = vector.shape_cast %349 : vector<8x8xf32> to vector<8x1x8xf32>
    tpu.vector_store %arg17[%c0_332, %c7_333, %c1_334], %352 {strides = array<i32>} : memref<8x10x10xf32, #tpu.memory_space<vmem>>, vector<8x1x8xf32>,
    %c0_335 = arith.constant 0 : index
    %c1_336 = arith.constant 1 : index
    %c0_337 = arith.constant 0 : index
    %353 = vector.load %arg16[%c0_335, %c1_336, %c0_337] : memref<8x6x6xf32, #tpu.memory_space<vmem>>, vector<8x1x4xf32>
    %354 = vector.shape_cast %353 : vector<8x1x4xf32> to vector<8x4xf32>
    %c0_338 = arith.constant 0 : index
    %c2_339 = arith.constant 2 : index
    %c0_340 = arith.constant 0 : index
    %355 = vector.load %arg16[%c0_338, %c2_339, %c0_340] : memref<8x6x6xf32, #tpu.memory_space<vmem>>, vector<8x1x4xf32>
    %356 = vector.shape_cast %355 : vector<8x1x4xf32> to vector<8x4xf32>
    %c0_341 = arith.constant 0 : index
    %c3_342 = arith.constant 3 : index
    %c0_343 = arith.constant 0 : index
    %357 = vector.load %arg16[%c0_341, %c3_342, %c0_343] : memref<8x6x6xf32, #tpu.memory_space<vmem>>, vector<8x1x4xf32>
    %358 = vector.shape_cast %357 : vector<8x1x4xf32> to vector<8x4xf32>
    %c0_344 = arith.constant 0 : index
    %c4_345 = arith.constant 4 : index
    %c0_346 = arith.constant 0 : index
    %359 = vector.load %arg16[%c0_344, %c4_345, %c0_346] : memref<8x6x6xf32, #tpu.memory_space<vmem>>, vector<8x1x4xf32>
    %360 = vector.shape_cast %359 : vector<8x1x4xf32> to vector<8x4xf32>
    %361 = tpu.concatenate %354, %356, %358, %360 in 1 : vector<8x4xf32>, vector<8x4xf32>, vector<8x4xf32>, vector<8x4xf32> -> vector<8x16xf32>
    %c0_347 = arith.constant 0 : index
    %c1_348 = arith.constant 1 : index
    %c1_349 = arith.constant 1 : index
    %362 = vector.load %arg16[%c0_347, %c1_348, %c1_349] : memref<8x6x6xf32, #tpu.memory_space<vmem>>, vector<8x1x4xf32>
    %363 = vector.shape_cast %362 : vector<8x1x4xf32> to vector<8x4xf32>
    %c0_350 = arith.constant 0 : index
    %c2_351 = arith.constant 2 : index
    %c1_352 = arith.constant 1 : index
    %364 = vector.load %arg16[%c0_350, %c2_351, %c1_352] : memref<8x6x6xf32, #tpu.memory_space<vmem>>, vector<8x1x4xf32>
    %365 = vector.shape_cast %364 : vector<8x1x4xf32> to vector<8x4xf32>
    %c0_353 = arith.constant 0 : index
    %c3_354 = arith.constant 3 : index
    %c1_355 = arith.constant 1 : index
    %366 = vector.load %arg16[%c0_353, %c3_354, %c1_355] : memref<8x6x6xf32, #tpu.memory_space<vmem>>, vector<8x1x4xf32>
    %367 = vector.shape_cast %366 : vector<8x1x4xf32> to vector<8x4xf32>
    %c0_356 = arith.constant 0 : index
    %c4_357 = arith.constant 4 : index
    %c1_358 = arith.constant 1 : index
    %368 = vector.load %arg16[%c0_356, %c4_357, %c1_358] : memref<8x6x6xf32, #tpu.memory_space<vmem>>, vector<8x1x4xf32>
    %369 = vector.shape_cast %368 : vector<8x1x4xf32> to vector<8x4xf32>
    %370 = tpu.concatenate %363, %365, %367, %369 in 1 : vector<8x4xf32>, vector<8x4xf32>, vector<8x4xf32>, vector<8x4xf32> -> vector<8x16xf32>
    %c0_359 = arith.constant 0 : index
    %c2_360 = arith.constant 2 : index
    %c0_361 = arith.constant 0 : index
    %371 = vector.load %arg16[%c0_359, %c2_360, %c0_361] : memref<8x6x6xf32, #tpu.memory_space<vmem>>, vector<8x1x4xf32>
    %372 = vector.shape_cast %371 : vector<8x1x4xf32> to vector<8x4xf32>
    %c0_362 = arith.constant 0 : index
    %c3_363 = arith.constant 3 : index
    %c0_364 = arith.constant 0 : index
    %373 = vector.load %arg16[%c0_362, %c3_363, %c0_364] : memref<8x6x6xf32, #tpu.memory_space<vmem>>, vector<8x1x4xf32>
    %374 = vector.shape_cast %373 : vector<8x1x4xf32> to vector<8x4xf32>
    %c0_365 = arith.constant 0 : index
    %c4_366 = arith.constant 4 : index
    %c0_367 = arith.constant 0 : index
    %375 = vector.load %arg16[%c0_365, %c4_366, %c0_367] : memref<8x6x6xf32, #tpu.memory_space<vmem>>, vector<8x1x4xf32>
    %376 = vector.shape_cast %375 : vector<8x1x4xf32> to vector<8x4xf32>
    %c0_368 = arith.constant 0 : index
    %c5_369 = arith.constant 5 : index
    %c0_370 = arith.constant 0 : index
    %377 = vector.load %arg16[%c0_368, %c5_369, %c0_370] : memref<8x6x6xf32, #tpu.memory_space<vmem>>, vector<8x1x4xf32>
    %378 = vector.shape_cast %377 : vector<8x1x4xf32> to vector<8x4xf32>
    %379 = tpu.concatenate %372, %374, %376, %378 in 1 : vector<8x4xf32>, vector<8x4xf32>, vector<8x4xf32>, vector<8x4xf32> -> vector<8x16xf32>
    %c0_371 = arith.constant 0 : index
    %c2_372 = arith.constant 2 : index
    %c1_373 = arith.constant 1 : index
    %380 = vector.load %arg16[%c0_371, %c2_372, %c1_373] : memref<8x6x6xf32, #tpu.memory_space<vmem>>, vector<8x1x4xf32>
    %381 = vector.shape_cast %380 : vector<8x1x4xf32> to vector<8x4xf32>
    %c0_374 = arith.constant 0 : index
    %c3_375 = arith.constant 3 : index
    %c1_376 = arith.constant 1 : index
    %382 = vector.load %arg16[%c0_374, %c3_375, %c1_376] : memref<8x6x6xf32, #tpu.memory_space<vmem>>, vector<8x1x4xf32>
    %383 = vector.shape_cast %382 : vector<8x1x4xf32> to vector<8x4xf32>
    %c0_377 = arith.constant 0 : index
    %c4_378 = arith.constant 4 : index
    %c1_379 = arith.constant 1 : index
    %384 = vector.load %arg16[%c0_377, %c4_378, %c1_379] : memref<8x6x6xf32, #tpu.memory_space<vmem>>, vector<8x1x4xf32>
    %385 = vector.shape_cast %384 : vector<8x1x4xf32> to vector<8x4xf32>
    %c0_380 = arith.constant 0 : index
    %c5_381 = arith.constant 5 : index
    %c1_382 = arith.constant 1 : index
    %386 = vector.load %arg16[%c0_380, %c5_381, %c1_382] : memref<8x6x6xf32, #tpu.memory_space<vmem>>, vector<8x1x4xf32>
    %387 = vector.shape_cast %386 : vector<8x1x4xf32> to vector<8x4xf32>
    %388 = tpu.concatenate %381, %383, %385, %387 in 1 : vector<8x4xf32>, vector<8x4xf32>, vector<8x4xf32>, vector<8x4xf32> -> vector<8x16xf32>
    %389 = tpu.concatenate %361, %370, %379, %388 in 0 : vector<8x16xf32>, vector<8x16xf32>, vector<8x16xf32>, vector<8x16xf32> -> vector<32x16xf32>
    %cst_383 = arith.constant dense<0.000000e+00> : vector<8x16xf32>
    %390 = tpu.matmul %236, %389, %cst_383 {dimension_numbers = #tpu.dot_dimension_numbers<[1], [0], [0], [1], [0, 0, 1, 1], [], []>} : vector<8x32xf32>, vector<32x16xf32>, vector<8x16xf32> -> vector<8x16xf32>
    %c0_384 = arith.constant 0 : index
    %c1_385 = arith.constant 1 : index
    %c1_386 = arith.constant 1 : index
    %391 = vector.load %arg16[%c0_384, %c1_385, %c1_386] : memref<8x6x6xf32, #tpu.memory_space<vmem>>, vector<8x1x4xf32>
    %392 = vector.shape_cast %391 : vector<8x1x4xf32> to vector<8x4xf32>
    %c0_387 = arith.constant 0 : index
    %c2_388 = arith.constant 2 : index
    %c1_389 = arith.constant 1 : index
    %393 = vector.load %arg16[%c0_387, %c2_388, %c1_389] : memref<8x6x6xf32, #tpu.memory_space<vmem>>, vector<8x1x4xf32>
    %394 = vector.shape_cast %393 : vector<8x1x4xf32> to vector<8x4xf32>
    %c0_390 = arith.constant 0 : index
    %c3_391 = arith.constant 3 : index
    %c1_392 = arith.constant 1 : index
    %395 = vector.load %arg16[%c0_390, %c3_391, %c1_392] : memref<8x6x6xf32, #tpu.memory_space<vmem>>, vector<8x1x4xf32>
    %396 = vector.shape_cast %395 : vector<8x1x4xf32> to vector<8x4xf32>
    %c0_393 = arith.constant 0 : index
    %c4_394 = arith.constant 4 : index
    %c1_395 = arith.constant 1 : index
    %397 = vector.load %arg16[%c0_393, %c4_394, %c1_395] : memref<8x6x6xf32, #tpu.memory_space<vmem>>, vector<8x1x4xf32>
    %398 = vector.shape_cast %397 : vector<8x1x4xf32> to vector<8x4xf32>
    %399 = tpu.concatenate %392, %394, %396, %398 in 1 : vector<8x4xf32>, vector<8x4xf32>, vector<8x4xf32>, vector<8x4xf32> -> vector<8x16xf32>
    %c0_396 = arith.constant 0 : index
    %c1_397 = arith.constant 1 : index
    %c2_398 = arith.constant 2 : index
    %400 = vector.load %arg16[%c0_396, %c1_397, %c2_398] : memref<8x6x6xf32, #tpu.memory_space<vmem>>, vector<8x1x4xf32>
    %401 = vector.shape_cast %400 : vector<8x1x4xf32> to vector<8x4xf32>
    %c0_399 = arith.constant 0 : index
    %c2_400 = arith.constant 2 : index
    %c2_401 = arith.constant 2 : index
    %402 = vector.load %arg16[%c0_399, %c2_400, %c2_401] : memref<8x6x6xf32, #tpu.memory_space<vmem>>, vector<8x1x4xf32>
    %403 = vector.shape_cast %402 : vector<8x1x4xf32> to vector<8x4xf32>
    %c0_402 = arith.constant 0 : index
    %c3_403 = arith.constant 3 : index
    %c2_404 = arith.constant 2 : index
    %404 = vector.load %arg16[%c0_402, %c3_403, %c2_404] : memref<8x6x6xf32, #tpu.memory_space<vmem>>, vector<8x1x4xf32>
    %405 = vector.shape_cast %404 : vector<8x1x4xf32> to vector<8x4xf32>
    %c0_405 = arith.constant 0 : index
    %c4_406 = arith.constant 4 : index
    %c2_407 = arith.constant 2 : index
    %406 = vector.load %arg16[%c0_405, %c4_406, %c2_407] : memref<8x6x6xf32, #tpu.memory_space<vmem>>, vector<8x1x4xf32>
    %407 = vector.shape_cast %406 : vector<8x1x4xf32> to vector<8x4xf32>
    %408 = tpu.concatenate %401, %403, %405, %407 in 1 : vector<8x4xf32>, vector<8x4xf32>, vector<8x4xf32>, vector<8x4xf32> -> vector<8x16xf32>
    %c0_408 = arith.constant 0 : index
    %c2_409 = arith.constant 2 : index
    %c1_410 = arith.constant 1 : index
    %409 = vector.load %arg16[%c0_408, %c2_409, %c1_410] : memref<8x6x6xf32, #tpu.memory_space<vmem>>, vector<8x1x4xf32>
    %410 = vector.shape_cast %409 : vector<8x1x4xf32> to vector<8x4xf32>
    %c0_411 = arith.constant 0 : index
    %c3_412 = arith.constant 3 : index
    %c1_413 = arith.constant 1 : index
    %411 = vector.load %arg16[%c0_411, %c3_412, %c1_413] : memref<8x6x6xf32, #tpu.memory_space<vmem>>, vector<8x1x4xf32>
    %412 = vector.shape_cast %411 : vector<8x1x4xf32> to vector<8x4xf32>
    %c0_414 = arith.constant 0 : index
    %c4_415 = arith.constant 4 : index
    %c1_416 = arith.constant 1 : index
    %413 = vector.load %arg16[%c0_414, %c4_415, %c1_416] : memref<8x6x6xf32, #tpu.memory_space<vmem>>, vector<8x1x4xf32>
    %414 = vector.shape_cast %413 : vector<8x1x4xf32> to vector<8x4xf32>
    %c0_417 = arith.constant 0 : index
    %c5_418 = arith.constant 5 : index
    %c1_419 = arith.constant 1 : index
    %415 = vector.load %arg16[%c0_417, %c5_418, %c1_419] : memref<8x6x6xf32, #tpu.memory_space<vmem>>, vector<8x1x4xf32>
    %416 = vector.shape_cast %415 : vector<8x1x4xf32> to vector<8x4xf32>
    %417 = tpu.concatenate %410, %412, %414, %416 in 1 : vector<8x4xf32>, vector<8x4xf32>, vector<8x4xf32>, vector<8x4xf32> -> vector<8x16xf32>
    %c0_420 = arith.constant 0 : index
    %c2_421 = arith.constant 2 : index
    %c2_422 = arith.constant 2 : index
    %418 = vector.load %arg16[%c0_420, %c2_421, %c2_422] : memref<8x6x6xf32, #tpu.memory_space<vmem>>, vector<8x1x4xf32>
    %419 = vector.shape_cast %418 : vector<8x1x4xf32> to vector<8x4xf32>
    %c0_423 = arith.constant 0 : index
    %c3_424 = arith.constant 3 : index
    %c2_425 = arith.constant 2 : index
    %420 = vector.load %arg16[%c0_423, %c3_424, %c2_425] : memref<8x6x6xf32, #tpu.memory_space<vmem>>, vector<8x1x4xf32>
    %421 = vector.shape_cast %420 : vector<8x1x4xf32> to vector<8x4xf32>
    %c0_426 = arith.constant 0 : index
    %c4_427 = arith.constant 4 : index
    %c2_428 = arith.constant 2 : index
    %422 = vector.load %arg16[%c0_426, %c4_427, %c2_428] : memref<8x6x6xf32, #tpu.memory_space<vmem>>, vector<8x1x4xf32>
    %423 = vector.shape_cast %422 : vector<8x1x4xf32> to vector<8x4xf32>
    %c0_429 = arith.constant 0 : index
    %c5_430 = arith.constant 5 : index
    %c2_431 = arith.constant 2 : index
    %424 = vector.load %arg16[%c0_429, %c5_430, %c2_431] : memref<8x6x6xf32, #tpu.memory_space<vmem>>, vector<8x1x4xf32>
    %425 = vector.shape_cast %424 : vector<8x1x4xf32> to vector<8x4xf32>
    %426 = tpu.concatenate %419, %421, %423, %425 in 1 : vector<8x4xf32>, vector<8x4xf32>, vector<8x4xf32>, vector<8x4xf32> -> vector<8x16xf32>
    %427 = tpu.concatenate %399, %408, %417, %426 in 0 : vector<8x16xf32>, vector<8x16xf32>, vector<8x16xf32>, vector<8x16xf32> -> vector<32x16xf32>
    %cst_432 = arith.constant dense<0.000000e+00> : vector<8x16xf32>
    %428 = tpu.matmul %238, %427, %cst_432 {dimension_numbers = #tpu.dot_dimension_numbers<[1], [0], [0], [1], [0, 0, 1, 1], [], []>} : vector<8x32xf32>, vector<32x16xf32>, vector<8x16xf32> -> vector<8x16xf32>
    %cst_433 = arith.constant dense<0.000000e+00> : vector<8x32xf32>
    %429 = tpu.matmul %390, %246, %cst_433 {dimension_numbers = #tpu.dot_dimension_numbers<[1], [0], [0], [1], [0, 0, 1, 1], [], []>} : vector<8x16xf32>, vector<16x32xf32>, vector<8x32xf32> -> vector<8x32xf32>
    %cst_434 = arith.constant dense<0.000000e+00> : vector<8x32xf32>
    %430 = tpu.matmul %428, %253, %cst_434 {dimension_numbers = #tpu.dot_dimension_numbers<[1], [0], [0], [1], [0, 0, 1, 1], [], []>} : vector<8x16xf32>, vector<16x32xf32>, vector<8x32xf32> -> vector<8x32xf32>
    %431 = arith.addf %429, %430 : vector<8x32xf32>
    %432 = vector.broadcast %239 : vector<8x1xf32> to vector<8x32xf32>
    %433 = arith.addf %431, %432 : vector<8x32xf32>
    %cst_435 = arith.constant 0.000000e+00 : f32
    %434 = vector.broadcast %cst_435 : f32 to vector<8x32xf32>
    %435 = arith.maximumf %433, %434 : vector<8x32xf32>
    %436 = vector.extract_strided_slice %435 {offsets = [0, 0], sizes = [8, 8], strides = [1, 1]} : vector<8x32xf32> to vector<8x8xf32>
    %c0_436 = arith.constant 0 : index
    %c2_437 = arith.constant 2 : index
    %c1_438 = arith.constant 1 : index
    %437 = vector.load %arg17[%c0_436, %c2_437, %c1_438] : memref<8x10x10xf32, #tpu.memory_space<vmem>>, vector<8x1x8xf32>
    %438 = vector.shape_cast %437 : vector<8x1x8xf32> to vector<8x8xf32>
    %439 = vector.shape_cast %436 : vector<8x8xf32> to vector<8x1x8xf32>
    tpu.vector_store %arg17[%c0_436, %c2_437, %c1_438], %439 {strides = array<i32>} : memref<8x10x10xf32, #tpu.memory_space<vmem>>, vector<8x1x8xf32>,
    %440 = vector.extract_strided_slice %435 {offsets = [0, 8], sizes = [8, 8], strides = [1, 1]} : vector<8x32xf32> to vector<8x8xf32>
    %c0_439 = arith.constant 0 : index
    %c4_440 = arith.constant 4 : index
    %c1_441 = arith.constant 1 : index
    %441 = vector.load %arg17[%c0_439, %c4_440, %c1_441] : memref<8x10x10xf32, #tpu.memory_space<vmem>>, vector<8x1x8xf32>
    %442 = vector.shape_cast %441 : vector<8x1x8xf32> to vector<8x8xf32>
    %443 = vector.shape_cast %440 : vector<8x8xf32> to vector<8x1x8xf32>
    tpu.vector_store %arg17[%c0_439, %c4_440, %c1_441], %443 {strides = array<i32>} : memref<8x10x10xf32, #tpu.memory_space<vmem>>, vector<8x1x8xf32>,
    %444 = vector.extract_strided_slice %435 {offsets = [0, 16], sizes = [8, 8], strides = [1, 1]} : vector<8x32xf32> to vector<8x8xf32>
    %c0_442 = arith.constant 0 : index
    %c6_443 = arith.constant 6 : index
    %c1_444 = arith.constant 1 : index
    %445 = vector.load %arg17[%c0_442, %c6_443, %c1_444] : memref<8x10x10xf32, #tpu.memory_space<vmem>>, vector<8x1x8xf32>
    %446 = vector.shape_cast %445 : vector<8x1x8xf32> to vector<8x8xf32>
    %447 = vector.shape_cast %444 : vector<8x8xf32> to vector<8x1x8xf32>
    tpu.vector_store %arg17[%c0_442, %c6_443, %c1_444], %447 {strides = array<i32>} : memref<8x10x10xf32, #tpu.memory_space<vmem>>, vector<8x1x8xf32>,
    %448 = vector.extract_strided_slice %435 {offsets = [0, 24], sizes = [8, 8], strides = [1, 1]} : vector<8x32xf32> to vector<8x8xf32>
    %c0_445 = arith.constant 0 : index
    %c8 = arith.constant 8 : index
    %c1_446 = arith.constant 1 : index
    %449 = vector.load %arg17[%c0_445, %c8, %c1_446] : memref<8x10x10xf32, #tpu.memory_space<vmem>>, vector<8x1x8xf32>
    %450 = vector.shape_cast %449 : vector<8x1x8xf32> to vector<8x8xf32>
    %451 = vector.shape_cast %448 : vector<8x8xf32> to vector<8x1x8xf32>
    tpu.vector_store %arg17[%c0_445, %c8, %c1_446], %451 {strides = array<i32>} : memref<8x10x10xf32, #tpu.memory_space<vmem>>, vector<8x1x8xf32>,
    %c0_447 = arith.constant 0 : index
    %c0_448 = arith.constant 0 : index
    %c0_449 = arith.constant 0 : index
    %452 = vector.load %arg12[%c0_447, %c0_448, %c0_449] : memref<4x1x32xf32, #tpu.memory_space<vmem>>, vector<1x1x32xf32>
    %453 = vector.shape_cast %452 : vector<1x1x32xf32> to vector<1x32xf32>
    %c1_450 = arith.constant 1 : index
    %c0_451 = arith.constant 0 : index
    %c0_452 = arith.constant 0 : index
    %454 = vector.load %arg12[%c1_450, %c0_451, %c0_452] : memref<4x1x32xf32, #tpu.memory_space<vmem>>, vector<1x1x32xf32>
    %455 = vector.shape_cast %454 : vector<1x1x32xf32> to vector<1x32xf32>
    %c2_453 = arith.constant 2 : index
    %c0_454 = arith.constant 0 : index
    %c0_455 = arith.constant 0 : index
    %456 = vector.load %arg12[%c2_453, %c0_454, %c0_455] : memref<4x1x32xf32, #tpu.memory_space<vmem>>, vector<1x1x32xf32>
    %457 = vector.shape_cast %456 : vector<1x1x32xf32> to vector<1x32xf32>
    %c3_456 = arith.constant 3 : index
    %c0_457 = arith.constant 0 : index
    %c0_458 = arith.constant 0 : index
    %458 = vector.load %arg12[%c3_456, %c0_457, %c0_458] : memref<4x1x32xf32, #tpu.memory_space<vmem>>, vector<1x1x32xf32>
    %459 = vector.shape_cast %458 : vector<1x1x32xf32> to vector<1x32xf32>
    %c0_459 = arith.constant 0 : index
    %c0_460 = arith.constant 0 : index
    %460 = vector.load %arg13[%c0_459, %c0_460] : memref<1x1xf32, #tpu.memory_space<vmem>>, vector<1x1xf32>
    %461 = tpu.iota {dimensions = array<i32: 0>} : vector<64x128xi32>
    %462 = tpu.iota {dimensions = array<i32: 1>} : vector<64x128xi32>
    %c2_i32_461 = arith.constant 2 : i32
    %463 = vector.broadcast %c2_i32_461 : i32 to vector<64x128xi32>
    %464 = arith.muli %463, %461 : vector<64x128xi32>
    %465 = arith.cmpi eq, %462, %464 : vector<64x128xi32>
    %466 = arith.extui %465 : vector<64x128xi1> to vector<64x128xi32>
    %467 = arith.sitofp %466 : vector<64x128xi32> to vector<64x128xf32>
    %c2_i32_462 = arith.constant 2 : i32
    %468 = vector.broadcast %c2_i32_462 : i32 to vector<64x128xi32>
    %469 = arith.muli %468, %461 : vector<64x128xi32>
    %c1_i32_463 = arith.constant 1 : i32
    %470 = vector.broadcast %c1_i32_463 : i32 to vector<64x128xi32>
    %471 = arith.addi %469, %470 : vector<64x128xi32>
    %472 = arith.cmpi eq, %462, %471 : vector<64x128xi32>
    %473 = arith.extui %472 : vector<64x128xi1> to vector<64x128xi32>
    %474 = arith.sitofp %473 : vector<64x128xi32> to vector<64x128xf32>
    %c0_464 = arith.constant 0 : index
    %c0_465 = arith.constant 0 : index
    %c0_466 = arith.constant 0 : index
    %475 = vector.load %arg17[%c0_464, %c0_465, %c0_466] : memref<8x10x10xf32, #tpu.memory_space<vmem>>, vector<8x1x8xf32>
    %476 = vector.shape_cast %475 : vector<8x1x8xf32> to vector<8x8xf32>
    %c0_467 = arith.constant 0 : index
    %c1_468 = arith.constant 1 : index
    %c0_469 = arith.constant 0 : index
    %477 = vector.load %arg17[%c0_467, %c1_468, %c0_469] : memref<8x10x10xf32, #tpu.memory_space<vmem>>, vector<8x1x8xf32>
    %478 = vector.shape_cast %477 : vector<8x1x8xf32> to vector<8x8xf32>
    %c0_470 = arith.constant 0 : index
    %c2_471 = arith.constant 2 : index
    %c0_472 = arith.constant 0 : index
    %479 = vector.load %arg17[%c0_470, %c2_471, %c0_472] : memref<8x10x10xf32, #tpu.memory_space<vmem>>, vector<8x1x8xf32>
    %480 = vector.shape_cast %479 : vector<8x1x8xf32> to vector<8x8xf32>
    %c0_473 = arith.constant 0 : index
    %c3_474 = arith.constant 3 : index
    %c0_475 = arith.constant 0 : index
    %481 = vector.load %arg17[%c0_473, %c3_474, %c0_475] : memref<8x10x10xf32, #tpu.memory_space<vmem>>, vector<8x1x8xf32>
    %482 = vector.shape_cast %481 : vector<8x1x8xf32> to vector<8x8xf32>
    %c0_476 = arith.constant 0 : index
    %c4_477 = arith.constant 4 : index
    %c0_478 = arith.constant 0 : index
    %483 = vector.load %arg17[%c0_476, %c4_477, %c0_478] : memref<8x10x10xf32, #tpu.memory_space<vmem>>, vector<8x1x8xf32>
    %484 = vector.shape_cast %483 : vector<8x1x8xf32> to vector<8x8xf32>
    %c0_479 = arith.constant 0 : index
    %c5_480 = arith.constant 5 : index
    %c0_481 = arith.constant 0 : index
    %485 = vector.load %arg17[%c0_479, %c5_480, %c0_481] : memref<8x10x10xf32, #tpu.memory_space<vmem>>, vector<8x1x8xf32>
    %486 = vector.shape_cast %485 : vector<8x1x8xf32> to vector<8x8xf32>
    %c0_482 = arith.constant 0 : index
    %c6_483 = arith.constant 6 : index
    %c0_484 = arith.constant 0 : index
    %487 = vector.load %arg17[%c0_482, %c6_483, %c0_484] : memref<8x10x10xf32, #tpu.memory_space<vmem>>, vector<8x1x8xf32>
    %488 = vector.shape_cast %487 : vector<8x1x8xf32> to vector<8x8xf32>
    %c0_485 = arith.constant 0 : index
    %c7_486 = arith.constant 7 : index
    %c0_487 = arith.constant 0 : index
    %489 = vector.load %arg17[%c0_485, %c7_486, %c0_487] : memref<8x10x10xf32, #tpu.memory_space<vmem>>, vector<8x1x8xf32>
    %490 = vector.shape_cast %489 : vector<8x1x8xf32> to vector<8x8xf32>
    %491 = tpu.concatenate %476, %478, %480, %482, %484, %486, %488, %490 in 1 : vector<8x8xf32>, vector<8x8xf32>, vector<8x8xf32>, vector<8x8xf32>, vector<8x8xf32>, vector<8x8xf32>, vector<8x8xf32>, vector<8x8xf32> -> vector<8x64xf32>
    %c0_488 = arith.constant 0 : index
    %c0_489 = arith.constant 0 : index
    %c1_490 = arith.constant 1 : index
    %492 = vector.load %arg17[%c0_488, %c0_489, %c1_490] : memref<8x10x10xf32, #tpu.memory_space<vmem>>, vector<8x1x8xf32>
    %493 = vector.shape_cast %492 : vector<8x1x8xf32> to vector<8x8xf32>
    %c0_491 = arith.constant 0 : index
    %c1_492 = arith.constant 1 : index
    %c1_493 = arith.constant 1 : index
    %494 = vector.load %arg17[%c0_491, %c1_492, %c1_493] : memref<8x10x10xf32, #tpu.memory_space<vmem>>, vector<8x1x8xf32>
    %495 = vector.shape_cast %494 : vector<8x1x8xf32> to vector<8x8xf32>
    %c0_494 = arith.constant 0 : index
    %c2_495 = arith.constant 2 : index
    %c1_496 = arith.constant 1 : index
    %496 = vector.load %arg17[%c0_494, %c2_495, %c1_496] : memref<8x10x10xf32, #tpu.memory_space<vmem>>, vector<8x1x8xf32>
    %497 = vector.shape_cast %496 : vector<8x1x8xf32> to vector<8x8xf32>
    %c0_497 = arith.constant 0 : index
    %c3_498 = arith.constant 3 : index
    %c1_499 = arith.constant 1 : index
    %498 = vector.load %arg17[%c0_497, %c3_498, %c1_499] : memref<8x10x10xf32, #tpu.memory_space<vmem>>, vector<8x1x8xf32>
    %499 = vector.shape_cast %498 : vector<8x1x8xf32> to vector<8x8xf32>
    %c0_500 = arith.constant 0 : index
    %c4_501 = arith.constant 4 : index
    %c1_502 = arith.constant 1 : index
    %500 = vector.load %arg17[%c0_500, %c4_501, %c1_502] : memref<8x10x10xf32, #tpu.memory_space<vmem>>, vector<8x1x8xf32>
    %501 = vector.shape_cast %500 : vector<8x1x8xf32> to vector<8x8xf32>
    %c0_503 = arith.constant 0 : index
    %c5_504 = arith.constant 5 : index
    %c1_505 = arith.constant 1 : index
    %502 = vector.load %arg17[%c0_503, %c5_504, %c1_505] : memref<8x10x10xf32, #tpu.memory_space<vmem>>, vector<8x1x8xf32>
    %503 = vector.shape_cast %502 : vector<8x1x8xf32> to vector<8x8xf32>
    %c0_506 = arith.constant 0 : index
    %c6_507 = arith.constant 6 : index
    %c1_508 = arith.constant 1 : index
    %504 = vector.load %arg17[%c0_506, %c6_507, %c1_508] : memref<8x10x10xf32, #tpu.memory_space<vmem>>, vector<8x1x8xf32>
    %505 = vector.shape_cast %504 : vector<8x1x8xf32> to vector<8x8xf32>
    %c0_509 = arith.constant 0 : index
    %c7_510 = arith.constant 7 : index
    %c1_511 = arith.constant 1 : index
    %506 = vector.load %arg17[%c0_509, %c7_510, %c1_511] : memref<8x10x10xf32, #tpu.memory_space<vmem>>, vector<8x1x8xf32>
    %507 = vector.shape_cast %506 : vector<8x1x8xf32> to vector<8x8xf32>
    %508 = tpu.concatenate %493, %495, %497, %499, %501, %503, %505, %507 in 1 : vector<8x8xf32>, vector<8x8xf32>, vector<8x8xf32>, vector<8x8xf32>, vector<8x8xf32>, vector<8x8xf32>, vector<8x8xf32>, vector<8x8xf32> -> vector<8x64xf32>
    %c0_512 = arith.constant 0 : index
    %c1_513 = arith.constant 1 : index
    %c0_514 = arith.constant 0 : index
    %509 = vector.load %arg17[%c0_512, %c1_513, %c0_514] : memref<8x10x10xf32, #tpu.memory_space<vmem>>, vector<8x1x8xf32>
    %510 = vector.shape_cast %509 : vector<8x1x8xf32> to vector<8x8xf32>
    %c0_515 = arith.constant 0 : index
    %c2_516 = arith.constant 2 : index
    %c0_517 = arith.constant 0 : index
    %511 = vector.load %arg17[%c0_515, %c2_516, %c0_517] : memref<8x10x10xf32, #tpu.memory_space<vmem>>, vector<8x1x8xf32>
    %512 = vector.shape_cast %511 : vector<8x1x8xf32> to vector<8x8xf32>
    %c0_518 = arith.constant 0 : index
    %c3_519 = arith.constant 3 : index
    %c0_520 = arith.constant 0 : index
    %513 = vector.load %arg17[%c0_518, %c3_519, %c0_520] : memref<8x10x10xf32, #tpu.memory_space<vmem>>, vector<8x1x8xf32>
    %514 = vector.shape_cast %513 : vector<8x1x8xf32> to vector<8x8xf32>
    %c0_521 = arith.constant 0 : index
    %c4_522 = arith.constant 4 : index
    %c0_523 = arith.constant 0 : index
    %515 = vector.load %arg17[%c0_521, %c4_522, %c0_523] : memref<8x10x10xf32, #tpu.memory_space<vmem>>, vector<8x1x8xf32>
    %516 = vector.shape_cast %515 : vector<8x1x8xf32> to vector<8x8xf32>
    %c0_524 = arith.constant 0 : index
    %c5_525 = arith.constant 5 : index
    %c0_526 = arith.constant 0 : index
    %517 = vector.load %arg17[%c0_524, %c5_525, %c0_526] : memref<8x10x10xf32, #tpu.memory_space<vmem>>, vector<8x1x8xf32>
    %518 = vector.shape_cast %517 : vector<8x1x8xf32> to vector<8x8xf32>
    %c0_527 = arith.constant 0 : index
    %c6_528 = arith.constant 6 : index
    %c0_529 = arith.constant 0 : index
    %519 = vector.load %arg17[%c0_527, %c6_528, %c0_529] : memref<8x10x10xf32, #tpu.memory_space<vmem>>, vector<8x1x8xf32>
    %520 = vector.shape_cast %519 : vector<8x1x8xf32> to vector<8x8xf32>
    %c0_530 = arith.constant 0 : index
    %c7_531 = arith.constant 7 : index
    %c0_532 = arith.constant 0 : index
    %521 = vector.load %arg17[%c0_530, %c7_531, %c0_532] : memref<8x10x10xf32, #tpu.memory_space<vmem>>, vector<8x1x8xf32>
    %522 = vector.shape_cast %521 : vector<8x1x8xf32> to vector<8x8xf32>
    %c0_533 = arith.constant 0 : index
    %c8_534 = arith.constant 8 : index
    %c0_535 = arith.constant 0 : index
    %523 = vector.load %arg17[%c0_533, %c8_534, %c0_535] : memref<8x10x10xf32, #tpu.memory_space<vmem>>, vector<8x1x8xf32>
    %524 = vector.shape_cast %523 : vector<8x1x8xf32> to vector<8x8xf32>
    %525 = tpu.concatenate %510, %512, %514, %516, %518, %520, %522, %524 in 1 : vector<8x8xf32>, vector<8x8xf32>, vector<8x8xf32>, vector<8x8xf32>, vector<8x8xf32>, vector<8x8xf32>, vector<8x8xf32>, vector<8x8xf32> -> vector<8x64xf32>
    %c0_536 = arith.constant 0 : index
    %c1_537 = arith.constant 1 : index
    %c1_538 = arith.constant 1 : index
    %526 = vector.load %arg17[%c0_536, %c1_537, %c1_538] : memref<8x10x10xf32, #tpu.memory_space<vmem>>, vector<8x1x8xf32>
    %527 = vector.shape_cast %526 : vector<8x1x8xf32> to vector<8x8xf32>
    %c0_539 = arith.constant 0 : index
    %c2_540 = arith.constant 2 : index
    %c1_541 = arith.constant 1 : index
    %528 = vector.load %arg17[%c0_539, %c2_540, %c1_541] : memref<8x10x10xf32, #tpu.memory_space<vmem>>, vector<8x1x8xf32>
    %529 = vector.shape_cast %528 : vector<8x1x8xf32> to vector<8x8xf32>
    %c0_542 = arith.constant 0 : index
    %c3_543 = arith.constant 3 : index
    %c1_544 = arith.constant 1 : index
    %530 = vector.load %arg17[%c0_542, %c3_543, %c1_544] : memref<8x10x10xf32, #tpu.memory_space<vmem>>, vector<8x1x8xf32>
    %531 = vector.shape_cast %530 : vector<8x1x8xf32> to vector<8x8xf32>
    %c0_545 = arith.constant 0 : index
    %c4_546 = arith.constant 4 : index
    %c1_547 = arith.constant 1 : index
    %532 = vector.load %arg17[%c0_545, %c4_546, %c1_547] : memref<8x10x10xf32, #tpu.memory_space<vmem>>, vector<8x1x8xf32>
    %533 = vector.shape_cast %532 : vector<8x1x8xf32> to vector<8x8xf32>
    %c0_548 = arith.constant 0 : index
    %c5_549 = arith.constant 5 : index
    %c1_550 = arith.constant 1 : index
    %534 = vector.load %arg17[%c0_548, %c5_549, %c1_550] : memref<8x10x10xf32, #tpu.memory_space<vmem>>, vector<8x1x8xf32>
    %535 = vector.shape_cast %534 : vector<8x1x8xf32> to vector<8x8xf32>
    %c0_551 = arith.constant 0 : index
    %c6_552 = arith.constant 6 : index
    %c1_553 = arith.constant 1 : index
    %536 = vector.load %arg17[%c0_551, %c6_552, %c1_553] : memref<8x10x10xf32, #tpu.memory_space<vmem>>, vector<8x1x8xf32>
    %537 = vector.shape_cast %536 : vector<8x1x8xf32> to vector<8x8xf32>
    %c0_554 = arith.constant 0 : index
    %c7_555 = arith.constant 7 : index
    %c1_556 = arith.constant 1 : index
    %538 = vector.load %arg17[%c0_554, %c7_555, %c1_556] : memref<8x10x10xf32, #tpu.memory_space<vmem>>, vector<8x1x8xf32>
    %539 = vector.shape_cast %538 : vector<8x1x8xf32> to vector<8x8xf32>
    %c0_557 = arith.constant 0 : index
    %c8_558 = arith.constant 8 : index
    %c1_559 = arith.constant 1 : index
    %540 = vector.load %arg17[%c0_557, %c8_558, %c1_559] : memref<8x10x10xf32, #tpu.memory_space<vmem>>, vector<8x1x8xf32>
    %541 = vector.shape_cast %540 : vector<8x1x8xf32> to vector<8x8xf32>
    %542 = tpu.concatenate %527, %529, %531, %533, %535, %537, %539, %541 in 1 : vector<8x8xf32>, vector<8x8xf32>, vector<8x8xf32>, vector<8x8xf32>, vector<8x8xf32>, vector<8x8xf32>, vector<8x8xf32>, vector<8x8xf32> -> vector<8x64xf32>
    %543 = tpu.concatenate %491, %508, %525, %542 in 0 : vector<8x64xf32>, vector<8x64xf32>, vector<8x64xf32>, vector<8x64xf32> -> vector<32x64xf32>
    %cst_560 = arith.constant dense<0.000000e+00> : vector<1x64xf32>
    %544 = tpu.matmul %453, %543, %cst_560 {dimension_numbers = #tpu.dot_dimension_numbers<[1], [0], [0], [1], [0, 0, 1, 1], [], []>} : vector<1x32xf32>, vector<32x64xf32>, vector<1x64xf32> -> vector<1x64xf32>
    %c0_561 = arith.constant 0 : index
    %c0_562 = arith.constant 0 : index
    %c1_563 = arith.constant 1 : index
    %545 = vector.load %arg17[%c0_561, %c0_562, %c1_563] : memref<8x10x10xf32, #tpu.memory_space<vmem>>, vector<8x1x8xf32>
    %546 = vector.shape_cast %545 : vector<8x1x8xf32> to vector<8x8xf32>
    %c0_564 = arith.constant 0 : index
    %c1_565 = arith.constant 1 : index
    %c1_566 = arith.constant 1 : index
    %547 = vector.load %arg17[%c0_564, %c1_565, %c1_566] : memref<8x10x10xf32, #tpu.memory_space<vmem>>, vector<8x1x8xf32>
    %548 = vector.shape_cast %547 : vector<8x1x8xf32> to vector<8x8xf32>
    %c0_567 = arith.constant 0 : index
    %c2_568 = arith.constant 2 : index
    %c1_569 = arith.constant 1 : index
    %549 = vector.load %arg17[%c0_567, %c2_568, %c1_569] : memref<8x10x10xf32, #tpu.memory_space<vmem>>, vector<8x1x8xf32>
    %550 = vector.shape_cast %549 : vector<8x1x8xf32> to vector<8x8xf32>
    %c0_570 = arith.constant 0 : index
    %c3_571 = arith.constant 3 : index
    %c1_572 = arith.constant 1 : index
    %551 = vector.load %arg17[%c0_570, %c3_571, %c1_572] : memref<8x10x10xf32, #tpu.memory_space<vmem>>, vector<8x1x8xf32>
    %552 = vector.shape_cast %551 : vector<8x1x8xf32> to vector<8x8xf32>
    %c0_573 = arith.constant 0 : index
    %c4_574 = arith.constant 4 : index
    %c1_575 = arith.constant 1 : index
    %553 = vector.load %arg17[%c0_573, %c4_574, %c1_575] : memref<8x10x10xf32, #tpu.memory_space<vmem>>, vector<8x1x8xf32>
    %554 = vector.shape_cast %553 : vector<8x1x8xf32> to vector<8x8xf32>
    %c0_576 = arith.constant 0 : index
    %c5_577 = arith.constant 5 : index
    %c1_578 = arith.constant 1 : index
    %555 = vector.load %arg17[%c0_576, %c5_577, %c1_578] : memref<8x10x10xf32, #tpu.memory_space<vmem>>, vector<8x1x8xf32>
    %556 = vector.shape_cast %555 : vector<8x1x8xf32> to vector<8x8xf32>
    %c0_579 = arith.constant 0 : index
    %c6_580 = arith.constant 6 : index
    %c1_581 = arith.constant 1 : index
    %557 = vector.load %arg17[%c0_579, %c6_580, %c1_581] : memref<8x10x10xf32, #tpu.memory_space<vmem>>, vector<8x1x8xf32>
    %558 = vector.shape_cast %557 : vector<8x1x8xf32> to vector<8x8xf32>
    %c0_582 = arith.constant 0 : index
    %c7_583 = arith.constant 7 : index
    %c1_584 = arith.constant 1 : index
    %559 = vector.load %arg17[%c0_582, %c7_583, %c1_584] : memref<8x10x10xf32, #tpu.memory_space<vmem>>, vector<8x1x8xf32>
    %560 = vector.shape_cast %559 : vector<8x1x8xf32> to vector<8x8xf32>
    %561 = tpu.concatenate %546, %548, %550, %552, %554, %556, %558, %560 in 1 : vector<8x8xf32>, vector<8x8xf32>, vector<8x8xf32>, vector<8x8xf32>, vector<8x8xf32>, vector<8x8xf32>, vector<8x8xf32>, vector<8x8xf32> -> vector<8x64xf32>
    %c0_585 = arith.constant 0 : index
    %c0_586 = arith.constant 0 : index
    %c2_587 = arith.constant 2 : index
    %562 = vector.load %arg17[%c0_585, %c0_586, %c2_587] : memref<8x10x10xf32, #tpu.memory_space<vmem>>, vector<8x1x8xf32>
    %563 = vector.shape_cast %562 : vector<8x1x8xf32> to vector<8x8xf32>
    %c0_588 = arith.constant 0 : index
    %c1_589 = arith.constant 1 : index
    %c2_590 = arith.constant 2 : index
    %564 = vector.load %arg17[%c0_588, %c1_589, %c2_590] : memref<8x10x10xf32, #tpu.memory_space<vmem>>, vector<8x1x8xf32>
    %565 = vector.shape_cast %564 : vector<8x1x8xf32> to vector<8x8xf32>
    %c0_591 = arith.constant 0 : index
    %c2_592 = arith.constant 2 : index
    %c2_593 = arith.constant 2 : index
    %566 = vector.load %arg17[%c0_591, %c2_592, %c2_593] : memref<8x10x10xf32, #tpu.memory_space<vmem>>, vector<8x1x8xf32>
    %567 = vector.shape_cast %566 : vector<8x1x8xf32> to vector<8x8xf32>
    %c0_594 = arith.constant 0 : index
    %c3_595 = arith.constant 3 : index
    %c2_596 = arith.constant 2 : index
    %568 = vector.load %arg17[%c0_594, %c3_595, %c2_596] : memref<8x10x10xf32, #tpu.memory_space<vmem>>, vector<8x1x8xf32>
    %569 = vector.shape_cast %568 : vector<8x1x8xf32> to vector<8x8xf32>
    %c0_597 = arith.constant 0 : index
    %c4_598 = arith.constant 4 : index
    %c2_599 = arith.constant 2 : index
    %570 = vector.load %arg17[%c0_597, %c4_598, %c2_599] : memref<8x10x10xf32, #tpu.memory_space<vmem>>, vector<8x1x8xf32>
    %571 = vector.shape_cast %570 : vector<8x1x8xf32> to vector<8x8xf32>
    %c0_600 = arith.constant 0 : index
    %c5_601 = arith.constant 5 : index
    %c2_602 = arith.constant 2 : index
    %572 = vector.load %arg17[%c0_600, %c5_601, %c2_602] : memref<8x10x10xf32, #tpu.memory_space<vmem>>, vector<8x1x8xf32>
    %573 = vector.shape_cast %572 : vector<8x1x8xf32> to vector<8x8xf32>
    %c0_603 = arith.constant 0 : index
    %c6_604 = arith.constant 6 : index
    %c2_605 = arith.constant 2 : index
    %574 = vector.load %arg17[%c0_603, %c6_604, %c2_605] : memref<8x10x10xf32, #tpu.memory_space<vmem>>, vector<8x1x8xf32>
    %575 = vector.shape_cast %574 : vector<8x1x8xf32> to vector<8x8xf32>
    %c0_606 = arith.constant 0 : index
    %c7_607 = arith.constant 7 : index
    %c2_608 = arith.constant 2 : index
    %576 = vector.load %arg17[%c0_606, %c7_607, %c2_608] : memref<8x10x10xf32, #tpu.memory_space<vmem>>, vector<8x1x8xf32>
    %577 = vector.shape_cast %576 : vector<8x1x8xf32> to vector<8x8xf32>
    %578 = tpu.concatenate %563, %565, %567, %569, %571, %573, %575, %577 in 1 : vector<8x8xf32>, vector<8x8xf32>, vector<8x8xf32>, vector<8x8xf32>, vector<8x8xf32>, vector<8x8xf32>, vector<8x8xf32>, vector<8x8xf32> -> vector<8x64xf32>
    %c0_609 = arith.constant 0 : index
    %c1_610 = arith.constant 1 : index
    %c1_611 = arith.constant 1 : index
    %579 = vector.load %arg17[%c0_609, %c1_610, %c1_611] : memref<8x10x10xf32, #tpu.memory_space<vmem>>, vector<8x1x8xf32>
    %580 = vector.shape_cast %579 : vector<8x1x8xf32> to vector<8x8xf32>
    %c0_612 = arith.constant 0 : index
    %c2_613 = arith.constant 2 : index
    %c1_614 = arith.constant 1 : index
    %581 = vector.load %arg17[%c0_612, %c2_613, %c1_614] : memref<8x10x10xf32, #tpu.memory_space<vmem>>, vector<8x1x8xf32>
    %582 = vector.shape_cast %581 : vector<8x1x8xf32> to vector<8x8xf32>
    %c0_615 = arith.constant 0 : index
    %c3_616 = arith.constant 3 : index
    %c1_617 = arith.constant 1 : index
    %583 = vector.load %arg17[%c0_615, %c3_616, %c1_617] : memref<8x10x10xf32, #tpu.memory_space<vmem>>, vector<8x1x8xf32>
    %584 = vector.shape_cast %583 : vector<8x1x8xf32> to vector<8x8xf32>
    %c0_618 = arith.constant 0 : index
    %c4_619 = arith.constant 4 : index
    %c1_620 = arith.constant 1 : index
    %585 = vector.load %arg17[%c0_618, %c4_619, %c1_620] : memref<8x10x10xf32, #tpu.memory_space<vmem>>, vector<8x1x8xf32>
    %586 = vector.shape_cast %585 : vector<8x1x8xf32> to vector<8x8xf32>
    %c0_621 = arith.constant 0 : index
    %c5_622 = arith.constant 5 : index
    %c1_623 = arith.constant 1 : index
    %587 = vector.load %arg17[%c0_621, %c5_622, %c1_623] : memref<8x10x10xf32, #tpu.memory_space<vmem>>, vector<8x1x8xf32>
    %588 = vector.shape_cast %587 : vector<8x1x8xf32> to vector<8x8xf32>
    %c0_624 = arith.constant 0 : index
    %c6_625 = arith.constant 6 : index
    %c1_626 = arith.constant 1 : index
    %589 = vector.load %arg17[%c0_624, %c6_625, %c1_626] : memref<8x10x10xf32, #tpu.memory_space<vmem>>, vector<8x1x8xf32>
    %590 = vector.shape_cast %589 : vector<8x1x8xf32> to vector<8x8xf32>
    %c0_627 = arith.constant 0 : index
    %c7_628 = arith.constant 7 : index
    %c1_629 = arith.constant 1 : index
    %591 = vector.load %arg17[%c0_627, %c7_628, %c1_629] : memref<8x10x10xf32, #tpu.memory_space<vmem>>, vector<8x1x8xf32>
    %592 = vector.shape_cast %591 : vector<8x1x8xf32> to vector<8x8xf32>
    %c0_630 = arith.constant 0 : index
    %c8_631 = arith.constant 8 : index
    %c1_632 = arith.constant 1 : index
    %593 = vector.load %arg17[%c0_630, %c8_631, %c1_632] : memref<8x10x10xf32, #tpu.memory_space<vmem>>, vector<8x1x8xf32>
    %594 = vector.shape_cast %593 : vector<8x1x8xf32> to vector<8x8xf32>
    %595 = tpu.concatenate %580, %582, %584, %586, %588, %590, %592, %594 in 1 : vector<8x8xf32>, vector<8x8xf32>, vector<8x8xf32>, vector<8x8xf32>, vector<8x8xf32>, vector<8x8xf32>, vector<8x8xf32>, vector<8x8xf32> -> vector<8x64xf32>
    %c0_633 = arith.constant 0 : index
    %c1_634 = arith.constant 1 : index
    %c2_635 = arith.constant 2 : index
    %596 = vector.load %arg17[%c0_633, %c1_634, %c2_635] : memref<8x10x10xf32, #tpu.memory_space<vmem>>, vector<8x1x8xf32>
    %597 = vector.shape_cast %596 : vector<8x1x8xf32> to vector<8x8xf32>
    %c0_636 = arith.constant 0 : index
    %c2_637 = arith.constant 2 : index
    %c2_638 = arith.constant 2 : index
    %598 = vector.load %arg17[%c0_636, %c2_637, %c2_638] : memref<8x10x10xf32, #tpu.memory_space<vmem>>, vector<8x1x8xf32>
    %599 = vector.shape_cast %598 : vector<8x1x8xf32> to vector<8x8xf32>
    %c0_639 = arith.constant 0 : index
    %c3_640 = arith.constant 3 : index
    %c2_641 = arith.constant 2 : index
    %600 = vector.load %arg17[%c0_639, %c3_640, %c2_641] : memref<8x10x10xf32, #tpu.memory_space<vmem>>, vector<8x1x8xf32>
    %601 = vector.shape_cast %600 : vector<8x1x8xf32> to vector<8x8xf32>
    %c0_642 = arith.constant 0 : index
    %c4_643 = arith.constant 4 : index
    %c2_644 = arith.constant 2 : index
    %602 = vector.load %arg17[%c0_642, %c4_643, %c2_644] : memref<8x10x10xf32, #tpu.memory_space<vmem>>, vector<8x1x8xf32>
    %603 = vector.shape_cast %602 : vector<8x1x8xf32> to vector<8x8xf32>
    %c0_645 = arith.constant 0 : index
    %c5_646 = arith.constant 5 : index
    %c2_647 = arith.constant 2 : index
    %604 = vector.load %arg17[%c0_645, %c5_646, %c2_647] : memref<8x10x10xf32, #tpu.memory_space<vmem>>, vector<8x1x8xf32>
    %605 = vector.shape_cast %604 : vector<8x1x8xf32> to vector<8x8xf32>
    %c0_648 = arith.constant 0 : index
    %c6_649 = arith.constant 6 : index
    %c2_650 = arith.constant 2 : index
    %606 = vector.load %arg17[%c0_648, %c6_649, %c2_650] : memref<8x10x10xf32, #tpu.memory_space<vmem>>, vector<8x1x8xf32>
    %607 = vector.shape_cast %606 : vector<8x1x8xf32> to vector<8x8xf32>
    %c0_651 = arith.constant 0 : index
    %c7_652 = arith.constant 7 : index
    %c2_653 = arith.constant 2 : index
    %608 = vector.load %arg17[%c0_651, %c7_652, %c2_653] : memref<8x10x10xf32, #tpu.memory_space<vmem>>, vector<8x1x8xf32>
    %609 = vector.shape_cast %608 : vector<8x1x8xf32> to vector<8x8xf32>
    %c0_654 = arith.constant 0 : index
    %c8_655 = arith.constant 8 : index
    %c2_656 = arith.constant 2 : index
    %610 = vector.load %arg17[%c0_654, %c8_655, %c2_656] : memref<8x10x10xf32, #tpu.memory_space<vmem>>, vector<8x1x8xf32>
    %611 = vector.shape_cast %610 : vector<8x1x8xf32> to vector<8x8xf32>
    %612 = tpu.concatenate %597, %599, %601, %603, %605, %607, %609, %611 in 1 : vector<8x8xf32>, vector<8x8xf32>, vector<8x8xf32>, vector<8x8xf32>, vector<8x8xf32>, vector<8x8xf32>, vector<8x8xf32>, vector<8x8xf32> -> vector<8x64xf32>
    %613 = tpu.concatenate %561, %578, %595, %612 in 0 : vector<8x64xf32>, vector<8x64xf32>, vector<8x64xf32>, vector<8x64xf32> -> vector<32x64xf32>
    %cst_657 = arith.constant dense<0.000000e+00> : vector<1x64xf32>
    %614 = tpu.matmul %455, %613, %cst_657 {dimension_numbers = #tpu.dot_dimension_numbers<[1], [0], [0], [1], [0, 0, 1, 1], [], []>} : vector<1x32xf32>, vector<32x64xf32>, vector<1x64xf32> -> vector<1x64xf32>
    %cst_658 = arith.constant dense<0.000000e+00> : vector<1x128xf32>
    %615 = tpu.matmul %544, %467, %cst_658 {dimension_numbers = #tpu.dot_dimension_numbers<[1], [0], [0], [1], [0, 0, 1, 1], [], []>} : vector<1x64xf32>, vector<64x128xf32>, vector<1x128xf32> -> vector<1x128xf32>
    %cst_659 = arith.constant dense<0.000000e+00> : vector<1x128xf32>
    %616 = tpu.matmul %614, %474, %cst_659 {dimension_numbers = #tpu.dot_dimension_numbers<[1], [0], [0], [1], [0, 0, 1, 1], [], []>} : vector<1x64xf32>, vector<64x128xf32>, vector<1x128xf32> -> vector<1x128xf32>
    %617 = arith.addf %615, %616 : vector<1x128xf32>
    %618 = vector.broadcast %460 : vector<1x1xf32> to vector<1x128xf32>
    %619 = arith.addf %617, %618 : vector<1x128xf32>
    %cst_660 = arith.constant 0.000000e+00 : f32
    %620 = vector.broadcast %cst_660 : f32 to vector<1x128xf32>
    %621 = arith.subf %620, %619 : vector<1x128xf32>
    %622 = math.exp %621 : vector<1x128xf32>
    %cst_661 = arith.constant 1.000000e+00 : f32
    %623 = vector.broadcast %cst_661 : f32 to vector<1x128xf32>
    %624 = arith.addf %623, %622 : vector<1x128xf32>
    %cst_662 = arith.constant 1.000000e+00 : f32
    %625 = vector.broadcast %cst_662 : f32 to vector<1x128xf32>
    %626 = arith.divf %625, %624 : vector<1x128xf32>
    %627 = vector.extract_strided_slice %626 {offsets = [0, 0], sizes = [1, 16], strides = [1, 1]} : vector<1x128xf32> to vector<1x16xf32>
    %c0_663 = arith.constant 0 : index
    %c0_664 = arith.constant 0 : index
    %c0_665 = arith.constant 0 : index
    %c0_666 = arith.constant 0 : index
    %628 = vector.load %arg14[%c0_663, %c0_664, %c0_665, %c0_666] : memref<1x1x16x16xf32, #tpu.memory_space<vmem>>, vector<1x1x1x16xf32>
    %629 = vector.shape_cast %628 : vector<1x1x1x16xf32> to vector<1x16xf32>
    %630 = vector.shape_cast %627 : vector<1x16xf32> to vector<1x1x1x16xf32>
    tpu.vector_store %arg14[%c0_663, %c0_664, %c0_665, %c0_666], %630 {strides = array<i32>} : memref<1x1x16x16xf32, #tpu.memory_space<vmem>>, vector<1x1x1x16xf32>,
    %631 = vector.extract_strided_slice %626 {offsets = [0, 16], sizes = [1, 16], strides = [1, 1]} : vector<1x128xf32> to vector<1x16xf32>
    %c0_667 = arith.constant 0 : index
    %c0_668 = arith.constant 0 : index
    %c2_669 = arith.constant 2 : index
    %c0_670 = arith.constant 0 : index
    %632 = vector.load %arg14[%c0_667, %c0_668, %c2_669, %c0_670] : memref<1x1x16x16xf32, #tpu.memory_space<vmem>>, vector<1x1x1x16xf32>
    %633 = vector.shape_cast %632 : vector<1x1x1x16xf32> to vector<1x16xf32>
    %634 = vector.shape_cast %631 : vector<1x16xf32> to vector<1x1x1x16xf32>
    tpu.vector_store %arg14[%c0_667, %c0_668, %c2_669, %c0_670], %634 {strides = array<i32>} : memref<1x1x16x16xf32, #tpu.memory_space<vmem>>, vector<1x1x1x16xf32>,
    %635 = vector.extract_strided_slice %626 {offsets = [0, 32], sizes = [1, 16], strides = [1, 1]} : vector<1x128xf32> to vector<1x16xf32>
    %c0_671 = arith.constant 0 : index
    %c0_672 = arith.constant 0 : index
    %c4_673 = arith.constant 4 : index
    %c0_674 = arith.constant 0 : index
    %636 = vector.load %arg14[%c0_671, %c0_672, %c4_673, %c0_674] : memref<1x1x16x16xf32, #tpu.memory_space<vmem>>, vector<1x1x1x16xf32>
    %637 = vector.shape_cast %636 : vector<1x1x1x16xf32> to vector<1x16xf32>
    %638 = vector.shape_cast %635 : vector<1x16xf32> to vector<1x1x1x16xf32>
    tpu.vector_store %arg14[%c0_671, %c0_672, %c4_673, %c0_674], %638 {strides = array<i32>} : memref<1x1x16x16xf32, #tpu.memory_space<vmem>>, vector<1x1x1x16xf32>,
    %639 = vector.extract_strided_slice %626 {offsets = [0, 48], sizes = [1, 16], strides = [1, 1]} : vector<1x128xf32> to vector<1x16xf32>
    %c0_675 = arith.constant 0 : index
    %c0_676 = arith.constant 0 : index
    %c6_677 = arith.constant 6 : index
    %c0_678 = arith.constant 0 : index
    %640 = vector.load %arg14[%c0_675, %c0_676, %c6_677, %c0_678] : memref<1x1x16x16xf32, #tpu.memory_space<vmem>>, vector<1x1x1x16xf32>
    %641 = vector.shape_cast %640 : vector<1x1x1x16xf32> to vector<1x16xf32>
    %642 = vector.shape_cast %639 : vector<1x16xf32> to vector<1x1x1x16xf32>
    tpu.vector_store %arg14[%c0_675, %c0_676, %c6_677, %c0_678], %642 {strides = array<i32>} : memref<1x1x16x16xf32, #tpu.memory_space<vmem>>, vector<1x1x1x16xf32>,
    %643 = vector.extract_strided_slice %626 {offsets = [0, 64], sizes = [1, 16], strides = [1, 1]} : vector<1x128xf32> to vector<1x16xf32>
    %c0_679 = arith.constant 0 : index
    %c0_680 = arith.constant 0 : index
    %c8_681 = arith.constant 8 : index
    %c0_682 = arith.constant 0 : index
    %644 = vector.load %arg14[%c0_679, %c0_680, %c8_681, %c0_682] : memref<1x1x16x16xf32, #tpu.memory_space<vmem>>, vector<1x1x1x16xf32>
    %645 = vector.shape_cast %644 : vector<1x1x1x16xf32> to vector<1x16xf32>
    %646 = vector.shape_cast %643 : vector<1x16xf32> to vector<1x1x1x16xf32>
    tpu.vector_store %arg14[%c0_679, %c0_680, %c8_681, %c0_682], %646 {strides = array<i32>} : memref<1x1x16x16xf32, #tpu.memory_space<vmem>>, vector<1x1x1x16xf32>,
    %647 = vector.extract_strided_slice %626 {offsets = [0, 80], sizes = [1, 16], strides = [1, 1]} : vector<1x128xf32> to vector<1x16xf32>
    %c0_683 = arith.constant 0 : index
    %c0_684 = arith.constant 0 : index
    %c10 = arith.constant 10 : index
    %c0_685 = arith.constant 0 : index
    %648 = vector.load %arg14[%c0_683, %c0_684, %c10, %c0_685] : memref<1x1x16x16xf32, #tpu.memory_space<vmem>>, vector<1x1x1x16xf32>
    %649 = vector.shape_cast %648 : vector<1x1x1x16xf32> to vector<1x16xf32>
    %650 = vector.shape_cast %647 : vector<1x16xf32> to vector<1x1x1x16xf32>
    tpu.vector_store %arg14[%c0_683, %c0_684, %c10, %c0_685], %650 {strides = array<i32>} : memref<1x1x16x16xf32, #tpu.memory_space<vmem>>, vector<1x1x1x16xf32>,
    %651 = vector.extract_strided_slice %626 {offsets = [0, 96], sizes = [1, 16], strides = [1, 1]} : vector<1x128xf32> to vector<1x16xf32>
    %c0_686 = arith.constant 0 : index
    %c0_687 = arith.constant 0 : index
    %c12 = arith.constant 12 : index
    %c0_688 = arith.constant 0 : index
    %652 = vector.load %arg14[%c0_686, %c0_687, %c12, %c0_688] : memref<1x1x16x16xf32, #tpu.memory_space<vmem>>, vector<1x1x1x16xf32>
    %653 = vector.shape_cast %652 : vector<1x1x1x16xf32> to vector<1x16xf32>
    %654 = vector.shape_cast %651 : vector<1x16xf32> to vector<1x1x1x16xf32>
    tpu.vector_store %arg14[%c0_686, %c0_687, %c12, %c0_688], %654 {strides = array<i32>} : memref<1x1x16x16xf32, #tpu.memory_space<vmem>>, vector<1x1x1x16xf32>,
    %655 = vector.extract_strided_slice %626 {offsets = [0, 112], sizes = [1, 16], strides = [1, 1]} : vector<1x128xf32> to vector<1x16xf32>
    %c0_689 = arith.constant 0 : index
    %c0_690 = arith.constant 0 : index
    %c14 = arith.constant 14 : index
    %c0_691 = arith.constant 0 : index
    %656 = vector.load %arg14[%c0_689, %c0_690, %c14, %c0_691] : memref<1x1x16x16xf32, #tpu.memory_space<vmem>>, vector<1x1x1x16xf32>
    %657 = vector.shape_cast %656 : vector<1x1x1x16xf32> to vector<1x16xf32>
    %658 = vector.shape_cast %655 : vector<1x16xf32> to vector<1x1x1x16xf32>
    tpu.vector_store %arg14[%c0_689, %c0_690, %c14, %c0_691], %658 {strides = array<i32>} : memref<1x1x16x16xf32, #tpu.memory_space<vmem>>, vector<1x1x1x16xf32>,
    %c0_692 = arith.constant 0 : index
    %c1_693 = arith.constant 1 : index
    %c0_694 = arith.constant 0 : index
    %659 = vector.load %arg17[%c0_692, %c1_693, %c0_694] : memref<8x10x10xf32, #tpu.memory_space<vmem>>, vector<8x1x8xf32>
    %660 = vector.shape_cast %659 : vector<8x1x8xf32> to vector<8x8xf32>
    %c0_695 = arith.constant 0 : index
    %c2_696 = arith.constant 2 : index
    %c0_697 = arith.constant 0 : index
    %661 = vector.load %arg17[%c0_695, %c2_696, %c0_697] : memref<8x10x10xf32, #tpu.memory_space<vmem>>, vector<8x1x8xf32>
    %662 = vector.shape_cast %661 : vector<8x1x8xf32> to vector<8x8xf32>
    %c0_698 = arith.constant 0 : index
    %c3_699 = arith.constant 3 : index
    %c0_700 = arith.constant 0 : index
    %663 = vector.load %arg17[%c0_698, %c3_699, %c0_700] : memref<8x10x10xf32, #tpu.memory_space<vmem>>, vector<8x1x8xf32>
    %664 = vector.shape_cast %663 : vector<8x1x8xf32> to vector<8x8xf32>
    %c0_701 = arith.constant 0 : index
    %c4_702 = arith.constant 4 : index
    %c0_703 = arith.constant 0 : index
    %665 = vector.load %arg17[%c0_701, %c4_702, %c0_703] : memref<8x10x10xf32, #tpu.memory_space<vmem>>, vector<8x1x8xf32>
    %666 = vector.shape_cast %665 : vector<8x1x8xf32> to vector<8x8xf32>
    %c0_704 = arith.constant 0 : index
    %c5_705 = arith.constant 5 : index
    %c0_706 = arith.constant 0 : index
    %667 = vector.load %arg17[%c0_704, %c5_705, %c0_706] : memref<8x10x10xf32, #tpu.memory_space<vmem>>, vector<8x1x8xf32>
    %668 = vector.shape_cast %667 : vector<8x1x8xf32> to vector<8x8xf32>
    %c0_707 = arith.constant 0 : index
    %c6_708 = arith.constant 6 : index
    %c0_709 = arith.constant 0 : index
    %669 = vector.load %arg17[%c0_707, %c6_708, %c0_709] : memref<8x10x10xf32, #tpu.memory_space<vmem>>, vector<8x1x8xf32>
    %670 = vector.shape_cast %669 : vector<8x1x8xf32> to vector<8x8xf32>
    %c0_710 = arith.constant 0 : index
    %c7_711 = arith.constant 7 : index
    %c0_712 = arith.constant 0 : index
    %671 = vector.load %arg17[%c0_710, %c7_711, %c0_712] : memref<8x10x10xf32, #tpu.memory_space<vmem>>, vector<8x1x8xf32>
    %672 = vector.shape_cast %671 : vector<8x1x8xf32> to vector<8x8xf32>
    %c0_713 = arith.constant 0 : index
    %c8_714 = arith.constant 8 : index
    %c0_715 = arith.constant 0 : index
    %673 = vector.load %arg17[%c0_713, %c8_714, %c0_715] : memref<8x10x10xf32, #tpu.memory_space<vmem>>, vector<8x1x8xf32>
    %674 = vector.shape_cast %673 : vector<8x1x8xf32> to vector<8x8xf32>
    %675 = tpu.concatenate %660, %662, %664, %666, %668, %670, %672, %674 in 1 : vector<8x8xf32>, vector<8x8xf32>, vector<8x8xf32>, vector<8x8xf32>, vector<8x8xf32>, vector<8x8xf32>, vector<8x8xf32>, vector<8x8xf32> -> vector<8x64xf32>
    %c0_716 = arith.constant 0 : index
    %c1_717 = arith.constant 1 : index
    %c1_718 = arith.constant 1 : index
    %676 = vector.load %arg17[%c0_716, %c1_717, %c1_718] : memref<8x10x10xf32, #tpu.memory_space<vmem>>, vector<8x1x8xf32>
    %677 = vector.shape_cast %676 : vector<8x1x8xf32> to vector<8x8xf32>
    %c0_719 = arith.constant 0 : index
    %c2_720 = arith.constant 2 : index
    %c1_721 = arith.constant 1 : index
    %678 = vector.load %arg17[%c0_719, %c2_720, %c1_721] : memref<8x10x10xf32, #tpu.memory_space<vmem>>, vector<8x1x8xf32>
    %679 = vector.shape_cast %678 : vector<8x1x8xf32> to vector<8x8xf32>
    %c0_722 = arith.constant 0 : index
    %c3_723 = arith.constant 3 : index
    %c1_724 = arith.constant 1 : index
    %680 = vector.load %arg17[%c0_722, %c3_723, %c1_724] : memref<8x10x10xf32, #tpu.memory_space<vmem>>, vector<8x1x8xf32>
    %681 = vector.shape_cast %680 : vector<8x1x8xf32> to vector<8x8xf32>
    %c0_725 = arith.constant 0 : index
    %c4_726 = arith.constant 4 : index
    %c1_727 = arith.constant 1 : index
    %682 = vector.load %arg17[%c0_725, %c4_726, %c1_727] : memref<8x10x10xf32, #tpu.memory_space<vmem>>, vector<8x1x8xf32>
    %683 = vector.shape_cast %682 : vector<8x1x8xf32> to vector<8x8xf32>
    %c0_728 = arith.constant 0 : index
    %c5_729 = arith.constant 5 : index
    %c1_730 = arith.constant 1 : index
    %684 = vector.load %arg17[%c0_728, %c5_729, %c1_730] : memref<8x10x10xf32, #tpu.memory_space<vmem>>, vector<8x1x8xf32>
    %685 = vector.shape_cast %684 : vector<8x1x8xf32> to vector<8x8xf32>
    %c0_731 = arith.constant 0 : index
    %c6_732 = arith.constant 6 : index
    %c1_733 = arith.constant 1 : index
    %686 = vector.load %arg17[%c0_731, %c6_732, %c1_733] : memref<8x10x10xf32, #tpu.memory_space<vmem>>, vector<8x1x8xf32>
    %687 = vector.shape_cast %686 : vector<8x1x8xf32> to vector<8x8xf32>
    %c0_734 = arith.constant 0 : index
    %c7_735 = arith.constant 7 : index
    %c1_736 = arith.constant 1 : index
    %688 = vector.load %arg17[%c0_734, %c7_735, %c1_736] : memref<8x10x10xf32, #tpu.memory_space<vmem>>, vector<8x1x8xf32>
    %689 = vector.shape_cast %688 : vector<8x1x8xf32> to vector<8x8xf32>
    %c0_737 = arith.constant 0 : index
    %c8_738 = arith.constant 8 : index
    %c1_739 = arith.constant 1 : index
    %690 = vector.load %arg17[%c0_737, %c8_738, %c1_739] : memref<8x10x10xf32, #tpu.memory_space<vmem>>, vector<8x1x8xf32>
    %691 = vector.shape_cast %690 : vector<8x1x8xf32> to vector<8x8xf32>
    %692 = tpu.concatenate %677, %679, %681, %683, %685, %687, %689, %691 in 1 : vector<8x8xf32>, vector<8x8xf32>, vector<8x8xf32>, vector<8x8xf32>, vector<8x8xf32>, vector<8x8xf32>, vector<8x8xf32>, vector<8x8xf32> -> vector<8x64xf32>
    %c0_740 = arith.constant 0 : index
    %c2_741 = arith.constant 2 : index
    %c0_742 = arith.constant 0 : index
    %693 = vector.load %arg17[%c0_740, %c2_741, %c0_742] : memref<8x10x10xf32, #tpu.memory_space<vmem>>, vector<8x1x8xf32>
    %694 = vector.shape_cast %693 : vector<8x1x8xf32> to vector<8x8xf32>
    %c0_743 = arith.constant 0 : index
    %c3_744 = arith.constant 3 : index
    %c0_745 = arith.constant 0 : index
    %695 = vector.load %arg17[%c0_743, %c3_744, %c0_745] : memref<8x10x10xf32, #tpu.memory_space<vmem>>, vector<8x1x8xf32>
    %696 = vector.shape_cast %695 : vector<8x1x8xf32> to vector<8x8xf32>
    %c0_746 = arith.constant 0 : index
    %c4_747 = arith.constant 4 : index
    %c0_748 = arith.constant 0 : index
    %697 = vector.load %arg17[%c0_746, %c4_747, %c0_748] : memref<8x10x10xf32, #tpu.memory_space<vmem>>, vector<8x1x8xf32>
    %698 = vector.shape_cast %697 : vector<8x1x8xf32> to vector<8x8xf32>
    %c0_749 = arith.constant 0 : index
    %c5_750 = arith.constant 5 : index
    %c0_751 = arith.constant 0 : index
    %699 = vector.load %arg17[%c0_749, %c5_750, %c0_751] : memref<8x10x10xf32, #tpu.memory_space<vmem>>, vector<8x1x8xf32>
    %700 = vector.shape_cast %699 : vector<8x1x8xf32> to vector<8x8xf32>
    %c0_752 = arith.constant 0 : index
    %c6_753 = arith.constant 6 : index
    %c0_754 = arith.constant 0 : index
    %701 = vector.load %arg17[%c0_752, %c6_753, %c0_754] : memref<8x10x10xf32, #tpu.memory_space<vmem>>, vector<8x1x8xf32>
    %702 = vector.shape_cast %701 : vector<8x1x8xf32> to vector<8x8xf32>
    %c0_755 = arith.constant 0 : index
    %c7_756 = arith.constant 7 : index
    %c0_757 = arith.constant 0 : index
    %703 = vector.load %arg17[%c0_755, %c7_756, %c0_757] : memref<8x10x10xf32, #tpu.memory_space<vmem>>, vector<8x1x8xf32>
    %704 = vector.shape_cast %703 : vector<8x1x8xf32> to vector<8x8xf32>
    %c0_758 = arith.constant 0 : index
    %c8_759 = arith.constant 8 : index
    %c0_760 = arith.constant 0 : index
    %705 = vector.load %arg17[%c0_758, %c8_759, %c0_760] : memref<8x10x10xf32, #tpu.memory_space<vmem>>, vector<8x1x8xf32>
    %706 = vector.shape_cast %705 : vector<8x1x8xf32> to vector<8x8xf32>
    %c0_761 = arith.constant 0 : index
    %c9 = arith.constant 9 : index
    %c0_762 = arith.constant 0 : index
    %707 = vector.load %arg17[%c0_761, %c9, %c0_762] : memref<8x10x10xf32, #tpu.memory_space<vmem>>, vector<8x1x8xf32>
    %708 = vector.shape_cast %707 : vector<8x1x8xf32> to vector<8x8xf32>
    %709 = tpu.concatenate %694, %696, %698, %700, %702, %704, %706, %708 in 1 : vector<8x8xf32>, vector<8x8xf32>, vector<8x8xf32>, vector<8x8xf32>, vector<8x8xf32>, vector<8x8xf32>, vector<8x8xf32>, vector<8x8xf32> -> vector<8x64xf32>
    %c0_763 = arith.constant 0 : index
    %c2_764 = arith.constant 2 : index
    %c1_765 = arith.constant 1 : index
    %710 = vector.load %arg17[%c0_763, %c2_764, %c1_765] : memref<8x10x10xf32, #tpu.memory_space<vmem>>, vector<8x1x8xf32>
    %711 = vector.shape_cast %710 : vector<8x1x8xf32> to vector<8x8xf32>
    %c0_766 = arith.constant 0 : index
    %c3_767 = arith.constant 3 : index
    %c1_768 = arith.constant 1 : index
    %712 = vector.load %arg17[%c0_766, %c3_767, %c1_768] : memref<8x10x10xf32, #tpu.memory_space<vmem>>, vector<8x1x8xf32>
    %713 = vector.shape_cast %712 : vector<8x1x8xf32> to vector<8x8xf32>
    %c0_769 = arith.constant 0 : index
    %c4_770 = arith.constant 4 : index
    %c1_771 = arith.constant 1 : index
    %714 = vector.load %arg17[%c0_769, %c4_770, %c1_771] : memref<8x10x10xf32, #tpu.memory_space<vmem>>, vector<8x1x8xf32>
    %715 = vector.shape_cast %714 : vector<8x1x8xf32> to vector<8x8xf32>
    %c0_772 = arith.constant 0 : index
    %c5_773 = arith.constant 5 : index
    %c1_774 = arith.constant 1 : index
    %716 = vector.load %arg17[%c0_772, %c5_773, %c1_774] : memref<8x10x10xf32, #tpu.memory_space<vmem>>, vector<8x1x8xf32>
    %717 = vector.shape_cast %716 : vector<8x1x8xf32> to vector<8x8xf32>
    %c0_775 = arith.constant 0 : index
    %c6_776 = arith.constant 6 : index
    %c1_777 = arith.constant 1 : index
    %718 = vector.load %arg17[%c0_775, %c6_776, %c1_777] : memref<8x10x10xf32, #tpu.memory_space<vmem>>, vector<8x1x8xf32>
    %719 = vector.shape_cast %718 : vector<8x1x8xf32> to vector<8x8xf32>
    %c0_778 = arith.constant 0 : index
    %c7_779 = arith.constant 7 : index
    %c1_780 = arith.constant 1 : index
    %720 = vector.load %arg17[%c0_778, %c7_779, %c1_780] : memref<8x10x10xf32, #tpu.memory_space<vmem>>, vector<8x1x8xf32>
    %721 = vector.shape_cast %720 : vector<8x1x8xf32> to vector<8x8xf32>
    %c0_781 = arith.constant 0 : index
    %c8_782 = arith.constant 8 : index
    %c1_783 = arith.constant 1 : index
    %722 = vector.load %arg17[%c0_781, %c8_782, %c1_783] : memref<8x10x10xf32, #tpu.memory_space<vmem>>, vector<8x1x8xf32>
    %723 = vector.shape_cast %722 : vector<8x1x8xf32> to vector<8x8xf32>
    %c0_784 = arith.constant 0 : index
    %c9_785 = arith.constant 9 : index
    %c1_786 = arith.constant 1 : index
    %724 = vector.load %arg17[%c0_784, %c9_785, %c1_786] : memref<8x10x10xf32, #tpu.memory_space<vmem>>, vector<8x1x8xf32>
    %725 = vector.shape_cast %724 : vector<8x1x8xf32> to vector<8x8xf32>
    %726 = tpu.concatenate %711, %713, %715, %717, %719, %721, %723, %725 in 1 : vector<8x8xf32>, vector<8x8xf32>, vector<8x8xf32>, vector<8x8xf32>, vector<8x8xf32>, vector<8x8xf32>, vector<8x8xf32>, vector<8x8xf32> -> vector<8x64xf32>
    %727 = tpu.concatenate %675, %692, %709, %726 in 0 : vector<8x64xf32>, vector<8x64xf32>, vector<8x64xf32>, vector<8x64xf32> -> vector<32x64xf32>
    %cst_787 = arith.constant dense<0.000000e+00> : vector<1x64xf32>
    %728 = tpu.matmul %457, %727, %cst_787 {dimension_numbers = #tpu.dot_dimension_numbers<[1], [0], [0], [1], [0, 0, 1, 1], [], []>} : vector<1x32xf32>, vector<32x64xf32>, vector<1x64xf32> -> vector<1x64xf32>
    %c0_788 = arith.constant 0 : index
    %c1_789 = arith.constant 1 : index
    %c1_790 = arith.constant 1 : index
    %729 = vector.load %arg17[%c0_788, %c1_789, %c1_790] : memref<8x10x10xf32, #tpu.memory_space<vmem>>, vector<8x1x8xf32>
    %730 = vector.shape_cast %729 : vector<8x1x8xf32> to vector<8x8xf32>
    %c0_791 = arith.constant 0 : index
    %c2_792 = arith.constant 2 : index
    %c1_793 = arith.constant 1 : index
    %731 = vector.load %arg17[%c0_791, %c2_792, %c1_793] : memref<8x10x10xf32, #tpu.memory_space<vmem>>, vector<8x1x8xf32>
    %732 = vector.shape_cast %731 : vector<8x1x8xf32> to vector<8x8xf32>
    %c0_794 = arith.constant 0 : index
    %c3_795 = arith.constant 3 : index
    %c1_796 = arith.constant 1 : index
    %733 = vector.load %arg17[%c0_794, %c3_795, %c1_796] : memref<8x10x10xf32, #tpu.memory_space<vmem>>, vector<8x1x8xf32>
    %734 = vector.shape_cast %733 : vector<8x1x8xf32> to vector<8x8xf32>
    %c0_797 = arith.constant 0 : index
    %c4_798 = arith.constant 4 : index
    %c1_799 = arith.constant 1 : index
    %735 = vector.load %arg17[%c0_797, %c4_798, %c1_799] : memref<8x10x10xf32, #tpu.memory_space<vmem>>, vector<8x1x8xf32>
    %736 = vector.shape_cast %735 : vector<8x1x8xf32> to vector<8x8xf32>
    %c0_800 = arith.constant 0 : index
    %c5_801 = arith.constant 5 : index
    %c1_802 = arith.constant 1 : index
    %737 = vector.load %arg17[%c0_800, %c5_801, %c1_802] : memref<8x10x10xf32, #tpu.memory_space<vmem>>, vector<8x1x8xf32>
    %738 = vector.shape_cast %737 : vector<8x1x8xf32> to vector<8x8xf32>
    %c0_803 = arith.constant 0 : index
    %c6_804 = arith.constant 6 : index
    %c1_805 = arith.constant 1 : index
    %739 = vector.load %arg17[%c0_803, %c6_804, %c1_805] : memref<8x10x10xf32, #tpu.memory_space<vmem>>, vector<8x1x8xf32>
    %740 = vector.shape_cast %739 : vector<8x1x8xf32> to vector<8x8xf32>
    %c0_806 = arith.constant 0 : index
    %c7_807 = arith.constant 7 : index
    %c1_808 = arith.constant 1 : index
    %741 = vector.load %arg17[%c0_806, %c7_807, %c1_808] : memref<8x10x10xf32, #tpu.memory_space<vmem>>, vector<8x1x8xf32>
    %742 = vector.shape_cast %741 : vector<8x1x8xf32> to vector<8x8xf32>
    %c0_809 = arith.constant 0 : index
    %c8_810 = arith.constant 8 : index
    %c1_811 = arith.constant 1 : index
    %743 = vector.load %arg17[%c0_809, %c8_810, %c1_811] : memref<8x10x10xf32, #tpu.memory_space<vmem>>, vector<8x1x8xf32>
    %744 = vector.shape_cast %743 : vector<8x1x8xf32> to vector<8x8xf32>
    %745 = tpu.concatenate %730, %732, %734, %736, %738, %740, %742, %744 in 1 : vector<8x8xf32>, vector<8x8xf32>, vector<8x8xf32>, vector<8x8xf32>, vector<8x8xf32>, vector<8x8xf32>, vector<8x8xf32>, vector<8x8xf32> -> vector<8x64xf32>
    %c0_812 = arith.constant 0 : index
    %c1_813 = arith.constant 1 : index
    %c2_814 = arith.constant 2 : index
    %746 = vector.load %arg17[%c0_812, %c1_813, %c2_814] : memref<8x10x10xf32, #tpu.memory_space<vmem>>, vector<8x1x8xf32>
    %747 = vector.shape_cast %746 : vector<8x1x8xf32> to vector<8x8xf32>
    %c0_815 = arith.constant 0 : index
    %c2_816 = arith.constant 2 : index
    %c2_817 = arith.constant 2 : index
    %748 = vector.load %arg17[%c0_815, %c2_816, %c2_817] : memref<8x10x10xf32, #tpu.memory_space<vmem>>, vector<8x1x8xf32>
    %749 = vector.shape_cast %748 : vector<8x1x8xf32> to vector<8x8xf32>
    %c0_818 = arith.constant 0 : index
    %c3_819 = arith.constant 3 : index
    %c2_820 = arith.constant 2 : index
    %750 = vector.load %arg17[%c0_818, %c3_819, %c2_820] : memref<8x10x10xf32, #tpu.memory_space<vmem>>, vector<8x1x8xf32>
    %751 = vector.shape_cast %750 : vector<8x1x8xf32> to vector<8x8xf32>
    %c0_821 = arith.constant 0 : index
    %c4_822 = arith.constant 4 : index
    %c2_823 = arith.constant 2 : index
    %752 = vector.load %arg17[%c0_821, %c4_822, %c2_823] : memref<8x10x10xf32, #tpu.memory_space<vmem>>, vector<8x1x8xf32>
    %753 = vector.shape_cast %752 : vector<8x1x8xf32> to vector<8x8xf32>
    %c0_824 = arith.constant 0 : index
    %c5_825 = arith.constant 5 : index
    %c2_826 = arith.constant 2 : index
    %754 = vector.load %arg17[%c0_824, %c5_825, %c2_826] : memref<8x10x10xf32, #tpu.memory_space<vmem>>, vector<8x1x8xf32>
    %755 = vector.shape_cast %754 : vector<8x1x8xf32> to vector<8x8xf32>
    %c0_827 = arith.constant 0 : index
    %c6_828 = arith.constant 6 : index
    %c2_829 = arith.constant 2 : index
    %756 = vector.load %arg17[%c0_827, %c6_828, %c2_829] : memref<8x10x10xf32, #tpu.memory_space<vmem>>, vector<8x1x8xf32>
    %757 = vector.shape_cast %756 : vector<8x1x8xf32> to vector<8x8xf32>
    %c0_830 = arith.constant 0 : index
    %c7_831 = arith.constant 7 : index
    %c2_832 = arith.constant 2 : index
    %758 = vector.load %arg17[%c0_830, %c7_831, %c2_832] : memref<8x10x10xf32, #tpu.memory_space<vmem>>, vector<8x1x8xf32>
    %759 = vector.shape_cast %758 : vector<8x1x8xf32> to vector<8x8xf32>
    %c0_833 = arith.constant 0 : index
    %c8_834 = arith.constant 8 : index
    %c2_835 = arith.constant 2 : index
    %760 = vector.load %arg17[%c0_833, %c8_834, %c2_835] : memref<8x10x10xf32, #tpu.memory_space<vmem>>, vector<8x1x8xf32>
    %761 = vector.shape_cast %760 : vector<8x1x8xf32> to vector<8x8xf32>
    %762 = tpu.concatenate %747, %749, %751, %753, %755, %757, %759, %761 in 1 : vector<8x8xf32>, vector<8x8xf32>, vector<8x8xf32>, vector<8x8xf32>, vector<8x8xf32>, vector<8x8xf32>, vector<8x8xf32>, vector<8x8xf32> -> vector<8x64xf32>
    %c0_836 = arith.constant 0 : index
    %c2_837 = arith.constant 2 : index
    %c1_838 = arith.constant 1 : index
    %763 = vector.load %arg17[%c0_836, %c2_837, %c1_838] : memref<8x10x10xf32, #tpu.memory_space<vmem>>, vector<8x1x8xf32>
    %764 = vector.shape_cast %763 : vector<8x1x8xf32> to vector<8x8xf32>
    %c0_839 = arith.constant 0 : index
    %c3_840 = arith.constant 3 : index
    %c1_841 = arith.constant 1 : index
    %765 = vector.load %arg17[%c0_839, %c3_840, %c1_841] : memref<8x10x10xf32, #tpu.memory_space<vmem>>, vector<8x1x8xf32>
    %766 = vector.shape_cast %765 : vector<8x1x8xf32> to vector<8x8xf32>
    %c0_842 = arith.constant 0 : index
    %c4_843 = arith.constant 4 : index
    %c1_844 = arith.constant 1 : index
    %767 = vector.load %arg17[%c0_842, %c4_843, %c1_844] : memref<8x10x10xf32, #tpu.memory_space<vmem>>, vector<8x1x8xf32>
    %768 = vector.shape_cast %767 : vector<8x1x8xf32> to vector<8x8xf32>
    %c0_845 = arith.constant 0 : index
    %c5_846 = arith.constant 5 : index
    %c1_847 = arith.constant 1 : index
    %769 = vector.load %arg17[%c0_845, %c5_846, %c1_847] : memref<8x10x10xf32, #tpu.memory_space<vmem>>, vector<8x1x8xf32>
    %770 = vector.shape_cast %769 : vector<8x1x8xf32> to vector<8x8xf32>
    %c0_848 = arith.constant 0 : index
    %c6_849 = arith.constant 6 : index
    %c1_850 = arith.constant 1 : index
    %771 = vector.load %arg17[%c0_848, %c6_849, %c1_850] : memref<8x10x10xf32, #tpu.memory_space<vmem>>, vector<8x1x8xf32>
    %772 = vector.shape_cast %771 : vector<8x1x8xf32> to vector<8x8xf32>
    %c0_851 = arith.constant 0 : index
    %c7_852 = arith.constant 7 : index
    %c1_853 = arith.constant 1 : index
    %773 = vector.load %arg17[%c0_851, %c7_852, %c1_853] : memref<8x10x10xf32, #tpu.memory_space<vmem>>, vector<8x1x8xf32>
    %774 = vector.shape_cast %773 : vector<8x1x8xf32> to vector<8x8xf32>
    %c0_854 = arith.constant 0 : index
    %c8_855 = arith.constant 8 : index
    %c1_856 = arith.constant 1 : index
    %775 = vector.load %arg17[%c0_854, %c8_855, %c1_856] : memref<8x10x10xf32, #tpu.memory_space<vmem>>, vector<8x1x8xf32>
    %776 = vector.shape_cast %775 : vector<8x1x8xf32> to vector<8x8xf32>
    %c0_857 = arith.constant 0 : index
    %c9_858 = arith.constant 9 : index
    %c1_859 = arith.constant 1 : index
    %777 = vector.load %arg17[%c0_857, %c9_858, %c1_859] : memref<8x10x10xf32, #tpu.memory_space<vmem>>, vector<8x1x8xf32>
    %778 = vector.shape_cast %777 : vector<8x1x8xf32> to vector<8x8xf32>
    %779 = tpu.concatenate %764, %766, %768, %770, %772, %774, %776, %778 in 1 : vector<8x8xf32>, vector<8x8xf32>, vector<8x8xf32>, vector<8x8xf32>, vector<8x8xf32>, vector<8x8xf32>, vector<8x8xf32>, vector<8x8xf32> -> vector<8x64xf32>
    %c0_860 = arith.constant 0 : index
    %c2_861 = arith.constant 2 : index
    %c2_862 = arith.constant 2 : index
    %780 = vector.load %arg17[%c0_860, %c2_861, %c2_862] : memref<8x10x10xf32, #tpu.memory_space<vmem>>, vector<8x1x8xf32>
    %781 = vector.shape_cast %780 : vector<8x1x8xf32> to vector<8x8xf32>
    %c0_863 = arith.constant 0 : index
    %c3_864 = arith.constant 3 : index
    %c2_865 = arith.constant 2 : index
    %782 = vector.load %arg17[%c0_863, %c3_864, %c2_865] : memref<8x10x10xf32, #tpu.memory_space<vmem>>, vector<8x1x8xf32>
    %783 = vector.shape_cast %782 : vector<8x1x8xf32> to vector<8x8xf32>
    %c0_866 = arith.constant 0 : index
    %c4_867 = arith.constant 4 : index
    %c2_868 = arith.constant 2 : index
    %784 = vector.load %arg17[%c0_866, %c4_867, %c2_868] : memref<8x10x10xf32, #tpu.memory_space<vmem>>, vector<8x1x8xf32>
    %785 = vector.shape_cast %784 : vector<8x1x8xf32> to vector<8x8xf32>
    %c0_869 = arith.constant 0 : index
    %c5_870 = arith.constant 5 : index
    %c2_871 = arith.constant 2 : index
    %786 = vector.load %arg17[%c0_869, %c5_870, %c2_871] : memref<8x10x10xf32, #tpu.memory_space<vmem>>, vector<8x1x8xf32>
    %787 = vector.shape_cast %786 : vector<8x1x8xf32> to vector<8x8xf32>
    %c0_872 = arith.constant 0 : index
    %c6_873 = arith.constant 6 : index
    %c2_874 = arith.constant 2 : index
    %788 = vector.load %arg17[%c0_872, %c6_873, %c2_874] : memref<8x10x10xf32, #tpu.memory_space<vmem>>, vector<8x1x8xf32>
    %789 = vector.shape_cast %788 : vector<8x1x8xf32> to vector<8x8xf32>
    %c0_875 = arith.constant 0 : index
    %c7_876 = arith.constant 7 : index
    %c2_877 = arith.constant 2 : index
    %790 = vector.load %arg17[%c0_875, %c7_876, %c2_877] : memref<8x10x10xf32, #tpu.memory_space<vmem>>, vector<8x1x8xf32>
    %791 = vector.shape_cast %790 : vector<8x1x8xf32> to vector<8x8xf32>
    %c0_878 = arith.constant 0 : index
    %c8_879 = arith.constant 8 : index
    %c2_880 = arith.constant 2 : index
    %792 = vector.load %arg17[%c0_878, %c8_879, %c2_880] : memref<8x10x10xf32, #tpu.memory_space<vmem>>, vector<8x1x8xf32>
    %793 = vector.shape_cast %792 : vector<8x1x8xf32> to vector<8x8xf32>
    %c0_881 = arith.constant 0 : index
    %c9_882 = arith.constant 9 : index
    %c2_883 = arith.constant 2 : index
    %794 = vector.load %arg17[%c0_881, %c9_882, %c2_883] : memref<8x10x10xf32, #tpu.memory_space<vmem>>, vector<8x1x8xf32>
    %795 = vector.shape_cast %794 : vector<8x1x8xf32> to vector<8x8xf32>
    %796 = tpu.concatenate %781, %783, %785, %787, %789, %791, %793, %795 in 1 : vector<8x8xf32>, vector<8x8xf32>, vector<8x8xf32>, vector<8x8xf32>, vector<8x8xf32>, vector<8x8xf32>, vector<8x8xf32>, vector<8x8xf32> -> vector<8x64xf32>
    %797 = tpu.concatenate %745, %762, %779, %796 in 0 : vector<8x64xf32>, vector<8x64xf32>, vector<8x64xf32>, vector<8x64xf32> -> vector<32x64xf32>
    %cst_884 = arith.constant dense<0.000000e+00> : vector<1x64xf32>
    %798 = tpu.matmul %459, %797, %cst_884 {dimension_numbers = #tpu.dot_dimension_numbers<[1], [0], [0], [1], [0, 0, 1, 1], [], []>} : vector<1x32xf32>, vector<32x64xf32>, vector<1x64xf32> -> vector<1x64xf32>
    %cst_885 = arith.constant dense<0.000000e+00> : vector<1x128xf32>
    %799 = tpu.matmul %728, %467, %cst_885 {dimension_numbers = #tpu.dot_dimension_numbers<[1], [0], [0], [1], [0, 0, 1, 1], [], []>} : vector<1x64xf32>, vector<64x128xf32>, vector<1x128xf32> -> vector<1x128xf32>
    %cst_886 = arith.constant dense<0.000000e+00> : vector<1x128xf32>
    %800 = tpu.matmul %798, %474, %cst_886 {dimension_numbers = #tpu.dot_dimension_numbers<[1], [0], [0], [1], [0, 0, 1, 1], [], []>} : vector<1x64xf32>, vector<64x128xf32>, vector<1x128xf32> -> vector<1x128xf32>
    %801 = arith.addf %799, %800 : vector<1x128xf32>
    %802 = vector.broadcast %460 : vector<1x1xf32> to vector<1x128xf32>
    %803 = arith.addf %801, %802 : vector<1x128xf32>
    %cst_887 = arith.constant 0.000000e+00 : f32
    %804 = vector.broadcast %cst_887 : f32 to vector<1x128xf32>
    %805 = arith.subf %804, %803 : vector<1x128xf32>
    %806 = math.exp %805 : vector<1x128xf32>
    %cst_888 = arith.constant 1.000000e+00 : f32
    %807 = vector.broadcast %cst_888 : f32 to vector<1x128xf32>
    %808 = arith.addf %807, %806 : vector<1x128xf32>
    %cst_889 = arith.constant 1.000000e+00 : f32
    %809 = vector.broadcast %cst_889 : f32 to vector<1x128xf32>
    %810 = arith.divf %809, %808 : vector<1x128xf32>
    %811 = vector.extract_strided_slice %810 {offsets = [0, 0], sizes = [1, 16], strides = [1, 1]} : vector<1x128xf32> to vector<1x16xf32>
    %c0_890 = arith.constant 0 : index
    %c0_891 = arith.constant 0 : index
    %c1_892 = arith.constant 1 : index
    %c0_893 = arith.constant 0 : index
    %812 = vector.load %arg14[%c0_890, %c0_891, %c1_892, %c0_893] : memref<1x1x16x16xf32, #tpu.memory_space<vmem>>, vector<1x1x1x16xf32>
    %813 = vector.shape_cast %812 : vector<1x1x1x16xf32> to vector<1x16xf32>
    %814 = vector.shape_cast %811 : vector<1x16xf32> to vector<1x1x1x16xf32>
    tpu.vector_store %arg14[%c0_890, %c0_891, %c1_892, %c0_893], %814 {strides = array<i32>} : memref<1x1x16x16xf32, #tpu.memory_space<vmem>>, vector<1x1x1x16xf32>,
    %815 = vector.extract_strided_slice %810 {offsets = [0, 16], sizes = [1, 16], strides = [1, 1]} : vector<1x128xf32> to vector<1x16xf32>
    %c0_894 = arith.constant 0 : index
    %c0_895 = arith.constant 0 : index
    %c3_896 = arith.constant 3 : index
    %c0_897 = arith.constant 0 : index
    %816 = vector.load %arg14[%c0_894, %c0_895, %c3_896, %c0_897] : memref<1x1x16x16xf32, #tpu.memory_space<vmem>>, vector<1x1x1x16xf32>
    %817 = vector.shape_cast %816 : vector<1x1x1x16xf32> to vector<1x16xf32>
    %818 = vector.shape_cast %815 : vector<1x16xf32> to vector<1x1x1x16xf32>
    tpu.vector_store %arg14[%c0_894, %c0_895, %c3_896, %c0_897], %818 {strides = array<i32>} : memref<1x1x16x16xf32, #tpu.memory_space<vmem>>, vector<1x1x1x16xf32>,
    %819 = vector.extract_strided_slice %810 {offsets = [0, 32], sizes = [1, 16], strides = [1, 1]} : vector<1x128xf32> to vector<1x16xf32>
    %c0_898 = arith.constant 0 : index
    %c0_899 = arith.constant 0 : index
    %c5_900 = arith.constant 5 : index
    %c0_901 = arith.constant 0 : index
    %820 = vector.load %arg14[%c0_898, %c0_899, %c5_900, %c0_901] : memref<1x1x16x16xf32, #tpu.memory_space<vmem>>, vector<1x1x1x16xf32>
    %821 = vector.shape_cast %820 : vector<1x1x1x16xf32> to vector<1x16xf32>
    %822 = vector.shape_cast %819 : vector<1x16xf32> to vector<1x1x1x16xf32>
    tpu.vector_store %arg14[%c0_898, %c0_899, %c5_900, %c0_901], %822 {strides = array<i32>} : memref<1x1x16x16xf32, #tpu.memory_space<vmem>>, vector<1x1x1x16xf32>,
    %823 = vector.extract_strided_slice %810 {offsets = [0, 48], sizes = [1, 16], strides = [1, 1]} : vector<1x128xf32> to vector<1x16xf32>
    %c0_902 = arith.constant 0 : index
    %c0_903 = arith.constant 0 : index
    %c7_904 = arith.constant 7 : index
    %c0_905 = arith.constant 0 : index
    %824 = vector.load %arg14[%c0_902, %c0_903, %c7_904, %c0_905] : memref<1x1x16x16xf32, #tpu.memory_space<vmem>>, vector<1x1x1x16xf32>
    %825 = vector.shape_cast %824 : vector<1x1x1x16xf32> to vector<1x16xf32>
    %826 = vector.shape_cast %823 : vector<1x16xf32> to vector<1x1x1x16xf32>
    tpu.vector_store %arg14[%c0_902, %c0_903, %c7_904, %c0_905], %826 {strides = array<i32>} : memref<1x1x16x16xf32, #tpu.memory_space<vmem>>, vector<1x1x1x16xf32>,
    %827 = vector.extract_strided_slice %810 {offsets = [0, 64], sizes = [1, 16], strides = [1, 1]} : vector<1x128xf32> to vector<1x16xf32>
    %c0_906 = arith.constant 0 : index
    %c0_907 = arith.constant 0 : index
    %c9_908 = arith.constant 9 : index
    %c0_909 = arith.constant 0 : index
    %828 = vector.load %arg14[%c0_906, %c0_907, %c9_908, %c0_909] : memref<1x1x16x16xf32, #tpu.memory_space<vmem>>, vector<1x1x1x16xf32>
    %829 = vector.shape_cast %828 : vector<1x1x1x16xf32> to vector<1x16xf32>
    %830 = vector.shape_cast %827 : vector<1x16xf32> to vector<1x1x1x16xf32>
    tpu.vector_store %arg14[%c0_906, %c0_907, %c9_908, %c0_909], %830 {strides = array<i32>} : memref<1x1x16x16xf32, #tpu.memory_space<vmem>>, vector<1x1x1x16xf32>,
    %831 = vector.extract_strided_slice %810 {offsets = [0, 80], sizes = [1, 16], strides = [1, 1]} : vector<1x128xf32> to vector<1x16xf32>
    %c0_910 = arith.constant 0 : index
    %c0_911 = arith.constant 0 : index
    %c11 = arith.constant 11 : index
    %c0_912 = arith.constant 0 : index
    %832 = vector.load %arg14[%c0_910, %c0_911, %c11, %c0_912] : memref<1x1x16x16xf32, #tpu.memory_space<vmem>>, vector<1x1x1x16xf32>
    %833 = vector.shape_cast %832 : vector<1x1x1x16xf32> to vector<1x16xf32>
    %834 = vector.shape_cast %831 : vector<1x16xf32> to vector<1x1x1x16xf32>
    tpu.vector_store %arg14[%c0_910, %c0_911, %c11, %c0_912], %834 {strides = array<i32>} : memref<1x1x16x16xf32, #tpu.memory_space<vmem>>, vector<1x1x1x16xf32>,
    %835 = vector.extract_strided_slice %810 {offsets = [0, 96], sizes = [1, 16], strides = [1, 1]} : vector<1x128xf32> to vector<1x16xf32>
    %c0_913 = arith.constant 0 : index
    %c0_914 = arith.constant 0 : index
    %c13 = arith.constant 13 : index
    %c0_915 = arith.constant 0 : index
    %836 = vector.load %arg14[%c0_913, %c0_914, %c13, %c0_915] : memref<1x1x16x16xf32, #tpu.memory_space<vmem>>, vector<1x1x1x16xf32>
    %837 = vector.shape_cast %836 : vector<1x1x1x16xf32> to vector<1x16xf32>
    %838 = vector.shape_cast %835 : vector<1x16xf32> to vector<1x1x1x16xf32>
    tpu.vector_store %arg14[%c0_913, %c0_914, %c13, %c0_915], %838 {strides = array<i32>} : memref<1x1x16x16xf32, #tpu.memory_space<vmem>>, vector<1x1x1x16xf32>,
    %839 = vector.extract_strided_slice %810 {offsets = [0, 112], sizes = [1, 16], strides = [1, 1]} : vector<1x128xf32> to vector<1x16xf32>
    %c0_916 = arith.constant 0 : index
    %c0_917 = arith.constant 0 : index
    %c15 = arith.constant 15 : index
    %c0_918 = arith.constant 0 : index
    %840 = vector.load %arg14[%c0_916, %c0_917, %c15, %c0_918] : memref<1x1x16x16xf32, #tpu.memory_space<vmem>>, vector<1x1x1x16xf32>
    %841 = vector.shape_cast %840 : vector<1x1x1x16xf32> to vector<1x16xf32>
    %842 = vector.shape_cast %839 : vector<1x16xf32> to vector<1x1x1x16xf32>
    tpu.vector_store %arg14[%c0_916, %c0_917, %c15, %c0_918], %842 {strides = array<i32>} : memref<1x1x16x16xf32, #tpu.memory_space<vmem>>, vector<1x1x1x16xf32>,
    return
  }
  func.func @transform_0(%arg0: i32) -> (i32, i32, i32) {
    %c0_i32 = arith.constant 0 : i32
    %c0_i32_0 = arith.constant 0 : i32
    %c0_i32_1 = arith.constant 0 : i32
    return %arg0, %c0_i32, %c0_i32_0 : i32, i32, i32
  }
  func.func @transform_1(%arg0: i32) -> (i32, i32) {
    %c0_i32 = arith.constant 0 : i32
    %c0_i32_0 = arith.constant 0 : i32
    %c0_i32_1 = arith.constant 0 : i32
    return %c0_i32, %c0_i32_0 : i32, i32
  }
  func.func @transform_2(%arg0: i32) -> (i32, i32) {
    %c0_i32 = arith.constant 0 : i32
    %c0_i32_0 = arith.constant 0 : i32
    %c0_i32_1 = arith.constant 0 : i32
    return %c0_i32, %c0_i32_0 : i32, i32
  }
  func.func @transform_3(%arg0: i32) -> (i32, i32) {
    %c0_i32 = arith.constant 0 : i32
    %c0_i32_0 = arith.constant 0 : i32
    %c0_i32_1 = arith.constant 0 : i32
    return %c0_i32, %c0_i32_0 : i32, i32
  }
  func.func @transform_4(%arg0: i32) -> (i32, i32) {
    %c0_i32 = arith.constant 0 : i32
    %c0_i32_0 = arith.constant 0 : i32
    %c0_i32_1 = arith.constant 0 : i32
    return %c0_i32, %c0_i32_0 : i32, i32
  }
  func.func @transform_5(%arg0: i32) -> (i32, i32) {
    %c0_i32 = arith.constant 0 : i32
    %c0_i32_0 = arith.constant 0 : i32
    %c0_i32_1 = arith.constant 0 : i32
    return %c0_i32, %c0_i32_0 : i32, i32
  }
  func.func @transform_6(%arg0: i32) -> (i32, i32) {
    %c0_i32 = arith.constant 0 : i32
    %c0_i32_0 = arith.constant 0 : i32
    %c0_i32_1 = arith.constant 0 : i32
    return %c0_i32, %c0_i32_0 : i32, i32
  }
  func.func @transform_7(%arg0: i32) -> (i32, i32, i32) {
    %c0_i32 = arith.constant 0 : i32
    %c0_i32_0 = arith.constant 0 : i32
    %c0_i32_1 = arith.constant 0 : i32
    %c0_i32_2 = arith.constant 0 : i32
    return %c0_i32, %c0_i32_0, %c0_i32_1 : i32, i32, i32
  }
  func.func @transform_8(%arg0: i32) -> (i32, i32) {
    %c0_i32 = arith.constant 0 : i32
    %c0_i32_0 = arith.constant 0 : i32
    %c0_i32_1 = arith.constant 0 : i32
    return %c0_i32, %c0_i32_0 : i32, i32
  }
  func.func @transform_9(%arg0: i32) -> (i32, i32, i32) {
    %c0_i32 = arith.constant 0 : i32
    %c0_i32_0 = arith.constant 0 : i32
    %c0_i32_1 = arith.constant 0 : i32
    %c0_i32_2 = arith.constant 0 : i32
    return %c0_i32, %c0_i32_0, %c0_i32_1 : i32, i32, i32
  }
  func.func @transform_10(%arg0: i32) -> (i32, i32) {
    %c0_i32 = arith.constant 0 : i32
    %c0_i32_0 = arith.constant 0 : i32
    %c0_i32_1 = arith.constant 0 : i32
    return %c0_i32, %c0_i32_0 : i32, i32
  }
  func.func @transform_11(%arg0: i32) -> (i32, i32, i32) {
    %c0_i32 = arith.constant 0 : i32
    %c0_i32_0 = arith.constant 0 : i32
    %c0_i32_1 = arith.constant 0 : i32
    %c0_i32_2 = arith.constant 0 : i32
    return %c0_i32, %c0_i32_0, %c0_i32_1 : i32, i32, i32
  }
  func.func @transform_12(%arg0: i32) -> (i32, i32) {
    %c0_i32 = arith.constant 0 : i32
    %c0_i32_0 = arith.constant 0 : i32
    %c0_i32_1 = arith.constant 0 : i32
    return %c0_i32, %c0_i32_0 : i32, i32
  }
  func.func @transform_13(%arg0: i32) -> (i32, i32, i32, i32) {
    %c0_i32 = arith.constant 0 : i32
    %c0_i32_0 = arith.constant 0 : i32
    %c0_i32_1 = arith.constant 0 : i32
    %c0_i32_2 = arith.constant 0 : i32
    return %arg0, %c0_i32, %c0_i32_0, %c0_i32_1 : i32, i32, i32, i32
  }
}

</mosaic_0001>

<bundles_post_ra>
// kernel: decoder_forward.1
= control target key start
LH: loop header
LB: loop body
LE: loop exit
PB: predicated region body
PF: predicated region fallthrough
CT: control target
= control target key end

     0   :  { %s8280_s0 = inlined_call_operand.vmem [shape: f32[2,1,10], index: 0, kind: input, shape index: {}]   ;;  %s8281_s1 = inlined_call_operand.hbm [shape: f32[10,32], index: 1, kind: input, shape index: {}]   ;;  %s8282_s2 = inlined_call_operand.hbm [shape: f32[1,32], index: 2, kind: input, shape index: {}]   ;;  %s8283_s3 = inlined_call_operand.vmem [shape: f32[32,32], index: 3, kind: input, shape index: {}]   ;;  %s8284_s4 = inlined_call_operand.hbm [shape: f32[1,32], index: 4, kind: input, shape index: {}]   ;;  %s8285_s5 = inlined_call_operand.hbm [shape: f32[32,32], index: 5, kind: input, shape index: {}]   ;;  %s8286_s6 = inlined_call_operand.hbm [shape: f32[1,32], index: 6, kind: input, shape index: {}]   ;;  %s8287_s7 = inlined_call_operand.hbm [shape: f32[4,8,32], index: 7, kind: input, shape index: {}]   ;;  %s8288_s8 = inlined_call_operand.vmem [shape: f32[8,1], index: 8, kind: input, shape index: {}]   ;;  %s8289_s9 = inlined_call_operand.hbm [shape: f32[4,8,32], index: 9, kind: input, shape index: {}]   ;;  %s8290_s10 = inlined_call_operand.vmem [shape: f32[8,1], index: 10, kind: input, shape index: {}]   ;;  %s8291_s11 = inlined_call_operand.vmem [shape: f32[4,1,32], index: 11, kind: input, shape index: {}]   ;;  %s8292_s12 = inlined_call_operand.<no memory space> [shape: f32[1,1], index: 12, kind: input, shape index: {}]   ;;  %s8293_s13 = inlined_call_operand.hbm [shape: f32[2,1,16,16], index: 13, kind: output, shape index: {}]  }
   0x1   :  { %8365 = sst [smem:[#allocation27_spill]] %s8280_s0  ;;  %v18_v0 = vstv %s8292_s12 }
   0x2   :  { %8366 = sst [smem:[#allocation28_spill]] %s8281_s1  ;;  %19 = vst [vmem:[#allocation5] sm:$0x1] %v18_v0 }
   0x3   :  { %8367 = sst [smem:[#allocation29_spill]] %s8282_s2 }
   0x4   :  { %8368 = sst [smem:[#allocation30_spill]] %s8283_s3 }
   0x5   :  { %8369 = sst [smem:[#allocation31_spill]] %s8284_s4 }
   0x6   :  { %8370 = sst [smem:[#allocation32_spill]] %s8285_s5 }
   0x7   :  { %8371 = sst [smem:[#allocation33_spill]] %s8286_s6 }
   0x8   :  { %20 = vsyncpa [#allocation7], 0 }
   0x9   :  { %21 = vsyncpa [#allocation10], 0 }
   0xa   :  { %22 = vsyncpa [#allocation13], 0 }
   0xb   :  { %23 = vsyncpa [#allocation16], 0 }
   0xc   :  { %24 = vsyncpa [#allocation8], 0 }
   0xd   :  { %26 = vsyncpa [#allocation8 + $0x1], 0  ;;  %s6439_s27 = smov 0   ;;  %s6441_s28 = smov 0  }
   0xe   :  { %s6443_s29 = smov 0   ;;  %s6445_s30 = smov 0  }
   0xf LB: > { %8372 = sst [smem:[#allocation24_spill]] %s6296_s29  ;;  %s6460_s12 = sadd.s32 4294967295, %s6300_s30   ;;  %s6300_s30 = sphi %s6445_s30, %s8490_s30   ;;  %s6296_s29 = sphi %s6443_s29, %s8492_s29   ;;  %s6292_s28 = sphi %s6441_s28, %s8494_s28   ;;  %s6288_s27 = sphi %s6439_s27, %s8493_s27  }
  0x10   : > { %s5336_s14 = sadd.s32 4294967294, %s6300_s30   ;;  %s6464_s15 = sadd.s32 1, %s6300_s30  }
  0x11   : > { %8373 = sst [smem:[#allocation25_spill]] %s6464_s15  ;;  %s317_s16 = sadd.s32 1, %s6296_s29 }
  0x12   : > { %s314_s17 = ssub.s32 %s6300_s30, %s6464_s15  ;;  %p327_p0 = scmp.ne.s32.totalorder %s6296_s29, %s6292_s28 }
  0x13   : > { %p315_p1 = scmp.eq.s32.totalorder %s314_s17, 0  ;;  %p328_p2 = scmp.eq.s32.totalorder %s6460_s12, 1 }
  0x14   : > { %p333_p3 = scmp.ne.s32.totalorder %s6292_s28, %s6288_s27  ;;  %p334_p4 = scmp.eq.s32.totalorder %s5336_s14, 1 }
  0x15   : > { %s6475_s18 = scalar_select %p315_p1, %s6296_s29, %s317_s16  }
  0x16   : > { %p6477_p5 = por %p328_p2, %p327_p0  ;;  %p6481_p6 = por %p334_p4, %p333_p3 }
  0x17   : > { %8374 = sst [smem:[#allocation26_spill]] %s6475_s18  ;;  %p5337_p7 = scmp.ge.s32.totalorder %s6300_s30, 1 }
  0x18   : > { %s8375_s19 = scalar_select %p6477_p5, 1, 0 }
  0x19   : > { %s8376_s20 = scalar_select %p6481_p6, 1, 0 }
  0x1a   : > { %p341_p8 = scmp.lt.s32.totalorder %s6300_s30, 3  ;;  %p8295_p9 = scmp.eq.s32.totalorder %s6460_s12, 0 }
  0x1b   : > { %s6302_s22 = smov [#allocation9]   ;;  %s6303_s25 = smov [#allocation12]  }
  0x1c   : > { %p6488_p10 = pnand %p5337_p7, %p341_p8  ;;  %s367_s23 = sshll.u32 %s6302_s22, 4  ;;  %s368_s23 = int_to_ptr.vmem [resolvable:$true] %s367_s23 }
  0x1d   : > { %s391_s26 = sshll.u32 %s6303_s25, 4  ;;  %s6304_s14 = smov [#allocation15]   ;;  %s6500_s26 = int_to_ptr.vmem [resolvable:$true] %s391_s26 }
  0x1e   : > { %s8377_s21 = scalar_select %p6488_p10, 1, 0 }
  0x1f   : > { %p5896_p11 = pneg %p6488_p10  ;;  %s415_s16 = sshll.u32 %s6304_s14, 4  ;;  %s416_s16 = int_to_ptr.vmem [resolvable:$true] %s415_s16 }
  0x20   : > { %s6053_s22 = scalar_lea.vmem %s368_s23, 16  ;;  %s6060_s18 = scalar_lea.vmem %s368_s23, 32 }
  0x21   : > { %p6496_p12 = pnand %p8295_p9, %p5896_p11  ;;  %p6054_p0 = scmp.ne.s32.totalorder %s368_s23, %s6053_s22 }
  0x22   : > { %p6061_p3 = scmp.lt.s32.totalorder %s368_s23, %s368_s23  ;;  %p6062_p4 = scmp.lt.s32.totalorder %s6060_s18, %s6053_s22 }
  0x23   : > { %p6504_p13 = pneg %p6496_p12 }
  0x24   : > { %p6063_p7 = por %p6062_p4, %p6061_p3 }
  0x25   : > { %p6056_p1 = pnand %p6054_p0, %p6504_p13 }
  0x27   : > { %p6057_p2 = pneg %p6056_p1 }
  0x29   : > { %p6064_p8 = pnand %p6063_p7, %p6057_p2 }
  0x2b   : > { %6067 = shalt.err (!%p6064_p8)
}
  0x2c   : > { %s8380_s2 = sld [smem:[#allocation29_spill]]  ;;  %s6079_s29 = scalar_lea.vmem %s6500_s26, 512 }
  0x2d   : > { %p6080_p11 = scmp.ne.s32.totalorder %s6500_s26, %s6079_s29  ;;  %p6087_p9 = scmp.lt.s32.totalorder %s6500_s26, %s6500_s26 }
  0x2e   : > { %p6088_p3 = scmp.lt.s32.totalorder %s6079_s29, %s6079_s29 }
  0x2f   : > { %p6082_p0 = pnand %p6080_p11, %p6504_p13 }
  0x30   : > { %p6089_p2 = por %p6088_p3, %p6087_p9 }
  0x31   : > { %p6083_p1 = pneg %p6082_p0 }
  0x32   : > { %5902 = dma.hbm_to_vmem [thread:$0]  (!%p6496_p12), %s8380_s2, 16, %s368_s23, [#allocation10]  }
  0x33   : > { %p6090_p4 = pnand %p6089_p2, %p6083_p1 }
  0x35   : > { %6093 = shalt.err (!%p6090_p4)
}
  0x36   : > { %s8298_s18 = smov 128   ;;  %s6306_s22 = smov 8  }
  0x37   : > { %s8381_s5 = sld [smem:[#allocation32_spill]]  ;;  %s6105_s14 = scalar_lea.vmem %s416_s16, 512 }
  0x38   : > { %p6106_p7 = scmp.ne.s32.totalorder %s416_s16, %s6105_s14  ;;  %p6113_p11 = scmp.lt.s32.totalorder %s416_s16, %s416_s16 }
  0x39   : > { %p6114_p0 = scmp.lt.s32.totalorder %s6105_s14, %s6105_s14 }
  0x3a   : > { %p6108_p9 = pnand %p6106_p7, %p6504_p13 }
  0x3b   : > { %p6115_p1 = por %p6114_p0, %p6113_p11 }
  0x3c   : > { %p6109_p8 = pneg %p6108_p9 }
  0x3d   : > { %5908 = dma.hbm_to_vmem [thread:$0]  (!%p6496_p12), %s8381_s5, 512, %s6500_s26, [#allocation13], %s8298_s18, %s8298_s18, %s6306_s22  }
  0x3e   : > { %p6116_p3 = pnand %p6115_p1, %p6109_p8 }
  0x40   : > { %6119 = shalt.err (!%p6116_p3)
}
  0x41   : > { %5914 = dma.hbm_to_vmem [thread:$0]  (!%p6496_p12), %s8287_s7, 512, %s416_s16, [#allocation16], %s8298_s18, %s8298_s18, %s6306_s22  }
  0x42   : > { %s6307_s26 = smov [#allocation6]   ;;  %s6308_s25 = smov [#allocation11]  }
  0x43   : > { %s353_s23 = sshll.u32 %s6307_s26, 4  ;;  %s381_s5 = sshll.u32 %s6308_s25, 4  ;;  %s354_s23 = int_to_ptr.vmem [resolvable:$true] %s353_s23  ;;  %s382_s5 = int_to_ptr.vmem [resolvable:$true] %s381_s5 }
  0x44   : > { %s6131_s15 = scalar_lea.vmem %s354_s23, 256  ;;  %p6139_p9 = scmp.lt.s32.totalorder %s354_s23, %s354_s23 }
  0x45   : > { %p6132_p2 = scmp.ne.s32.totalorder %s354_s23, %s6131_s15  ;;  %p6140_p8 = scmp.lt.s32.totalorder %s6131_s15, %s6131_s15 }
  0x47   : > { %p6134_p4 = pnand %p6132_p2, %p6504_p13  ;;  %p6141_p11 = por %p6140_p8, %p6139_p9 }
  0x49   : > { %p6135_p7 = pneg %p6134_p4 }
  0x4b   : > { %p6142_p0 = pnand %p6141_p11, %p6135_p7 }
  0x4d   : > { %6145 = shalt.err (!%p6142_p0)
}
  0x4e   : > { %s8382_s1 = sld [smem:[#allocation28_spill]]  ;;  %s6157_s14 = scalar_lea.vmem %s382_s5, 16 }
  0x4f   : > { %p6158_p1 = scmp.ne.s32.totalorder %s382_s5, %s6157_s14  ;;  %s6164_s15 = scalar_lea.vmem %s382_s5, 32 }
  0x50   : > { %p6165_p4 = scmp.lt.s32.totalorder %s382_s5, %s382_s5  ;;  %p6166_p7 = scmp.lt.s32.totalorder %s6164_s15, %s6157_s14 }
  0x51   : > { %p6160_p3 = pnand %p6158_p1, %p6504_p13 }
  0x52   : > { %p6167_p9 = por %p6166_p7, %p6165_p4 }
  0x53   : > { %p6161_p2 = pneg %p6160_p3 }
  0x54   : > { %5899 = dma.hbm_to_vmem [thread:$0]  (!%p6496_p12), %s8382_s1, 256, %s354_s23, [#allocation7], %s8298_s18, %s8298_s18, %s6306_s22  }
  0x55   : > { %p6168_p8 = pnand %p6167_p9, %p6161_p2 }
  0x57   : > { %6171 = shalt.err (!%p6168_p8)
}
  0x58   : > { %s8383_s4 = sld [smem:[#allocation31_spill]]  ;;  %s6309_s23 = smov [#allocation14]  }
  0x59   : > { %s405_s25 = sshll.u32 %s6309_s23, 4  ;;  %s6310_s2 = smov [#allocation17]   ;;  %s406_s25 = int_to_ptr.vmem [resolvable:$true] %s405_s25 }
  0x5a   : > { %s431_s16 = sshll.u32 %s6310_s2, 4  ;;  %s6183_s18 = scalar_lea.vmem %s406_s25, 16  ;;  %s432_s16 = int_to_ptr.vmem [resolvable:$true] %s431_s16 }
  0x5b   : > { %p6184_p11 = scmp.ne.s32.totalorder %s406_s25, %s6183_s18  ;;  %s6190_s14 = scalar_lea.vmem %s406_s25, 32 }
  0x5c   : > { %p6191_p3 = scmp.lt.s32.totalorder %s406_s25, %s406_s25  ;;  %p6192_p2 = scmp.lt.s32.totalorder %s6190_s14, %s6183_s18 }
  0x5d   : > { %p6186_p0 = pnand %p6184_p11, %p6504_p13 }
  0x5e   : > { %5905 = dma.hbm_to_vmem [thread:$0]  (!%p6496_p12), %s8383_s4, 16, %s382_s5, [#allocation10]  }
  0x5f   : > { %p6187_p1 = pneg %p6186_p0  ;;  %p6193_p4 = por %p6192_p2, %p6191_p3 }
  0x61   : > { %p6194_p7 = pnand %p6193_p4, %p6187_p1 }
  0x63   : > { %6197 = shalt.err (!%p6194_p7)
}
  0x64   : > { %s8384_s6 = sld [smem:[#allocation33_spill]]  ;;  %s6209_s29 = scalar_lea.vmem %s432_s16, 512 }
  0x65   : > { %p6210_p9 = scmp.ne.s32.totalorder %s432_s16, %s6209_s29  ;;  %p6217_p0 = scmp.lt.s32.totalorder %s432_s16, %s432_s16 }
  0x66   : > { %p6218_p6 = scmp.lt.s32.totalorder %s6209_s29, %s6209_s29 }
  0x67   : > { %p6212_p8 = pnand %p6210_p9, %p6504_p13 }
  0x68   : > { %p6219_p5 = por %p6218_p6, %p6217_p0 }
  0x69   : > { %p6213_p11 = pneg %p6212_p8 }
  0x6a   : > { %5911 = dma.hbm_to_vmem [thread:$0]  (!%p6496_p12), %s8384_s6, 16, %s406_s25, [#allocation13]  }
  0x6b   : > { %p6220_p10 = pnand %p6219_p5, %p6213_p11 }
  0x6d   : > { %6223 = shalt.err (!%p6220_p10)
}
  0x6e   : > { %s8385_s18 = smov 128   ;;  %p8386_p1 = scmp.ne.s32.totalorder %s8377_s21, 0 }
  0x6f   : > { %5917 = dma.hbm_to_vmem [thread:$0]  (!%p6496_p12), %s8289_s9, 512, %s432_s16, [#allocation16], %s8385_s18, %s8385_s18, %s6306_s22  }
  0x70   : > { %462 = sbr.rel (%p8386_p1) target bundleno = 3603 (0xe13), region = 72  ;;  %p8387_p13 = scmp.eq.s32.totalorder (!%p8386_p1), %s6460_s12, 0 }
  0x75   : > { %6267 = dma.done.wait (%p8387_p13), [#allocation7], 256   ;;  %p8388_p3 = pmov %p8387_p13 }
  0x77   : > { %6269 = vsyncadd (%p8388_p3), [#allocation7], 4294967040  ;;  %p8389_p5 = pmov %p8388_p3 }
  0x78   : > { %p8390_p6 = pmov %p8388_p3 }
  0x79   : > { %6271 = dma.done.wait (%p8389_p5), [#allocation10], 32  }
  0x7a   : > { %6273 = vsyncadd (%p8390_p6), [#allocation10], 4294967264  ;;  %p8391_p10 = pmov %p8388_p3 }
  0x7b   : > { %p8392_p12 = pmov %p8388_p3 }
  0x7c   : > { %6275 = dma.done.wait (%p8391_p10), [#allocation13], 528  }
  0x7d   : > { %6277 = vsyncadd (%p8392_p12), [#allocation13], 4294966768  ;;  %p8393_p2 = pmov %p8388_p3 }
  0x7f   : > { %6279 = dma.done.wait (%p8393_p2), [#allocation16], 1024   ;;  %p8394_p4 = pmov %p8393_p2 }
  0x80   : > { %p528_p7 = scmp.lt.s32.totalorder %s6460_s12, 1  ;;  %v6311_v1 = vmov 0.0   ;;  %vm8308_vm0 = vmmov 0   ;;  %vm549_vm1 = vcmask 80896   ;;  %vm574_vm2 = vcmask 1041408   ;;  %s8395_s0 = sld [smem:[#allocation27_spill]] }
  0x81   : > { %6281 = vsyncadd (%p8394_p4), [#allocation16], 4294966272  ;;  %5581 = vmatprep.subr.mxu0 %v6311_v1  ;;  %5585 = vmatprep.mubr.msk.f32.mxu0 %vm8308_vm0, %v6311_v1  ;;  %550 = vst.msk [vmem:[#allocation4] sm:$0xff] %vm549_vm1, %v6311_v1  ;;  %v569_v2 = vld [vmem:[#allocation6 + $0x8] sm:$0x3]  ;;  %v568_v3 = vld [vmem:[#allocation6] sm:$0xff] }
  0x82   : > { %s529_s21 = scalar_select %p528_p7, %s6460_s12, 1  ;;  %553 = vst.msk [vmem:[#allocation4 + $0x10] sm:$0xff] %vm549_vm1, %v6311_v1  ;;  %555 = vst.msk [vmem:[#allocation4 + $0x20] sm:$0xff] %vm549_vm1, %v6311_v1  ;;  %5588 = vmatprep.subr.mxu1 %v6311_v1  ;;  %5596 = vmatprep.mubr.msk.f32.mxu1 %vm8308_vm0, %v6311_v1  ;;  %v732_v9 = vld [vmem:[#allocation12 + $0x18] sm:$0xff]  ;;  %vm8356_vm3 = vcmask 261120   ;;  %v731_v15 = vld [vmem:[#allocation12 + $0x10] sm:$0xff] }
  0x83   : > { %557 = vst.msk [vmem:[#allocation4 + $0x30] sm:$0xff] %vm549_vm1, %v6311_v1  ;;  %559 = vst.msk [vmem:[#allocation4 + $0x40] sm:$0xff] %vm549_vm1, %v6311_v1  ;;  %5582 = vmatpush3.msk.msra.mxu0 %vm574_vm2, %v569_v2  ;;  %s8396_s3 = sld [smem:[#allocation30_spill]]  ;;  %v570_v10 = vld [vmem:[#allocation9] sm:$0x1]  ;;  %v730_v16 = vld [vmem:[#allocation12 + $0x8] sm:$0xff] }
  0x84   : > { %561 = vst.msk [vmem:[#allocation4 + $0x50] sm:$0xff] %vm549_vm1, %v6311_v1  ;;  %563 = vst.msk [vmem:[#allocation4 + $0x60] sm:$0xff] %vm549_vm1, %v6311_v1  ;;  %5583 = vmatprep.subr.mxu0 %v6311_v1  ;;  %v729_v17 = vld [vmem:[#allocation12] sm:$0xff]  ;;  %v653_v18 = vld [vmem:[#allocation11] sm:$0x1]  ;;  %vm531_vm4 = vcmask 27648  }
  0x85   : > { %565 = vst.msk [vmem:[#allocation4 + $0x70] sm:$0xff] %vm549_vm1, %v6311_v1  ;;  %5584 = vmatpush3.msra.mxu0 %v568_v3  ;;  %v733_v23 = vld [vmem:[#allocation14] sm:$0x1]  ;;  %s6313_s26 = smov 121   ;;  %s6314_s23 = smov 125   ;;  %vm926_vm5 = vcmask 1041409  }
  0x86   : > { %s530_s22 = scalar_lea.vmem %s8395_s0, %s529_s21  ;;  %5599 = vmatprep.subr.mxu0 %v6311_v1  ;;  %534 = vst.msk [vmem:[#allocation2 + $0x8] sm:$0xf] %vm531_vm4, %v6311_v1  ;;  %532 = vst.msk [vmem:[#allocation2] sm:$0xf] %vm531_vm4, %v6311_v1  ;;  %s6315_s21 = smov 119   ;;  %vm929_vm6 = vcmask 1042434  }
  0x87   : > { %v567_v4 = vld [vmem:[%s530_s22] sm:$0x1]  ;;  %533 = vst.msk [vmem:[#allocation2 + $0x4] sm:$0xf] %vm531_vm4, %v6311_v1  ;;  %535 = vst.msk [vmem:[#allocation2 + $0xc] sm:$0xf] %vm531_vm4, %v6311_v1 }
  0x88   : > { %5586 = vmatmul.mubr.msk.f32.vlgmr.msra.gmra.mxu0 %vm549_vm1, %v567_v4  ;;  %536 = vst.msk [vmem:[#allocation2 + $0x10] sm:$0xf] %vm531_vm4, %v6311_v1  ;;  %537 = vst.msk [vmem:[#allocation2 + $0x14] sm:$0xf] %vm531_vm4, %v6311_v1  ;;  %s6316_s24 = smov 123   ;;  %s8310_s17 = smov 127  }
  0x89   : > { %v652_v5 = vld [vmem:[%s8396_s3 + $0x18] sm:$0xff]  ;;  %5607 = vmatprep.mubr.msk.f32.mxu0 %vm8308_vm0, %v6311_v1  ;;  %v651_v6 = vld [vmem:[%s8396_s3 + $0x10] sm:$0xff]  ;;  %v650_v7 = vld [vmem:[%s8396_s3 + $0x8] sm:$0xff]  ;;  %5600 = vmatpush3.msra.mxu0 %v732_v9  ;;  %538 = vst.msk [vmem:[#allocation2 + $0x18] sm:$0xf] %vm531_vm4, %v6311_v1  ;;  %s6318_s22 = smov 1  }
  0x8a   : > { %5589 = vmatpush3.msra.mxu1 %v652_v5  ;;  %v649_v8 = vld [vmem:[%s8396_s3] sm:$0xff]  ;;  %5601 = vmatprep.subr.mxu0 %v6311_v1  ;;  %539 = vst.msk [vmem:[#allocation2 + $0x1c] sm:$0xf] %vm531_vm4, %v6311_v1  ;;  %s6319_s25 = smov 115   ;;  %s6320_s2 = smov 117   ;;  %vm932_vm7 = vcmask 1043459  }
  0x8b   : > { %5590 = vmatprep.subr.mxu1 %v6311_v1  ;;  %5602 = vmatpush3.msra.mxu0 %v731_v15  ;;  %s6321_s16 = smov 111   ;;  %s6322_s14 = smov 113   ;;  %vm935_vm8 = vcmask 1044484   ;;  %vm938_vm9 = vcmask 1045509   ;;  %vm941_vm10 = vcmask 1046534   ;;  %vm8307_vm11 = vcmask 1047559  }
  0x8c   : > { %5591 = vmatpush3.msra.mxu1 %v651_v6  ;;  %5603 = vmatprep.subr.mxu0 %v6311_v1  ;;  %s6323_s15 = smov 107   ;;  %s6324_s5 = smov 109   ;;  %vm812_vm12 = vcmask 16392   ;;  %vm972_vm13 = vcmask 15360   ;;  %vm1182_vm1 = vcmask 1043456   ;;  %vm1178_vm2 = vcmask 31744  }
  0x8d   : > { %5592 = vmatprep.subr.mxu1 %v6311_v1  ;;  %5604 = vmatpush3.msra.mxu0 %v730_v16  ;;  %v903_v29 = vld [vmem:[#allocation2 + $0x8] sm:$0x1]  ;;  %v901_v31 = vld [vmem:[#allocation2] sm:$0x1]  ;;  %s6325_s29 = smov 103   ;;  %s8301_s18 = smov 105  }
  0x8e   : > { %5593 = vmatpush3.msra.mxu1 %v650_v7  ;;  %5605 = vmatprep.subr.mxu0 %v6311_v1  ;;  %v902_v28 = vld [vmem:[#allocation2 + $0x4] sm:$0x1]  ;;  %v904_v32 = vld [vmem:[#allocation2 + $0xc] sm:$0x1]  ;;  %v928_v33 = vrot.slane %v903_v29, 6  ;;  %vm540_vm4 = vcmask 46080  }
  0x8f   : > { %5594 = vmatprep.subr.mxu1 %v6311_v1  ;;  %5606 = vmatpush3.msra.mxu0 %v729_v17  ;;  %v925_v30 = vrot.slane %v902_v28, 7  ;;  %v905_v34 = vld [vmem:[#allocation2 + $0x10] sm:$0x1]  ;;  %v906_v36 = vld [vmem:[#allocation2 + $0x14] sm:$0x1]  ;;  %v931_v38 = vrot.slane %v904_v32, 5 }
  0x90   : > { %5595 = vmatpush3.msra.mxu1 %v649_v8  ;;  %5621 = vmatprep.subr.mxu0 %v6311_v1  ;;  %v934_v39 = vrot.slane %v905_v34, 4  ;;  %v907_v41 = vld [vmem:[#allocation2 + $0x18] sm:$0x1]  ;;  %v937_v42 = vrot.slane %v906_v36, 3  ;;  %v1559_v62 = vld [vmem:[#allocation2 + $0x7] sm:$0x1] }
  0x91   : > { %5610 = vmatprep.subr.mxu1 %v6311_v1  ;;  %v927_v35 = vsel %vm926_vm5, %v925_v30, %v901_v31  ;;  %v908_v44 = vld [vmem:[#allocation2 + $0x1c] sm:$0x1]  ;;  %v940_v45 = vrot.slane %v907_v41, 2  ;;  %v1575_v4 = vrot.slane %v1559_v62, 7  ;;  %541 = vst.msk [vmem:[#allocation3] sm:$0x3f] %vm540_vm4, %v6311_v1 }
  0x92   : > { %v930_v37 = vsel %vm929_vm6, %v928_v33, %v927_v35  ;;  %v943_v47 = vrot.slane %v908_v44, 1  ;;  %v1561_v33 = vld [vmem:[#allocation2 + $0xf] sm:$0x1]  ;;  %542 = vst.msk [vmem:[#allocation3 + $0x8] sm:$0x3f] %vm540_vm4, %v6311_v1  ;;  %s8428_s0 = smov 55  }
  0x93   : > { %v933_v40 = vsel %vm932_vm7, %v931_v38, %v930_v37  ;;  %543 = vst.msk [vmem:[#allocation3 + $0x10] sm:$0x3f] %vm540_vm4, %v6311_v1  ;;  %544 = vst.msk [vmem:[#allocation3 + $0x18] sm:$0x3f] %vm540_vm4, %v6311_v1  ;;  %s8429_s1 = smov 14   ;;  %s8430_s3 = smov 54  }
  0x94   : > { %v936_v43 = vsel %vm935_vm8, %v934_v39, %v933_v40  ;;  %545 = vst.msk [vmem:[#allocation3 + $0x20] sm:$0x3f] %vm540_vm4, %v6311_v1  ;;  %546 = vst.msk [vmem:[#allocation3 + $0x28] sm:$0x3f] %vm540_vm4, %v6311_v1  ;;  %s8431_s4 = smov 40   ;;  %s8432_s6 = smov 56  }
  0x95   : > { %v939_v46 = vsel %vm938_vm9, %v937_v42, %v936_v43  ;;  %547 = vst.msk [vmem:[#allocation3 + $0x30] sm:$0x3f] %vm540_vm4, %v6311_v1  ;;  %548 = vst.msk [vmem:[#allocation3 + $0x38] sm:$0x3f] %vm540_vm4, %v6311_v1  ;;  %p8488_p8 = scmp.ne.s32.totalorder %s8375_s19, 0 }
  0x96   : > { %v942_v48 = vsel %vm941_vm10, %v940_v45, %v939_v46  ;;  %v1579_v46 = vrot.slane %v1561_v33, 5 }
  0x97   : > { %v6671_v49 = vsel %vm8307_vm11, %v943_v47, %v942_v48 }
 0x148   : > { %v644_v11 = vpop.f32.mrf.mxu0 }
 0x149   : > { %v645_v12 = vadd.f32 %v644_v11, %v570_v10 }
 0x14a   : > { %v5587_v13 = vpop.f32.mrf.mxu0 }
 0x14b   : > { %v648_v14 = vmax.f32 %v645_v12, 0.0  ;;  %v1560_v13 = vld [vmem:[#allocation2 + $0xb] sm:$0x1] }
 0x14c   : > { %v1577_v34 = vrot.slane %v1560_v13, 6 }
 0x14d   : > { %5597 = vmatmul.mubr.msk.f32.vlgmr.msra.gmra.mxu1 %vm8356_vm3, %v648_v14 }
 0x14e   : > { %5618 = vmatprep.mubr.msk.f32.mxu1 %vm8308_vm0, %v6311_v1 }
 0x20d   : > { %v724_v19 = vpop.f32.mrf.mxu1 }
 0x20e   : > { %v725_v20 = vadd.f32 %v724_v19, %v653_v18 }
 0x20f   : > { %v5598_v21 = vpop.f32.mrf.mxu1 }
 0x210   : > { %v728_v22 = vmax.f32 %v725_v20, 0.0 }
 0x212   : > { %5608 = vmatmul.mubr.msk.f32.vlgmr.msra.gmra.mxu0 %vm8356_vm3, %v728_v22 }
 0x213   : > { %5629 = vmatprep.mubr.msk.f32.mxu0 %vm8308_vm0, %v6311_v1 }
 0x2d2   : > { %v803_v24 = vpop.f32.mrf.mxu0 }
 0x2d3   : > { %v804_v25 = vadd.f32 %v803_v24, %v733_v23 }
 0x2d4   : > { %v5609_v26 = vpop.f32.mrf.mxu0 }
 0x2d5   : > { %v807_v27 = vmax.f32 %v804_v25, 0.0  ;;  %v1558_v26 = vld [vmem:[#allocation2 + $0x3] sm:$0x1] }
 0x2d6   : > { %v1576_v41 = vsel %vm926_vm5, %v1575_v4, %v1558_v26 }
 0x2d7   : > { %827 = vrot.lane.b32.xlu1 %v807_v27, %s6313_s26  ;;  %818 = vrot.lane.b32.xlu0 %v807_v27, %s6314_s23 }
 0x2db   : > { %832 = vrot.lane.b32.xlu1 %v807_v27, %s6315_s21  ;;  %823 = vrot.lane.b32.xlu0 %v807_v27, %s6316_s24  ;;  %s6327_s21 = smov 99   ;;  %s6328_s24 = smov 101  }
 0x2df   : > { %814 = vrot.lane.b32.xlu1 %v807_v27, %s8310_s17  ;;  %809 = vrot.lane.b32.xlu0 %v807_v27, %s6318_s22 }
 0x2e3   : > { %841 = vrot.lane.b32.xlu1 %v807_v27, %s6319_s25  ;;  %836 = vrot.lane.b32.xlu0 %v807_v27, %s6320_s2  ;;  %s6329_s25 = smov 2   ;;  %s8305_s2 = smov 126  }
 0x2e7   : > { %850 = vrot.lane.b32.xlu1 %v807_v27, %s6321_s16  ;;  %845 = vrot.lane.b32.xlu0 %v807_v27, %s6322_s14  ;;  %s6338_s16 = smov 10  }
 0x2eb   : > { %859 = vrot.lane.b32.xlu1 %v807_v27, %s6323_s15  ;;  %854 = vrot.lane.b32.xlu0 %v807_v27, %s6324_s5  ;;  %s8303_s5 = smov 6   ;;  %s6339_s15 = smov 11  }
 0x2ef   : > { %868 = vrot.lane.b32.xlu1 %v807_v27, %s6325_s29  ;;  %863 = vrot.lane.b32.xlu0 %v807_v27, %s8301_s18  ;;  %s8345_s29 = smov 8   ;;  %s6340_s18 = smov 12  }
 0x2f3   : > { %877 = vrot.lane.b32.xlu1 %v807_v27, %s6327_s21  ;;  %872 = vrot.lane.b32.xlu0 %v807_v27, %s6328_s24  ;;  %s6335_s21 = smov 3   ;;  %s6337_s24 = smov 4  }
 0x2f7   : > { %974 = vrot.lane.b32.xlu0 %v6671_v49, %s8310_s17 }
 0x349   : > { %v828_v50 = vpop.permute.xlu1 %827  ;;  %v819_v51 = vpop.permute.xlu0 %818 }
 0x34a   : > { %831 = vst.msk [vmem:[#allocation2 + $0x9] sm:$0x1] %vm812_vm12, %v828_v50  ;;  %822 = vst.msk [vmem:[#allocation2 + $0x5] sm:$0x1] %vm812_vm12, %v819_v51 }
 0x34d   : > { %v833_v52 = vpop.permute.xlu1 %832  ;;  %v824_v53 = vpop.permute.xlu0 %823 }
 0x34e   : > { %835 = vst.msk [vmem:[#allocation2 + $0xa] sm:$0x1] %vm812_vm12, %v833_v52  ;;  %826 = vst.msk [vmem:[#allocation2 + $0x6] sm:$0x1] %vm812_vm12, %v824_v53  ;;  %v1562_v52 = vld [vmem:[#allocation2 + $0x13] sm:$0x1] }
 0x34f   : > { %v1581_v62 = vrot.slane %v1562_v52, 4 }
 0x351   : > { %v815_v54 = vpop.permute.xlu1 %814  ;;  %v810_v55 = vpop.permute.xlu0 %809  ;;  %v910_v3 = vld [vmem:[#allocation2 + $0x5] sm:$0x1]  ;;  %v911_v7 = vld [vmem:[#allocation2 + $0x9] sm:$0x1] }
 0x352   : > { %817 = vst.msk [vmem:[#allocation2 + $0x2] sm:$0x1] %vm812_vm12, %v815_v54  ;;  %813 = vst.msk [vmem:[#allocation2 + $0x1] sm:$0x1] %vm812_vm12, %v810_v55  ;;  %v955_v17 = vrot.slane %v910_v3, 7  ;;  %v957_v21 = vrot.slane %v911_v7, 6 }
 0x355   : > { %v842_v56 = vpop.permute.xlu1 %841  ;;  %v837_v57 = vpop.permute.xlu0 %836  ;;  %v982_v2 = vld [vmem:[#allocation2 + $0x6] sm:$0x1]  ;;  %v983_v6 = vld [vmem:[#allocation2 + $0xa] sm:$0x1] }
 0x356   : > { %844 = vst.msk [vmem:[#allocation2 + $0xe] sm:$0x1] %vm812_vm12, %v842_v56  ;;  %840 = vst.msk [vmem:[#allocation2 + $0xd] sm:$0x1] %vm812_vm12, %v837_v57  ;;  %v998_v15 = vrot.slane %v982_v2, 7  ;;  %v1000_v19 = vrot.slane %v983_v6, 6  ;;  %v1578_v56 = vsel %vm929_vm6, %v1577_v34, %v1576_v41 }
 0x357   : > { %v1495_v55 = vld [vmem:[#allocation2 + $0x6] sm:$0x1]  ;;  %v1580_v3 = vsel %vm932_vm7, %v1579_v46, %v1578_v56 }
 0x358   : > { %v1533_v2 = vrot.slane %v1495_v55, 7  ;;  %v1582_v13 = vsel %vm935_vm8, %v1581_v62, %v1580_v3 }
 0x359   : > { %v851_v58 = vpop.permute.xlu1 %850  ;;  %v846_v59 = vpop.permute.xlu0 %845  ;;  %v981_v5 = vld [vmem:[#allocation2 + $0x2] sm:$0x1]  ;;  %v909_v11 = vld [vmem:[#allocation2 + $0x1] sm:$0x1] }
 0x35a   : > { %853 = vst.msk [vmem:[#allocation2 + $0x12] sm:$0x1] %vm812_vm12, %v851_v58  ;;  %849 = vst.msk [vmem:[#allocation2 + $0x11] sm:$0x1] %vm812_vm12, %v846_v59  ;;  %v999_v22 = vsel %vm926_vm5, %v998_v15, %v981_v5  ;;  %v956_v24 = vsel %vm926_vm5, %v955_v17, %v909_v11  ;;  %v1563_v59 = vld [vmem:[#allocation2 + $0x17] sm:$0x1] }
 0x35b   : > { %v1001_v35 = vsel %vm929_vm6, %v1000_v19, %v999_v22  ;;  %v958_v37 = vsel %vm929_vm6, %v957_v21, %v956_v24  ;;  %v1565_v17 = vld [vmem:[#allocation2 + $0x1f] sm:$0x1]  ;;  %v1487_v19 = vld [vmem:[#allocation2 + $0x5] sm:$0x1]  ;;  %v1486_v24 = vld [vmem:[#allocation2 + $0x1] sm:$0x1] }
 0x35d   : > { %v860_v60 = vpop.permute.xlu1 %859  ;;  %v855_v61 = vpop.permute.xlu0 %854  ;;  %v984_v10 = vld [vmem:[#allocation2 + $0xe] sm:$0x1]  ;;  %v912_v12 = vld [vmem:[#allocation2 + $0xd] sm:$0x1] }
 0x35e   : > { %862 = vst.msk [vmem:[#allocation2 + $0x16] sm:$0x1] %vm812_vm12, %v860_v60  ;;  %858 = vst.msk [vmem:[#allocation2 + $0x15] sm:$0x1] %vm812_vm12, %v855_v61  ;;  %v1002_v23 = vrot.slane %v984_v10, 5  ;;  %v959_v25 = vrot.slane %v912_v12, 5 }
 0x35f   : > { %v1494_v60 = vld [vmem:[#allocation2 + $0x2] sm:$0x1]  ;;  %v1497_v61 = vld [vmem:[#allocation2 + $0xe] sm:$0x1] }
 0x360   : > { %v1003_v39 = vsel %vm932_vm7, %v1002_v23, %v1001_v35  ;;  %v960_v40 = vsel %vm932_vm7, %v959_v25, %v958_v37  ;;  %v1534_v6 = vsel %vm926_vm5, %v1533_v2, %v1494_v60  ;;  %v1537_v7 = vrot.slane %v1497_v61, 5  ;;  %v1489_v25 = vld [vmem:[#allocation2 + $0xd] sm:$0x1] }
 0x361   : > { %v869_v63 = vpop.permute.xlu1 %868  ;;  %v864_v0 = vpop.permute.xlu0 %863  ;;  %v985_v14 = vld [vmem:[#allocation2 + $0x12] sm:$0x1]  ;;  %v913_v16 = vld [vmem:[#allocation2 + $0x11] sm:$0x1]  ;;  %v1514_v37 = vrot.slane %v1489_v25, 5 }
 0x362   : > { %871 = vst.msk [vmem:[#allocation2 + $0x1a] sm:$0x1] %vm812_vm12, %v869_v63  ;;  %867 = vst.msk [vmem:[#allocation2 + $0x19] sm:$0x1] %vm812_vm12, %v864_v0  ;;  %v1004_v28 = vrot.slane %v985_v14, 4  ;;  %v961_v30 = vrot.slane %v913_v16, 4 }
 0x363   : > { %v1496_v63 = vld [vmem:[#allocation2 + $0xa] sm:$0x1]  ;;  %v1498_v0 = vld [vmem:[#allocation2 + $0x12] sm:$0x1] }
 0x364   : > { %v1005_v43 = vsel %vm935_vm8, %v1004_v28, %v1003_v39  ;;  %v962_v45 = vsel %vm935_vm8, %v961_v30, %v960_v40  ;;  %v1535_v11 = vrot.slane %v1496_v63, 6  ;;  %v1539_v12 = vrot.slane %v1498_v0, 4  ;;  %v1488_v28 = vld [vmem:[#allocation2 + $0x9] sm:$0x1] }
 0x365   : > { %v878_v8 = vpop.permute.xlu1 %877  ;;  %v873_v9 = vpop.permute.xlu0 %872  ;;  %v986_v18 = vld [vmem:[#allocation2 + $0x16] sm:$0x1]  ;;  %v914_v20 = vld [vmem:[#allocation2 + $0x15] sm:$0x1]  ;;  %v1510_v30 = vrot.slane %v1487_v19, 7  ;;  %v1512_v39 = vrot.slane %v1488_v28, 6 }
 0x366   : > { %880 = vst.msk [vmem:[#allocation2 + $0x1e] sm:$0x1] %vm812_vm12, %v878_v8  ;;  %876 = vst.msk [vmem:[#allocation2 + $0x1d] sm:$0x1] %vm812_vm12, %v873_v9  ;;  %v1006_v31 = vrot.slane %v986_v18, 3  ;;  %v963_v32 = vrot.slane %v914_v20, 3  ;;  %v1536_v15 = vsel %vm929_vm6, %v1535_v11, %v1534_v6 }
 0x367   : > { %v1499_v4 = vld [vmem:[#allocation2 + $0x16] sm:$0x1]  ;;  %v1564_v8 = vld [vmem:[#allocation2 + $0x1b] sm:$0x1]  ;;  %v1583_v9 = vrot.slane %v1563_v59, 3  ;;  %v1538_v20 = vsel %vm932_vm7, %v1537_v7, %v1536_v15  ;;  %v8397_v6 = vmov 0 }
 0x368   : > { %v1007_v47 = vsel %vm938_vm9, %v1006_v31, %v1005_v43  ;;  %v964_v50 = vsel %vm938_vm9, %v963_v32, %v962_v45  ;;  %v1541_v14 = vrot.slane %v1499_v4, 3  ;;  %v1585_v18 = vrot.slane %v1564_v8, 2  ;;  %v1491_v33 = vld [vmem:[#allocation2 + $0x15] sm:$0x1]  ;;  %v883_v8 = vld [vmem:[#allocation15 + $0x8] sm:$0xff]  ;;  %v881_v11 = vld [vmem:[#allocation15] sm:$0xff] }
 0x369   : > { %v987_v27 = vld [vmem:[#allocation2 + $0x1a] sm:$0x1]  ;;  %v915_v29 = vld [vmem:[#allocation2 + $0x19] sm:$0x1]  ;;  %v1584_v22 = vsel %vm938_vm9, %v1583_v9, %v1582_v13  ;;  %v1540_v23 = vsel %vm935_vm8, %v1539_v12, %v1538_v20  ;;  %v975_v52 = vpop.permute.xlu0 %974  ;;  %v8399_v9 = vmov 0  ;;  %vm1445_vm12 = vcmask 32776  }
 0x36a   : > { %v1008_v36 = vrot.slane %v987_v27, 2  ;;  %v965_v38 = vrot.slane %v915_v29, 2  ;;  %v1500_v5 = vld [vmem:[#allocation2 + $0x1a] sm:$0x1]  ;;  %v1542_v26 = vsel %vm938_vm9, %v1541_v14, %v1540_v23  ;;  %v1587_v27 = vrot.slane %v1565_v17, 1 }
 0x36b   : > { %v1543_v16 = vrot.slane %v1500_v5, 2  ;;  %v1490_v29 = vld [vmem:[#allocation2 + $0x11] sm:$0x1]  ;;  %v1586_v32 = vsel %vm941_vm10, %v1585_v18, %v1584_v22  ;;  %v1492_v35 = vld [vmem:[#allocation2 + $0x19] sm:$0x1]  ;;  %v6331_v14 = vmov 0  }
 0x36c   : > { %v1009_v53 = vsel %vm941_vm10, %v1008_v36, %v1007_v47  ;;  %v966_v54 = vsel %vm941_vm10, %v965_v38, %v964_v50  ;;  %v1511_v36 = vsel %vm926_vm5, %v1510_v30, %v1486_v24  ;;  %v1516_v40 = vrot.slane %v1490_v29, 4  ;;  %6032 = vset.pattern.permute.xlu0 %v6331_v14  ;;  %6033 = vset.pattern.permute.xlu1 %v6331_v14 }
 0x36d   : > { %v988_v42 = vld [vmem:[#allocation2 + $0x1e] sm:$0x1]  ;;  %v916_v44 = vld [vmem:[#allocation2 + $0x1d] sm:$0x1]  ;;  %v1544_v31 = vsel %vm941_vm10, %v1543_v16, %v1542_v26  ;;  %v6742_v41 = vsel %vm8307_vm11, %v1587_v27, %v1586_v32  ;;  %v1513_v43 = vsel %vm929_vm6, %v1512_v39, %v1511_v36 }
 0x36e   : > { %v1010_v48 = vrot.slane %v988_v42, 1  ;;  %v967_v51 = vrot.slane %v916_v44, 1  ;;  %v1501_v10 = vld [vmem:[#allocation2 + $0x1e] sm:$0x1]  ;;  %v1493_v38 = vld [vmem:[#allocation2 + $0x1d] sm:$0x1]  ;;  %v1515_v45 = vsel %vm932_vm7, %v1514_v37, %v1513_v43 }
 0x36f   : > { %v1545_v21 = vrot.slane %v1501_v10, 1  ;;  %v1518_v42 = vrot.slane %v1491_v33, 3  ;;  %v1520_v44 = vrot.slane %v1492_v35, 2  ;;  %v1522_v46 = vrot.slane %v1493_v38, 1  ;;  %v887_v35 = vld [vmem:[#allocation15 + $0x18] sm:$0xff] }
 0x370   : > { %v6706_v57 = vsel %vm8307_vm11, %v1010_v48, %v1009_v53  ;;  %v6709_v58 = vsel %vm8307_vm11, %v967_v51, %v966_v54  ;;  %v1517_v47 = vsel %vm935_vm8, %v1516_v40, %v1515_v45  ;;  %v889_v53 = vlaneseq }
 0x371   : > { %1019 = vrot.lane.b32.xlu1 %v6706_v57, %s6318_s22  ;;  %1016 = vrot.lane.b32.xlu0 %v6709_v58, %s8310_s17  ;;  %v6734_v34 = vsel %vm8307_vm11, %v1545_v21, %v1544_v31  ;;  %v1519_v48 = vsel %vm938_vm9, %v1518_v42, %v1517_v47  ;;  %v885_v31 = vld [vmem:[#allocation15 + $0x10] sm:$0xff] }
 0x372   : > { %v1521_v50 = vsel %vm941_vm10, %v1520_v44, %v1519_v48  ;;  %v6766_v54 = vshrl.u32 %v889_v53, 7  ;;  %v6775_v2 = vand.u32 127, %v889_v53 }
 0x373   : > { %v6754_v51 = vsel %vm8307_vm11, %v1522_v46, %v1521_v50 }
 0x374   : > { %v893_v60 = vmul.u32 2, %v6766_v54  ;;  %v6871_v48 = vsub.s32 0, %v6766_v54 }
 0x375   : > { %1012 = vrot.lane.b32.xlu1 %v6706_v57, %s6329_s25  ;;  %1100 = vrot.lane.b32.xlu0 %v6709_v58, %s8305_s2 }
 0x376   : > { %v897_v3 = vadd.s32 1, %v893_v60  ;;  %vm6780_vm14 = vcmp.eq.s32.totalorder %v6775_v2, %v893_v60 }
 0x377   : > { %v8398_v6 = vsel %vm6780_vm14, 4294967295, %v8397_v6  ;;  %v6798_v10 = vsel %vm6780_vm14, 1.0, %v6311_v1 }
 0x378   : > { %vm6789_vm15 = vcmp.eq.s32.totalorder %v6775_v2, %v897_v3 }
 0x379   : > { %977 = vrot.lane.b32.xlu1 %v6709_v58, %s6318_s22  ;;  %1096 = vrot.lane.b32.xlu0 %v6671_v49, %s8305_s2  ;;  %v8400_v9 = vsel %vm6789_vm15, 4294967295, %v8399_v9  ;;  %v5360_v13 = vsel %vm6789_vm15, 1.0, %v6311_v1 }
 0x37d   : > { %969 = vrot.lane.b32.xlu1 %v6709_v58, %s6329_s25  ;;  %1593 = vrot.lane.b32.xlu0 %v6734_v34, %s8310_s17 }
 0x381   : > { %1596 = vrot.lane.b32.xlu1 %v6742_v41, %s6318_s22  ;;  %1677 = vrot.lane.b32.xlu0 %v6734_v34, %s8305_s2 }
 0x385   : > { %1589 = vrot.lane.b32.xlu1 %v6742_v41, %s6329_s25  ;;  %1551 = vrot.lane.b32.xlu0 %v6754_v51, %s8310_s17 }
 0x389   : > { %1554 = vrot.lane.b32.xlu1 %v6734_v34, %s6318_s22  ;;  %1673 = vrot.lane.b32.xlu0 %v6754_v51, %s8305_s2 }
 0x38d   : > { %1547 = vrot.lane.b32.xlu1 %v6734_v34, %s6329_s25 }
 0x3e3   : > { %v1020_v55 = vpop.permute.xlu1 %1019  ;;  %v1017_v56 = vpop.permute.xlu0 %1016 }
 0x3e4   : > { %v1022_v59 = vsel %vm972_vm13, %v1017_v56, %v1020_v55 }
 0x3e5   : > { %5611 = vmatpush3.msra.mxu1 %v1022_v59 }
 0x3e6   : > { %5612 = vmatprep.subr.mxu1 %v6311_v1 }
 0x3e7   : > { %v1013_v61 = vpop.permute.xlu1 %1012  ;;  %v1101_v62 = vpop.permute.xlu0 %1100 }
 0x3e8   : > { %v1015_v63 = vsel %vm972_vm13, %v6709_v58, %v1013_v61  ;;  %v1104_v0 = vsel %vm972_vm13, %v1101_v62, %v6706_v57 }
 0x3e9   : > { %5613 = vmatpush3.msra.mxu1 %v1015_v63  ;;  %5622 = vmatpush3.msra.mxu0 %v1104_v0 }
 0x3ea   : > { %5623 = vmatprep.subr.mxu0 %v6311_v1  ;;  %5614 = vmatprep.subr.mxu1 %v6311_v1 }
 0x3eb   : > { %v978_v4 = vpop.permute.xlu1 %977  ;;  %5624 = vmatpush3.msra.mxu0 %v1022_v59  ;;  %v1097_v5 = vpop.permute.xlu0 %1096 }
 0x3ec   : > { %v980_v7 = vsel %vm972_vm13, %v975_v52, %v978_v4  ;;  %v1099_v57 = vsel %vm972_vm13, %v1097_v5, %v6709_v58  ;;  %5625 = vmatprep.subr.mxu0 %v6311_v1 }
 0x3ed   : > { %5615 = vmatpush3.msra.mxu1 %v980_v7  ;;  %5626 = vmatpush3.msra.mxu0 %v1099_v57 }
 0x3ee   : > { %5627 = vmatprep.subr.mxu0 %v6311_v1  ;;  %5616 = vmatprep.subr.mxu1 %v6311_v1 }
 0x3ef   : > { %v970_v58 = vpop.permute.xlu1 %969  ;;  %5628 = vmatpush3.msra.mxu0 %v980_v7  ;;  %v1594_v15 = vpop.permute.xlu0 %1593 }
 0x3f0   : > { %v973_v12 = vsel %vm972_vm13, %v6671_v49, %v970_v58  ;;  %5630 = vmatmul.mubr.msk.f32.vlgmr.msra.gmra.mxu0 %vm8356_vm3, %v883_v8  ;;  %5637 = vmatprep.subr.mxu0 %v6311_v1  ;;  %v888_v49 = vld [vmem:[%s8288_s8] sm:$0xff] }
 0x3f1   : > { %5617 = vmatpush3.msra.mxu1 %v973_v12  ;;  %5638 = vmatpush3.msk.msra.mxu0 %vm1182_vm1, %v6798_v10 }
 0x3f2   : > { %5619 = vmatmul.mubr.msk.f32.vlgmr.msra.gmra.mxu1 %vm8356_vm3, %v881_v11  ;;  %5632 = vmatprep.subr.mxu1 %v6311_v1 }
 0x3f3   : > { %5633 = vmatpush3.msk.msra.mxu1 %vm1182_vm1, %v5360_v13  ;;  %5634 = vmatprep.mubr.msk.f32.mxu1 %vm8308_vm0, %v6311_v1  ;;  %v1597_v16 = vpop.permute.xlu1 %1596  ;;  %v1678_v17 = vpop.permute.xlu0 %1677 }
 0x3f4   : > { %5642 = vmatprep.subr.mxu1 %v6311_v1  ;;  %5639 = vmatprep.mubr.msk.f32.mxu0 %vm8308_vm0, %v6311_v1  ;;  %v1599_v22 = vsel %vm972_vm13, %v1594_v15, %v1597_v16  ;;  %v1681_v25 = vsel %vm972_vm13, %v1678_v17, %v6742_v41 }
 0x3f5   : > { %5653 = vmatprep.subr.mxu0 %v6311_v1  ;;  %1334 = vperm.xlu0 %6032, %v888_v49  }
 0x3f7   : > { %v1590_v18 = vpop.permute.xlu1 %1589  ;;  %v1552_v19 = vpop.permute.xlu0 %1551 }
 0x3f8   : > { %v1592_v26 = vsel %vm972_vm13, %v6734_v34, %v1590_v18 }
 0x3fb   : > { %v1555_v20 = vpop.permute.xlu1 %1554  ;;  %v1674_v27 = vpop.permute.xlu0 %1673 }
 0x3fc   : > { %v1557_v30 = vsel %vm972_vm13, %v1552_v19, %v1555_v20  ;;  %v1676_v32 = vsel %vm972_vm13, %v1674_v27, %v6734_v34  ;;  %v6332_v34 = vmov 1966171168  }
 0x3fd   : > { %v1342_v36 = vunpack.c.l.s4 %v6332_v34 }
 0x3ff   : > { %v1548_v28 = vpop.permute.xlu1 %1547  ;;  %v1343_v38 = vunpack.c.0.s8 %v1342_v36 }
 0x400   : > { %v1550_v33 = vsel %vm972_vm13, %v6754_v51, %v1548_v28  ;;  %vm2197_vm13 = vcmask 64512  }
 0x401   : > { %v6867_v44 = vsub.s32 %v1343_v38, %v6766_v54 }
 0x470   : > { %v6864_v39 = vpop.permute.xlu0 %1334 }
 0x4b0   : > { %v1174_v21 = vpop.f32.mrf.mxu0 }
 0x4b1   : > { %5635 = vmatmul.mubr.msk.f32.vlgmr.msra.gmra.mxu1 %vm1178_vm2, %v1174_v21 }
 0x4b2   : > { %5643 = vmatpush3.msra.mxu1 %v1599_v22  ;;  %v1092_v23 = vpop.f32.mrf.mxu1  ;;  %v5631_v24 = vpop.f32.mrf.mxu0  ;;  %5650 = vmatprep.mubr.msk.f32.mxu1 %vm8308_vm0, %v6311_v1 }
 0x4b3   : > { %5644 = vmatprep.subr.mxu1 %v6311_v1  ;;  %5640 = vmatmul.mubr.msk.f32.vlgmr.msra.gmra.mxu0 %vm1178_vm2, %v1092_v23 }
 0x4b4   : > { %5645 = vmatpush3.msra.mxu1 %v1592_v26  ;;  %5654 = vmatpush3.msra.mxu0 %v1681_v25  ;;  %v5620_v29 = vpop.f32.mrf.mxu1 }
 0x4b5   : > { %5646 = vmatprep.subr.mxu1 %v6311_v1  ;;  %5655 = vmatprep.subr.mxu0 %v6311_v1 }
 0x4b6   : > { %5647 = vmatpush3.msra.mxu1 %v1557_v30  ;;  %5656 = vmatpush3.msra.mxu0 %v1599_v22 }
 0x4b7   : > { %5648 = vmatprep.subr.mxu1 %v6311_v1  ;;  %5657 = vmatprep.subr.mxu0 %v6311_v1 }
 0x4b8   : > { %5649 = vmatpush3.msra.mxu1 %v1550_v33  ;;  %5658 = vmatpush3.msra.mxu0 %v1676_v32 }
 0x4b9   : > { %5651 = vmatmul.mubr.msk.f32.vlgmr.msra.gmra.mxu1 %vm8356_vm3, %v885_v31  ;;  %5659 = vmatprep.subr.mxu0 %v6311_v1 }
 0x4ba   : > { %5660 = vmatpush3.msra.mxu0 %v1557_v30  ;;  %5661 = vmatprep.mubr.msk.f32.mxu0 %vm8308_vm0, %v6311_v1 }
 0x4bb   : > { %5662 = vmatmul.mubr.msk.f32.vlgmr.msra.gmra.mxu0 %vm8356_vm3, %v887_v35  ;;  %5664 = vmatprep.subr.mxu1 %v6311_v1 }
 0x4bc   : > { %5669 = vmatprep.subr.mxu0 %v6311_v1  ;;  %5665 = vmatpush3.msk.msra.mxu1 %vm1182_vm1, %v5360_v13 }
 0x4bd   : > { %5670 = vmatpush3.msk.msra.mxu0 %vm1182_vm1, %v6798_v10  ;;  %5671 = vmatprep.mubr.msk.f32.mxu0 %vm8308_vm0, %v6311_v1  ;;  %vm2199_vm1 = vcmask 97280  }
 0x4be   : > { %5666 = vmatprep.mubr.msk.f32.mxu1 %vm8308_vm0, %v6311_v1  ;;  %5674 = vmatprep.subr.mxu1 %v6311_v1 }
 0x4bf   : > { %5685 = vmatprep.subr.mxu0 %v6311_v1 }
 0x571   : > { %v1252_v37 = vpop.f32.mrf.mxu1 }
 0x573   : > { %v5636_v40 = vpop.f32.mrf.mxu1  ;;  %v1328_v41 = vpop.f32.mrf.mxu0 }
 0x574   : > { %v1329_v42 = vadd.f32 %v1328_v41, %v1252_v37 }
 0x575   : > { %v5641_v43 = vpop.f32.mrf.mxu0 }
 0x576   : > { %v1337_v45 = vadd.f32 %v6864_v39, %v1329_v42 }
 0x578   : > { %v1338_v46 = vmax.f32 %v1337_v45, 0.0 }
 0x579   : > { %v1669_v47 = vpop.f32.mrf.mxu1 }
 0x57a   : > { %v1340_v50 = vcombine.high %v1338_v46, %v1338_v46  ;;  %v1347_v51 = vrot.slane %v1338_v46, %v6867_v44  ;;  %5672 = vmatmul.mubr.msk.f32.vlgmr.msra.gmra.mxu0 %vm1178_vm2, %v1669_v47 }
 0x57b   : > { %v5652_v52 = vpop.f32.mrf.mxu1  ;;  %v1751_v53 = vpop.f32.mrf.mxu0  ;;  %5693 = vmatprep.mubr.msk.f32.mxu0 %vm8308_vm0, %v6311_v1 }
 0x57c   : > { %5667 = vmatmul.mubr.msk.f32.vlgmr.msra.gmra.mxu1 %vm1178_vm2, %v1751_v53  ;;  %v1363_v55 = vrot.slane %v1347_v51, %v6867_v44  ;;  %v1355_v56 = vcombine.high %v1347_v51, %v1347_v51  ;;  %v1354_v60 = vrot.slane %v1340_v50, %v6867_v44 }
 0x57d   : > { %v5663_v59 = vpop.f32.mrf.mxu0  ;;  %5682 = vmatprep.mubr.msk.f32.mxu1 %vm8308_vm0, %v6311_v1 }
 0x57e   : > { %v1392_v61 = vrot.slane %v1363_v55, %v6871_v48  ;;  %v1385_v62 = vcombine.high %v1363_v55, %v1363_v55  ;;  %v1377_v63 = vrot.slane %v1355_v56, %v6867_v44  ;;  %v1356_v5 = vcombine.high %v1354_v60, %v1354_v60 }
 0x57f   : > { %v1370_v10 = vrot.slane %v1354_v60, %v6867_v44 }
 0x580   : > { %1454 = vrot.lane.b32.xlu0 %v1392_v61, %s6314_s23  ;;  %1421 = vrot.lane.b32.xlu1 %v1392_v61, %s6318_s22  ;;  %v1400_v0 = vrot.slane %v1385_v62, %v6871_v48  ;;  %v1396_v3 = vrot.slane %v1377_v63, %v6871_v48  ;;  %v1387_v4 = vcombine.high %v1377_v63, %v1377_v63 }
 0x581   : > { %v1384_v57 = vrot.slane %v1356_v5, %v6867_v44  ;;  %v1408_v58 = vrot.slane %v1370_v10, %v6871_v48  ;;  %v1386_v11 = vcombine.high %v1370_v10, %v1370_v10 }
 0x582   : > { %v1404_v7 = vrot.slane %v1387_v4, %v6871_v48 }
 0x583   : > { %v1412_v8 = vrot.slane %v1384_v57, %v6871_v48  ;;  %v1416_v12 = vrot.slane %v1386_v11, %v6871_v48  ;;  %v1388_v13 = vcombine.high %v1384_v57, %v1384_v57 }
 0x584   : > { %1425 = vrot.lane.b32.xlu0 %v1400_v0, %s6318_s22  ;;  %1423 = vrot.lane.b32.xlu1 %v1396_v3, %s6318_s22 }
 0x585   : > { %v1420_v49 = vrot.slane %v1388_v13, %v6871_v48  ;;  %v2066_v13 = vld [vmem:[#allocation3] sm:$0x1] }
 0x588   : > { %1456 = vrot.lane.b32.xlu1 %v1396_v3, %s6314_s23  ;;  %1427 = vrot.lane.b32.xlu0 %v1404_v7, %s6318_s22  ;;  %v2067_v3 = vld [vmem:[#allocation3 + $0x8] sm:$0x1] }
 0x589   : > { %v2106_v11 = vrot.slane %v2067_v3, 7 }
 0x58c   : > { %1458 = vrot.lane.b32.xlu1 %v1400_v0, %s6314_s23  ;;  %1431 = vrot.lane.b32.xlu0 %v1412_v8, %s6318_s22 }
 0x590   : > { %1429 = vrot.lane.b32.xlu1 %v1408_v58, %s6318_s22  ;;  %1464 = vrot.lane.b32.xlu0 %v1412_v8, %s6314_s23 }
 0x594   : > { %1462 = vrot.lane.b32.xlu1 %v1408_v58, %s6314_s23  ;;  %1466 = vrot.lane.b32.xlu0 %v1416_v12, %s6314_s23  ;;  %v2068_v58 = vld [vmem:[#allocation3 + $0x10] sm:$0x1] }
 0x598   : > { %1460 = vrot.lane.b32.xlu1 %v1404_v7, %s6314_s23 }
 0x59c   : > { %1433 = vrot.lane.b32.xlu1 %v1416_v12, %s6318_s22 }
 0x5a0   : > { %1435 = vrot.lane.b32.xlu1 %v1420_v49, %s6318_s22 }
 0x5a4   : > { %1468 = vrot.lane.b32.xlu1 %v1420_v49, %s6314_s23 }
 0x5f2   : > { %v1455_v14 = vpop.permute.xlu0 %1454  ;;  %v1422_v15 = vpop.permute.xlu1 %1421 }
 0x5f3   : > { %1478 = vst.msk [vmem:[#allocation3 + $0x3] sm:$0x1] %vm1445_vm12, %v1455_v14  ;;  %1446 = vst.msk [vmem:[#allocation3 + $0x1] sm:$0x1] %vm1445_vm12, %v1422_v15  ;;  %v2069_v14 = vld [vmem:[#allocation3 + $0x18] sm:$0x1] }
 0x5f6   : > { %v1426_v16 = vpop.permute.xlu0 %1425  ;;  %v1424_v17 = vpop.permute.xlu1 %1423 }
 0x5f7   : > { %1448 = vst.msk [vmem:[#allocation3 + $0x11] sm:$0x1] %vm1445_vm12, %v1426_v16  ;;  %1447 = vst.msk [vmem:[#allocation3 + $0x9] sm:$0x1] %vm1445_vm12, %v1424_v17 }
 0x5fa   : > { %v1457_v18 = vpop.permute.xlu1 %1456  ;;  %v1428_v19 = vpop.permute.xlu0 %1427  ;;  %v2090_v57 = vld [vmem:[#allocation3 + $0x3] sm:$0x1] }
 0x5fb   : > { %1479 = vst.msk [vmem:[#allocation3 + $0xb] sm:$0x1] %vm1445_vm12, %v1457_v18  ;;  %1449 = vst.msk [vmem:[#allocation3 + $0x19] sm:$0x1] %vm1445_vm12, %v1428_v19 }
 0x5fe   : > { %v1459_v20 = vpop.permute.xlu1 %1458  ;;  %v1432_v21 = vpop.permute.xlu0 %1431  ;;  %v2075_v19 = vld [vmem:[#allocation3 + $0x9] sm:$0x1] }
 0x5ff   : > { %1480 = vst.msk [vmem:[#allocation3 + $0x13] sm:$0x1] %vm1445_vm12, %v1459_v20  ;;  %1451 = vst.msk [vmem:[#allocation3 + $0x29] sm:$0x1] %vm1445_vm12, %v1432_v21  ;;  %v2108_v20 = vrot.slane %v2068_v58, 6  ;;  %v2107_v21 = vsel %vm926_vm5, %v2106_v11, %v2066_v13 }
 0x602   : > { %v1430_v22 = vpop.permute.xlu1 %1429  ;;  %v1465_v23 = vpop.permute.xlu0 %1464  ;;  %v2091_v53 = vld [vmem:[#allocation3 + $0xb] sm:$0x1] }
 0x603   : > { %1450 = vst.msk [vmem:[#allocation3 + $0x21] sm:$0x1] %vm1445_vm12, %v1430_v22  ;;  %1483 = vst.msk [vmem:[#allocation3 + $0x2b] sm:$0x1] %vm1445_vm12, %v1465_v23  ;;  %v2179_v63 = vrot.slane %v2091_v53, 7 }
 0x605   : > { %v2180_v10 = vsel %vm926_vm5, %v2179_v63, %v2090_v57 }
 0x606   : > { %v1463_v24 = vpop.permute.xlu1 %1462  ;;  %v1467_v25 = vpop.permute.xlu0 %1466  ;;  %v2092_v55 = vld [vmem:[#allocation3 + $0x13] sm:$0x1] }
 0x607   : > { %1482 = vst.msk [vmem:[#allocation3 + $0x23] sm:$0x1] %vm1445_vm12, %v1463_v24  ;;  %1484 = vst.msk [vmem:[#allocation3 + $0x33] sm:$0x1] %vm1445_vm12, %v1467_v25  ;;  %v2181_v0 = vrot.slane %v2092_v55, 6  ;;  %v2110_v25 = vrot.slane %v2069_v14, 5 }
 0x608   : > { %v2070_v24 = vld [vmem:[#allocation3 + $0x20] sm:$0x1] }
 0x609   : > { %v2182_v12 = vsel %vm929_vm6, %v2181_v0, %v2180_v10 }
 0x60a   : > { %v1461_v26 = vpop.permute.xlu1 %1460  ;;  %v2095_v17 = vld [vmem:[#allocation3 + $0x2b] sm:$0x1] }
 0x60b   : > { %1481 = vst.msk [vmem:[#allocation3 + $0x1b] sm:$0x1] %vm1445_vm12, %v1461_v26 }
 0x60e   : > { %v1434_v27 = vpop.permute.xlu1 %1433  ;;  %v2094_v8 = vld [vmem:[#allocation3 + $0x23] sm:$0x1]  ;;  %v2096_v26 = vld [vmem:[#allocation3 + $0x33] sm:$0x1] }
 0x60f   : > { %1452 = vst.msk [vmem:[#allocation3 + $0x31] sm:$0x1] %vm1445_vm12, %v1434_v27  ;;  %v2185_v18 = vrot.slane %v2094_v8, 4  ;;  %v2187_v27 = vrot.slane %v2095_v17, 3 }
 0x612   : > { %v1436_v28 = vpop.permute.xlu1 %1435  ;;  %v2093_v62 = vld [vmem:[#allocation3 + $0x1b] sm:$0x1] }
 0x613   : > { %1453 = vst.msk [vmem:[#allocation3 + $0x39] sm:$0x1] %vm1445_vm12, %v1436_v28  ;;  %v2183_v4 = vrot.slane %v2093_v62, 5  ;;  %v2076_v28 = vld [vmem:[#allocation3 + $0x11] sm:$0x1] }
 0x614   : > { %v2073_v62 = vld [vmem:[#allocation3 + $0x38] sm:$0x1] }
 0x615   : > { %v2184_v49 = vsel %vm932_vm7, %v2183_v4, %v2182_v12  ;;  %v2118_v57 = vrot.slane %v2073_v62, 1 }
 0x616   : > { %v1469_v29 = vpop.permute.xlu1 %1468  ;;  %v2186_v23 = vsel %vm935_vm8, %v2185_v18, %v2184_v49 }
 0x617   : > { %1485 = vst.msk [vmem:[#allocation3 + $0x3b] sm:$0x1] %vm1445_vm12, %v1469_v29  ;;  %v2129_v29 = vrot.slane %v2075_v19, 7 }
 0x61a   : > { %v2081_v53 = vld [vmem:[#allocation3 + $0x39] sm:$0x1] }
 0x61b   : > { %v2141_v3 = vrot.slane %v2081_v53, 1 }
 0x61e   : > { %v2097_v22 = vld [vmem:[#allocation3 + $0x3b] sm:$0x1] }
 0x63a   : > { %v1897_v30 = vpop.f32.mrf.mxu0 }
 0x63c   : > { %v1824_v31 = vpop.f32.mrf.mxu1  ;;  %v5673_v32 = vpop.f32.mrf.mxu0 }
 0x63d   : > { %v1898_v33 = vadd.f32 %v1897_v30, %v1824_v31  ;;  %v2077_v30 = vld [vmem:[#allocation3 + $0x19] sm:$0x1]  ;;  %v2109_v31 = vsel %vm929_vm6, %v2108_v20, %v2107_v21  ;;  %v2188_v32 = vsel %vm938_vm9, %v2187_v27, %v2186_v23 }
 0x63e   : > { %v5668_v35 = vpop.f32.mrf.mxu1 }
 0x63f   : > { %v1901_v34 = vadd.f32 %v1898_v33, %v6864_v39  ;;  %v2191_v33 = vrot.slane %v2097_v22, 1  ;;  %v2078_v35 = vld [vmem:[#allocation3 + $0x21] sm:$0x1] }
 0x641   : > { %v1902_v36 = vmax.f32 %v1901_v34, 0.0  ;;  %v2071_v34 = vld [vmem:[#allocation3 + $0x28] sm:$0x1] }
 0x643   : > { %v1911_v37 = vrot.slane %v1902_v36, %v6867_v44  ;;  %v1904_v41 = vcombine.high %v1902_v36, %v1902_v36  ;;  %v2189_v36 = vrot.slane %v2096_v26, 2 }
 0x645   : > { %v1919_v38 = vcombine.high %v1911_v37, %v1911_v37  ;;  %v1927_v40 = vrot.slane %v1911_v37, %v6867_v44  ;;  %v1918_v46 = vrot.slane %v1904_v41, %v6867_v44  ;;  %v2074_v37 = vld [vmem:[#allocation3 + $0x1] sm:$0x1] }
 0x646   : > { %v2130_v41 = vsel %vm926_vm5, %v2129_v29, %v2074_v37 }
 0x647   : > { %v1956_v42 = vrot.slane %v1927_v40, %v6871_v48  ;;  %v1949_v43 = vcombine.high %v1927_v40, %v1927_v40  ;;  %v1941_v45 = vrot.slane %v1919_v38, %v6867_v44  ;;  %v1934_v51 = vrot.slane %v1918_v46, %v6867_v44 }
 0x648   : > { %v1920_v52 = vcombine.high %v1918_v46, %v1918_v46  ;;  %v2131_v38 = vrot.slane %v2076_v28, 6  ;;  %v2112_v40 = vrot.slane %v2070_v24, 4  ;;  %v2135_v46 = vrot.slane %v2078_v35, 4 }
 0x649   : > { %2017 = vrot.lane.b32.xlu1 %v1956_v42, %s6314_s23  ;;  %1985 = vrot.lane.b32.xlu0 %v1956_v42, %s6318_s22  ;;  %v1964_v39 = vrot.slane %v1949_v43, %v6871_v48  ;;  %v1960_v47 = vrot.slane %v1941_v45, %v6871_v48  ;;  %v1951_v50 = vcombine.high %v1941_v45, %v1941_v45  ;;  %v2133_v42 = vrot.slane %v2077_v30, 5 }
 0x64a   : > { %v1972_v59 = vrot.slane %v1934_v51, %v6871_v48  ;;  %v1950_v60 = vcombine.high %v1934_v51, %v1934_v51  ;;  %v1948_v61 = vrot.slane %v1920_v52, %v6867_v44  ;;  %v2111_v43 = vsel %vm932_vm7, %v2110_v25, %v2109_v31  ;;  %v2079_v52 = vld [vmem:[#allocation3 + $0x29] sm:$0x1] }
 0x64b   : > { %v1968_v56 = vrot.slane %v1951_v50, %v6871_v48  ;;  %v2190_v45 = vsel %vm941_vm10, %v2189_v36, %v2188_v32  ;;  %v2072_v50 = vld [vmem:[#allocation3 + $0x30] sm:$0x1]  ;;  %v2114_v51 = vrot.slane %v2071_v34, 3  ;;  %v2132_v55 = vsel %vm929_vm6, %v2131_v38, %v2130_v41 }
 0x64c   : > { %v6946_v5 = vrot.slane %v1950_v60, %v6871_v48  ;;  %v1952_v7 = vcombine.high %v1948_v61, %v1948_v61  ;;  %v1976_v15 = vrot.slane %v1948_v61, %v6871_v48  ;;  %v2116_v63 = vrot.slane %v2072_v50, 2 }
 0x64d   : > { %1989 = vrot.lane.b32.xlu0 %v1964_v39, %s6318_s22  ;;  %1987 = vrot.lane.b32.xlu1 %v1960_v47, %s6318_s22  ;;  %v2137_v0 = vrot.slane %v2079_v52, 3 }
 0x64e   : > { %v1984_v16 = vrot.slane %v1952_v7, %v6871_v48 }
 0x651   : > { %2019 = vrot.lane.b32.xlu0 %v1960_v47, %s6314_s23  ;;  %2021 = vrot.lane.b32.xlu1 %v1964_v39, %s6314_s23  ;;  %v6968_v39 = vsel %vm8307_vm11, %v2191_v33, %v2190_v45  ;;  %v2080_v47 = vld [vmem:[#allocation3 + $0x31] sm:$0x1] }
 0x652   : > { %v2139_v61 = vrot.slane %v2080_v47, 2 }
 0x655   : > { %1991 = vrot.lane.b32.xlu1 %v1968_v56, %s6318_s22  ;;  %1993 = vrot.lane.b32.xlu0 %v1972_v59, %s6318_s22 }
 0x659   : > { %2025 = vrot.lane.b32.xlu0 %v1972_v59, %s6314_s23  ;;  %1997 = vrot.lane.b32.xlu1 %v6946_v5, %s6318_s22  ;;  %v2134_v59 = vsel %vm932_vm7, %v2133_v42, %v2132_v55 }
 0x65a   : > { %v2136_v60 = vsel %vm935_vm8, %v2135_v46, %v2134_v59 }
 0x65b   : > { %v2138_v7 = vsel %vm938_vm9, %v2137_v0, %v2136_v60 }
 0x65c   : > { %v2140_v8 = vsel %vm941_vm10, %v2139_v61, %v2138_v7  ;;  %v2964_v7 = vld [vmem:[#allocation3 + $0xd] sm:$0x1] }
 0x65d   : > { %1995 = vrot.lane.b32.xlu0 %v1976_v15, %s6318_s22  ;;  %1999 = vrot.lane.b32.xlu1 %v1984_v16, %s6318_s22  ;;  %v6986_v58 = vsel %vm8307_vm11, %v2141_v3, %v2140_v8 }
 0x661   : > { %2023 = vrot.lane.b32.xlu0 %v1968_v56, %s6314_s23  ;;  %2031 = vrot.lane.b32.xlu1 %v1984_v16, %s6314_s23  ;;  %v2113_v56 = vsel %vm935_vm8, %v2112_v40, %v2111_v43 }
 0x662   : > { %v2115_v4 = vsel %vm938_vm9, %v2114_v51, %v2113_v56 }
 0x663   : > { %v2117_v10 = vsel %vm941_vm10, %v2116_v63, %v2115_v4  ;;  %v2832_v4 = vld [vmem:[#allocation3 + $0xb] sm:$0x1] }
 0x665   : > { %2027 = vrot.lane.b32.xlu0 %v1976_v15, %s6314_s23  ;;  %2368 = vrot.lane.b32.xlu1 %v6968_v39, %s8303_s5 }
 0x669   : > { %2029 = vrot.lane.b32.xlu0 %v6946_v5, %s6314_s23  ;;  %2228 = vrot.lane.b32.xlu1 %v6968_v39, %s8345_s29  ;;  %v6993_v5 = vsel %vm8307_vm11, %v2118_v57, %v2117_v10  ;;  %s8347_s23 = smov 7   ;;  %v2833_v10 = vld [vmem:[#allocation3 + $0x13] sm:$0x1] }
 0x66d   : > { %2259 = vrot.lane.b32.xlu0 %v6986_v58, %s8310_s17  ;;  %2204 = vrot.lane.b32.xlu1 %v6986_v58, %s6335_s21 }
 0x671   : > { %2362 = vrot.lane.b32.xlu0 %v6986_v58, %s8305_s2  ;;  %2347 = vrot.lane.b32.xlu1 %v6993_v5, %s8305_s2 }
 0x675   : > { %2265 = vrot.lane.b32.xlu0 %v6968_v39, %s8347_s23  ;;  %2143 = vrot.lane.b32.xlu1 %v6986_v58, %s6337_s24 }
 0x679   : > { %2201 = vrot.lane.b32.xlu0 %v6993_v5, %s8310_s17  ;;  %2356 = vrot.lane.b32.xlu1 %v6968_v39, %s6338_s16 }
 0x67d   : > { %2350 = vrot.lane.b32.xlu0 %v6986_v58, %s6329_s25 }
 0x681   : > { %2210 = vrot.lane.b32.xlu0 %v6968_v39, %s6339_s15 }
 0x6bb   : > { %v2018_v11 = vpop.permute.xlu1 %2017  ;;  %v1986_v12 = vpop.permute.xlu0 %1985 }
 0x6bc   : > { %2041 = vst.msk [vmem:[#allocation3 + $0x4] sm:$0x1] %vm1445_vm12, %v2018_v11  ;;  %2009 = vst.msk [vmem:[#allocation3 + $0x2] sm:$0x1] %vm1445_vm12, %v1986_v12 }
 0x6bf   : > { %v1990_v13 = vpop.permute.xlu0 %1989  ;;  %v1988_v49 = vpop.permute.xlu1 %1987 }
 0x6c0   : > { %2011 = vst.msk [vmem:[#allocation3 + $0x12] sm:$0x1] %vm1445_vm12, %v1990_v13  ;;  %2010 = vst.msk [vmem:[#allocation3 + $0xa] sm:$0x1] %vm1445_vm12, %v1988_v49  ;;  %v2834_v13 = vld [vmem:[#allocation3 + $0x1b] sm:$0x1] }
 0x6c3   : > { %v2020_v14 = vpop.permute.xlu0 %2019  ;;  %v2022_v15 = vpop.permute.xlu1 %2021  ;;  %v2082_v26 = vld [vmem:[#allocation3 + $0x2] sm:$0x1]  ;;  %v2216_v59 = vld [vmem:[#allocation3 + $0x4] sm:$0x1] }
 0x6c4   : > { %2042 = vst.msk [vmem:[#allocation3 + $0xc] sm:$0x1] %vm1445_vm12, %v2020_v14  ;;  %2043 = vst.msk [vmem:[#allocation3 + $0x14] sm:$0x1] %vm1445_vm12, %v2022_v15  ;;  %v2903_v14 = vrot.slane %v2832_v4, 7 }
 0x6c5   : > { %v2965_v15 = vld [vmem:[#allocation3 + $0x15] sm:$0x1]  ;;  %v2818_v4 = vld [vmem:[#allocation3 + $0x19] sm:$0x1] }
 0x6c7   : > { %v1992_v16 = vpop.permute.xlu1 %1991  ;;  %v1994_v17 = vpop.permute.xlu0 %1993  ;;  %v2083_v20 = vld [vmem:[#allocation3 + $0xa] sm:$0x1]  ;;  %v2084_v21 = vld [vmem:[#allocation3 + $0x12] sm:$0x1] }
 0x6c8   : > { %2012 = vst.msk [vmem:[#allocation3 + $0x1a] sm:$0x1] %vm1445_vm12, %v1992_v16  ;;  %2013 = vst.msk [vmem:[#allocation3 + $0x22] sm:$0x1] %vm1445_vm12, %v1994_v17  ;;  %v2154_v22 = vrot.slane %v2083_v20, 7  ;;  %v2156_v27 = vrot.slane %v2084_v21, 6 }
 0x6c9   : > { %v2986_v16 = vrot.slane %v2964_v7, 7  ;;  %v2963_v20 = vld [vmem:[#allocation3 + $0x5] sm:$0x1] }
 0x6ca   : > { %v2155_v29 = vsel %vm926_vm5, %v2154_v22, %v2082_v26  ;;  %v2966_v26 = vld [vmem:[#allocation3 + $0x1d] sm:$0x1] }
 0x6cb   : > { %v2026_v18 = vpop.permute.xlu0 %2025  ;;  %v1998_v19 = vpop.permute.xlu1 %1997  ;;  %v2157_v33 = vsel %vm929_vm6, %v2156_v27, %v2155_v29  ;;  %v2217_v37 = vld [vmem:[#allocation3 + $0xc] sm:$0x1]  ;;  %v2218_v46 = vld [vmem:[#allocation3 + $0x14] sm:$0x1]  ;;  %v2988_v27 = vrot.slane %v2965_v15, 6 }
 0x6cc   : > { %2045 = vst.msk [vmem:[#allocation3 + $0x24] sm:$0x1] %vm1445_vm12, %v2026_v18  ;;  %2015 = vst.msk [vmem:[#allocation3 + $0x32] sm:$0x1] %vm1445_vm12, %v1998_v19  ;;  %v2239_v47 = vrot.slane %v2217_v37, 7  ;;  %v2241_v60 = vrot.slane %v2218_v46, 6 }
 0x6cd   : > { %v2905_v19 = vrot.slane %v2833_v10, 6  ;;  %v2835_v29 = vld [vmem:[#allocation3 + $0x23] sm:$0x1] }
 0x6ce   : > { %v2240_v61 = vsel %vm926_vm5, %v2239_v47, %v2216_v59  ;;  %v2909_v37 = vrot.slane %v2835_v29, 4  ;;  %v2839_v29 = vld [vmem:[#allocation3 + $0x4] sm:$0x1] }
 0x6cf   : > { %v1996_v23 = vpop.permute.xlu0 %1995  ;;  %v2000_v24 = vpop.permute.xlu1 %1999  ;;  %v2085_v25 = vld [vmem:[#allocation3 + $0x1a] sm:$0x1]  ;;  %v2086_v28 = vld [vmem:[#allocation3 + $0x22] sm:$0x1]  ;;  %v2242_v3 = vsel %vm929_vm6, %v2241_v60, %v2240_v61  ;;  %v2817_v61 = vld [vmem:[#allocation3 + $0x11] sm:$0x1] }
 0x6d0   : > { %2014 = vst.msk [vmem:[#allocation3 + $0x2a] sm:$0x1] %vm1445_vm12, %v1996_v23  ;;  %2016 = vst.msk [vmem:[#allocation3 + $0x3a] sm:$0x1] %vm1445_vm12, %v2000_v24  ;;  %v2158_v30 = vrot.slane %v2085_v25, 5  ;;  %v2160_v35 = vrot.slane %v2086_v28, 4 }
 0x6d1   : > { %v2907_v23 = vrot.slane %v2834_v13, 5  ;;  %v2831_v25 = vld [vmem:[#allocation3 + $0x3] sm:$0x1]  ;;  %v2857_v10 = vrot.slane %v2817_v61, 6 }
 0x6d2   : > { %v2159_v36 = vsel %vm932_vm7, %v2158_v30, %v2157_v33  ;;  %v2904_v30 = vsel %vm926_vm5, %v2903_v14, %v2831_v25  ;;  %v2825_v25 = vld [vmem:[#allocation3 + $0x12] sm:$0x1] }
 0x6d3   : > { %v2024_v31 = vpop.permute.xlu0 %2023  ;;  %v2032_v32 = vpop.permute.xlu1 %2031  ;;  %v2088_v34 = vld [vmem:[#allocation3 + $0x32] sm:$0x1]  ;;  %v2161_v43 = vsel %vm935_vm8, %v2160_v35, %v2159_v36  ;;  %v2220_v63 = vld [vmem:[#allocation3 + $0x24] sm:$0x1]  ;;  %v2967_v35 = vld [vmem:[#allocation3 + $0x25] sm:$0x1] }
 0x6d4   : > { %2044 = vst.msk [vmem:[#allocation3 + $0x1c] sm:$0x1] %vm1445_vm12, %v2024_v31  ;;  %2048 = vst.msk [vmem:[#allocation3 + $0x3c] sm:$0x1] %vm1445_vm12, %v2032_v32  ;;  %v2164_v45 = vrot.slane %v2088_v34, 2  ;;  %v2245_v12 = vrot.slane %v2220_v63, 4  ;;  %v2987_v31 = vsel %vm926_vm5, %v2986_v16, %v2963_v20  ;;  %v2906_v32 = vsel %vm929_vm6, %v2905_v19, %v2904_v30 }
 0x6d5   : > { %v2908_v33 = vsel %vm932_vm7, %v2907_v23, %v2906_v32  ;;  %v2990_v34 = vrot.slane %v2966_v26, 5  ;;  %v2836_v36 = vld [vmem:[#allocation3 + $0x2b] sm:$0x1]  ;;  %v2824_v16 = vld [vmem:[#allocation3 + $0xa] sm:$0x1] }
 0x6d6   : > { %v2911_v46 = vrot.slane %v2836_v36, 3  ;;  %v2822_v20 = vld [vmem:[#allocation3 + $0x39] sm:$0x1]  ;;  %v2878_v26 = vrot.slane %v2824_v16, 7  ;;  %v2823_v36 = vld [vmem:[#allocation3 + $0x2] sm:$0x1] }
 0x6d7   : > { %v2028_v38 = vpop.permute.xlu0 %2027  ;;  %v2087_v40 = vld [vmem:[#allocation3 + $0x2a] sm:$0x1]  ;;  %v2089_v41 = vld [vmem:[#allocation3 + $0x3a] sm:$0x1] }
 0x6d8   : > { %2046 = vst.msk [vmem:[#allocation3 + $0x2c] sm:$0x1] %vm1445_vm12, %v2028_v38  ;;  %v2162_v42 = vrot.slane %v2087_v40, 3  ;;  %v2166_v51 = vrot.slane %v2089_v41, 1  ;;  %v2989_v38 = vsel %vm929_vm6, %v2988_v27, %v2987_v31  ;;  %v2838_v40 = vld [vmem:[#allocation3 + $0x3b] sm:$0x1]  ;;  %v2910_v41 = vsel %vm935_vm8, %v2909_v37, %v2908_v33 }
 0x6d9   : > { %v2991_v47 = vsel %vm932_vm7, %v2990_v34, %v2989_v38  ;;  %v2826_v31 = vld [vmem:[#allocation3 + $0x1a] sm:$0x1]  ;;  %v2867_v33 = vrot.slane %v2822_v20, 1  ;;  %v2827_v38 = vld [vmem:[#allocation3 + $0x22] sm:$0x1] }
 0x6da   : > { %v2163_v50 = vsel %vm938_vm9, %v2162_v42, %v2161_v43  ;;  %v2968_v42 = vld [vmem:[#allocation3 + $0x2d] sm:$0x1]  ;;  %v2992_v43 = vrot.slane %v2967_v35, 4 }
 0x6db   : > { %v2030_v52 = vpop.permute.xlu0 %2029  ;;  %v2165_v53 = vsel %vm941_vm10, %v2164_v45, %v2163_v50  ;;  %v2219_v55 = vld [vmem:[#allocation3 + $0x1c] sm:$0x1]  ;;  %v2837_v45 = vld [vmem:[#allocation3 + $0x33] sm:$0x1]  ;;  %v2816_v50 = vld [vmem:[#allocation3 + $0x9] sm:$0x1] }
 0x6dc   : > { %2047 = vst.msk [vmem:[#allocation3 + $0x34] sm:$0x1] %vm1445_vm12, %v2030_v52  ;;  %v7034_v56 = vsel %vm8307_vm11, %v2166_v51, %v2165_v53  ;;  %v2243_v62 = vrot.slane %v2219_v55, 5  ;;  %v2223_v11 = vld [vmem:[#allocation3 + $0x3c] sm:$0x1]  ;;  %v2912_v51 = vsel %vm938_vm9, %v2911_v46, %v2910_v41  ;;  %v2915_v52 = vrot.slane %v2838_v40, 1 }
 0x6dd   : > { %2225 = vrot.lane.b32.xlu0 %v7034_v56, %s6337_s24  ;;  %2262 = vrot.lane.b32.xlu1 %v7034_v56, %s6335_s21  ;;  %v2251_v22 = vrot.slane %v2223_v11, 1  ;;  %v2969_v53 = vld [vmem:[#allocation3 + $0x35] sm:$0x1]  ;;  %v2994_v55 = vrot.slane %v2968_v42, 3  ;;  %v2913_v59 = vrot.slane %v2837_v45, 2  ;;  %v2993_v60 = vsel %vm935_vm8, %v2992_v43, %v2991_v47 }
 0x6de   : > { %v2244_v57 = vsel %vm932_vm7, %v2243_v62, %v2242_v3  ;;  %v2855_v62 = vrot.slane %v2816_v50, 7  ;;  %v2996_v3 = vrot.slane %v2969_v53, 2  ;;  %v2840_v11 = vld [vmem:[#allocation3 + $0xc] sm:$0x1]  ;;  %v2880_v40 = vrot.slane %v2825_v25, 6 }
 0x6df   : > { %v2221_v0 = vld [vmem:[#allocation3 + $0x2c] sm:$0x1]  ;;  %v2246_v17 = vsel %vm935_vm8, %v2245_v12, %v2244_v57  ;;  %v2914_v63 = vsel %vm941_vm10, %v2913_v59, %v2912_v51  ;;  %v2995_v57 = vsel %vm938_vm9, %v2994_v55, %v2993_v60  ;;  %v2928_v19 = vrot.slane %v2840_v11, 7  ;;  %v2843_v42 = vld [vmem:[#allocation3 + $0x24] sm:$0x1]  ;;  %v2260_v20 = vpop.permute.xlu0 %2259 }
 0x6e0   : > { %v2247_v8 = vrot.slane %v2221_v0, 3  ;;  %v2970_v0 = vld [vmem:[#allocation3 + $0x3d] sm:$0x1]  ;;  %v7069_v7 = vsel %vm8307_vm11, %v2915_v52, %v2914_v63  ;;  %v2997_v14 = vsel %vm941_vm10, %v2996_v3, %v2995_v57  ;;  %v2844_v37 = vld [vmem:[#allocation3 + $0x2c] sm:$0x1]  ;;  %v2879_v45 = vsel %vm926_vm5, %v2878_v26, %v2823_v36 }
 0x6e1   : > { %2365 = vrot.lane.b32.xlu1 %v7034_v56, %s6329_s25  ;;  %v2998_v12 = vrot.slane %v2970_v0, 1  ;;  %v2929_v35 = vsel %vm926_vm5, %v2928_v19, %v2839_v29  ;;  %v2882_v46 = vrot.slane %v2826_v31, 5  ;;  %v2828_v51 = vld [vmem:[#allocation3 + $0x2a] sm:$0x1]  ;;  %v2936_v55 = vrot.slane %v2844_v37, 3  ;;  %v2369_v19 = vpop.permute.xlu1 %2368 }
 0x6e2   : > { %v2248_v21 = vsel %vm938_vm9, %v2247_v8, %v2246_v17  ;;  %v2819_v8 = vld [vmem:[#allocation3 + $0x21] sm:$0x1]  ;;  %v2821_v17 = vld [vmem:[#allocation3 + $0x31] sm:$0x1]  ;;  %v2934_v59 = vrot.slane %v2843_v42, 4  ;;  %v2881_v61 = vsel %vm929_vm6, %v2880_v40, %v2879_v45  ;;  %v2886_v0 = vrot.slane %v2828_v51, 3 }
 0x6e3   : > { %v2222_v49 = vld [vmem:[#allocation3 + $0x34] sm:$0x1]  ;;  %v2861_v15 = vrot.slane %v2819_v8, 4  ;;  %v2999_v23 = vsel %vm8307_vm11, %v2998_v12, %v2997_v14  ;;  %v2883_v63 = vsel %vm932_vm7, %v2882_v46, %v2881_v61  ;;  %v2846_v3 = vld [vmem:[#allocation3 + $0x3c] sm:$0x1]  ;;  %v2057_v42 = vadd.s32 8, %v6766_v54 }
 0x6e4   : > { %v2249_v18 = vrot.slane %v2222_v49, 2  ;;  %v2859_v49 = vrot.slane %v2818_v4, 5  ;;  %v2845_v43 = vld [vmem:[#allocation3 + $0x34] sm:$0x1]  ;;  %v2829_v8 = vld [vmem:[#allocation3 + $0x32] sm:$0x1] }
 0x6e5   : > { %v2938_v60 = vrot.slane %v2845_v43, 2  ;;  %v2940_v11 = vrot.slane %v2846_v3, 1 }
 0x6e6   : > { %v2250_v24 = vsel %vm941_vm10, %v2249_v18, %v2248_v21  ;;  %v2841_v18 = vld [vmem:[#allocation3 + $0x14] sm:$0x1] }
 0x6e7   : > { %v2252_v28 = vsel %vm8307_vm11, %v2251_v22, %v2250_v24  ;;  %v2842_v22 = vld [vmem:[#allocation3 + $0x1c] sm:$0x1]  ;;  %v2930_v30 = vrot.slane %v2841_v18, 6  ;;  %v2056_v18 = vld [vmem:[%s8290_s10] sm:$0xff] }
 0x6e8   : > { %2371 = vrot.lane.b32.xlu0 %v2252_v28, %s6338_s16  ;;  %2268 = vrot.lane.b32.xlu1 %v2252_v28, %s6339_s15  ;;  %v2932_v34 = vrot.slane %v2842_v22, 5  ;;  %v2363_v22 = vpop.permute.xlu0 %2362 }
 0x6e9   : > { %v2931_v50 = vsel %vm929_vm6, %v2930_v30, %v2929_v35 }
 0x6ea   : > { %v2933_v53 = vsel %vm932_vm7, %v2932_v34, %v2931_v50 }
 0x6eb   : > { %v2935_v4 = vsel %vm935_vm8, %v2934_v59, %v2933_v53  ;;  %v2058_v53 = vmul.u32 2, %v2057_v42 }
 0x6ec   : > { %2253 = vrot.lane.b32.xlu0 %v2252_v28, %s6340_s18  ;;  %2207 = vrot.lane.b32.xlu1 %v7034_v56, %s8347_s23  ;;  %v2865_v28 = vrot.slane %v2821_v17, 2  ;;  %v2937_v57 = vsel %vm938_vm9, %v2936_v55, %v2935_v4  ;;  %v8401_v4 = vmov 0 }
 0x6ed   : > { %vm7167_vm4 = vcmp.eq.s32.totalorder %v6775_v2, %v2058_v53 }
 0x6ee   : > { %v8402_v4 = vsel %vm7167_vm4, 4294967295, %v8401_v4 }
 0x6f0   : > { %2353 = vrot.lane.b32.xlu0 %v7034_v56, %s8303_s5  ;;  %2193 = vrot.lane.b32.xlu1 %v6968_v39, %s6340_s18  ;;  %v2815_v39 = vld [vmem:[#allocation3 + $0x1] sm:$0x1] }
 0x6f1   : > { %v2856_v13 = vsel %vm926_vm5, %v2855_v62, %v2815_v39  ;;  %v2884_v62 = vrot.slane %v2827_v38, 4  ;;  %v2939_v39 = vsel %vm941_vm10, %v2938_v60, %v2937_v57 }
 0x6f2   : > { %v2858_v21 = vsel %vm929_vm6, %v2857_v10, %v2856_v13  ;;  %v2830_v13 = vld [vmem:[#allocation3 + $0x3a] sm:$0x1]  ;;  %v2941_v14 = vsel %vm8307_vm11, %v2940_v11, %v2939_v39 }
 0x6f3   : > { %v2860_v24 = vsel %vm932_vm7, %v2859_v49, %v2858_v21  ;;  %v2885_v10 = vsel %vm935_vm8, %v2884_v62, %v2883_v63  ;;  %v2888_v49 = vrot.slane %v2829_v8, 2  ;;  %v2890_v16 = vrot.slane %v2830_v13, 1  ;;  %v2051_v63 = vld [vmem:[#allocation17 + $0x8] sm:$0xff]  ;;  %v2049_v39 = vld [vmem:[#allocation17] sm:$0xff] }
 0x6f4   : > { %2168 = vrot.lane.b32.xlu0 %v7034_v56, %s8345_s29  ;;  %3009 = vrot.lane.b32.xlu1 %v7069_v7, %s6335_s21  ;;  %v2820_v56 = vld [vmem:[#allocation3 + $0x29] sm:$0x1]  ;;  %v2862_v27 = vsel %vm935_vm8, %v2861_v15, %v2860_v24  ;;  %v2887_v12 = vsel %vm938_vm9, %v2886_v0, %v2885_v10  ;;  %v2266_v24 = vpop.permute.xlu0 %2265  ;;  %v7161_v62 = vadd.s32 1, %v2058_v53 }
 0x6f5   : > { %v2863_v32 = vrot.slane %v2820_v56, 3  ;;  %v2889_v15 = vsel %vm941_vm10, %v2888_v49, %v2887_v12  ;;  %v2229_v56 = vpop.permute.xlu1 %2228  ;;  %v2053_v53 = vld [vmem:[#allocation17 + $0x10] sm:$0xff] }
 0x6f6   : > { %v7117_v17 = vsel %vm8307_vm11, %v2890_v16, %v2889_v15  ;;  %vm8358_vm12 = vcmp.eq.s32.totalorder %v6775_v2, %v7161_v62 }
 0x6f7   : > { %v2864_v41 = vsel %vm938_vm9, %v2863_v32, %v2862_v27 }
 0x6f8   : > { %2972 = vrot.lane.b32.xlu0 %v7069_v7, %s6337_s24  ;;  %3112 = vrot.lane.b32.xlu1 %v7069_v7, %s6329_s25  ;;  %v2866_v47 = vsel %vm941_vm10, %v2865_v28, %v2864_v41  ;;  %v2202_v26 = vpop.permute.xlu0 %2201 }
 0x6f9   : > { %v7094_v52 = vsel %vm8307_vm11, %v2867_v33, %v2866_v47  ;;  %v2205_v21 = vpop.permute.xlu1 %2204  ;;  %vm2450_vm11 = vcmask 130048  }
 0x6fa   : > { %v2213_v43 = vsel %vm1178_vm2, %v2202_v26, %v2205_v21 }
 0x6fc   : > { %3118 = vrot.lane.b32.xlu0 %v2999_v23, %s6338_s16  ;;  %3015 = vrot.lane.b32.xlu1 %v2999_v23, %s6339_s15  ;;  %v2351_v28 = vpop.permute.xlu0 %2350 }
 0x700   : > { %2948 = vrot.lane.b32.xlu0 %v7094_v52, %s8310_s17  ;;  %3094 = vrot.lane.b32.xlu1 %v7094_v52, %s8305_s2  ;;  %v2211_v30 = vpop.permute.xlu0 %2210 }
 0x704   : > { %3000 = vrot.lane.b32.xlu0 %v2999_v23, %s6340_s18  ;;  %2954 = vrot.lane.b32.xlu1 %v7069_v7, %s8347_s23  ;;  %v2348_v23 = vpop.permute.xlu1 %2347 }
 0x705   : > { %v2359_v55 = vsel %vm1178_vm2, %v2348_v23, %v2351_v28 }
 0x708   : > { %3100 = vrot.lane.b32.xlu0 %v7069_v7, %s8303_s5  ;;  %3115 = vrot.lane.b32.xlu1 %v2941_v14, %s8303_s5  ;;  %v2144_v25 = vpop.permute.xlu1 %2143  ;;  %s8406_s5 = smov 126  }
 0x709   : > { %v2196_v0 = vsel %vm1178_vm2, %v6993_v5, %v2144_v25  ;;  %v6341_v5 = vmov 1.0  }
 0x70c   : > { %3006 = vrot.lane.b32.xlu0 %v7117_v17, %s8310_s17  ;;  %2975 = vrot.lane.b32.xlu1 %v2941_v14, %s8345_s29  ;;  %v2357_v27 = vpop.permute.xlu1 %2356 }
 0x710   : > { %3109 = vrot.lane.b32.xlu0 %v7117_v17, %s8305_s2  ;;  %2951 = vrot.lane.b32.xlu1 %v7117_v17, %s6335_s21  ;;  %s8322_s2 = smov 16   ;;  %s8324_s21 = smov 15  }
 0x714   : > { %3012 = vrot.lane.b32.xlu0 %v2941_v14, %s8347_s23  ;;  %2892 = vrot.lane.b32.xlu1 %v7117_v17, %s6337_s24  ;;  %s8314_s24 = smov 30  }
 0x718   : > { %3097 = vrot.lane.b32.xlu0 %v7117_v17, %s6329_s25  ;;  %3103 = vrot.lane.b32.xlu1 %v2941_v14, %s6338_s16  ;;  %s8332_s25 = smov 14   ;;  %s8318_s16 = smov 32  }
 0x71c   : > { %2957 = vrot.lane.b32.xlu0 %v2941_v14, %s6339_s15  ;;  %2942 = vrot.lane.b32.xlu1 %v2941_v14, %s6340_s18  ;;  %s8403_s18 = smov 105   ;;  %s8316_s15 = smov 46  }
 0x720   : > { %2917 = vrot.lane.b32.xlu0 %v7069_v7, %s8345_s29 }
 0x724   : > { %2599 = vperm.xlu0 %6032, %v2056_v18  }
 0x74f   : > { %v2263_v29 = vpop.permute.xlu1 %2262  ;;  %v2226_v7 = vpop.permute.xlu0 %2225 }
 0x750   : > { %v2271_v32 = vsel %vm1178_vm2, %v2260_v20, %v2263_v29  ;;  %v2256_v38 = vsel %vm1178_vm2, %v6986_v58, %v2226_v7 }
 0x751   : > { %v2272_v36 = vsel %vm2197_vm13, %v2271_v32, %v2266_v24  ;;  %v2257_v46 = vsel %vm2197_vm13, %v2256_v38, %v2229_v56 }
 0x753   : > { %v2366_v31 = vpop.permute.xlu1 %2365 }
 0x754   : > { %v2374_v33 = vsel %vm1178_vm2, %v2363_v22, %v2366_v31 }
 0x755   : > { %v2375_v34 = vsel %vm2197_vm13, %v2374_v33, %v2369_v19 }
 0x75a   : > { %v2372_v35 = vpop.permute.xlu0 %2371  ;;  %v2269_v37 = vpop.permute.xlu1 %2268 }
 0x75b   : > { %v2376_v40 = vsel %vm2199_vm1, %v2375_v34, %v2372_v35  ;;  %v2273_v41 = vsel %vm2199_vm1, %v2272_v36, %v2269_v37 }
 0x75c   : > { %5675 = vmatpush3.msra.mxu1 %v2273_v41  ;;  %5686 = vmatpush3.msra.mxu0 %v2376_v40 }
 0x75d   : > { %5687 = vmatprep.subr.mxu0 %v6311_v1  ;;  %5676 = vmatprep.subr.mxu1 %v6311_v1 }
 0x75e   : > { %v2254_v45 = vpop.permute.xlu0 %2253  ;;  %5688 = vmatpush3.msra.mxu0 %v2273_v41  ;;  %v2208_v47 = vpop.permute.xlu1 %2207 }
 0x75f   : > { %v2258_v58 = vsel %vm2199_vm1, %v2257_v46, %v2254_v45  ;;  %v2214_v50 = vsel %vm2197_vm13, %v2213_v43, %v2208_v47  ;;  %5689 = vmatprep.subr.mxu0 %v6311_v1 }
 0x760   : > { %5677 = vmatpush3.msra.mxu1 %v2258_v58  ;;  %v2215_v51 = vsel %vm2199_vm1, %v2214_v50, %v2211_v30 }
 0x761   : > { %5678 = vmatprep.subr.mxu1 %v6311_v1 }
 0x762   : > { %v2354_v59 = vpop.permute.xlu0 %2353  ;;  %5679 = vmatpush3.msra.mxu1 %v2215_v51  ;;  %v2194_v57 = vpop.permute.xlu1 %2193 }
 0x763   : > { %v2360_v60 = vsel %vm2197_vm13, %v2359_v55, %v2354_v59  ;;  %5680 = vmatprep.subr.mxu1 %v6311_v1 }
 0x764   : > { %v2361_v61 = vsel %vm2199_vm1, %v2360_v60, %v2357_v27  ;;  %v2055_v60 = vld [vmem:[#allocation17 + $0x18] sm:$0xff] }
 0x765   : > { %5690 = vmatpush3.msra.mxu0 %v2361_v61 }
 0x766   : > { %v2169_v3 = vpop.permute.xlu0 %2168  ;;  %5691 = vmatprep.subr.mxu0 %v6311_v1  ;;  %v3010_v12 = vpop.permute.xlu1 %3009 }
 0x767   : > { %v2198_v8 = vsel %vm2197_vm13, %v2196_v0, %v2169_v3  ;;  %5692 = vmatpush3.msra.mxu0 %v2215_v51 }
 0x768   : > { %5694 = vmatmul.mubr.msk.f32.vlgmr.msra.gmra.mxu0 %vm8356_vm3, %v2051_v63  ;;  %v2200_v10 = vsel %vm2199_vm1, %v2198_v8, %v2194_v57  ;;  %5703 = vmatprep.subr.mxu0 %v6311_v1 }
 0x769   : > { %5681 = vmatpush3.msra.mxu1 %v2200_v10  ;;  %5704 = vmatpush3.msk.msra.mxu0 %vm7167_vm4, %v6341_v5 }
 0x76a   : > { %5683 = vmatmul.mubr.msk.f32.vlgmr.msra.gmra.mxu1 %vm8356_vm3, %v2049_v39  ;;  %5696 = vmatprep.subr.mxu1 %v6311_v1  ;;  %v2973_v11 = vpop.permute.xlu0 %2972  ;;  %v3113_v49 = vpop.permute.xlu1 %3112 }
 0x76b   : > { %5697 = vmatpush3.msk.msra.mxu1 %vm8358_vm12, %v6341_v5  ;;  %5700 = vmatprep.mubr.msk.f32.mxu1 %vm8308_vm0, %v6311_v1  ;;  %v3003_v7 = vsel %vm1178_vm2, %v7117_v17, %v2973_v11 }
 0x76c   : > { %5698 = vmatprep.subr.mxu1 %v6311_v1  ;;  %5705 = vmatprep.subr.mxu0 %v6311_v1 }
 0x76d   : > { %5699 = vmatpush3.msk.msra.mxu1 %vm6789_vm15, %v6341_v5  ;;  %5706 = vmatpush3.msk.msra.mxu0 %vm6780_vm14, %v6341_v5 }
 0x76e   : > { %5710 = vmatprep.subr.mxu1 %v6311_v1  ;;  %5707 = vmatprep.mubr.msk.f32.mxu0 %vm8308_vm0, %v6311_v1  ;;  %v3119_v13 = vpop.permute.xlu0 %3118  ;;  %v3016_v15 = vpop.permute.xlu1 %3015 }
 0x76f   : > { %5721 = vmatprep.subr.mxu0 %v6311_v1 }
 0x772   : > { %v2949_v14 = vpop.permute.xlu0 %2948  ;;  %v3095_v18 = vpop.permute.xlu1 %3094 }
 0x776   : > { %v3001_v16 = vpop.permute.xlu0 %3000  ;;  %v2955_v56 = vpop.permute.xlu1 %2954 }
 0x77a   : > { %v3101_v19 = vpop.permute.xlu0 %3100  ;;  %v3116_v21 = vpop.permute.xlu1 %3115 }
 0x77e   : > { %v3007_v20 = vpop.permute.xlu0 %3006  ;;  %v2976_v23 = vpop.permute.xlu1 %2975 }
 0x77f   : > { %v3018_v29 = vsel %vm1178_vm2, %v3007_v20, %v3010_v12  ;;  %v3004_v32 = vsel %vm2197_vm13, %v3003_v7, %v2976_v23 }
 0x780   : > { %v3005_v43 = vsel %vm2199_vm1, %v3004_v32, %v3001_v16 }
 0x782   : > { %v3110_v22 = vpop.permute.xlu0 %3109  ;;  %v2952_v25 = vpop.permute.xlu1 %2951 }
 0x783   : > { %v3121_v30 = vsel %vm1178_vm2, %v3110_v22, %v3113_v49  ;;  %v2960_v36 = vsel %vm1178_vm2, %v2949_v14, %v2952_v25 }
 0x784   : > { %v3122_v33 = vsel %vm2197_vm13, %v3121_v30, %v3116_v21  ;;  %v2961_v47 = vsel %vm2197_vm13, %v2960_v36, %v2955_v56 }
 0x785   : > { %v3123_v45 = vsel %vm2199_vm1, %v3122_v33, %v3119_v13 }
 0x786   : > { %v3013_v24 = vpop.permute.xlu0 %3012  ;;  %v2893_v27 = vpop.permute.xlu1 %2892 }
 0x787   : > { %v3019_v31 = vsel %vm2197_vm13, %v3018_v29, %v3013_v24  ;;  %v2945_v17 = vsel %vm1178_vm2, %v7094_v52, %v2893_v27 }
 0x788   : > { %v3020_v40 = vsel %vm2199_vm1, %v3019_v31, %v3016_v15 }
 0x78a   : > { %v3098_v26 = vpop.permute.xlu0 %3097  ;;  %v3104_v35 = vpop.permute.xlu1 %3103 }
 0x78b   : > { %v3106_v37 = vsel %vm1178_vm2, %v3095_v18, %v3098_v26  ;;  %vm2710_vm2 = vcmask 65544  }
 0x78c   : > { %v3107_v46 = vsel %vm2197_vm13, %v3106_v37, %v3101_v19 }
 0x78d   : > { %v3108_v55 = vsel %vm2199_vm1, %v3107_v46, %v3104_v35 }
 0x78e   : > { %v2958_v28 = vpop.permute.xlu0 %2957  ;;  %v2943_v52 = vpop.permute.xlu1 %2942 }
 0x78f   : > { %v2962_v51 = vsel %vm2199_vm1, %v2961_v47, %v2958_v28 }
 0x792   : > { %v2918_v38 = vpop.permute.xlu0 %2917 }
 0x793   : > { %v2946_v58 = vsel %vm2197_vm13, %v2945_v17, %v2918_v38 }
 0x794   : > { %v2947_v59 = vsel %vm2199_vm1, %v2946_v58, %v2943_v52  ;;  %vm8404_vm1 = vcmask 1047559  }
 0x79f   : > { %v7257_v57 = vpop.permute.xlu0 %2599 }
 0x828   : > { %v2446_v34 = vpop.f32.mrf.mxu0 }
 0x829   : > { %5701 = vmatmul.mubr.msk.f32.vlgmr.msra.gmra.mxu1 %vm2450_vm11, %v2446_v34 }
 0x82a   : > { %5711 = vmatpush3.msra.mxu1 %v3020_v40  ;;  %v2343_v41 = vpop.f32.mrf.mxu1  ;;  %v5695_v42 = vpop.f32.mrf.mxu0  ;;  %5718 = vmatprep.mubr.msk.f32.mxu1 %vm8308_vm0, %v6311_v1 }
 0x82b   : > { %5712 = vmatprep.subr.mxu1 %v6311_v1  ;;  %5708 = vmatmul.mubr.msk.f32.vlgmr.msra.gmra.mxu0 %vm2450_vm11, %v2343_v41 }
 0x82c   : > { %5713 = vmatpush3.msra.mxu1 %v3005_v43  ;;  %5722 = vmatpush3.msra.mxu0 %v3123_v45  ;;  %v5684_v50 = vpop.f32.mrf.mxu1 }
 0x82d   : > { %5714 = vmatprep.subr.mxu1 %v6311_v1  ;;  %5723 = vmatprep.subr.mxu0 %v6311_v1 }
 0x82e   : > { %5715 = vmatpush3.msra.mxu1 %v2962_v51  ;;  %5724 = vmatpush3.msra.mxu0 %v3020_v40 }
 0x82f   : > { %5716 = vmatprep.subr.mxu1 %v6311_v1  ;;  %5725 = vmatprep.subr.mxu0 %v6311_v1 }
 0x830   : > { %5717 = vmatpush3.msra.mxu1 %v2947_v59  ;;  %5726 = vmatpush3.msra.mxu0 %v3108_v55 }
 0x831   : > { %5719 = vmatmul.mubr.msk.f32.vlgmr.msra.gmra.mxu1 %vm8356_vm3, %v2053_v53  ;;  %5727 = vmatprep.subr.mxu0 %v6311_v1 }
 0x832   : > { %5728 = vmatpush3.msra.mxu0 %v2962_v51  ;;  %5729 = vmatprep.mubr.msk.f32.mxu0 %vm8308_vm0, %v6311_v1 }
 0x833   : > { %5730 = vmatmul.mubr.msk.f32.vlgmr.msra.gmra.mxu0 %vm8356_vm3, %v2055_v60  ;;  %5739 = vmatprep.subr.mxu0 %v6311_v1 }
 0x834   : > { %5732 = vmatprep.subr.mxu1 %v6311_v1  ;;  %5740 = vmatpush3.msk.msra.mxu0 %vm7167_vm4, %v6341_v5 }
 0x835   : > { %5733 = vmatpush3.msk.msra.mxu1 %vm8358_vm12, %v6341_v5  ;;  %5741 = vmatprep.subr.mxu0 %v6311_v1 }
 0x836   : > { %5734 = vmatprep.subr.mxu1 %v6311_v1  ;;  %5742 = vmatpush3.msk.msra.mxu0 %vm6780_vm14, %v6341_v5 }
 0x837   : > { %5743 = vmatprep.mubr.msk.f32.mxu0 %vm8308_vm0, %v6311_v1  ;;  %5735 = vmatpush3.msk.msra.mxu1 %vm6789_vm15, %v6341_v5 }
 0x838   : > { %5736 = vmatprep.mubr.msk.f32.mxu1 %vm8308_vm0, %v6311_v1  ;;  %5746 = vmatprep.subr.mxu1 %v6311_v1 }
 0x839   : > { %5757 = vmatprep.subr.mxu0 %v6311_v1 }
 0x8e9   : > { %v2520_v61 = vpop.f32.mrf.mxu1 }
 0x8eb   : > { %v5702_v63 = vpop.f32.mrf.mxu1  ;;  %v2593_v0 = vpop.f32.mrf.mxu0 }
 0x8ec   : > { %v2594_v3 = vadd.f32 %v2593_v0, %v2520_v61 }
 0x8ed   : > { %v5709_v8 = vpop.f32.mrf.mxu0 }
 0x8ee   : > { %v2602_v39 = vadd.f32 %v7257_v57, %v2594_v3 }
 0x8f0   : > { %v2603_v10 = vmax.f32 %v2602_v39, 0.0 }
 0x8f1   : > { %v3090_v11 = vpop.f32.mrf.mxu1 }
 0x8f2   : > { %v2612_v12 = vrot.slane %v2603_v10, %v6867_v44  ;;  %5744 = vmatmul.mubr.msk.f32.vlgmr.msra.gmra.mxu0 %vm2450_vm11, %v3090_v11  ;;  %v2605_v19 = vcombine.high %v2603_v10, %v2603_v10 }
 0x8f3   : > { %v5720_v13 = vpop.f32.mrf.mxu1  ;;  %v3193_v49 = vpop.f32.mrf.mxu0  ;;  %5765 = vmatprep.mubr.msk.f32.mxu0 %vm8308_vm0, %v6311_v1 }
 0x8f4   : > { %v2628_v14 = vrot.slane %v2612_v12, %v6867_v44  ;;  %5737 = vmatmul.mubr.msk.f32.vlgmr.msra.gmra.mxu1 %vm2450_vm11, %v3193_v49  ;;  %v2620_v16 = vcombine.high %v2612_v12, %v2612_v12  ;;  %v2619_v20 = vrot.slane %v2605_v19, %v6867_v44 }
 0x8f5   : > { %v5731_v15 = vpop.f32.mrf.mxu0  ;;  %5754 = vmatprep.mubr.msk.f32.mxu1 %vm8308_vm0, %v6311_v1  ;;  %vm8405_vm0 = vmmov %vm8404_vm1 }
 0x8f6   : > { %v2657_v18 = vrot.slane %v2628_v14, %v6871_v48  ;;  %v2642_v56 = vrot.slane %v2620_v16, %v6867_v44  ;;  %v2650_v21 = vcombine.high %v2628_v14, %v2628_v14  ;;  %v2635_v23 = vrot.slane %v2619_v20, %v6867_v44 }
 0x8f7   : > { %v2621_v26 = vcombine.high %v2619_v20, %v2619_v20 }
 0x8f8   : > { %2719 = vrot.lane.b32.xlu1 %v2657_v18, %s6313_s26  ;;  %2686 = vrot.lane.b32.xlu0 %v2657_v18, %s6318_s22  ;;  %v2661_v22 = vrot.slane %v2642_v56, %v6871_v48  ;;  %v2665_v24 = vrot.slane %v2650_v21, %v6871_v48  ;;  %v2673_v25 = vrot.slane %v2635_v23, %v6871_v48 }
 0x8f9   : > { %v2652_v27 = vcombine.high %v2642_v56, %v2642_v56  ;;  %v2651_v29 = vcombine.high %v2635_v23, %v2635_v23  ;;  %v2649_v30 = vrot.slane %v2621_v26, %v6867_v44 }
 0x8fb   : > { %v2669_v28 = vrot.slane %v2652_v27, %v6871_v48  ;;  %v2681_v31 = vrot.slane %v2651_v29, %v6871_v48  ;;  %v2677_v7 = vrot.slane %v2649_v30, %v6871_v48  ;;  %v2653_v32 = vcombine.high %v2649_v30, %v2649_v30 }
 0x8fc   : > { %2751 = vrot.lane.b32.xlu1 %v2657_v18, %s6322_s14  ;;  %2783 = vrot.lane.b32.xlu0 %v2657_v18, %s8403_s18 }
 0x8fd   : > { %v2685_v33 = vrot.slane %v2653_v32, %v6871_v48 }
 0x900   : > { %2721 = vrot.lane.b32.xlu0 %v2661_v22, %s6313_s26  ;;  %2688 = vrot.lane.b32.xlu1 %v2661_v22, %s6318_s22 }
 0x904   : > { %2723 = vrot.lane.b32.xlu0 %v2665_v24, %s6313_s26  ;;  %2690 = vrot.lane.b32.xlu1 %v2665_v24, %s6318_s22 }
 0x908   : > { %2753 = vrot.lane.b32.xlu1 %v2661_v22, %s6322_s14  ;;  %2694 = vrot.lane.b32.xlu0 %v2673_v25, %s6318_s22 }
 0x90c   : > { %2727 = vrot.lane.b32.xlu1 %v2673_v25, %s6313_s26  ;;  %2755 = vrot.lane.b32.xlu0 %v2665_v24, %s6322_s14 }
 0x910   : > { %2785 = vrot.lane.b32.xlu1 %v2661_v22, %s8403_s18  ;;  %2787 = vrot.lane.b32.xlu0 %v2665_v24, %s8403_s18 }
 0x914   : > { %2759 = vrot.lane.b32.xlu1 %v2673_v25, %s6322_s14  ;;  %2791 = vrot.lane.b32.xlu0 %v2673_v25, %s8403_s18 }
 0x918   : > { %2692 = vrot.lane.b32.xlu1 %v2669_v28, %s6318_s22  ;;  %2725 = vrot.lane.b32.xlu0 %v2669_v28, %s6313_s26 }
 0x91c   : > { %2698 = vrot.lane.b32.xlu1 %v2681_v31, %s6318_s22  ;;  %2696 = vrot.lane.b32.xlu0 %v2677_v7, %s6318_s22 }
 0x920   : > { %2761 = vrot.lane.b32.xlu1 %v2677_v7, %s6322_s14  ;;  %2729 = vrot.lane.b32.xlu0 %v2677_v7, %s6313_s26 }
 0x924   : > { %2789 = vrot.lane.b32.xlu1 %v2669_v28, %s8403_s18  ;;  %2757 = vrot.lane.b32.xlu0 %v2669_v28, %s6322_s14 }
 0x928   : > { %2763 = vrot.lane.b32.xlu1 %v2681_v31, %s6322_s14  ;;  %2731 = vrot.lane.b32.xlu0 %v2681_v31, %s6313_s26 }
 0x92c   : > { %2795 = vrot.lane.b32.xlu1 %v2681_v31, %s8403_s18  ;;  %2793 = vrot.lane.b32.xlu0 %v2677_v7, %s8403_s18 }
 0x930   : > { %2733 = vrot.lane.b32.xlu0 %v2685_v33, %s6313_s26  ;;  %2700 = vrot.lane.b32.xlu1 %v2685_v33, %s6318_s22 }
 0x934   : > { %2797 = vrot.lane.b32.xlu0 %v2685_v33, %s8403_s18  ;;  %2765 = vrot.lane.b32.xlu1 %v2685_v33, %s6322_s14 }
 0x96a   : > { %v2720_v35 = vpop.permute.xlu1 %2719  ;;  %v2687_v34 = vpop.permute.xlu0 %2686 }
 0x96b   : > { %2743 = vst.msk [vmem:[#allocation4 + $0x3] sm:$0x1] %vm2710_vm2, %v2720_v35  ;;  %2711 = vst.msk [vmem:[#allocation4 + $0x1] sm:$0x1] %vm2710_vm2, %v2687_v34 }
 0x96e   : > { %v2752_v36 = vpop.permute.xlu1 %2751  ;;  %v2784_v37 = vpop.permute.xlu0 %2783 }
 0x96f   : > { %2775 = vst.msk [vmem:[#allocation4 + $0x5] sm:$0x1] %vm2710_vm2, %v2752_v36  ;;  %2807 = vst.msk [vmem:[#allocation4 + $0x7] sm:$0x1] %vm2710_vm2, %v2784_v37 }
 0x972   : > { %v2722_v38 = vpop.permute.xlu0 %2721  ;;  %v2689_v40 = vpop.permute.xlu1 %2688  ;;  %v3625_v23 = vld [vmem:[#allocation4 + $0x1] sm:$0x1]  ;;  %v3641_v28 = vld [vmem:[#allocation4 + $0x3] sm:$0x1] }
 0x973   : > { %2744 = vst.msk [vmem:[#allocation4 + $0x13] sm:$0x1] %vm2710_vm2, %v2722_v38  ;;  %2712 = vst.msk [vmem:[#allocation4 + $0x11] sm:$0x1] %vm2710_vm2, %v2689_v40 }
 0x976   : > { %v2724_v41 = vpop.permute.xlu0 %2723  ;;  %v2691_v42 = vpop.permute.xlu1 %2690 }
 0x977   : > { %2745 = vst.msk [vmem:[#allocation4 + $0x23] sm:$0x1] %vm2710_vm2, %v2724_v41  ;;  %2713 = vst.msk [vmem:[#allocation4 + $0x21] sm:$0x1] %vm2710_vm2, %v2691_v42 }
 0x97a   : > { %v2754_v17 = vpop.permute.xlu1 %2753  ;;  %v2695_v43 = vpop.permute.xlu0 %2694  ;;  %v3626_v39 = vld [vmem:[#allocation4 + $0x11] sm:$0x1]  ;;  %v3642_v13 = vld [vmem:[#allocation4 + $0x13] sm:$0x1] }
 0x97b   : > { %2776 = vst.msk [vmem:[#allocation4 + $0x15] sm:$0x1] %vm2710_vm2, %v2754_v17  ;;  %2715 = vst.msk [vmem:[#allocation4 + $0x41] sm:$0x1] %vm2710_vm2, %v2695_v43  ;;  %v3712_v15 = vrot.slane %v3626_v39, 7  ;;  %v3762_v19 = vrot.slane %v3642_v13, 7 }
 0x97d   : > { %v3713_v27 = vsel %vm926_vm5, %v3712_v15, %v3625_v23  ;;  %v3763_v32 = vsel %vm926_vm5, %v3762_v19, %v3641_v28 }
 0x97e   : > { %v2728_v45 = vpop.permute.xlu1 %2727  ;;  %v2756_v46 = vpop.permute.xlu0 %2755  ;;  %v3627_v10 = vld [vmem:[#allocation4 + $0x21] sm:$0x1]  ;;  %v3643_v14 = vld [vmem:[#allocation4 + $0x23] sm:$0x1] }
 0x97f   : > { %2747 = vst.msk [vmem:[#allocation4 + $0x43] sm:$0x1] %vm2710_vm2, %v2728_v45  ;;  %2777 = vst.msk [vmem:[#allocation4 + $0x25] sm:$0x1] %vm2710_vm2, %v2756_v46  ;;  %v3714_v18 = vrot.slane %v3627_v10, 6  ;;  %v3764_v22 = vrot.slane %v3643_v14, 6 }
 0x981   : > { %v3715_v31 = vsel %vm929_vm6, %v3714_v18, %v3713_v27  ;;  %v3765_v38 = vsel %vm929_vm6, %v3764_v22, %v3763_v32 }
 0x982   : > { %v2786_v47 = vpop.permute.xlu1 %2785  ;;  %v2788_v58 = vpop.permute.xlu0 %2787  ;;  %v3629_v26 = vld [vmem:[#allocation4 + $0x41] sm:$0x1] }
 0x983   : > { %2808 = vst.msk [vmem:[#allocation4 + $0x17] sm:$0x1] %vm2710_vm2, %v2786_v47  ;;  %2809 = vst.msk [vmem:[#allocation4 + $0x27] sm:$0x1] %vm2710_vm2, %v2788_v58  ;;  %v3718_v40 = vrot.slane %v3629_v26, 4 }
 0x986   : > { %v2760_v50 = vpop.permute.xlu1 %2759  ;;  %v2792_v51 = vpop.permute.xlu0 %2791  ;;  %v3645_v29 = vld [vmem:[#allocation4 + $0x43] sm:$0x1] }
 0x987   : > { %2779 = vst.msk [vmem:[#allocation4 + $0x45] sm:$0x1] %vm2710_vm2, %v2760_v50  ;;  %2811 = vst.msk [vmem:[#allocation4 + $0x47] sm:$0x1] %vm2710_vm2, %v2792_v51  ;;  %v3768_v17 = vrot.slane %v3645_v29, 4 }
 0x98a   : > { %v2693_v52 = vpop.permute.xlu1 %2692  ;;  %v2726_v53 = vpop.permute.xlu0 %2725 }
 0x98b   : > { %2714 = vst.msk [vmem:[#allocation4 + $0x31] sm:$0x1] %vm2710_vm2, %v2693_v52  ;;  %2746 = vst.msk [vmem:[#allocation4 + $0x33] sm:$0x1] %vm2710_vm2, %v2726_v53 }
 0x98e   : > { %v2699_v55 = vpop.permute.xlu1 %2698  ;;  %v2697_v59 = vpop.permute.xlu0 %2696 }
 0x98f   : > { %2717 = vst.msk [vmem:[#allocation4 + $0x61] sm:$0x1] %vm2710_vm2, %v2699_v55  ;;  %2716 = vst.msk [vmem:[#allocation4 + $0x51] sm:$0x1] %vm2710_vm2, %v2697_v59 }
 0x992   : > { %v2762_v60 = vpop.permute.xlu1 %2761  ;;  %v2730_v61 = vpop.permute.xlu0 %2729  ;;  %v3628_v49 = vld [vmem:[#allocation4 + $0x31] sm:$0x1]  ;;  %v3644_v16 = vld [vmem:[#allocation4 + $0x33] sm:$0x1] }
 0x993   : > { %2780 = vst.msk [vmem:[#allocation4 + $0x55] sm:$0x1] %vm2710_vm2, %v2762_v60  ;;  %2748 = vst.msk [vmem:[#allocation4 + $0x53] sm:$0x1] %vm2710_vm2, %v2730_v61  ;;  %v3716_v56 = vrot.slane %v3628_v49, 5  ;;  %v3766_v25 = vrot.slane %v3644_v16, 5 }
 0x995   : > { %v3717_v35 = vsel %vm932_vm7, %v3716_v56, %v3715_v31  ;;  %v3767_v41 = vsel %vm932_vm7, %v3766_v25, %v3765_v38  ;;  %v3659_v31 = vld [vmem:[#allocation4 + $0x25] sm:$0x1]  ;;  %v3619_v38 = vld [vmem:[#allocation4 + $0x20] sm:$0x1] }
 0x996   : > { %v2790_v63 = vpop.permute.xlu1 %2789  ;;  %v2758_v0 = vpop.permute.xlu0 %2757  ;;  %v3630_v24 = vld [vmem:[#allocation4 + $0x51] sm:$0x1]  ;;  %v3631_v33 = vld [vmem:[#allocation4 + $0x61] sm:$0x1]  ;;  %v3719_v45 = vsel %vm935_vm8, %v3718_v40, %v3717_v35  ;;  %v3769_v50 = vsel %vm935_vm8, %v3768_v17, %v3767_v41 }
 0x997   : > { %2810 = vst.msk [vmem:[#allocation4 + $0x37] sm:$0x1] %vm2710_vm2, %v2790_v63  ;;  %2778 = vst.msk [vmem:[#allocation4 + $0x35] sm:$0x1] %vm2710_vm2, %v2758_v0  ;;  %v3720_v34 = vrot.slane %v3630_v24, 3  ;;  %v3722_v46 = vrot.slane %v3631_v33, 2 }
 0x998   : > { %v3814_v33 = vrot.slane %v3659_v31, 6 }
 0x999   : > { %v3721_v47 = vsel %vm938_vm9, %v3720_v34, %v3719_v45  ;;  %v3657_v34 = vld [vmem:[#allocation4 + $0x5] sm:$0x1] }
 0x99a   : > { %v2764_v3 = vpop.permute.xlu1 %2763  ;;  %v2732_v8 = vpop.permute.xlu0 %2731  ;;  %v3646_v30 = vld [vmem:[#allocation4 + $0x53] sm:$0x1]  ;;  %v3723_v60 = vsel %vm941_vm10, %v3722_v46, %v3721_v47  ;;  %v3620_v46 = vld [vmem:[#allocation4 + $0x30] sm:$0x1]  ;;  %v3691_v47 = vrot.slane %v3619_v38, 6 }
 0x99b   : > { %2781 = vst.msk [vmem:[#allocation4 + $0x65] sm:$0x1] %vm2710_vm2, %v2764_v3  ;;  %2749 = vst.msk [vmem:[#allocation4 + $0x63] sm:$0x1] %vm2710_vm2, %v2732_v8  ;;  %v3770_v42 = vrot.slane %v3646_v30, 3 }
 0x99c   : > { %v3658_v30 = vld [vmem:[#allocation4 + $0x15] sm:$0x1] }
 0x99d   : > { %v3771_v52 = vsel %vm938_vm9, %v3770_v42, %v3769_v50  ;;  %v3812_v32 = vrot.slane %v3658_v30, 7  ;;  %v3617_v42 = vld [vmem:[#allocation4] sm:$0x1] }
 0x99e   : > { %v2796_v11 = vpop.permute.xlu1 %2795  ;;  %v2794_v12 = vpop.permute.xlu0 %2793 }
 0x99f   : > { %2813 = vst.msk [vmem:[#allocation4 + $0x67] sm:$0x1] %vm2710_vm2, %v2796_v11  ;;  %2812 = vst.msk [vmem:[#allocation4 + $0x57] sm:$0x1] %vm2710_vm2, %v2794_v12 }
 0x9a2   : > { %v2734_v20 = vpop.permute.xlu0 %2733  ;;  %v2701_v21 = vpop.permute.xlu1 %2700  ;;  %v3647_v7 = vld [vmem:[#allocation4 + $0x63] sm:$0x1] }
 0x9a3   : > { %2750 = vst.msk [vmem:[#allocation4 + $0x73] sm:$0x1] %vm2710_vm2, %v2734_v20  ;;  %2718 = vst.msk [vmem:[#allocation4 + $0x71] sm:$0x1] %vm2710_vm2, %v2701_v21  ;;  %v3772_v43 = vrot.slane %v3647_v7, 2 }
 0x9a4   : > { %v3660_v7 = vld [vmem:[#allocation4 + $0x35] sm:$0x1] }
 0x9a5   : > { %v3773_v59 = vsel %vm941_vm10, %v3772_v43, %v3771_v52  ;;  %v3816_v35 = vrot.slane %v3660_v7, 5  ;;  %v3662_v43 = vld [vmem:[#allocation4 + $0x55] sm:$0x1]  ;;  %v3677_v7 = vld [vmem:[#allocation4 + $0x47] sm:$0x1] }
 0x9a6   : > { %v2798_v36 = vpop.permute.xlu0 %2797  ;;  %v2766_v37 = vpop.permute.xlu1 %2765  ;;  %v3678_v30 = vld [vmem:[#allocation4 + $0x57] sm:$0x1] }
 0x9a7   : > { %2814 = vst.msk [vmem:[#allocation4 + $0x77] sm:$0x1] %vm2710_vm2, %v2798_v36  ;;  %2782 = vst.msk [vmem:[#allocation4 + $0x75] sm:$0x1] %vm2710_vm2, %v2766_v37  ;;  %v3661_v36 = vld [vmem:[#allocation4 + $0x45] sm:$0x1]  ;;  %v3813_v37 = vsel %vm926_vm5, %v3812_v32, %v3657_v34 }
 0x9a8   : > { %v3815_v41 = vsel %vm929_vm6, %v3814_v33, %v3813_v37  ;;  %v3818_v45 = vrot.slane %v3661_v36, 4  ;;  %v3679_v33 = vld [vmem:[#allocation4 + $0x67] sm:$0x1]  ;;  %v3868_v36 = vrot.slane %v3677_v7, 4 }
 0x9a9   : > { %v3817_v17 = vsel %vm932_vm7, %v3816_v35, %v3815_v41  ;;  %v3870_v35 = vrot.slane %v3678_v30, 3  ;;  %v3872_v38 = vrot.slane %v3679_v33, 2 }
 0x9aa   : > { %v3648_v58 = vld [vmem:[#allocation4 + $0x73] sm:$0x1]  ;;  %v3632_v51 = vld [vmem:[#allocation4 + $0x71] sm:$0x1]  ;;  %v3819_v52 = vsel %vm935_vm8, %v3818_v45, %v3817_v17 }
 0x9ab   : > { %v3774_v53 = vrot.slane %v3648_v58, 1  ;;  %v3724_v55 = vrot.slane %v3632_v51, 1  ;;  %v3663_v58 = vld [vmem:[#allocation4 + $0x65] sm:$0x1] }
 0x9ad   : > { %v7357_v61 = vsel %vm8404_vm1, %v3774_v53, %v3773_v59  ;;  %v7360_v63 = vsel %vm8405_vm0, %v3724_v55, %v3723_v60  ;;  %vm551_vm0 = vcmask 74752   ;;  %v3820_v53 = vrot.slane %v3662_v43, 3  ;;  %v3621_v55 = vld [vmem:[#allocation4 + $0x40] sm:$0x1] }
 0x9ae   : > { %4121 = vrot.lane.b32.xlu0 %v7357_v61, %s8332_s25  ;;  %3980 = vrot.lane.b32.xlu1 %v7360_v63, %s8310_s17  ;;  %552 = vst.msk [vmem:[#allocation4 + $0x8] sm:$0x3] %vm551_vm0, %v6311_v1  ;;  %554 = vst.msk [vmem:[#allocation4 + $0x18] sm:$0x3] %vm551_vm0, %v6311_v1  ;;  %v3664_v51 = vld [vmem:[#allocation4 + $0x75] sm:$0x1] }
 0x9af   : > { %556 = vst.msk [vmem:[#allocation4 + $0x28] sm:$0x3] %vm551_vm0, %v6311_v1  ;;  %558 = vst.msk [vmem:[#allocation4 + $0x38] sm:$0x3] %vm551_vm0, %v6311_v1  ;;  %v3693_v59 = vrot.slane %v3620_v46, 5  ;;  %v3822_v60 = vrot.slane %v3663_v58, 2 }
 0x9b0   : > { %560 = vst.msk [vmem:[#allocation4 + $0x48] sm:$0x3] %vm551_vm0, %v6311_v1  ;;  %562 = vst.msk [vmem:[#allocation4 + $0x58] sm:$0x3] %vm551_vm0, %v6311_v1  ;;  %v3680_v34 = vld [vmem:[#allocation4 + $0x77] sm:$0x1] }
 0x9b1   : > { %564 = vst.msk [vmem:[#allocation4 + $0x68] sm:$0x3] %vm551_vm0, %v6311_v1  ;;  %566 = vst.msk [vmem:[#allocation4 + $0x78] sm:$0x3] %vm551_vm0, %v6311_v1  ;;  %v3874_v41 = vrot.slane %v3680_v34, 1 }
 0x9b2   : > { %v3339_v0 = vpop.f32.mrf.mxu0  ;;  %3933 = vrot.lane.b32.xlu0 %v7357_v61, %s8322_s2  ;;  %4115 = vrot.lane.b32.xlu1 %v7360_v63, %s8406_s5  ;;  %vm8407_vm0 = vmmov %vm8404_vm1  ;;  %s8336_s2 = smov 55  }
 0x9b4   : > { %v3266_v3 = vpop.f32.mrf.mxu1  ;;  %v5745_v8 = vpop.f32.mrf.mxu0 }
 0x9b5   : > { %v3340_v39 = vadd.f32 %v3339_v0, %v3266_v3  ;;  %v3821_v8 = vsel %vm938_vm9, %v3820_v53, %v3819_v52 }
 0x9b6   : > { %v5738_v10 = vpop.f32.mrf.mxu1  ;;  %3986 = vrot.lane.b32.xlu1 %v7357_v61, %s8324_s21  ;;  %s8338_s21 = smov 54  }
 0x9b7   : > { %v3343_v11 = vadd.f32 %v3340_v39, %v7257_v57  ;;  %v3824_v39 = vrot.slane %v3664_v51, 1  ;;  %v3622_v10 = vld [vmem:[#allocation4 + $0x50] sm:$0x1] }
 0x9b9   : > { %v3344_v12 = vmax.f32 %v3343_v11, 0.0  ;;  %v3695_v11 = vrot.slane %v3621_v55, 4 }
 0x9bb   : > { %v3353_v57 = vrot.slane %v3344_v12, %v6867_v44  ;;  %v3346_v13 = vcombine.high %v3344_v12, %v3344_v12 }
 0x9bd   : > { %v3361_v49 = vcombine.high %v3353_v57, %v3353_v57  ;;  %v3369_v14 = vrot.slane %v3353_v57, %v6867_v44  ;;  %v3360_v15 = vrot.slane %v3346_v13, %v6867_v44  ;;  %v3823_v57 = vsel %vm941_vm10, %v3822_v60, %v3821_v8 }
 0x9bf   : > { %v3383_v16 = vrot.slane %v3361_v49, %v6867_v44  ;;  %v3398_v18 = vrot.slane %v3369_v14, %v6871_v48  ;;  %v3376_v19 = vrot.slane %v3360_v15, %v6867_v44  ;;  %v3391_v20 = vcombine.high %v3369_v14, %v3369_v14  ;;  %v3623_v14 = vld [vmem:[#allocation4 + $0x60] sm:$0x1] }
 0x9c0   : > { %v3362_v24 = vcombine.high %v3360_v15, %v3360_v15  ;;  %v7433_v49 = vsel %vm8404_vm1, %v3824_v39, %v3823_v57  ;;  %v3697_v15 = vrot.slane %v3622_v10, 3  ;;  %vm8409_vm1 = vmmov %vm8407_vm0 }
 0x9c1   : > { %3459 = vrot.lane.b32.xlu0 %v3398_v18, %s6313_s26  ;;  %3427 = vrot.lane.b32.xlu1 %v3398_v18, %s6318_s22  ;;  %v3402_v56 = vrot.slane %v3383_v16, %v6871_v48  ;;  %v3414_v21 = vrot.slane %v3376_v19, %v6871_v48  ;;  %v3406_v22 = vrot.slane %v3391_v20, %v6871_v48 }
 0x9c2   : > { %v3393_v23 = vcombine.high %v3383_v16, %v3383_v16  ;;  %v3392_v26 = vcombine.high %v3376_v19, %v3376_v19  ;;  %v3390_v28 = vrot.slane %v3362_v24, %v6867_v44  ;;  %v3618_v44 = vld [vmem:[#allocation4 + $0x10] sm:$0x1] }
 0x9c3   : > { %v3689_v40 = vrot.slane %v3618_v44, 7  ;;  %v3624_v19 = vld [vmem:[#allocation4 + $0x70] sm:$0x1] }
 0x9c4   : > { %v3410_v25 = vrot.slane %v3393_v23, %v6871_v48  ;;  %v3422_v27 = vrot.slane %v3392_v26, %v6871_v48  ;;  %v3418_v29 = vrot.slane %v3390_v28, %v6871_v48  ;;  %v3394_v0 = vcombine.high %v3390_v28, %v3390_v28  ;;  %v3676_v23 = vld [vmem:[#allocation4 + $0x37] sm:$0x1]  ;;  %v3673_v26 = vld [vmem:[#allocation4 + $0x7] sm:$0x1] }
 0x9c5   : > { %3491 = vrot.lane.b32.xlu1 %v3398_v18, %s6322_s14  ;;  %3429 = vrot.lane.b32.xlu0 %v3402_v56, %s6318_s22  ;;  %v3690_v50 = vsel %vm926_vm5, %v3689_v40, %v3617_v42  ;;  %v3701_v24 = vrot.slane %v3624_v19, 1 }
 0x9c6   : > { %v3692_v3 = vsel %vm929_vm6, %v3691_v47, %v3690_v50  ;;  %v3426_v13 = vrot.slane %v3394_v0, %v6871_v48 }
 0x9c7   : > { %v3694_v12 = vsel %vm932_vm7, %v3693_v59, %v3692_v3 }
 0x9c8   : > { %v3696_v16 = vsel %vm935_vm8, %v3695_v11, %v3694_v12 }
 0x9c9   : > { %3523 = vrot.lane.b32.xlu1 %v3398_v18, %s8403_s18  ;;  %3435 = vrot.lane.b32.xlu0 %v3414_v21, %s6318_s22  ;;  %v3674_v18 = vld [vmem:[#allocation4 + $0x17] sm:$0x1]  ;;  %v3698_v20 = vsel %vm938_vm9, %v3697_v15, %v3696_v16 }
 0x9cd   : > { %3431 = vrot.lane.b32.xlu1 %v3406_v22, %s6318_s22  ;;  %3493 = vrot.lane.b32.xlu0 %v3402_v56, %s6322_s14 }
 0x9d1   : > { %3461 = vrot.lane.b32.xlu1 %v3402_v56, %s6313_s26  ;;  %3495 = vrot.lane.b32.xlu0 %v3406_v22, %s6322_s14 }
 0x9d5   : > { %3463 = vrot.lane.b32.xlu1 %v3406_v22, %s6313_s26  ;;  %3527 = vrot.lane.b32.xlu0 %v3406_v22, %s8403_s18  ;;  %v3862_v22 = vrot.slane %v3674_v18, 7 }
 0x9d7   : > { %v3863_v28 = vsel %vm926_vm5, %v3862_v22, %v3673_v26 }
 0x9d9   : > { %3467 = vrot.lane.b32.xlu1 %v3414_v21, %s6313_s26  ;;  %3531 = vrot.lane.b32.xlu0 %v3414_v21, %s8403_s18 }
 0x9dd   : > { %3525 = vrot.lane.b32.xlu1 %v3402_v56, %s8403_s18  ;;  %3433 = vrot.lane.b32.xlu0 %v3410_v25, %s6318_s22  ;;  %v3699_v56 = vrot.slane %v3623_v14, 2 }
 0x9e1   : > { %3499 = vrot.lane.b32.xlu1 %v3414_v21, %s6322_s14  ;;  %3439 = vrot.lane.b32.xlu0 %v3422_v27, %s6318_s22  ;;  %v3675_v21 = vld [vmem:[#allocation4 + $0x27] sm:$0x1] }
 0x9e5   : > { %3469 = vrot.lane.b32.xlu0 %v3418_v29, %s6313_s26  ;;  %3437 = vrot.lane.b32.xlu1 %v3418_v29, %s6318_s22 }
 0x9e9   : > { %3497 = vrot.lane.b32.xlu0 %v3410_v25, %s6322_s14  ;;  %3465 = vrot.lane.b32.xlu1 %v3410_v25, %s6313_s26 }
 0x9ed   : > { %3471 = vrot.lane.b32.xlu0 %v3422_v27, %s6313_s26  ;;  %3503 = vrot.lane.b32.xlu1 %v3422_v27, %s6322_s14 }
 0x9f1   : > { %3501 = vrot.lane.b32.xlu0 %v3418_v29, %s6322_s14  ;;  %3533 = vrot.lane.b32.xlu1 %v3418_v29, %s8403_s18  ;;  %v3866_v29 = vrot.slane %v3676_v23, 5 }
 0x9f5   : > { %3529 = vrot.lane.b32.xlu0 %v3410_v25, %s8403_s18  ;;  %3535 = vrot.lane.b32.xlu1 %v3422_v27, %s8403_s18  ;;  %v3700_v25 = vsel %vm941_vm10, %v3699_v56, %v3698_v20  ;;  %v3864_v27 = vrot.slane %v3675_v21, 6 }
 0x9f6   : > { %v7449_v31 = vsel %vm8407_vm0, %v3701_v24, %v3700_v25 }
 0x9f7   : > { %v3865_v32 = vsel %vm929_vm6, %v3864_v27, %v3863_v28 }
 0x9f8   : > { %v3867_v44 = vsel %vm932_vm7, %v3866_v29, %v3865_v32 }
 0x9f9   : > { %4127 = vrot.lane.b32.xlu0 %v7433_v49, %s8314_s24  ;;  %3441 = vrot.lane.b32.xlu1 %v3426_v13, %s6318_s22  ;;  %s8320_s22 = smov 31   ;;  %v3869_v37 = vsel %vm935_vm8, %v3868_v36, %v3867_v44  ;;  %s8342_s24 = smov 48  }
 0x9fa   : > { %v3871_v40 = vsel %vm938_vm9, %v3870_v35, %v3869_v37 }
 0x9fb   : > { %v3873_v42 = vsel %vm941_vm10, %v3872_v38, %v3871_v40 }
 0x9fc   : > { %v7464_v17 = vsel %vm8409_vm1, %v3874_v41, %v3873_v42  ;;  %vm8410_vm1 = vmmov %vm8407_vm0 }
 0x9fd   : > { %3893 = vrot.lane.b32.xlu0 %v7360_v63, %s8347_s23  ;;  %3473 = vrot.lane.b32.xlu1 %v3426_v13, %s6313_s26  ;;  %s8408_s26 = smov 6  }
 0xa01   : > { %3505 = vrot.lane.b32.xlu0 %v3426_v13, %s6322_s14  ;;  %3992 = vrot.lane.b32.xlu1 %v7433_v49, %s8320_s22  ;;  %s8312_s14 = smov 47   ;;  %s8334_s22 = smov 40  }
 0xa05   : > { %3537 = vrot.lane.b32.xlu0 %v3426_v13, %s8403_s18  ;;  %3890 = vrot.lane.b32.xlu1 %v7449_v31, %s8310_s17  ;;  %s8340_s18 = smov 23   ;;  %s8344_s17 = smov 22  }
 0xa09   : > { %4087 = vrot.lane.b32.xlu0 %v7360_v63, %s8408_s26  ;;  %4084 = vrot.lane.b32.xlu1 %v7449_v31, %s8406_s5 }
 0xa0d   : > { %3998 = vrot.lane.b32.xlu0 %v7464_v17, %s8312_s14  ;;  %3939 = vrot.lane.b32.xlu1 %v7433_v49, %s8318_s16  ;;  %s8330_s14 = smov 39   ;;  %s8326_s16 = smov 24  }
 0xa11   : > { %4133 = vrot.lane.b32.xlu0 %v7464_v17, %s8316_s15  ;;  %3726 = vrot.lane.b32.xlu1 %v7360_v63, %s8345_s29  ;;  %s8328_s15 = smov 38  }
 0xa15   : > { %3899 = vrot.lane.b32.xlu0 %v7357_v61, %s8340_s18  ;;  %4093 = vrot.lane.b32.xlu1 %v7357_v61, %s8344_s17 }
 0xa19   : > { %3905 = vrot.lane.b32.xlu0 %v7433_v49, %s8330_s14  ;;  %3945 = vrot.lane.b32.xlu1 %v7464_v17, %s8342_s24 }
 0xa1d   : > { %4099 = vrot.lane.b32.xlu0 %v7433_v49, %s8328_s15  ;;  %3776 = vrot.lane.b32.xlu1 %v7357_v61, %s8326_s16 }
 0xa20   : > { %v7490_v43 = vpop.permute.xlu1 %3980  ;;  %v7494_v45 = vpop.permute.xlu0 %4121 }
 0xa21   : > { %3826 = vrot.lane.b32.xlu0 %v7433_v49, %s8334_s22  ;;  %3911 = vrot.lane.b32.xlu1 %v7464_v17, %s8336_s2 }
 0xa24   : > { %v7496_v46 = vpop.permute.xlu1 %4115  ;;  %v7498_v47 = vpop.permute.xlu0 %3933 }
 0xa25   : > { %4105 = vrot.lane.b32.xlu0 %v7464_v17, %s8338_s21 }
 0xa28   : > { %v7500_v61 = vpop.permute.xlu1 %3986 }
 0xa33   : > { %v3460_v58 = vpop.permute.xlu0 %3459  ;;  %v3428_v50 = vpop.permute.xlu1 %3427 }
 0xa34   : > { %3483 = vst.msk [vmem:[#allocation4 + $0x4] sm:$0x1] %vm2710_vm2, %v3460_v58  ;;  %3451 = vst.msk [vmem:[#allocation4 + $0x2] sm:$0x1] %vm2710_vm2, %v3428_v50 }
 0xa37   : > { %v3492_v51 = vpop.permute.xlu1 %3491  ;;  %v3430_v52 = vpop.permute.xlu0 %3429 }
 0xa38   : > { %3515 = vst.msk [vmem:[#allocation4 + $0x6] sm:$0x1] %vm2710_vm2, %v3492_v51  ;;  %3452 = vst.msk [vmem:[#allocation4 + $0x12] sm:$0x1] %vm2710_vm2, %v3430_v52 }
 0xa3b   : > { %v3524_v53 = vpop.permute.xlu1 %3523  ;;  %v3436_v55 = vpop.permute.xlu0 %3435  ;;  %v3633_v34 = vld [vmem:[#allocation4 + $0x2] sm:$0x1]  ;;  %v3649_v58 = vld [vmem:[#allocation4 + $0x4] sm:$0x1] }
 0xa3c   : > { %3547 = vst.msk [vmem:[#allocation4 + $0x8] sm:$0x1] %vm2710_vm2, %v3524_v53  ;;  %3455 = vst.msk [vmem:[#allocation4 + $0x42] sm:$0x1] %vm2710_vm2, %v3436_v55 }
 0xa3f   : > { %v3432_v59 = vpop.permute.xlu1 %3431  ;;  %v3494_v60 = vpop.permute.xlu0 %3493  ;;  %v3634_v22 = vld [vmem:[#allocation4 + $0x12] sm:$0x1] }
 0xa40   : > { %3453 = vst.msk [vmem:[#allocation4 + $0x22] sm:$0x1] %vm2710_vm2, %v3432_v59  ;;  %3516 = vst.msk [vmem:[#allocation4 + $0x16] sm:$0x1] %vm2710_vm2, %v3494_v60  ;;  %v3737_v28 = vrot.slane %v3634_v22, 7 }
 0xa42   : > { %v3738_v40 = vsel %vm926_vm5, %v3737_v28, %v3633_v34 }
 0xa43   : > { %v3462_v0 = vpop.permute.xlu1 %3461  ;;  %v3496_v3 = vpop.permute.xlu0 %3495  ;;  %v3637_v38 = vld [vmem:[#allocation4 + $0x42] sm:$0x1] }
 0xa44   : > { %3484 = vst.msk [vmem:[#allocation4 + $0x14] sm:$0x1] %vm2710_vm2, %v3462_v0  ;;  %3517 = vst.msk [vmem:[#allocation4 + $0x26] sm:$0x1] %vm2710_vm2, %v3496_v3  ;;  %v3743_v60 = vrot.slane %v3637_v38, 4 }
 0xa47   : > { %v3464_v8 = vpop.permute.xlu1 %3463  ;;  %v3528_v39 = vpop.permute.xlu0 %3527  ;;  %v3635_v23 = vld [vmem:[#allocation4 + $0x22] sm:$0x1] }
 0xa48   : > { %3485 = vst.msk [vmem:[#allocation4 + $0x24] sm:$0x1] %vm2710_vm2, %v3464_v8  ;;  %3549 = vst.msk [vmem:[#allocation4 + $0x28] sm:$0x1] %vm2710_vm2, %v3528_v39  ;;  %v3739_v30 = vrot.slane %v3635_v23, 6 }
 0xa4a   : > { %v3740_v42 = vsel %vm929_vm6, %v3739_v30, %v3738_v40 }
 0xa4b   : > { %v3468_v10 = vpop.permute.xlu1 %3467  ;;  %v3532_v11 = vpop.permute.xlu0 %3531  ;;  %v3650_v27 = vld [vmem:[#allocation4 + $0x14] sm:$0x1] }
 0xa4c   : > { %3487 = vst.msk [vmem:[#allocation4 + $0x44] sm:$0x1] %vm2710_vm2, %v3468_v10  ;;  %3551 = vst.msk [vmem:[#allocation4 + $0x48] sm:$0x1] %vm2710_vm2, %v3532_v11  ;;  %v3787_v33 = vrot.slane %v3650_v27, 7 }
 0xa4e   : > { %v3788_v53 = vsel %vm926_vm5, %v3787_v33, %v3649_v58 }
 0xa4f   : > { %v3526_v12 = vpop.permute.xlu1 %3525  ;;  %v3434_v57 = vpop.permute.xlu0 %3433  ;;  %v3651_v29 = vld [vmem:[#allocation4 + $0x24] sm:$0x1] }
 0xa50   : > { %3548 = vst.msk [vmem:[#allocation4 + $0x18] sm:$0x1] %vm2710_vm2, %v3526_v12  ;;  %3454 = vst.msk [vmem:[#allocation4 + $0x32] sm:$0x1] %vm2710_vm2, %v3434_v57  ;;  %v3789_v37 = vrot.slane %v3651_v29, 6 }
 0xa51   : > { %v3666_v12 = vld [vmem:[#allocation4 + $0x16] sm:$0x1] }
 0xa52   : > { %v3790_v0 = vsel %vm929_vm6, %v3789_v37, %v3788_v53  ;;  %v3921_v53 = vld [vmem:[#allocation4 + $0x8] sm:$0x1] }
 0xa53   : > { %v3500_v13 = vpop.permute.xlu1 %3499  ;;  %v3440_v49 = vpop.permute.xlu0 %3439  ;;  %v3653_v52 = vld [vmem:[#allocation4 + $0x44] sm:$0x1] }
 0xa54   : > { %3519 = vst.msk [vmem:[#allocation4 + $0x46] sm:$0x1] %vm2710_vm2, %v3500_v13  ;;  %3457 = vst.msk [vmem:[#allocation4 + $0x62] sm:$0x1] %vm2710_vm2, %v3440_v49  ;;  %v3793_v11 = vrot.slane %v3653_v52, 4 }
 0xa55   : > { %v3667_v49 = vld [vmem:[#allocation4 + $0x26] sm:$0x1] }
 0xa57   : > { %v3470_v14 = vpop.permute.xlu0 %3469  ;;  %v3438_v15 = vpop.permute.xlu1 %3437  ;;  %v3636_v26 = vld [vmem:[#allocation4 + $0x32] sm:$0x1] }
 0xa58   : > { %3488 = vst.msk [vmem:[#allocation4 + $0x54] sm:$0x1] %vm2710_vm2, %v3470_v14  ;;  %3456 = vst.msk [vmem:[#allocation4 + $0x52] sm:$0x1] %vm2710_vm2, %v3438_v15  ;;  %v3741_v32 = vrot.slane %v3636_v26, 5 }
 0xa5a   : > { %v3742_v50 = vsel %vm932_vm7, %v3741_v32, %v3740_v42 }
 0xa5b   : > { %v3498_v16 = vpop.permute.xlu0 %3497  ;;  %v3466_v18 = vpop.permute.xlu1 %3465  ;;  %v3639_v3 = vld [vmem:[#allocation4 + $0x62] sm:$0x1]  ;;  %v3744_v39 = vsel %vm935_vm8, %v3743_v60, %v3742_v50  ;;  %v3923_v50 = vld [vmem:[#allocation4 + $0x28] sm:$0x1] }
 0xa5c   : > { %3518 = vst.msk [vmem:[#allocation4 + $0x36] sm:$0x1] %vm2710_vm2, %v3498_v16  ;;  %3486 = vst.msk [vmem:[#allocation4 + $0x34] sm:$0x1] %vm2710_vm2, %v3466_v18  ;;  %v3747_v16 = vrot.slane %v3639_v3, 2 }
 0xa5f   : > { %v3472_v19 = vpop.permute.xlu0 %3471  ;;  %v3504_v56 = vpop.permute.xlu1 %3503  ;;  %v3638_v36 = vld [vmem:[#allocation4 + $0x52] sm:$0x1]  ;;  %v3654_v10 = vld [vmem:[#allocation4 + $0x54] sm:$0x1] }
 0xa60   : > { %3489 = vst.msk [vmem:[#allocation4 + $0x64] sm:$0x1] %vm2710_vm2, %v3472_v19  ;;  %3521 = vst.msk [vmem:[#allocation4 + $0x66] sm:$0x1] %vm2710_vm2, %v3504_v56  ;;  %v3745_v51 = vrot.slane %v3638_v36, 3 }
 0xa62   : > { %v3746_v57 = vsel %vm938_vm9, %v3745_v51, %v3744_v39 }
 0xa63   : > { %v3502_v20 = vpop.permute.xlu0 %3501  ;;  %v3534_v21 = vpop.permute.xlu1 %3533  ;;  %v3652_v7 = vld [vmem:[#allocation4 + $0x34] sm:$0x1]  ;;  %v3668_v19 = vld [vmem:[#allocation4 + $0x36] sm:$0x1]  ;;  %v3748_v22 = vsel %vm941_vm10, %v3747_v16, %v3746_v57 }
 0xa64   : > { %3520 = vst.msk [vmem:[#allocation4 + $0x56] sm:$0x1] %vm2710_vm2, %v3502_v20  ;;  %3552 = vst.msk [vmem:[#allocation4 + $0x58] sm:$0x1] %vm2710_vm2, %v3534_v21  ;;  %v3791_v41 = vrot.slane %v3652_v7, 5  ;;  %v3795_v20 = vrot.slane %v3654_v10, 3 }
 0xa65   : > { %v3837_v21 = vrot.slane %v3666_v12, 7  ;;  %v3841_v28 = vrot.slane %v3668_v19, 5  ;;  %v3665_v7 = vld [vmem:[#allocation4 + $0x6] sm:$0x1] }
 0xa66   : > { %v3792_v8 = vsel %vm932_vm7, %v3791_v41, %v3790_v0 }
 0xa67   : > { %v3530_v24 = vpop.permute.xlu0 %3529  ;;  %v3536_v25 = vpop.permute.xlu1 %3535  ;;  %v3655_v13 = vld [vmem:[#allocation4 + $0x64] sm:$0x1]  ;;  %v3794_v18 = vsel %vm935_vm8, %v3793_v11, %v3792_v8  ;;  %v3838_v34 = vsel %vm926_vm5, %v3837_v21, %v3665_v7  ;;  %v3958_v8 = vrot.slane %v3923_v50, 6  ;;  %v3925_v11 = vld [vmem:[#allocation4 + $0x48] sm:$0x1] }
 0xa68   : > { %3550 = vst.msk [vmem:[#allocation4 + $0x38] sm:$0x1] %vm2710_vm2, %v3530_v24  ;;  %3553 = vst.msk [vmem:[#allocation4 + $0x68] sm:$0x1] %vm2710_vm2, %v3536_v25  ;;  %v3797_v23 = vrot.slane %v3655_v13, 2  ;;  %v3839_v24 = vrot.slane %v3667_v49, 6  ;;  %v3796_v27 = vsel %vm938_vm9, %v3795_v20, %v3794_v18 }
 0xa69   : > { %v3922_v25 = vld [vmem:[#allocation4 + $0x18] sm:$0x1]  ;;  %v4432_v7 = vld [vmem:[#allocation4 + $0x33] sm:$0x1] }
 0xa6a   : > { %v3956_v36 = vrot.slane %v3922_v25, 7  ;;  %v3798_v37 = vsel %vm941_vm10, %v3797_v23, %v3796_v27  ;;  %v3840_v38 = vsel %vm929_vm6, %v3839_v24, %v3838_v34  ;;  %v4430_v27 = vld [vmem:[#allocation4 + $0x13] sm:$0x1]  ;;  %v4414_v34 = vld [vmem:[#allocation4 + $0x11] sm:$0x1]  ;;  %v4537_v50 = vrot.slane %v4432_v7, 5 }
 0xa6b   : > { %v7530_v44 = vpop.permute.xlu0 %4127  ;;  %v3442_v35 = vpop.permute.xlu1 %3441  ;;  %v3670_v32 = vld [vmem:[#allocation4 + $0x56] sm:$0x1]  ;;  %v3842_v42 = vsel %vm932_vm7, %v3841_v28, %v3840_v38  ;;  %v4446_v28 = vld [vmem:[#allocation4 + $0x15] sm:$0x1]  ;;  %v4451_v7 = vld [vmem:[#allocation4 + $0x65] sm:$0x1] }
 0xa6c   : > { %3458 = vst.msk [vmem:[#allocation4 + $0x72] sm:$0x1] %vm2710_vm2, %v3442_v35  ;;  %v3669_v35 = vld [vmem:[#allocation4 + $0x46] sm:$0x1]  ;;  %v3845_v58 = vrot.slane %v3670_v32, 3  ;;  %v3957_v60 = vsel %vm926_vm5, %v3956_v36, %v3921_v53 }
 0xa6d   : > { %v3843_v52 = vrot.slane %v3669_v35, 4  ;;  %v3959_v57 = vsel %vm929_vm6, %v3958_v8, %v3957_v60  ;;  %v4448_v32 = vld [vmem:[#allocation4 + $0x35] sm:$0x1]  ;;  %v4583_v35 = vrot.slane %v4446_v28, 7  ;;  %v4434_v53 = vld [vmem:[#allocation4 + $0x53] sm:$0x1] }
 0xa6e   : > { %v4485_v60 = vrot.slane %v4414_v34, 7  ;;  %v4449_v8 = vld [vmem:[#allocation4 + $0x45] sm:$0x1] }
 0xa6f   : > { %v7537_v55 = vpop.permute.xlu0 %3893  ;;  %v3474_v59 = vpop.permute.xlu1 %3473  ;;  %v3924_v40 = vld [vmem:[#allocation4 + $0x38] sm:$0x1]  ;;  %v3844_v3 = vsel %vm935_vm8, %v3843_v52, %v3842_v42  ;;  %v7589_v42 = vld [vmem:[#allocation4 + $0x41] sm:$0x1]  ;;  %v4462_v52 = vld [vmem:[#allocation4 + $0x17] sm:$0x1] }
 0xa70   : > { %3490 = vst.msk [vmem:[#allocation4 + $0x74] sm:$0x1] %vm2710_vm2, %v3474_v59  ;;  %v3671_v59 = vld [vmem:[#allocation4 + $0x66] sm:$0x1]  ;;  %v3960_v0 = vrot.slane %v3924_v40, 5  ;;  %v3846_v39 = vsel %vm938_vm9, %v3845_v58, %v3844_v3 }
 0xa71   : > { %v3847_v12 = vrot.slane %v3671_v59, 2  ;;  %v4415_v40 = vld [vmem:[#allocation4 + $0x21] sm:$0x1]  ;;  %v4433_v58 = vld [vmem:[#allocation4 + $0x43] sm:$0x1] }
 0xa72   : > { %v3961_v13 = vsel %vm932_vm7, %v3960_v0, %v3959_v57  ;;  %v4416_v59 = vld [vmem:[#allocation4 + $0x31] sm:$0x1]  ;;  %v4435_v0 = vld [vmem:[#allocation4 + $0x63] sm:$0x1] }
 0xa73   : > { %v3506_v14 = vpop.permute.xlu0 %3505  ;;  %v3640_v15 = vld [vmem:[#allocation4 + $0x72] sm:$0x1]  ;;  %v3848_v49 = vsel %vm941_vm10, %v3847_v12, %v3846_v39  ;;  %v4413_v39 = vld [vmem:[#allocation4 + $0x1] sm:$0x1]  ;;  %v4436_v12 = vld [vmem:[#allocation4 + $0x73] sm:$0x1] }
 0xa74   : > { %3522 = vst.msk [vmem:[#allocation4 + $0x76] sm:$0x1] %vm2710_vm2, %v3506_v14  ;;  %v3749_v56 = vrot.slane %v3640_v15, 1  ;;  %v3926_v14 = vld [vmem:[#allocation4 + $0x58] sm:$0x1]  ;;  %v3962_v15 = vrot.slane %v3925_v11, 4  ;;  %v4486_v28 = vsel %vm926_vm5, %v4485_v60, %v4413_v39 }
 0xa75   : > { %v3964_v20 = vrot.slane %v3926_v14, 3  ;;  %v4491_v11 = vrot.slane %v7589_v42, 4  ;;  %v4633_v14 = vrot.slane %v4462_v52, 7  ;;  %v4593_v52 = vrot.slane %v4451_v7, 2  ;;  %v4420_v39 = vld [vmem:[#allocation4 + $0x71] sm:$0x1] }
 0xa76   : > { %v3750_v26 = vsel %vm8407_vm0, %v3749_v56, %v3748_v22  ;;  %v3963_v19 = vsel %vm935_vm8, %v3962_v15, %v3961_v13  ;;  %v3927_v56 = vld [vmem:[#allocation4 + $0x68] sm:$0x1]  ;;  %v4539_v13 = vrot.slane %v4433_v58, 4  ;;  %v4714_v15 = vld [vmem:[#allocation4 + $0x19] sm:$0x1] }
 0xa77   : > { %v3538_v29 = vpop.permute.xlu0 %3537  ;;  %3930 = vrot.lane.b32.xlu1 %v3750_v26, %s8345_s29  ;;  %3983 = vrot.lane.b32.xlu0 %v3750_v26, %s8347_s23  ;;  %v3656_v30 = vld [vmem:[#allocation4 + $0x74] sm:$0x1]  ;;  %v3965_v21 = vsel %vm938_vm9, %v3964_v20, %v3963_v19  ;;  %v3966_v23 = vrot.slane %v3927_v56, 2  ;;  %v4541_v19 = vrot.slane %v4434_v53, 3  ;;  %v4418_v20 = vld [vmem:[#allocation4 + $0x51] sm:$0x1] }
 0xa78   : > { %3554 = vst.msk [vmem:[#allocation4 + $0x78] sm:$0x1] %vm2710_vm2, %v3538_v29  ;;  %v3799_v33 = vrot.slane %v3656_v30, 1  ;;  %vm8411_vm2 = vmmov %vm8407_vm0  ;;  %v4431_v29 = vld [vmem:[#allocation4 + $0x23] sm:$0x1] }
 0xa79   : > { %v3967_v24 = vsel %vm941_vm10, %v3966_v23, %v3965_v21  ;;  %v4447_v30 = vld [vmem:[#allocation4 + $0x25] sm:$0x1]  ;;  %v4535_v36 = vrot.slane %v4431_v29, 6  ;;  %v4489_v21 = vrot.slane %v4416_v59, 5  ;;  %v4463_v23 = vld [vmem:[#allocation4 + $0x27] sm:$0x1] }
 0xa7a   : > { %v3800_v41 = vsel %vm8410_vm1, %v3799_v33, %v3798_v37  ;;  %v4533_v33 = vrot.slane %v4430_v27, 7  ;;  %v4445_v37 = vld [vmem:[#allocation4 + $0x5] sm:$0x1]  ;;  %v4585_v38 = vrot.slane %v4447_v30, 6  ;;  %v4589_v27 = vrot.slane %v4449_v8, 4  ;;  %vm8419_vm1 = vmmov %vm8407_vm0 }
 0xa7b   : > { %4118 = vrot.lane.b32.xlu0 %v3750_v26, %s8408_s26  ;;  %4124 = vrot.lane.b32.xlu1 %v3800_v41, %s8344_s17  ;;  %v3672_v51 = vld [vmem:[#allocation4 + $0x76] sm:$0x1]  ;;  %v4464_v29 = vld [vmem:[#allocation4 + $0x37] sm:$0x1]  ;;  %v4545_v30 = vrot.slane %v4436_v12, 1 }
 0xa7c   : > { %v3849_v10 = vrot.slane %v3672_v51, 1  ;;  %v4587_v51 = vrot.slane %v4448_v32, 5  ;;  %v4637_v53 = vrot.slane %v4464_v29, 5  ;;  %v4419_v8 = vld [vmem:[#allocation4 + $0x61] sm:$0x1] }
 0xa7e   : > { %v7568_v16 = vsel %vm8411_vm2, %v3849_v10, %v3848_v49  ;;  %v4487_v10 = vrot.slane %v4415_v40, 6  ;;  %v4713_v40 = vld [vmem:[#allocation4 + $0x9] sm:$0x1]  ;;  %vm8420_vm2 = vmmov %vm8407_vm0 }
 0xa7f   : > { %3936 = vrot.lane.b32.xlu1 %v3800_v41, %s8326_s16  ;;  %3989 = vrot.lane.b32.xlu0 %v3800_v41, %s8340_s18  ;;  %v3928_v18 = vld [vmem:[#allocation4 + $0x78] sm:$0x1]  ;;  %s8412_s16 = smov 15   ;;  %s8418_s18 = smov 47  }
 0xa80   : > { %v3968_v22 = vrot.slane %v3928_v18, 1  ;;  %v4488_v32 = vsel %vm929_vm6, %v4487_v10, %v4486_v28  ;;  %v4466_v10 = vld [vmem:[#allocation4 + $0x57] sm:$0x1] }
 0xa82   : > { %v3969_v25 = vsel %vm8407_vm0, %v3968_v22, %v3967_v24  ;;  %v4461_v22 = vld [vmem:[#allocation4 + $0x7] sm:$0x1]  ;;  %v4543_v24 = vrot.slane %v4435_v0, 2 }
 0xa83   : > { %4130 = vrot.lane.b32.xlu1 %v7568_v16, %s8328_s15  ;;  %3995 = vrot.lane.b32.xlu0 %v7568_v16, %s8330_s14  ;;  %s8413_s15 = smov 16   ;;  %s8348_s14 = smov 56  }
 0xa87   : > { %4090 = vrot.lane.b32.xlu1 %v3750_v26, %s8332_s25  ;;  %3896 = vrot.lane.b32.xlu0 %v3750_v26, %s8412_s16  ;;  %s8414_s25 = smov 31  }
 0xa8b   : > { %3942 = vrot.lane.b32.xlu1 %v7568_v16, %s8334_s22  ;;  %4001 = vrot.lane.b32.xlu0 %v3969_v25, %s8336_s2  ;;  %s8415_s22 = smov 32   ;;  %s8416_s2 = smov 30  }
 0xa8f   : > { %3751 = vrot.lane.b32.xlu1 %v3750_v26, %s8413_s15  ;;  %4136 = vrot.lane.b32.xlu0 %v3969_v25, %s8338_s21  ;;  %v4429_v26 = vld [vmem:[#allocation4 + $0x3] sm:$0x1]  ;;  %s8417_s21 = smov 46  }
 0xa90   : > { %v4534_v3 = vsel %vm926_vm5, %v4533_v33, %v4429_v26  ;;  %v4715_v33 = vld [vmem:[#allocation4 + $0x29] sm:$0x1]  ;;  %v4452_v26 = vld [vmem:[#allocation4 + $0x75] sm:$0x1] }
 0xa91   : > { %v4536_v57 = vsel %vm929_vm6, %v4535_v36, %v4534_v3  ;;  %v4750_v59 = vrot.slane %v4715_v33, 6  ;;  %v4595_v3 = vrot.slane %v4452_v26, 1  ;;  %v4719_v26 = vld [vmem:[#allocation4 + $0x69] sm:$0x1] }
 0xa92   : > { %v4538_v18 = vsel %vm932_vm7, %v4537_v50, %v4536_v57  ;;  %v4490_v50 = vsel %vm932_vm7, %v4489_v21, %v4488_v32  ;;  %v4465_v57 = vld [vmem:[#allocation4 + $0x47] sm:$0x1]  ;;  %v4497_v21 = vrot.slane %v4420_v39, 1 }
 0xa93   : > { %3970 = vrot.lane.b32.xlu1 %v3969_v25, %s8348_s14  ;;  %3902 = vrot.lane.b32.xlu0 %v3800_v41, %s8414_s25  ;;  %v4450_v25 = vld [vmem:[#allocation4 + $0x55] sm:$0x1]  ;;  %v4540_v34 = vsel %vm935_vm8, %v4539_v13, %v4538_v18  ;;  %v4492_v12 = vsel %vm935_vm8, %v4491_v11, %v4490_v50  ;;  %v4641_v11 = vrot.slane %v4466_v10, 3 }
 0xa94   : > { %v4542_v42 = vsel %vm938_vm9, %v4541_v19, %v4540_v34  ;;  %v4591_v58 = vrot.slane %v4450_v25, 3  ;;  %v4495_v19 = vrot.slane %v4419_v8, 2  ;;  %v4639_v25 = vrot.slane %v4465_v57, 4  ;;  %v4441_v57 = vld [vmem:[#allocation4 + $0x44] sm:$0x1] }
 0xa97   : > { %3801 = vrot.lane.b32.xlu1 %v3800_v41, %s8415_s22  ;;  %4096 = vrot.lane.b32.xlu0 %v3800_v41, %s8416_s2  ;;  %v4584_v41 = vsel %vm926_vm5, %v4583_v35, %v4445_v37  ;;  %v4748_v35 = vrot.slane %v4714_v15, 7  ;;  %v4634_v37 = vsel %vm926_vm5, %v4633_v14, %v4461_v22  ;;  %v4467_v22 = vld [vmem:[#allocation4 + $0x67] sm:$0x1] }
 0xa98   : > { %v4586_v49 = vsel %vm929_vm6, %v4585_v38, %v4584_v41  ;;  %v4635_v38 = vrot.slane %v4463_v23, 6  ;;  %v4643_v32 = vrot.slane %v4467_v22, 2  ;;  %v4564_v22 = vrot.slane %v4441_v57, 4 }
 0xa99   : > { %v4588_v56 = vsel %vm932_vm7, %v4587_v51, %v4586_v49  ;;  %v4493_v51 = vrot.slane %v4418_v20, 3  ;;  %v4749_v41 = vsel %vm926_vm5, %v4748_v35, %v4713_v40  ;;  %v4717_v49 = vld [vmem:[#allocation4 + $0x49] sm:$0x1]  ;;  %v4720_v40 = vld [vmem:[#allocation4 + $0x79] sm:$0x1] }
 0xa9a   : > { %v4590_v36 = vsel %vm935_vm8, %v4589_v27, %v4588_v56  ;;  %v4636_v13 = vsel %vm929_vm6, %v4635_v38, %v4634_v37  ;;  %v4751_v56 = vsel %vm929_vm6, %v4750_v59, %v4749_v41  ;;  %v4718_v27 = vld [vmem:[#allocation4 + $0x59] sm:$0x1]  ;;  %v4754_v28 = vrot.slane %v4717_v49, 4  ;;  %v4439_v59 = vld [vmem:[#allocation4 + $0x24] sm:$0x1]  ;;  %v7670_v41 = vpop.permute.xlu0 %4087 }
 0xa9b   : > { %4102 = vrot.lane.b32.xlu1 %v7568_v16, %s8417_s21  ;;  %3908 = vrot.lane.b32.xlu0 %v7568_v16, %s8418_s18  ;;  %v4592_v0 = vsel %vm938_vm9, %v4591_v58, %v4590_v36  ;;  %v4494_v18 = vsel %vm938_vm9, %v4493_v51, %v4492_v12  ;;  %v4638_v23 = vsel %vm932_vm7, %v4637_v53, %v4636_v13  ;;  %v4756_v36 = vrot.slane %v4718_v27, 3  ;;  %v7663_v53 = vpop.permute.xlu1 %3992  ;;  %v4437_v12 = vld [vmem:[#allocation4 + $0x4] sm:$0x1]  ;;  %v4444_v27 = vld [vmem:[#allocation4 + $0x74] sm:$0x1] }
 0xa9c   : > { %v4594_v15 = vsel %vm941_vm10, %v4593_v52, %v4592_v0  ;;  %v4640_v7 = vsel %vm935_vm8, %v4639_v25, %v4638_v23  ;;  %v4760_v51 = vrot.slane %v4720_v40, 1  ;;  %v4440_v0 = vld [vmem:[#allocation4 + $0x34] sm:$0x1]  ;;  %v4560_v39 = vrot.slane %v4439_v59, 6  ;;  %v4454_v23 = vld [vmem:[#allocation4 + $0x16] sm:$0x1] }
 0xa9d   : > { %v7629_v20 = vsel %vm8420_vm2, %v4595_v3, %v4594_v15  ;;  %v4642_v35 = vsel %vm938_vm9, %v4641_v11, %v4640_v7  ;;  %vm8426_vm2 = vmmov %vm8407_vm0  ;;  %v4562_v10 = vrot.slane %v4440_v0, 5  ;;  %v4422_v15 = vld [vmem:[#allocation4 + $0x12] sm:$0x1]  ;;  %v4443_v11 = vld [vmem:[#allocation4 + $0x64] sm:$0x1] }
 0xa9e   : > { %v4644_v38 = vsel %vm941_vm10, %v4643_v32, %v4642_v35  ;;  %v4455_v25 = vld [vmem:[#allocation4 + $0x26] sm:$0x1]  ;;  %v4608_v35 = vrot.slane %v4454_v23, 7  ;;  %v4421_v40 = vld [vmem:[#allocation4 + $0x2] sm:$0x1] }
 0xa9f   : > { %3851 = vrot.lane.b32.xlu1 %v7568_v16, %s8342_s24  ;;  %3876 = vrot.lane.b32.xlu0 %v7464_v17, %s8348_s14  ;;  %v4544_v16 = vsel %vm941_vm10, %v4543_v24, %v4542_v42  ;;  %v4716_v17 = vld [vmem:[#allocation4 + $0x39] sm:$0x1]  ;;  %v4468_v24 = vld [vmem:[#allocation4 + $0x77] sm:$0x1]  ;;  %s8421_s24 = smov 127   ;;  %v4758_v42 = vrot.slane %v4719_v26, 2  ;;  %v7668_v8 = vpop.permute.xlu1 %3890 }
 0xaa0   : > { %v7615_v60 = vsel %vm8419_vm1, %v4545_v30, %v4544_v16  ;;  %v4752_v14 = vrot.slane %v4716_v17, 5  ;;  %v4496_v30 = vsel %vm941_vm10, %v4495_v19, %v4494_v18  ;;  %v4645_v34 = vrot.slane %v4468_v24, 1  ;;  %vm8423_vm1 = vmmov %vm8407_vm0  ;;  %s8427_s14 = smov 38   ;;  %v4438_v17 = vld [vmem:[#allocation4 + $0x14] sm:$0x1] }
 0xaa1   : > { %v7640_v33 = vsel %vm8407_vm0, %v4497_v21, %v4496_v30  ;;  %v4558_v3 = vrot.slane %v4438_v17, 7  ;;  %v4423_v18 = vld [vmem:[#allocation4 + $0x22] sm:$0x1]  ;;  %v4442_v21 = vld [vmem:[#allocation4 + $0x54] sm:$0x1] }
 0xaa2   : > { %v4753_v29 = vsel %vm932_vm7, %v4752_v14, %v4751_v56  ;;  %v7650_v58 = vsel %vm8423_vm1, %v4645_v34, %v4644_v38  ;;  %v7684_v56 = vpop.permute.xlu0 %3998  ;;  %v4424_v24 = vld [vmem:[#allocation4 + $0x32] sm:$0x1]  ;;  %v4456_v30 = vld [vmem:[#allocation4 + $0x36] sm:$0x1]  ;;  %v4566_v7 = vrot.slane %v4442_v21, 3  ;;  %v4510_v32 = vrot.slane %v4423_v18, 6  ;;  %vm8433_vm1 = vmmov %vm8407_vm0 }
 0xaa3   : > { %4722 = vrot.lane.b32.xlu1 %v7615_v60, %s8345_s29  ;;  %4775 = vrot.lane.b32.xlu0 %v7615_v60, %s8347_s23  ;;  %v4755_v37 = vsel %vm935_vm8, %v4754_v28, %v4753_v29  ;;  %s8424_s29 = smov 24   ;;  %s8425_s23 = smov 39   ;;  %v4559_v13 = vsel %vm926_vm5, %v4558_v3, %v4437_v12  ;;  %v7682_v19 = vpop.permute.xlu1 %4084  ;;  %v4508_v29 = vrot.slane %v4422_v15, 7  ;;  %v4568_v34 = vrot.slane %v4443_v11, 2  ;;  %v4453_v17 = vld [vmem:[#allocation4 + $0x6] sm:$0x1] }
 0xaa4   : > { %v4757_v50 = vsel %vm938_vm9, %v4756_v36, %v4755_v37  ;;  %v4561_v49 = vsel %vm929_vm6, %v4560_v39, %v4559_v13  ;;  %v4512_v26 = vrot.slane %v4424_v24, 5  ;;  %v4610_v36 = vrot.slane %v4455_v25, 6  ;;  %v4458_v59 = vld [vmem:[#allocation4 + $0x56] sm:$0x1]  ;;  %v4425_v0 = vld [vmem:[#allocation4 + $0x42] sm:$0x1] }
 0xaa5   : > { %v4759_v16 = vsel %vm941_vm10, %v4758_v42, %v4757_v50  ;;  %v4563_v14 = vsel %vm932_vm7, %v4562_v10, %v4561_v49  ;;  %v4570_v38 = vrot.slane %v4444_v27, 1  ;;  %v4612_v42 = vrot.slane %v4456_v30, 5  ;;  %v4457_v39 = vld [vmem:[#allocation4 + $0x46] sm:$0x1]  ;;  %v4470_v13 = vld [vmem:[#allocation4 + $0x18] sm:$0x1] }
 0xaa6   : > { %v4761_v52 = vsel %vm8426_vm2, %v4760_v51, %v4759_v16  ;;  %v4565_v28 = vsel %vm935_vm8, %v4564_v22, %v4563_v14  ;;  %v7694_v50 = vpop.permute.xlu0 %4133  ;;  %v4426_v51 = vld [vmem:[#allocation4 + $0x52] sm:$0x1]  ;;  %v4509_v16 = vsel %vm926_vm5, %v4508_v29, %v4421_v40  ;;  %v4609_v10 = vsel %vm926_vm5, %v4608_v35, %v4453_v17  ;;  %v4460_v23 = vld [vmem:[#allocation4 + $0x76] sm:$0x1]  ;;  %v4427_v24 = vld [vmem:[#allocation4 + $0x62] sm:$0x1] }
 0xaa7   : > { %4916 = vrot.lane.b32.xlu1 %v7629_v20, %s8344_s17  ;;  %4910 = vrot.lane.b32.xlu0 %v7615_v60, %s8408_s26  ;;  %s8422_s17 = smov 23   ;;  %v4567_v37 = vsel %vm938_vm9, %v4566_v7, %v4565_v28  ;;  %v4511_v3 = vsel %vm929_vm6, %v4510_v32, %v4509_v16  ;;  %v4516_v14 = vrot.slane %v4426_v51, 3  ;;  %v4616_v18 = vrot.slane %v4458_v59, 3  ;;  %v4428_v21 = vld [vmem:[#allocation4 + $0x72] sm:$0x1]  ;;  %vm8434_vm2 = vmmov %vm8407_vm0 }
 0xaa8   : > { %v4569_v12 = vsel %vm941_vm10, %v4568_v34, %v4567_v37  ;;  %v4513_v57 = vsel %vm932_vm7, %v4512_v26, %v4511_v3  ;;  %v4514_v22 = vrot.slane %v4425_v0, 4  ;;  %v4614_v11 = vrot.slane %v4457_v39, 4  ;;  %v4459_v25 = vld [vmem:[#allocation4 + $0x66] sm:$0x1]  ;;  %v4472_v32 = vld [vmem:[#allocation4 + $0x38] sm:$0x1] }
 0xaa9   : > { %v7706_v49 = vsel %vm8407_vm0, %v4570_v38, %v4569_v12  ;;  %v4658_v27 = vrot.slane %v4470_v13, 7  ;;  %v4520_v35 = vrot.slane %v4428_v21, 1  ;;  %v4620_v26 = vrot.slane %v4460_v23, 1  ;;  %v4469_v40 = vld [vmem:[#allocation4 + $0x8] sm:$0x1] }
 0xaaa   : > { %v7715_v29 = vpop.permute.xlu0 %3899  ;;  %v4515_v30 = vsel %vm935_vm8, %v4514_v22, %v4513_v57  ;;  %v4518_v37 = vrot.slane %v4427_v24, 2  ;;  %v4618_v38 = vrot.slane %v4459_v25, 2  ;;  %v4662_v51 = vrot.slane %v4472_v32, 5  ;;  %v4473_v39 = vld [vmem:[#allocation4 + $0x48] sm:$0x1] }
 0xaab   : > { %4682 = vrot.lane.b32.xlu1 %v7640_v33, %s8421_s24  ;;  %4781 = vrot.lane.b32.xlu0 %v7629_v20, %s8422_s17  ;;  %v4474_v13 = vld [vmem:[#allocation4 + $0x58] sm:$0x1]  ;;  %v4475_v21 = vld [vmem:[#allocation4 + $0x68] sm:$0x1] }
 0xaac   : > { %v4666_v22 = vrot.slane %v4474_v13, 3 }
 0xaae   : > { %v7734_v12 = vpop.permute.xlu0 %3905 }
 0xaaf   : > { %4728 = vrot.lane.b32.xlu1 %v7629_v20, %s8424_s29  ;;  %4787 = vrot.lane.b32.xlu0 %v7650_v58, %s8425_s23 }
 0xab3   : > { %4876 = vrot.lane.b32.xlu1 %v7640_v33, %s8406_s5  ;;  %4688 = vrot.lane.b32.xlu0 %v7615_v60, %s8412_s16 }
 0xab7   : > { %4922 = vrot.lane.b32.xlu1 %v7650_v58, %s8427_s14  ;;  %4793 = vrot.lane.b32.xlu0 %v4761_v52, %s8428_s0 }
 0xabb   : > { %4882 = vrot.lane.b32.xlu1 %v7615_v60, %s8429_s1  ;;  %4928 = vrot.lane.b32.xlu0 %v4761_v52, %s8430_s3 }
 0xabf   : > { %4734 = vrot.lane.b32.xlu1 %v7650_v58, %s8431_s4  ;;  %4694 = vrot.lane.b32.xlu0 %v7629_v20, %s8414_s25 }
 0xac3   : > { %4547 = vrot.lane.b32.xlu1 %v7615_v60, %s8413_s15  ;;  %4888 = vrot.lane.b32.xlu0 %v7629_v20, %s8416_s2  ;;  %v7692_v60 = vpop.permute.xlu1 %3939 }
 0xac7   : > { %4762 = vrot.lane.b32.xlu1 %v4761_v52, %s8432_s6  ;;  %4700 = vrot.lane.b32.xlu0 %v7650_v58, %s8418_s18  ;;  %v4611_v52 = vsel %vm929_vm6, %v4610_v36, %v4609_v10  ;;  %v7713_v28 = vpop.permute.xlu1 %3726  ;;  %v4471_v36 = vld [vmem:[#allocation4 + $0x28] sm:$0x1] }
 0xac8   : > { %v4613_v15 = vsel %vm932_vm7, %v4612_v42, %v4611_v52  ;;  %v4659_v42 = vsel %vm926_vm5, %v4658_v27, %v4469_v40  ;;  %v4660_v59 = vrot.slane %v4471_v36, 6  ;;  %v4668_v27 = vrot.slane %v4475_v21, 2  ;;  %vm8436_vm5 = vmmov %vm8407_vm0 }
 0xac9   : > { %v4615_v7 = vsel %vm935_vm8, %v4614_v11, %v4613_v15  ;;  %v4476_v15 = vld [vmem:[#allocation4 + $0x78] sm:$0x1]  ;;  %v7748_v11 = vpop.permute.xlu0 %4099 }
 0xaca   : > { %v4617_v34 = vsel %vm938_vm9, %v4616_v18, %v4615_v7  ;;  %v4661_v57 = vsel %vm929_vm6, %v4660_v59, %v4659_v42  ;;  %v4670_v25 = vrot.slane %v4476_v15, 1  ;;  %vm3881_vm6 = vcmask 195584  }
 0xacb   : > { %4597 = vrot.lane.b32.xlu1 %v7629_v20, %s8415_s22  ;;  %4913 = vrot.lane.b32.xlu0 %v7706_v49, %s8429_s1  ;;  %v4517_v20 = vsel %vm938_vm9, %v4516_v14, %v4515_v30  ;;  %v4619_v17 = vsel %vm941_vm10, %v4618_v38, %v4617_v34  ;;  %v7732_v10 = vpop.permute.xlu1 %4093  ;;  %v4663_v52 = vsel %vm932_vm7, %v4662_v51, %v4661_v57  ;;  %v4664_v14 = vrot.slane %v4473_v39, 4  ;;  %s8435_s1 = smov 7  }
 0xacc   : > { %v4519_v16 = vsel %vm941_vm10, %v4518_v37, %v4517_v20  ;;  %v4621_v3 = vsel %vm8434_vm2, %v4620_v26, %v4619_v17  ;;  %vm8354_vm7 = vcmask 326656  }
 0xacd   : > { %v7729_v0 = vsel %vm8433_vm1, %v4520_v35, %v4519_v16  ;;  %v4665_v18 = vsel %vm935_vm8, %v4664_v14, %v4663_v52  ;;  %v7759_v20 = vpop.permute.xlu0 %3826  ;;  %vm8352_vm8 = vcmask 392192  }
 0xace   : > { %v4667_v24 = vsel %vm938_vm9, %v4666_v22, %v4665_v18  ;;  %vm8350_vm9 = vcmask 457728  }
 0xacf   : > { %4894 = vrot.lane.b32.xlu1 %v7650_v58, %s8417_s21  ;;  %4725 = vrot.lane.b32.xlu0 %v7706_v49, %s8413_s15  ;;  %v7746_v23 = vpop.permute.xlu1 %3945  ;;  %v4669_v30 = vsel %vm941_vm10, %v4668_v27, %v4667_v24  ;;  %v3914_v27 = vsel %vm2197_vm13, %v7668_v8, %v7537_v55  ;;  %v3568_v55 = vadd.s32 56, %v6766_v54  ;;  %v3879_v8 = vsel %vm2197_vm13, %v7449_v31, %v7713_v28 }
 0xad0   : > { %v4671_v7 = vsel %vm8436_vm5, %v4670_v25, %v4669_v30  ;;  %v3565_v31 = vadd.s32 32, %v6766_v54 }
 0xad1   : > { %v7767_v34 = vpop.permute.xlu0 %4105 }
 0xad3   : > { %4772 = vrot.lane.b32.xlu1 %v7729_v0, %s8421_s24  ;;  %4919 = vrot.lane.b32.xlu0 %v4621_v3, %s8416_s2  ;;  %v7757_v32 = vpop.permute.xlu1 %3776  ;;  %s8437_s2 = smov 8   ;;  %s525_s24 = sand.u32 1, %s6292_s28  }
 0xad7   : > { %4907 = vrot.lane.b32.xlu1 %v7729_v0, %s8406_s5  ;;  %4685 = vrot.lane.b32.xlu0 %v7729_v0, %s8435_s1  ;;  %v7765_v35 = vpop.permute.xlu1 %3911  ;;  %s8438_s5 = smov 22   ;;  %s6362_s1 = smov 64  }
 0xadb   : > { %4778 = vrot.lane.b32.xlu1 %v7706_v49, %s8412_s16  ;;  %4879 = vrot.lane.b32.xlu0 %v7729_v0, %s8408_s26  ;;  %s5354_s26 = sshll.u32 %s525_s24, 4  ;;  %s6361_s16 = smov 112  }
 0xadf   : > { %4784 = vrot.lane.b32.xlu1 %v4621_v3, %s8414_s25  ;;  %4790 = vrot.lane.b32.xlu0 %v4671_v7, %s8418_s18  ;;  %s8439_s25 = smov 48   ;;  %s8182_s18 = scalar_lea.vmem [#allocation18], %s5354_s26 }
 0xae3   : > { %4731 = vrot.lane.b32.xlu1 %v4621_v3, %s8415_s22  ;;  %4925 = vrot.lane.b32.xlu0 %v4671_v7, %s8417_s21 }
 0xae7   : > { %4522 = vrot.lane.b32.xlu1 %v7729_v0, %s8437_s2  ;;  %4691 = vrot.lane.b32.xlu0 %v7706_v49, %s8422_s17 }
 0xae9   : > { %v3984_v26 = vpop.permute.xlu0 %3983  ;;  %v3931_v36 = vpop.permute.xlu1 %3930 }
 0xaea   : > { %v4004_v51 = vsel %vm2197_vm13, %v7490_v43, %v3984_v26 }
 0xaeb   : > { %4885 = vrot.lane.b32.xlu1 %v7706_v49, %s8438_s5  ;;  %4697 = vrot.lane.b32.xlu0 %v4621_v3, %s8425_s23  ;;  %v4005_v17 = vsel %vm2450_vm11, %v4004_v51, %v7500_v61  ;;  %v3973_v61 = vsel %vm2197_vm13, %v7360_v63, %v3931_v36  ;;  %s6363_s5 = smov 80  }
 0xaed   : > { %v4119_v37 = vpop.permute.xlu0 %4118  ;;  %v4125_v38 = vpop.permute.xlu1 %4124 }
 0xaee   : > { %v4139_v16 = vsel %vm2197_vm13, %v7496_v46, %v4119_v37 }
 0xaef   : > { %4737 = vrot.lane.b32.xlu1 %v4671_v7, %s8439_s25  ;;  %4891 = vrot.lane.b32.xlu0 %v4621_v3, %s8427_s14  ;;  %v4140_v52 = vsel %vm2450_vm11, %v4139_v16, %v7494_v45  ;;  %v3974_v45 = vsel %vm2450_vm11, %v3973_v61, %v7498_v47  ;;  %v3564_v61 = vadd.s32 24, %v6766_v54  ;;  %s6360_s14 = smov 96  }
 0xaf1   : > { %v3990_v40 = vpop.permute.xlu0 %3989  ;;  %v3937_v42 = vpop.permute.xlu1 %3936 }
 0xaf2   : > { %v4006_v57 = vsel %vm3881_vm6, %v4005_v17, %v3990_v40  ;;  %v3975_v18 = vsel %vm3881_vm6, %v3974_v45, %v3937_v42  ;;  %v3567_v40 = vadd.s32 48, %v6766_v54  ;;  %v3574_v17 = vmul.u32 2, %v3568_v55 }
 0xaf3   : > { %4572 = vrot.lane.b32.xlu1 %v7706_v49, %s8424_s29  ;;  %4622 = vrot.lane.b32.xlu0 %v4621_v3, %s8431_s4  ;;  %v4007_v43 = vsel %vm8356_vm3, %v4006_v57, %v7663_v53  ;;  %v4141_v3 = vsel %vm3881_vm6, %v4140_v52, %v4125_v38  ;;  %v3976_v47 = vsel %vm8356_vm3, %v3975_v18, %v7692_v60  ;;  %v3563_v45 = vadd.s32 16, %v6766_v54 }
 0xaf4   : > { %v4142_v53 = vsel %vm8356_vm3, %v4141_v3, %v7530_v44  ;;  %v4108_v60 = vsel %vm2197_vm13, %v7682_v19, %v7670_v41  ;;  %v3573_v52 = vmul.u32 2, %v3567_v40  ;;  %vm7872_vm10 = vcmp.eq.s32.totalorder %v6775_v2, %v3574_v17 }
 0xaf5   : > { %v3996_v59 = vpop.permute.xlu0 %3995  ;;  %v4131_v39 = vpop.permute.xlu1 %4130 }
 0xaf6   : > { %v4008_v13 = vsel %vm8354_vm7, %v4007_v43, %v3996_v59  ;;  %v4143_v21 = vsel %vm8354_vm7, %v4142_v53, %v4131_v39  ;;  %v3566_v59 = vadd.s32 40, %v6766_v54  ;;  %v3555_v54 = vld [vmem:[%s8291_s11] sm:$0x1]  ;;  %vm7891_vm1 = vcmp.eq.s32.totalorder %v6775_v2, %v3573_v52 }
 0xaf7   : > { %4703 = vrot.lane.b32.xlu1 %v4671_v7, %s8428_s0  ;;  %4897 = vrot.lane.b32.xlu0 %v4671_v7, %s8430_s3  ;;  %v4009_v63 = vsel %vm8352_vm8, %v4008_v13, %v7684_v56  ;;  %v4144_v44 = vsel %vm8352_vm8, %v4143_v21, %v7694_v50 }
 0xaf8   : > { %v3572_v13 = vmul.u32 2, %v3566_v59 }
 0xaf9   : > { %v3897_v46 = vpop.permute.xlu0 %3896  ;;  %v4091_v49 = vpop.permute.xlu1 %4090 }
 0xafa   : > { %v3915_v26 = vsel %vm2450_vm11, %v3914_v27, %v3897_v46  ;;  %v4109_v36 = vsel %vm2450_vm11, %v4108_v60, %v4091_v49  ;;  %v7885_v21 = vadd.s32 1, %v3572_v13  ;;  %vm7911_vm5 = vcmp.eq.s32.totalorder %v6775_v2, %v3572_v13 }
 0xafb   : > { %4647 = vrot.lane.b32.xlu1 %v7650_v58, %s8439_s25  ;;  %4672 = vrot.lane.b32.xlu0 %v4671_v7, %s8432_s6  ;;  %v3916_v41 = vsel %vm3881_vm6, %v3915_v26, %v7715_v29  ;;  %s6364_s6 = smov [#allocation18]  }
 0xafc   : > { %s6228_s17 = sshll.u32 %s6364_s6, 4  ;;  %s6229_s17 = int_to_ptr.vmem [resolvable:$false] %s6228_s17 }
 0xafd   : > { %v4002_v14 = vpop.permute.xlu0 %4001  ;;  %v3943_v15 = vpop.permute.xlu1 %3942  ;;  %s6230_s29 = scalar_lea.vmem %s6229_s17, 512 }
 0xafe   : > { %v4010_v58 = vsel %vm8350_vm9, %v4009_v63, %v4002_v14  ;;  %v3977_v56 = vsel %vm8354_vm7, %v3976_v47, %v3943_v15  ;;  %v3571_v15 = vmul.u32 2, %v3565_v31 }
 0xaff   : > { %5747 = vmatpush3.msra.mxu1 %v4010_v58  ;;  %v3978_v50 = vsel %vm8352_vm8, %v3977_v56, %v7746_v23  ;;  %v4110_v23 = vsel %vm3881_vm6, %v4109_v36, %v7732_v10  ;;  %v3569_v56 = vmul.u32 2, %v3563_v45  ;;  %v8450_v36 = vmov 0 }
 0xb00   : > { %5748 = vmatprep.subr.mxu1 %v6311_v1 }
 0xb01   : > { %v4137_v22 = vpop.permute.xlu0 %4136  ;;  %v3752_v24 = vpop.permute.xlu1 %3751 }
 0xb02   : > { %v4145_v25 = vsel %vm8350_vm9, %v4144_v44, %v4137_v22  ;;  %v3880_v42 = vsel %vm2450_vm11, %v3879_v8, %v3752_v24  ;;  %v7903_v24 = vadd.s32 1, %v3571_v15 }
 0xb03   : > { %5758 = vmatpush3.msra.mxu0 %v4145_v25  ;;  %v3882_v28 = vsel %vm3881_vm6, %v3880_v42, %v7757_v32 }
 0xb04   : > { %5759 = vmatprep.subr.mxu0 %v6311_v1 }
 0xb05   : > { %v3903_v30 = vpop.permute.xlu0 %3902  ;;  %5760 = vmatpush3.msra.mxu0 %v4010_v58  ;;  %v3971_v7 = vpop.permute.xlu1 %3970  ;;  %v3570_v58 = vmul.u32 2, %v3564_v61 }
 0xb06   : > { %v3979_v37 = vsel %vm8350_vm9, %v3978_v50, %v3971_v7  ;;  %5761 = vmatprep.subr.mxu0 %v6311_v1  ;;  %v3917_v51 = vsel %vm8356_vm3, %v3916_v41, %v3903_v30  ;;  %v7943_v7 = vadd.s32 1, %v3569_v56 }
 0xb07   : > { %5749 = vmatpush3.msra.mxu1 %v3979_v37  ;;  %v3918_v10 = vsel %vm8354_vm7, %v3917_v51, %v7734_v12  ;;  %v7859_v12 = vadd.s32 1, %v3574_v17  ;;  %v7921_v27 = vadd.s32 1, %v3570_v58 }
 0xb08   : > { %5750 = vmatprep.subr.mxu1 %v6311_v1 }
 0xb09   : > { %v4097_v19 = vpop.permute.xlu0 %4096  ;;  %v3802_v38 = vpop.permute.xlu1 %3801  ;;  %vm8351_vm0 = vcmp.eq.s32.totalorder %v6775_v2, %v7859_v12 }
 0xb0a   : > { %v4111_v16 = vsel %vm8356_vm3, %v4110_v23, %v4097_v19  ;;  %v3883_v43 = vsel %vm8356_vm3, %v3882_v28, %v3802_v38 }
 0xb0b   : > { %v4112_v39 = vsel %vm8354_vm7, %v4111_v16, %v7748_v11  ;;  %v5391_v11 = vld [vmem:[%s8291_s11 + $0x1] sm:$0x1] }
 0xb0d   : > { %v3909_v29 = vpop.permute.xlu0 %3908  ;;  %v4103_v57 = vpop.permute.xlu1 %4102 }
 0xb0e   : > { %v3919_v46 = vsel %vm8352_vm8, %v3918_v10, %v3909_v29  ;;  %v4113_v49 = vsel %vm8352_vm8, %v4112_v39, %v4103_v57 }
 0xb0f   : > { %v3920_v32 = vsel %vm8350_vm9, %v3919_v46, %v7765_v35  ;;  %v4114_v3 = vsel %vm8350_vm9, %v4113_v49, %v7767_v34  ;;  %v3885_v35 = vsel %vm8354_vm7, %v3883_v43, %v7759_v20  ;;  %v7869_v34 = vadd.s32 1, %v3573_v52 }
 0xb10   : > { %5751 = vmatpush3.msra.mxu1 %v3920_v32  ;;  %5762 = vmatpush3.msra.mxu0 %v4114_v3  ;;  %vm8357_vm7 = vcmp.eq.s32.totalorder %v6775_v2, %v7921_v27 }
 0xb11   : > { %v3877_v53 = vpop.permute.xlu0 %3876  ;;  %5763 = vmatprep.subr.mxu0 %v6311_v1  ;;  %v3852_v14 = vpop.permute.xlu1 %3851  ;;  %5752 = vmatprep.subr.mxu1 %v6311_v1  ;;  %vm8353_vm2 = vcmp.eq.s32.totalorder %v6775_v2, %v7869_v34 }
 0xb12   : > { %v3887_v18 = vsel %vm8352_vm8, %v3885_v35, %v3852_v14  ;;  %5764 = vmatpush3.msra.mxu0 %v3920_v32  ;;  %vm8360_vm8 = vcmp.eq.s32.totalorder %v6775_v2, %v7903_v24 }
 0xb13   : > { %5766 = vmatmul.mubr.msk.f32.vlgmr.msra.gmra.mxu0 %vm8356_vm3, %v5391_v11  ;;  %v3889_v20 = vsel %vm8350_vm9, %v3887_v18, %v3877_v53  ;;  %5787 = vmatprep.subr.mxu0 %v6311_v1  ;;  %vm8355_vm9 = vcmp.eq.s32.totalorder %v6775_v2, %v7885_v21 }
 0xb14   : > { %5753 = vmatpush3.msra.mxu1 %v3889_v20  ;;  %5788 = vmatpush3.msk.msra.mxu0 %vm7872_vm10, %v6341_v5 }
 0xb15   : > { %v7895_v22 = vpop.permute.xlu0 %4775  ;;  %5755 = vmatmul.mubr.msk.f32.vlgmr.msra.gmra.mxu1 %vm8356_vm3, %v3555_v54  ;;  %v7898_v44 = vpop.permute.xlu1 %4722  ;;  %5768 = vmatprep.subr.mxu1 %v6311_v1  ;;  %vm8359_vm3 = vcmp.eq.s32.totalorder %v6775_v2, %v7943_v7 }
 0xb16   : > { %5769 = vmatpush3.msk.msra.mxu1 %vm8351_vm0, %v6341_v5  ;;  %5789 = vmatprep.subr.mxu0 %v6311_v1  ;;  %vm7929_vm0 = vcmp.eq.s32.totalorder %v6775_v2, %v3571_v15  ;;  %v4765_v57 = vsel %vm2197_vm13, %v7729_v0, %v7898_v44 }
 0xb17   : > { %5770 = vmatprep.subr.mxu1 %v6311_v1  ;;  %5790 = vmatpush3.msk.msra.mxu0 %vm7891_vm1, %v6341_v5 }
 0xb18   : > { %5771 = vmatpush3.msk.msra.mxu1 %vm8353_vm2, %v6341_v5  ;;  %5791 = vmatprep.subr.mxu0 %v6311_v1  ;;  %vm7951_vm2 = vcmp.eq.s32.totalorder %v6775_v2, %v3570_v58 }
 0xb19   : > { %v7933_v30 = vpop.permute.xlu0 %4910  ;;  %v7935_v50 = vpop.permute.xlu1 %4916  ;;  %5772 = vmatprep.subr.mxu1 %v6311_v1  ;;  %5792 = vmatpush3.msk.msra.mxu0 %vm7911_vm5, %v6341_v5 }
 0xb1a   : > { %5773 = vmatpush3.msk.msra.mxu1 %vm8355_vm9, %v6341_v5  ;;  %5793 = vmatprep.subr.mxu0 %v6311_v1  ;;  %vm7967_vm9 = vcmp.eq.s32.totalorder %v6775_v2, %v3569_v56  ;;  %v3562_v56 = vld [vmem:[#allocation5] sm:$0x1] }
 0xb1b   : > { %5774 = vmatprep.subr.mxu1 %v6311_v1  ;;  %5794 = vmatpush3.msk.msra.mxu0 %vm7929_vm0, %v6341_v5  ;;  %v8451_v36 = vsel %vm7967_vm9, 4294967295, %v8450_v36 }
 0xb1c   : > { %5775 = vmatpush3.msk.msra.mxu1 %vm8360_vm8, %v6341_v5  ;;  %5795 = vmatprep.subr.mxu0 %v6311_v1  ;;  %vm8457_vm8 = vcmask 326656  }
 0xb1d   : > { %v4782_v37 = vpop.permute.xlu0 %4781  ;;  %v4683_v55 = vpop.permute.xlu1 %4682  ;;  %5776 = vmatprep.subr.mxu1 %v6311_v1  ;;  %5796 = vmatpush3.msk.msra.mxu0 %vm7951_vm2, %v6341_v5 }
 0xb1e   : > { %5777 = vmatpush3.msk.msra.mxu1 %vm8357_vm7, %v6341_v5  ;;  %5797 = vmatprep.subr.mxu0 %v6311_v1  ;;  %vm8452_vm7 = vmmov 0  }
 0xb1f   : > { %5778 = vmatprep.subr.mxu1 %v6311_v1  ;;  %5798 = vmatpush3.msk.msra.mxu0 %vm7967_vm9, %v6341_v5 }
 0xb20   : > { %5779 = vmatpush3.msk.msra.mxu1 %vm8359_vm3, %v6341_v5  ;;  %5799 = vmatprep.subr.mxu0 %v6311_v1  ;;  %vm8454_vm3 = vcmask 326656  }
 0xb21   : > { %v4788_v8 = vpop.permute.xlu0 %4787  ;;  %v4729_v41 = vpop.permute.xlu1 %4728  ;;  %5780 = vmatprep.subr.mxu1 %v6311_v1  ;;  %5800 = vmatpush3.msk.msra.mxu0 %vm7167_vm4, %v6341_v5 }
 0xb22   : > { %5781 = vmatpush3.msk.msra.mxu1 %vm8358_vm12, %v6341_v5  ;;  %5784 = vmatprep.mubr.msk.f32.mxu1 %vm8452_vm7, %v6311_v1  ;;  %vm8453_vm12 = vcmask 261120  }
 0xb23   : > { %5782 = vmatprep.subr.mxu1 %v6311_v1  ;;  %5801 = vmatprep.subr.mxu0 %v6311_v1 }
 0xb24   : > { %5783 = vmatpush3.msk.msra.mxu1 %vm6789_vm15, %v6341_v5  ;;  %5802 = vmatpush3.msk.msra.mxu0 %vm6780_vm14, %v6341_v5  ;;  %vm4219_vm15 = vcmask 523264   ;;  %vm8458_vm14 = vcmask 392192  }
 0xb25   : > { %v4689_v19 = vpop.permute.xlu0 %4688  ;;  %v4877_v23 = vpop.permute.xlu1 %4876  ;;  %5806 = vmatprep.subr.mxu1 %v6311_v1  ;;  %5803 = vmatprep.mubr.msk.f32.mxu0 %vm8452_vm7, %v6311_v1 }
 0xb26   : > { %5817 = vmatprep.subr.mxu0 %v6311_v1  ;;  %4368 = vperm.xlu1 %6033, %v3562_v56  }
 0xb29   : > { %v8013_v38 = vpop.permute.xlu0 %4793  ;;  %v4923_v40 = vpop.permute.xlu1 %4922 }
 0xb2d   : > { %v8015_v42 = vpop.permute.xlu0 %4928  ;;  %v4883_v51 = vpop.permute.xlu1 %4882 }
 0xb31   : > { %v4695_v16 = vpop.permute.xlu0 %4694  ;;  %v4735_v17 = vpop.permute.xlu1 %4734 }
 0xb35   : > { %v8017_v59 = vpop.permute.xlu0 %4888  ;;  %v4548_v31 = vpop.permute.xlu1 %4547 }
 0xb39   : > { %v8019_v28 = vpop.permute.xlu0 %4700  ;;  %v8021_v29 = vpop.permute.xlu1 %4762 }
 0xb3d   : > { %v4914_v10 = vpop.permute.xlu0 %4913  ;;  %v4598_v39 = vpop.permute.xlu1 %4597 }
 0xb41   : > { %v4726_v52 = vpop.permute.xlu0 %4725  ;;  %v8026_v43 = vpop.permute.xlu1 %4894 }
 0xb42   : > { %v4766_v46 = vsel %vm2450_vm11, %v4765_v57, %v4726_v52 }
 0xb43   : > { %v4767_v49 = vsel %vm3881_vm6, %v4766_v46, %v4729_v41 }
 0xb45   : > { %v4920_v61 = vpop.permute.xlu0 %4919  ;;  %v4773_v32 = vpop.permute.xlu1 %4772 }
 0xb46   : > { %v4796_v14 = vsel %vm2197_vm13, %v4773_v32, %v7895_v22 }
 0xb49   : > { %v4686_v3 = vpop.permute.xlu0 %4685  ;;  %v4908_v13 = vpop.permute.xlu1 %4907 }
 0xb4a   : > { %v4706_v11 = vsel %vm2197_vm13, %v4683_v55, %v4686_v3  ;;  %v4931_v45 = vsel %vm2197_vm13, %v4908_v13, %v7933_v30 }
 0xb4b   : > { %v4932_v53 = vsel %vm2450_vm11, %v4931_v45, %v4914_v10  ;;  %v4707_v0 = vsel %vm2450_vm11, %v4706_v11, %v4689_v19 }
 0xb4c   : > { %v4933_v35 = vsel %vm3881_vm6, %v4932_v53, %v7935_v50 }
 0xb4d   : > { %v4779_v15 = vpop.permute.xlu1 %4778  ;;  %v4880_v30 = vpop.permute.xlu0 %4879 }
 0xb4e   : > { %v4797_v18 = vsel %vm2450_vm11, %v4796_v14, %v4779_v15  ;;  %v4900_v13 = vsel %vm2197_vm13, %v4877_v23, %v4880_v30 }
 0xb4f   : > { %v4798_v54 = vsel %vm3881_vm6, %v4797_v18, %v4782_v37 }
 0xb51   : > { %v4785_v20 = vpop.permute.xlu1 %4784  ;;  %v4791_v55 = vpop.permute.xlu0 %4790 }
 0xb52   : > { %v4799_v58 = vsel %vm8453_vm12, %v4798_v54, %v4785_v20  ;;  %v4901_v54 = vsel %vm2450_vm11, %v4900_v13, %v4883_v51 }
 0xb53   : > { %v4800_v44 = vsel %vm8454_vm3, %v4799_v58, %v4788_v8  ;;  %vm8455_vm3 = vmmov %vm8453_vm12 }
 0xb54   : > { %v4934_v8 = vsel %vm8455_vm3, %v4933_v35, %v4920_v61  ;;  %vm8456_vm12 = vmmov %vm8455_vm3 }
 0xb55   : > { %v4732_v41 = vpop.permute.xlu1 %4731  ;;  %v4926_v19 = vpop.permute.xlu0 %4925  ;;  %v4935_v18 = vsel %vm8457_vm8, %v4934_v8, %v4923_v40  ;;  %vm8460_vm3 = vmmov %vm8457_vm8 }
 0xb56   : > { %v4768_v45 = vsel %vm8456_vm12, %v4767_v49, %v4732_v41  ;;  %vm8462_vm9 = vmmov %vm8456_vm12 }
 0xb57   : > { %v4769_v49 = vsel %vm8460_vm3, %v4768_v45, %v4735_v17  ;;  %vm8463_vm8 = vmmov %vm8460_vm3 }
 0xb59   : > { %v4523_v50 = vpop.permute.xlu1 %4522  ;;  %v4692_v10 = vpop.permute.xlu0 %4691 }
 0xb5a   : > { %v4675_v37 = vsel %vm2197_vm13, %v7640_v33, %v4523_v50  ;;  %v4708_v14 = vsel %vm3881_vm6, %v4707_v0, %v4692_v10  ;;  %v4801_v33 = vsel %vm8458_vm14, %v4800_v44, %v4791_v55  ;;  %vm8459_vm13 = vmmov %vm8458_vm14 }
 0xb5b   : > { %v4676_v53 = vsel %vm2450_vm11, %v4675_v37, %v4548_v31  ;;  %v4936_v23 = vsel %vm8459_vm13, %v4935_v18, %v4926_v19  ;;  %v4709_v31 = vsel %vm8456_vm12, %v4708_v14, %v4695_v16  ;;  %vm8461_vm4 = vmmov %vm8459_vm13  ;;  %vm8464_vm11 = vcmask 457728  }
 0xb5c   : > { %v4802_v44 = vsel %vm8464_vm11, %v4801_v33, %v8013_v38  ;;  %vm8465_vm14 = vmmov %vm8462_vm9 }
 0xb5d   : > { %v4886_v57 = vpop.permute.xlu1 %4885  ;;  %v4698_v22 = vpop.permute.xlu0 %4697 }
 0xb5e   : > { %v4902_v61 = vsel %vm3881_vm6, %v4901_v54, %v4886_v57  ;;  %v4710_v40 = vsel %vm8463_vm8, %v4709_v31, %v4698_v22 }
 0xb5f   : > { %v4903_v56 = vsel %vm8465_vm14, %v4902_v61, %v8017_v59 }
 0xb61   : > { %v4738_v52 = vpop.permute.xlu1 %4737  ;;  %v4892_v46 = vpop.permute.xlu0 %4891 }
 0xb62   : > { %v4770_v0 = vsel %vm8461_vm4, %v4769_v49, %v4738_v52  ;;  %vm8467_vm4 = vmmov %vm8460_vm3 }
 0xb65   : > { %v4573_v32 = vpop.permute.xlu1 %4572  ;;  %v4623_v3 = vpop.permute.xlu0 %4622 }
 0xb66   : > { %v4677_v15 = vsel %vm3881_vm6, %v4676_v53, %v4573_v32  ;;  %vm8466_vm6 = vmmov %vm8464_vm11 }
 0xb67   : > { %v4678_v35 = vsel %vm8462_vm9, %v4677_v15, %v4598_v39  ;;  %v4937_v16 = vsel %vm8466_vm6, %v4936_v23, %v8015_v42  ;;  %v4904_v39 = vsel %vm8467_vm4, %v4903_v56, %v4892_v46  ;;  %vm8468_vm9 = vmmov %vm8460_vm3  ;;  %vm8470_vm3 = vcmask 392192  }
 0xb68   : > { %v4679_v55 = vsel %vm8468_vm9, %v4678_v35, %v4623_v3  ;;  %vm8469_vm13 = vmmov %vm8466_vm6  ;;  %v4711_v59 = vsel %vm8470_vm3, %v4710_v40, %v8019_v28  ;;  %v5392_v28 = vld [vmem:[%s8291_s11 + $0x2] sm:$0x1]  ;;  %vm8475_vm4 = vcmask 261120  }
 0xb69   : > { %v4704_v11 = vpop.permute.xlu1 %4703  ;;  %v4898_v20 = vpop.permute.xlu0 %4897  ;;  %v4771_v38 = vsel %vm8469_vm13, %v4770_v0, %v8021_v29  ;;  %vm8471_vm12 = vmmov %vm8470_vm3  ;;  %vm8477_vm13 = vcmp.eq.s32.totalorder %v6775_v2, %v7859_v12 }
 0xb6a   : > { %vm8472_vm8 = vmmov %vm8466_vm6 }
 0xb6b   : > { %v4712_v50 = vsel %vm8472_vm8, %v4711_v59, %v4704_v11  ;;  %vm8473_vm11 = vmmov %vm8470_vm3  ;;  %vm8482_vm3 = vnez %v8451_v36  ;;  %vm8485_vm8 = vcmp.eq.s32.totalorder %v6775_v2, %v7161_v62 }
 0xb6c   : > { %v4905_v10 = vsel %vm8473_vm11, %v4904_v39, %v8026_v43  ;;  %vm8474_vm14 = vmmov %vm8466_vm6  ;;  %v5393_v43 = vld [vmem:[%s8291_s11 + $0x3] sm:$0x1]  ;;  %vm8486_vm11 = vnez %v8398_v6 }
 0xb6d   : > { %v4648_v51 = vpop.permute.xlu1 %4647  ;;  %v4673_v41 = vpop.permute.xlu0 %4672  ;;  %v4906_v29 = vsel %vm8474_vm14, %v4905_v10, %v4898_v20  ;;  %vm8476_vm9 = vmmov %vm8475_vm4  ;;  %vm8487_vm14 = vnez %v8400_v9 }
 0xb6e   : > { %v4680_v42 = vsel %vm8471_vm12, %v4679_v55, %v4648_v51  ;;  %vm8484_vm12 = vnez %v8402_v4 }
 0xb6f   : > { %v4681_v57 = vsel %vm8466_vm6, %v4680_v42, %v4673_v41 }
 0xba1   : > { %v4369_v4 = vpop.permute.xlu1 %4368 }
 0xbd3   : > { %v4215_v58 = vpop.f32.mrf.mxu0 }
 0xbd4   : > { %5785 = vmatmul.mubr.msk.f32.vlgmr.msra.gmra.mxu1 %vm4219_vm15, %v4215_v58 }
 0xbd5   : > { %5807 = vmatpush3.msra.mxu1 %v4802_v44  ;;  %v4080_v17 = vpop.f32.mrf.mxu1  ;;  %v5767_v30 = vpop.f32.mrf.mxu0  ;;  %5814 = vmatprep.mubr.msk.f32.mxu1 %vm8452_vm7, %v6311_v1 }
 0xbd6   : > { %5808 = vmatprep.subr.mxu1 %v6311_v1  ;;  %5804 = vmatmul.mubr.msk.f32.vlgmr.msra.gmra.mxu0 %vm4219_vm15, %v4080_v17 }
 0xbd7   : > { %5809 = vmatpush3.msra.mxu1 %v4771_v38  ;;  %5818 = vmatpush3.msra.mxu0 %v4937_v16  ;;  %v5756_v19 = vpop.f32.mrf.mxu1 }
 0xbd8   : > { %5810 = vmatprep.subr.mxu1 %v6311_v1  ;;  %5819 = vmatprep.subr.mxu0 %v6311_v1 }
 0xbd9   : > { %5811 = vmatpush3.msra.mxu1 %v4712_v50  ;;  %5820 = vmatpush3.msra.mxu0 %v4802_v44 }
 0xbda   : > { %5812 = vmatprep.subr.mxu1 %v6311_v1  ;;  %5821 = vmatprep.subr.mxu0 %v6311_v1 }
 0xbdb   : > { %5813 = vmatpush3.msra.mxu1 %v4681_v57  ;;  %5822 = vmatpush3.msra.mxu0 %v4906_v29 }
 0xbdc   : > { %5815 = vmatmul.mubr.msk.f32.vlgmr.msra.gmra.mxu1 %vm8475_vm4, %v5392_v28  ;;  %5823 = vmatprep.subr.mxu0 %v6311_v1 }
 0xbdd   : > { %5824 = vmatpush3.msra.mxu0 %v4712_v50  ;;  %5825 = vmatprep.mubr.msk.f32.mxu0 %vm8452_vm7, %v6311_v1 }
 0xbde   : > { %5826 = vmatmul.mubr.msk.f32.vlgmr.msra.gmra.mxu0 %vm8476_vm9, %v5393_v43  ;;  %5847 = vmatprep.subr.mxu0 %v6311_v1 }
 0xbdf   : > { %5848 = vmatpush3.msk.msra.mxu0 %vm7872_vm10, %v6341_v5  ;;  %5828 = vmatprep.subr.mxu1 %v6311_v1  ;;  %vm8478_vm10 = vcmp.eq.s32.totalorder %v6775_v2, %v7869_v34 }
 0xbe0   : > { %5849 = vmatprep.subr.mxu0 %v6311_v1  ;;  %5829 = vmatpush3.msk.msra.mxu1 %vm8477_vm13, %v6341_v5 }
 0xbe1   : > { %5850 = vmatpush3.msk.msra.mxu0 %vm7891_vm1, %v6341_v5  ;;  %5830 = vmatprep.subr.mxu1 %v6311_v1  ;;  %vm8479_vm1 = vcmp.eq.s32.totalorder %v6775_v2, %v7885_v21 }
 0xbe2   : > { %5851 = vmatprep.subr.mxu0 %v6311_v1  ;;  %5831 = vmatpush3.msk.msra.mxu1 %vm8478_vm10, %v6341_v5 }
 0xbe3   : > { %5852 = vmatpush3.msk.msra.mxu0 %vm7911_vm5, %v6341_v5  ;;  %5832 = vmatprep.subr.mxu1 %v6311_v1  ;;  %vm8480_vm5 = vcmp.eq.s32.totalorder %v6775_v2, %v7903_v24 }
 0xbe4   : > { %5853 = vmatprep.subr.mxu0 %v6311_v1  ;;  %5833 = vmatpush3.msk.msra.mxu1 %vm8479_vm1, %v6341_v5 }
 0xbe5   : > { %5854 = vmatpush3.msk.msra.mxu0 %vm7929_vm0, %v6341_v5  ;;  %5834 = vmatprep.subr.mxu1 %v6311_v1  ;;  %vm8481_vm0 = vcmp.eq.s32.totalorder %v6775_v2, %v7921_v27 }
 0xbe6   : > { %5855 = vmatprep.subr.mxu0 %v6311_v1  ;;  %5835 = vmatpush3.msk.msra.mxu1 %vm8480_vm5, %v6341_v5 }
 0xbe7   : > { %5856 = vmatpush3.msk.msra.mxu0 %vm7951_vm2, %v6341_v5  ;;  %5836 = vmatprep.subr.mxu1 %v6311_v1  ;;  %vm8483_vm2 = vcmp.eq.s32.totalorder %v6775_v2, %v7943_v7  ;;  %v4374_v2 = vrot.slane %v4369_v4, %v6871_v48 }
 0xbe8   : > { %5857 = vmatprep.subr.mxu0 %v6311_v1  ;;  %5837 = vmatpush3.msk.msra.mxu1 %vm8481_vm0, %v6341_v5 }
 0xbe9   : > { %5858 = vmatpush3.msk.msra.mxu0 %vm8482_vm3, %v6341_v5  ;;  %5838 = vmatprep.subr.mxu1 %v6311_v1 }
 0xbea   : > { %5859 = vmatprep.subr.mxu0 %v6311_v1  ;;  %5839 = vmatpush3.msk.msra.mxu1 %vm8483_vm2, %v6341_v5 }
 0xbeb   : > { %5860 = vmatpush3.msk.msra.mxu0 %vm8484_vm12, %v6341_v5  ;;  %5840 = vmatprep.subr.mxu1 %v6311_v1 }
 0xbec   : > { %5861 = vmatprep.subr.mxu0 %v6311_v1  ;;  %5841 = vmatpush3.msk.msra.mxu1 %vm8485_vm8, %v6341_v5 }
 0xbed   : > { %5862 = vmatpush3.msk.msra.mxu0 %vm8486_vm11, %v6341_v5  ;;  %5863 = vmatprep.mubr.msk.f32.mxu0 %vm8452_vm7, %v6311_v1 }
 0xbee   : > { %5842 = vmatprep.subr.mxu1 %v6311_v1  ;;  %5844 = vmatprep.mubr.msk.f32.mxu1 %vm8452_vm7, %v6311_v1  ;;  %vm4382_vm7 = vcmask 122880  }
 0xbef   : > { %5843 = vmatpush3.msk.msra.mxu1 %vm8487_vm14, %v6341_v5 }
 0xc94   : > { %v4289_v12 = vpop.f32.mrf.mxu1 }
 0xc96   : > { %v5786_v62 = vpop.f32.mrf.mxu1  ;;  %v4362_v34 = vpop.f32.mrf.mxu0 }
 0xc97   : > { %v4363_v6 = vadd.f32 %v4362_v34, %v4289_v12 }
 0xc98   : > { %v5805_v63 = vpop.f32.mrf.mxu0 }
 0xc99   : > { %v4375_v21 = vadd.f32 %v4374_v2, %v4363_v6 }
 0xc9b   : > { %v4376_v47 = vsub.f32 0.0, %v4375_v21 }
 0xc9c   : > { %v4872_v24 = vpop.f32.mrf.mxu1 }
 0xc9d   : > { %v4377_v25 = vmul.f32 1.442695, %v4376_v47  ;;  %5864 = vmatmul.mubr.msk.f32.vlgmr.msra.gmra.mxu0 %vm4219_vm15, %v4872_v24 }
 0xc9e   : > { %v5816_v1 = vpop.f32.mrf.mxu1  ;;  %v5007_v27 = vpop.f32.mrf.mxu0 }
 0xc9f   : > { %6034 = vpow2.f32 %v4377_v25  ;;  %5845 = vmatmul.mubr.msk.f32.vlgmr.msra.gmra.mxu1 %vm4219_vm15, %v5007_v27 }
 0xca0   : > { %v5827_v9 = vpop.f32.mrf.mxu0 }
 0xcac   : > { %v6035_v5 = vpop.eup %6034 }
 0xcad   : > { %v4379_v48 = vadd.f32 1.0, %v6035_v5 }
 0xcaf   : > { %6036 = vrcp.f32 %v4379_v48 }
 0xcbc   : > { %v6037_v60 = vpop.eup %6036 }
 0xcbd   : > { %4389 = vrot.lane.b32.xlu1 %v6037_v60, %s6360_s14  ;;  %4385 = vrot.lane.b32.xlu0 %v6037_v60, %s6361_s16  ;;  %4383 = vst.msk [vmem:[%s8182_s18] sm:$0x1] %vm4382_vm7, %v6037_v60 }
 0xcc1   : > { %4397 = vrot.lane.b32.xlu1 %v6037_v60, %s6362_s1  ;;  %4393 = vrot.lane.b32.xlu0 %v6037_v60, %s6363_s5 }
 0xcc5   : > { %4405 = vrot.lane.b32.xlu1 %v6037_v60, %s8415_s22  ;;  %4401 = vrot.lane.b32.xlu0 %v6037_v60, %s8439_s25 }
 0xcc9   : > { %4409 = vrot.lane.b32.xlu0 %v6037_v60, %s8413_s15 }
 0xd2f   : > { %v4390_v7 = vpop.permute.xlu1 %4389  ;;  %v4386_v26 = vpop.permute.xlu0 %4385 }
 0xd30   : > { %4392 = vst.msk [vmem:[%s8182_s18 + $0x4] sm:$0x1] %vm4382_vm7, %v4390_v7  ;;  %4388 = vst.msk [vmem:[%s8182_s18 + $0x2] sm:$0x1] %vm4382_vm7, %v4386_v26 }
 0xd33   : > { %v4398_v36 = vpop.permute.xlu1 %4397  ;;  %v4394_v22 = vpop.permute.xlu0 %4393 }
 0xd34   : > { %4400 = vst.msk [vmem:[%s8182_s18 + $0x8] sm:$0x1] %vm4382_vm7, %v4398_v36  ;;  %4396 = vst.msk [vmem:[%s8182_s18 + $0x6] sm:$0x1] %vm4382_vm7, %v4394_v22 }
 0xd37   : > { %v4406_v52 = vpop.permute.xlu1 %4405  ;;  %v4402_v46 = vpop.permute.xlu0 %4401 }
 0xd38   : > { %4408 = vst.msk [vmem:[%s8182_s18 + $0xc] sm:$0x1] %vm4382_vm7, %v4406_v52  ;;  %4404 = vst.msk [vmem:[%s8182_s18 + $0xa] sm:$0x1] %vm4382_vm7, %v4402_v46 }
 0xd3b   : > { %v4410_v32 = vpop.permute.xlu0 %4409 }
 0xd3c   : > { %4412 = vst.msk [vmem:[%s8182_s18 + $0xe] sm:$0x1] %vm4382_vm7, %v4410_v32 }
 0xd5d   : > { %v5153_v3 = vpop.f32.mrf.mxu0 }
 0xd5f   : > { %v5080_v37 = vpop.f32.mrf.mxu1  ;;  %v5865_v13 = vpop.f32.mrf.mxu0 }
 0xd60   : > { %v5154_v8 = vadd.f32 %v5153_v3, %v5080_v37 }
 0xd61   : > { %v5846_v11 = vpop.f32.mrf.mxu1 }
 0xd62   : > { %v5157_v45 = vadd.f32 %v5154_v8, %v4374_v2 }
 0xd64   : > { %v5158_v53 = vsub.f32 0.0, %v5157_v45 }
 0xd66   : > { %v5159_v14 = vmul.f32 1.442695, %v5158_v53 }
 0xd68   : > { %6038 = vpow2.f32 %v5159_v14 }
 0xd75   : > { %v6039_v15 = vpop.eup %6038 }
 0xd76   : > { %v5161_v18 = vadd.f32 1.0, %v6039_v15 }
 0xd78   : > { %6040 = vrcp.f32 %v5161_v18 }
 0xd85   : > { %v6041_v54 = vpop.eup %6040 }
 0xd86   : > { %5164 = vst.msk [vmem:[%s8182_s18 + $0x1] sm:$0x1] %vm4382_vm7, %v6041_v54  ;;  %5170 = vrot.lane.b32.xlu0 %v6041_v54, %s6360_s14  ;;  %5166 = vrot.lane.b32.xlu1 %v6041_v54, %s6361_s16 }
 0xd8a   : > { %5178 = vrot.lane.b32.xlu0 %v6041_v54, %s6362_s1  ;;  %5174 = vrot.lane.b32.xlu1 %v6041_v54, %s6363_s5 }
 0xd8e   : > { %5186 = vrot.lane.b32.xlu0 %v6041_v54, %s8415_s22  ;;  %5182 = vrot.lane.b32.xlu1 %v6041_v54, %s8439_s25  ;;  %s5451_s22 = sshll.u32 %s6460_s12, 8  ;;  %s5208_s25 = sshll.u32 %s8182_s18, 4  ;;  %s8233_s25 = int_to_ptr.vmem [resolvable:$true] %s5208_s25 }
 0xd8f   : > { %s8231_s3 = scalar_lea.hbm %s8293_s13, %s5451_s22  ;;  %s8239_s12 = scalar_lea.sflag [#allocation8], %s525_s24 }
 0xd90   : > { %s6224_s4 = scalar_lea.vmem %s8233_s25, 256  ;;  %p6231_p1 = scmp.lt.s32.totalorder %s8233_s25, %s6229_s17 }
 0xd91   : > { %p6225_p9 = scmp.ne.s32.totalorder %s8233_s25, %s6224_s4  ;;  %p6232_p13 = scmp.lt.s32.totalorder %s6230_s29, %s6224_s4 }
 0xd92   : > { %5190 = vrot.lane.b32.xlu1 %v6041_v54, %s8413_s15 }
 0xd93   : > { %p6226_p11 = pnand %p6225_p9, %p8488_p8  ;;  %p6233_p3 = por %p6232_p13, %p6231_p1 }
 0xd95   : > { %p6227_p0 = pneg %p6226_p11 }
 0xd97   : > { %p6234_p5 = pnand %p6233_p3, %p6227_p0 }
 0xdf8   : > { %v5171_v20 = vpop.permute.xlu0 %5170  ;;  %v5167_v33 = vpop.permute.xlu1 %5166 }
 0xdf9   : > { %5173 = vst.msk [vmem:[%s8182_s18 + $0x5] sm:$0x1] %vm4382_vm7, %v5171_v20  ;;  %5169 = vst.msk [vmem:[%s8182_s18 + $0x3] sm:$0x1] %vm4382_vm7, %v5167_v33 }
 0xdfc   : > { %v5179_v23 = vpop.permute.xlu0 %5178  ;;  %v5175_v61 = vpop.permute.xlu1 %5174 }
 0xdfd   : > { %5181 = vst.msk [vmem:[%s8182_s18 + $0x9] sm:$0x1] %vm4382_vm7, %v5179_v23  ;;  %5177 = vst.msk [vmem:[%s8182_s18 + $0x7] sm:$0x1] %vm4382_vm7, %v5175_v61 }
 0xe00   : > { %v5187_v49 = vpop.permute.xlu0 %5186  ;;  %v5183_v31 = vpop.permute.xlu1 %5182 }
 0xe01   : > { %5189 = vst.msk [vmem:[%s8182_s18 + $0xd] sm:$0x1] %vm4382_vm7, %v5187_v49  ;;  %5185 = vst.msk [vmem:[%s8182_s18 + $0xb] sm:$0x1] %vm4382_vm7, %v5183_v31 }
 0xe04   : > { %v5191_v0 = vpop.permute.xlu1 %5190 }
 0xe05   : > { %5193 = vst.msk [vmem:[%s8182_s18 + $0xf] sm:$0x1] %vm4382_vm7, %v5191_v0 }
 0xe06   : > { %6237 = shalt.err (!%p6234_p5)
}
 0xe07   : > { %s6238_s23 = scalar_lea.hbm %s8231_s3, 256  ;;  %s6242_s26 = scalar_lea.hbm %s8293_s13, 512 }
 0xe08   : > { %p6239_p6 = scmp.ne.s32.totalorder %s8231_s3, %s6238_s23  ;;  %p6243_p2 = scmp.lt.s32.totalorder %s8231_s3, %s8293_s13 }
 0xe09   : > { %p6244_p4 = scmp.lt.s32.totalorder %s6242_s26, %s6238_s23 }
 0xe0a   : > { %p6240_p10 = pnand %p6239_p6, %p8488_p8 }
 0xe0b   : > { %p6245_p7 = por %p6244_p4, %p6243_p2 }
 0xe0c   : > { %p6241_p12 = pneg %p6240_p10 }
 0xe0e   : > { %p6246_p9 = pnand %p6245_p7, %p6241_p12 }
 0xe10   : > { %6249 = shalt.err (!%p6246_p9)
}
 0xe11   : > { %s6365_s18 = smov 128  }
 0xe12   : > { %5894 = dma.vmem_to_hbm [thread:$0]  (%p8488_p8), %s8233_s25, 256, %s8231_s3, %s8239_s12, %s6365_s18, %s6365_s18, %s8437_s2  }
 0xe13 PF: > { %p5936_p11 = scmp.ge.s32.totalorder %s6300_s30, 2  ;;  %s5223_s1 = sand.u32 1, %s6288_s27  }
 0xe14   : > { %p8489_p0 = scmp.ne.s32.totalorder %s8376_s20, 0  ;;  %s5224_s5 = scalar_lea.sflag [#allocation8], %s5223_s1 }
 0xe16   : > { %p5919_p1 = pnand %p5936_p11, %p8489_p0 }
 0xe18   : > { %p5920_p13 = pneg %p5919_p1 }
 0xe1a   : > { %6283 = dma.done.wait (%p5920_p13), %s5224_s5, 256  }
 0xe1b   : > { %6285 = vsyncadd (%p5920_p13), %s5224_s5, 4294967040  ;;  %s8490_s30 = sld [smem:[#allocation25_spill]]  ;;  %s8493_s27 = smov %s6292_s28 }
 0xe1c   : > { %s8491_s19 = sld [smem:[#allocation24_spill]] }
 0xe1d   : > { %s8492_s29 = sld [smem:[#allocation26_spill]] }
 0xe21   : > { %p29_p3 = scmp.ge.s32.totalorder %s8490_s30, 4  }
 0xe22   : > { %s8494_s28 = smov %s8491_s19 }
 0xe23   :  { %31 = sbr.rel (!%p29_p3) target bundleno = 15 (0xf), region = 152 }
 0xe28   :  { %5229 = vsyncpa [#allocation7], 1 }
 0xe29   :  { %5231 = vsyncpa [#allocation7 + $0x1], 1 }
 0xe2a   :  { %5232 = vsyncpa [#allocation10], 1 }
 0xe2b   :  { %5233 = vsyncpa [#allocation13], 1 }
 0xe2c   :  { %5234 = vsyncpa [#allocation16], 1 }
 0xe2d   :  { %5235 = vsyncpa [#allocation8], 1 }
 0xe2e   :  { %5237 = vsyncpa [#allocation8 + $0x1], 1 }

</bundles_post_ra>
